<compile_context>
chip_gen: v6e
topology: v6e:2x2x1
jax: 0.10.0
libtpu: 0.0.40
codegen_flags: <defaults>
</compile_context>

<pallas_src>
import math

import jax
import jax.numpy as jnp
from jax.experimental import pallas as pl
from jax.experimental.pallas import tpu as pltpu


# ---------------------------------------------------------------------------
# Kernel A: fused TemporalConvNet (temporal1), per-batch block, time-major layout
# ---------------------------------------------------------------------------
def _tcn_kernel(x_ref, xs1_ref, xs2_ref, xs3_ref, m2_ref,
                w10_ref, w11_ref, b1_ref, w20_ref, w21_ref, b2_ref,
                wd_ref, bd_ref, o_ref):
    dot = lambda a, b: jnp.dot(a, b, preferred_element_type=jnp.float32)
    x = x_ref[0]          # (T, N*Fin)
    xs1 = xs1_ref[0]      # x shifted by 1 (zero-filled)  == Conv pad + Chomp1d
    xs2 = xs2_ref[0]      # x shifted by 2
    xs3 = xs3_ref[0]      # x shifted by 3
    w10, w11 = w10_ref[...], w11_ref[...]

    # layer 1 (dilation 1): tap on x[t] and x[t-1], bias, ReLU
    h1 = jnp.maximum(dot(x, w11) + dot(xs1, w10) + b1_ref[...], 0.0)       # (T, N*C1)
    # shift2(h1) (the Chomp1d-ed input of the dilation-2 layer) recomputed from the
    # pre-shifted inputs; the mask zeroes the relu(b1) leak at t < 2.
    h1s = m2_ref[...] * jnp.maximum(dot(xs2, w11) + dot(xs3, w10) + b1_ref[...], 0.0)
    # layer 2 (dilation 2) + ReLU, then 1x1 downsample residual + outer ReLU
    h2 = jnp.maximum(dot(h1, w21_ref[...]) + dot(h1s, w20_ref[...]) + b2_ref[...], 0.0)
    ds = dot(x, wd_ref[...]) + bd_ref[...]
    o_ref[...] = jnp.maximum(h2 + ds, 0.0)                                 # (T, N*C2)


# ---------------------------------------------------------------------------
# Kernel B: fused graph aggregation + ODE Euler step + ReLU + BatchNorm2d(num_nodes)
# ---------------------------------------------------------------------------
def _graph_ode_bn_kernel(t1_ref, r_ref, w2t_ref, p_ref, g_ref, b_ref, o_ref):
    dot = lambda a, b: jnp.dot(a, b, preferred_element_type=jnp.float32)
    t1 = t1_ref[...]                                       # (T, B*N*C2)
    # z = relu(t1 + 6*f):  r_ref folds gate*A_hat, the C2xC2 feature mix and -2x;
    # w2t_ref is 6 * w2^T (temporal mix, batched over all (b, n) columns at once).
    z = jnp.maximum(dot(t1, r_ref[...]) + dot(w2t_ref[...], t1), 0.0)
    # temporal2 collapses to ReLU -> identity on the non-negative z.
    # BatchNorm over the node channel: stats pooled per node over (B, T, C2) via the
    # precomputed projector P (column -> node-mean scatter, includes the 1/count).
    colsum = jnp.sum(z, axis=0, keepdims=True)             # (1, B*N*C2)
    mean_c = dot(colsum, p_ref[...])
    diff = z - mean_c
    var_c = dot(jnp.sum(diff * diff, axis=0, keepdims=True), p_ref[...])
    o_ref[...] = diff * jax.lax.rsqrt(var_c + 1e-5) * g_ref[...] + b_ref[...]


# ---------------------------------------------------------------------------
# Wrapper (plain-JAX glue: tiny layout prep + parameter folding)
# ---------------------------------------------------------------------------
def stgcn_block_forward(X, p):
    B, N, T, Fin = X.shape
    C1 = p["conv1_w"].shape[0]
    C2 = p["conv2_w"].shape[0]
    NF, NC1, NC2 = N * Fin, N * C1, N * C2
    K = B * NC2
    f32 = jnp.float32

    # ---- time-major layout: (B, T, N*Fin); the input is tiny (~B*N*T*Fin*4 bytes) ----
    Xb = jnp.transpose(X, (0, 2, 1, 3)).reshape(B, T, NF)

    def shift_t(a, d):  # causal zero-filled shift along time (Conv pad + Chomp1d)
        return jnp.pad(a, ((0, 0), (d, 0), (0, 0)))[:, :T, :]

    Xs1, Xs2, Xs3 = shift_t(Xb, 1), shift_t(Xb, 2), shift_t(Xb, 3)
    mask2 = (jnp.arange(T) >= 2).astype(f32).reshape(T, 1)

    # Block-diagonal (per-node) conv weights so the whole batch of nodes is one
    # lane-dense matmul.  Tap 0 acts on x[t - dilation], tap 1 on x[t].
    eyeN = jnp.eye(N, dtype=f32)
    W10 = jnp.kron(eyeN, p["conv1_w"][:, :, 0].T)          # (N*Fin, N*C1)
    W11 = jnp.kron(eyeN, p["conv1_w"][:, :, 1].T)
    Bc1 = jnp.tile(p["conv1_b"], N).reshape(1, NC1)
    W20 = jnp.kron(eyeN, p["conv2_w"][:, :, 0].T)          # (N*C1, N*C2)
    W21 = jnp.kron(eyeN, p["conv2_w"][:, :, 1].T)
    Bc2 = jnp.tile(p["conv2_b"], N).reshape(1, NC2)
    Wd = jnp.kron(eyeN, p["down_w"].T)                     # (N*Fin, N*C2)
    Bcd = jnp.tile(p["down_b"], N).reshape(1, NC2)

    # ---- kernel A: fused TemporalConvNet, grid over batch ("parallel" for v7x) ----
    t1 = pl.pallas_call(
        _tcn_kernel,
        out_shape=jax.ShapeDtypeStruct((T, K), f32),
        grid=(B,),
        in_specs=[pl.BlockSpec((1, T, NF), lambda b: (b, 0, 0))] * 4 + [
            pl.BlockSpec((T, 1), lambda b: (0, 0)),
            pl.BlockSpec((NF, NC1), lambda b: (0, 0)),
            pl.BlockSpec((NF, NC1), lambda b: (0, 0)),
            pl.BlockSpec((1, NC1), lambda b: (0, 0)),
            pl.BlockSpec((NC1, NC2), lambda b: (0, 0)),
            pl.BlockSpec((NC1, NC2), lambda b: (0, 0)),
            pl.BlockSpec((1, NC2), lambda b: (0, 0)),
            pl.BlockSpec((NF, NC2), lambda b: (0, 0)),
            pl.BlockSpec((1, NC2), lambda b: (0, 0)),
        ],
        out_specs=pl.BlockSpec((T, NC2), lambda b: (0, b)),
        compiler_params=pltpu.CompilerParams(dimension_semantics=("parallel",)),
    )(Xb, Xs1, Xs2, Xs3, mask2, W10, W11, Bc1, W20, W21, Bc2, Wd, Bcd)

    # ---- ODE / graph / BN parameter folding (all tiny, plain JAX) ----
    d = jnp.clip(p["ode_d"], 0.0, 1.0)
    w_mat = jnp.dot(p["ode_w"] * d, p["ode_w"].T)          # (C2, C2)
    d2 = jnp.clip(p["ode_d2"], 0.0, 1.0)
    w2_mat = jnp.dot(p["ode_w2"] * d2, p["ode_w2"].T)      # (T, T)
    gate = jax.nn.sigmoid(p["alpha"]) * 0.5                # (N,)
    G = p["A_hat"].T * gate[None, :]                       # G[j,i] = A_hat[i,j]*gate[i]
    # z = relu(t1 + 6*(gate*A_hat-mix + feat-mix + temporal-mix - 2*t1))
    #   = relu(t1 @ Rfull + (6*w2^T) @ t1)   in the (T, B*N*C2) layout.
    R128 = (6.0 * (jnp.kron(G, jnp.eye(C2, dtype=f32)) + jnp.kron(eyeN, w_mat))
            - 11.0 * jnp.eye(NC2, dtype=f32))
    Rfull = jnp.kron(jnp.eye(B, dtype=f32), R128)          # (K, K)
    W2T6 = 6.0 * w2_mat.T                                  # (T, T)
    col_node = (jnp.arange(K) // C2) % N                   # node id of each column
    P = (col_node[:, None] == col_node[None, :]).astype(f32) / float(B * T * C2)
    g_col = p["bn_gamma"][col_node].reshape(1, K)
    b_col = p["bn_beta"][col_node].reshape(1, K)

    # ---- kernel B: graph+ODE+ReLU+BN fused; grid=(1,) because BN is a global
    #      per-node reduction over (B, T, C2) ----
    out_flat = pl.pallas_call(
        _graph_ode_bn_kernel,
        out_shape=jax.ShapeDtypeStruct((T, K), f32),
        grid=(1,),
        in_specs=[pl.BlockSpec((T, K), lambda i: (0, 0)),
                  pl.BlockSpec((K, K), lambda i: (0, 0)),
                  pl.BlockSpec((T, T), lambda i: (0, 0)),
                  pl.BlockSpec((K, K), lambda i: (0, 0)),
                  pl.BlockSpec((1, K), lambda i: (0, 0)),
                  pl.BlockSpec((1, K), lambda i: (0, 0))],
        out_specs=pl.BlockSpec((T, K), lambda i: (0, 0)),
        compiler_params=pltpu.CompilerParams(dimension_semantics=("arbitrary",)),
    )(t1, Rfull, W2T6, P, g_col, b_col)

    # (T, B, N, C2) -> (B, N, T, C2)
    return jnp.transpose(out_flat.reshape(T, B, N, C2), (1, 2, 0, 3))


# ---------------------------------------------------------------------------
# Pure-JAX reference (mirrors the PyTorch forward) for a sanity check
# ---------------------------------------------------------------------------
def _shift_time4(x, d):
    t = x.shape[2]
    return jnp.pad(x, ((0, 0), (0, 0), (d, 0), (0, 0)))[:, :, :t, :]


def reference_forward(X, p):
    def tap2(x, W, b, dil):
        xs = _shift_time4(x, dil)
        return (jnp.einsum('bntc,oc->bnto', x, W[:, :, 1])
                + jnp.einsum('bntc,oc->bnto', xs, W[:, :, 0]) + b)

    h1 = jax.nn.relu(tap2(X, p["conv1_w"], p["conv1_b"], 1))
    h2 = jax.nn.relu(tap2(h1, p["conv2_w"], p["conv2_b"], 2))
    ds = jnp.einsum('bntc,oc->bnto', X, p["down_w"]) + p["down_b"]
    t1 = jax.nn.relu(h2 + ds)

    alpha = jax.nn.sigmoid(p["alpha"])[None, :, None, None]
    xa = jnp.einsum('ij,bjtc->bitc', p["A_hat"], t1)
    d = jnp.clip(p["ode_d"], 0.0, 1.0)
    w = jnp.dot(p["ode_w"] * d, p["ode_w"].T)
    xw = jnp.einsum('bntc,cm->bntm', t1, w)
    d2 = jnp.clip(p["ode_d2"], 0.0, 1.0)
    w2 = jnp.dot(p["ode_w2"] * d2, p["ode_w2"].T)
    xw2 = jnp.einsum('bntc,tm->bnmc', t1, w2)
    f = alpha / 2.0 * xa - t1 + xw - t1 + xw2 - t1 + t1        # x0 == t1
    z = jax.nn.relu(t1 + 6.0 * f)

    y = jax.nn.relu(z)                                         # temporal2 == ReLU here
    mean = jnp.mean(y, axis=(0, 2, 3), keepdims=True)
    var = jnp.mean((y - mean) ** 2, axis=(0, 2, 3), keepdims=True)
    g = p["bn_gamma"][None, :, None, None]
    b = p["bn_beta"][None, :, None, None]
    return (y - mean) * jax.lax.rsqrt(var + 1e-5) * g + b


# ---------------------------------------------------------------------------
# Main
# ---------------------------------------------------------------------------
if __name__ == "__main__":
    # T must be 365: STGCNBlock hard-codes ODEG temporal_dim = 365.
    B, N, T, Fin = 2, 8, 365, 4
    C1, C2 = 8, 16                              # out_channels = [8, 16]

    key = jax.random.PRNGKey(0)
    ks = jax.random.split(key, 8)

    def ubound(k, shape, fan_in):
        b = 1.0 / math.sqrt(fan_in)
        return jax.random.uniform(k, shape, jnp.float32, minval=-b, maxval=b)

    # Deterministic normalized adjacency A_hat.
    a = (jax.random.uniform(ks[0], (N, N)) < 0.4).astype(jnp.float32)
    a = jnp.maximum(a, a.T) + jnp.eye(N, dtype=jnp.float32)
    deg = jnp.sum(a, axis=1)
    A_hat = a / jnp.sqrt(deg[:, None] * deg[None, :])

    params = {
        # TemporalConvNet (temporal1): weights ~ N(0, 0.01), biases torch-default.
        "conv1_w": 0.01 * jax.random.normal(ks[1], (C1, Fin, 2), jnp.float32),
        "conv1_b": ubound(ks[2], (C1,), Fin * 2),
        "conv2_w": 0.01 * jax.random.normal(ks[3], (C2, C1, 2), jnp.float32),
        "conv2_b": ubound(ks[4], (C2,), C1 * 2),
        "down_w": 0.01 * jax.random.normal(ks[5], (C2, Fin), jnp.float32),
        "down_b": ubound(ks[6], (C2,), Fin),
        "A_hat": A_hat,
        # ODEFunc.__init__ values.
        "alpha": 0.8 * jnp.ones((N,), jnp.float32),
        "ode_w": jnp.eye(C2, dtype=jnp.float32),
        "ode_d": jnp.ones((C2,), jnp.float32),
        "ode_w2": jnp.eye(T, dtype=jnp.float32),
        "ode_d2": jnp.ones((T,), jnp.float32),
        # BatchNorm2d(num_nodes) init.
        "bn_gamma": jnp.ones((N,), jnp.float32),
        "bn_beta": jnp.zeros((N,), jnp.float32),
    }

    X = jax.random.normal(ks[7], (B, N, T, Fin), jnp.float32)

    out = jax.jit(stgcn_block_forward)(X, params)
    out = jax.block_until_ready(out)
    assert out.shape == (B, N, T, C2), out.shape

    ref = reference_forward(X, params)
    err = float(jnp.max(jnp.abs(out - ref)))
    assert err < 1e-2, f"max abs err vs reference: {err}"
    print("KERNEL_OK")
</pallas_src>

<mosaic_0001>
module attributes {stable_mosaic.version = 11 : i64} {
  func.func @_tcn_kernel(%arg0: i32, %arg1: memref<1x365x32xf32, #tpu.memory_space<vmem>>, %arg2: memref<1x365x32xf32, #tpu.memory_space<vmem>>, %arg3: memref<1x365x32xf32, #tpu.memory_space<vmem>>, %arg4: memref<1x365x32xf32, #tpu.memory_space<vmem>>, %arg5: memref<365x1xf32, #tpu.memory_space<vmem>>, %arg6: memref<32x64xf32, #tpu.memory_space<vmem>>, %arg7: memref<32x64xf32, #tpu.memory_space<vmem>>, %arg8: memref<1x64xf32, #tpu.memory_space<vmem>>, %arg9: memref<64x128xf32, #tpu.memory_space<vmem>>, %arg10: memref<64x128xf32, #tpu.memory_space<vmem>>, %arg11: memref<1x128xf32, #tpu.memory_space<vmem>>, %arg12: memref<32x128xf32, #tpu.memory_space<vmem>>, %arg13: memref<1x128xf32, #tpu.memory_space<vmem>>, %arg14: memref<365x128xf32, #tpu.memory_space<vmem>>) attributes {dimension_semantics = [#tpu.dimension_semantics<parallel>], iteration_bounds = array<i64: 2>, scalar_prefetch = 0 : i64, scratch_operands = 0 : i64, tpu.core_type = #tpu.core_type<tc>, window_params = [{transform_indices = @transform_0, window_bounds = array<i64: 1, 365, 32>}, {transform_indices = @transform_1, window_bounds = array<i64: 1, 365, 32>}, {transform_indices = @transform_2, window_bounds = array<i64: 1, 365, 32>}, {transform_indices = @transform_3, window_bounds = array<i64: 1, 365, 32>}, {pipeline_mode = #tpu.pipeline_mode<synchronous>, transform_indices = @transform_4, window_bounds = array<i64: 365, 1>}, {pipeline_mode = #tpu.pipeline_mode<synchronous>, transform_indices = @transform_5, window_bounds = array<i64: 32, 64>}, {pipeline_mode = #tpu.pipeline_mode<synchronous>, transform_indices = @transform_6, window_bounds = array<i64: 32, 64>}, {pipeline_mode = #tpu.pipeline_mode<synchronous>, transform_indices = @transform_7, window_bounds = array<i64: 1, 64>}, {pipeline_mode = #tpu.pipeline_mode<synchronous>, transform_indices = @transform_8, window_bounds = array<i64: 64, 128>}, {pipeline_mode = #tpu.pipeline_mode<synchronous>, transform_indices = @transform_9, window_bounds = array<i64: 64, 128>}, {pipeline_mode = #tpu.pipeline_mode<synchronous>, transform_indices = @transform_10, window_bounds = array<i64: 1, 128>}, {pipeline_mode = #tpu.pipeline_mode<synchronous>, transform_indices = @transform_11, window_bounds = array<i64: 32, 128>}, {pipeline_mode = #tpu.pipeline_mode<synchronous>, transform_indices = @transform_12, window_bounds = array<i64: 1, 128>}, {transform_indices = @transform_13, window_bounds = array<i64: 365, 128>}]} {
    %c0 = arith.constant 0 : index
    %c0_0 = arith.constant 0 : index
    %c0_1 = arith.constant 0 : index
    %0 = vector.load %arg1[%c0, %c0_0, %c0_1] : memref<1x365x32xf32, #tpu.memory_space<vmem>>, vector<1x365x32xf32>
    %1 = vector.shape_cast %0 : vector<1x365x32xf32> to vector<365x32xf32>
    %c0_2 = arith.constant 0 : index
    %c0_3 = arith.constant 0 : index
    %c0_4 = arith.constant 0 : index
    %2 = vector.load %arg2[%c0_2, %c0_3, %c0_4] : memref<1x365x32xf32, #tpu.memory_space<vmem>>, vector<1x365x32xf32>
    %3 = vector.shape_cast %2 : vector<1x365x32xf32> to vector<365x32xf32>
    %c0_5 = arith.constant 0 : index
    %c0_6 = arith.constant 0 : index
    %c0_7 = arith.constant 0 : index
    %4 = vector.load %arg3[%c0_5, %c0_6, %c0_7] : memref<1x365x32xf32, #tpu.memory_space<vmem>>, vector<1x365x32xf32>
    %5 = vector.shape_cast %4 : vector<1x365x32xf32> to vector<365x32xf32>
    %c0_8 = arith.constant 0 : index
    %c0_9 = arith.constant 0 : index
    %c0_10 = arith.constant 0 : index
    %6 = vector.load %arg4[%c0_8, %c0_9, %c0_10] : memref<1x365x32xf32, #tpu.memory_space<vmem>>, vector<1x365x32xf32>
    %7 = vector.shape_cast %6 : vector<1x365x32xf32> to vector<365x32xf32>
    %c0_11 = arith.constant 0 : index
    %c0_12 = arith.constant 0 : index
    %8 = vector.load %arg6[%c0_11, %c0_12] : memref<32x64xf32, #tpu.memory_space<vmem>>, vector<32x64xf32>
    %c0_13 = arith.constant 0 : index
    %c0_14 = arith.constant 0 : index
    %9 = vector.load %arg7[%c0_13, %c0_14] : memref<32x64xf32, #tpu.memory_space<vmem>>, vector<32x64xf32>
    %cst = arith.constant dense<0.000000e+00> : vector<365x64xf32>
    %10 = tpu.matmul %1, %9, %cst {dimension_numbers = #tpu.dot_dimension_numbers<[1], [0], [0], [1], [0, 0, 1, 1], [], []>} : vector<365x32xf32>, vector<32x64xf32>, vector<365x64xf32> -> vector<365x64xf32>
    %cst_15 = arith.constant dense<0.000000e+00> : vector<365x64xf32>
    %11 = tpu.matmul %3, %8, %cst_15 {dimension_numbers = #tpu.dot_dimension_numbers<[1], [0], [0], [1], [0, 0, 1, 1], [], []>} : vector<365x32xf32>, vector<32x64xf32>, vector<365x64xf32> -> vector<365x64xf32>
    %12 = arith.addf %10, %11 : vector<365x64xf32>
    %c0_16 = arith.constant 0 : index
    %c0_17 = arith.constant 0 : index
    %13 = vector.load %arg8[%c0_16, %c0_17] : memref<1x64xf32, #tpu.memory_space<vmem>>, vector<1x64xf32>
    %14 = vector.broadcast %13 : vector<1x64xf32> to vector<365x64xf32>
    %15 = arith.addf %12, %14 : vector<365x64xf32>
    %cst_18 = arith.constant 0.000000e+00 : f32
    %16 = vector.broadcast %cst_18 : f32 to vector<365x64xf32>
    %17 = arith.maximumf %15, %16 : vector<365x64xf32>
    %c0_19 = arith.constant 0 : index
    %c0_20 = arith.constant 0 : index
    %18 = vector.load %arg5[%c0_19, %c0_20] : memref<365x1xf32, #tpu.memory_space<vmem>>, vector<365x1xf32>
    %cst_21 = arith.constant dense<0.000000e+00> : vector<365x64xf32>
    %19 = tpu.matmul %5, %9, %cst_21 {dimension_numbers = #tpu.dot_dimension_numbers<[1], [0], [0], [1], [0, 0, 1, 1], [], []>} : vector<365x32xf32>, vector<32x64xf32>, vector<365x64xf32> -> vector<365x64xf32>
    %cst_22 = arith.constant dense<0.000000e+00> : vector<365x64xf32>
    %20 = tpu.matmul %7, %8, %cst_22 {dimension_numbers = #tpu.dot_dimension_numbers<[1], [0], [0], [1], [0, 0, 1, 1], [], []>} : vector<365x32xf32>, vector<32x64xf32>, vector<365x64xf32> -> vector<365x64xf32>
    %21 = arith.addf %19, %20 : vector<365x64xf32>
    %c0_23 = arith.constant 0 : index
    %c0_24 = arith.constant 0 : index
    %22 = vector.load %arg8[%c0_23, %c0_24] : memref<1x64xf32, #tpu.memory_space<vmem>>, vector<1x64xf32>
    %23 = vector.broadcast %22 : vector<1x64xf32> to vector<365x64xf32>
    %24 = arith.addf %21, %23 : vector<365x64xf32>
    %cst_25 = arith.constant 0.000000e+00 : f32
    %25 = vector.broadcast %cst_25 : f32 to vector<365x64xf32>
    %26 = arith.maximumf %24, %25 : vector<365x64xf32>
    %27 = vector.broadcast %18 : vector<365x1xf32> to vector<365x64xf32>
    %28 = arith.mulf %27, %26 : vector<365x64xf32>
    %c0_26 = arith.constant 0 : index
    %c0_27 = arith.constant 0 : index
    %29 = vector.load %arg10[%c0_26, %c0_27] : memref<64x128xf32, #tpu.memory_space<vmem>>, vector<64x128xf32>
    %cst_28 = arith.constant dense<0.000000e+00> : vector<365x128xf32>
    %30 = tpu.matmul %17, %29, %cst_28 {dimension_numbers = #tpu.dot_dimension_numbers<[1], [0], [0], [1], [0, 0, 1, 1], [], []>} : vector<365x64xf32>, vector<64x128xf32>, vector<365x128xf32> -> vector<365x128xf32>
    %c0_29 = arith.constant 0 : index
    %c0_30 = arith.constant 0 : index
    %31 = vector.load %arg9[%c0_29, %c0_30] : memref<64x128xf32, #tpu.memory_space<vmem>>, vector<64x128xf32>
    %cst_31 = arith.constant dense<0.000000e+00> : vector<365x128xf32>
    %32 = tpu.matmul %28, %31, %cst_31 {dimension_numbers = #tpu.dot_dimension_numbers<[1], [0], [0], [1], [0, 0, 1, 1], [], []>} : vector<365x64xf32>, vector<64x128xf32>, vector<365x128xf32> -> vector<365x128xf32>
    %33 = arith.addf %30, %32 : vector<365x128xf32>
    %c0_32 = arith.constant 0 : index
    %c0_33 = arith.constant 0 : index
    %34 = vector.load %arg11[%c0_32, %c0_33] : memref<1x128xf32, #tpu.memory_space<vmem>>, vector<1x128xf32>
    %35 = vector.broadcast %34 : vector<1x128xf32> to vector<365x128xf32>
    %36 = arith.addf %33, %35 : vector<365x128xf32>
    %cst_34 = arith.constant 0.000000e+00 : f32
    %37 = vector.broadcast %cst_34 : f32 to vector<365x128xf32>
    %38 = arith.maximumf %36, %37 : vector<365x128xf32>
    %c0_35 = arith.constant 0 : index
    %c0_36 = arith.constant 0 : index
    %39 = vector.load %arg12[%c0_35, %c0_36] : memref<32x128xf32, #tpu.memory_space<vmem>>, vector<32x128xf32>
    %cst_37 = arith.constant dense<0.000000e+00> : vector<365x128xf32>
    %40 = tpu.matmul %1, %39, %cst_37 {dimension_numbers = #tpu.dot_dimension_numbers<[1], [0], [0], [1], [0, 0, 1, 1], [], []>} : vector<365x32xf32>, vector<32x128xf32>, vector<365x128xf32> -> vector<365x128xf32>
    %c0_38 = arith.constant 0 : index
    %c0_39 = arith.constant 0 : index
    %41 = vector.load %arg13[%c0_38, %c0_39] : memref<1x128xf32, #tpu.memory_space<vmem>>, vector<1x128xf32>
    %42 = vector.broadcast %41 : vector<1x128xf32> to vector<365x128xf32>
    %43 = arith.addf %40, %42 : vector<365x128xf32>
    %44 = arith.addf %38, %43 : vector<365x128xf32>
    %cst_40 = arith.constant 0.000000e+00 : f32
    %45 = vector.broadcast %cst_40 : f32 to vector<365x128xf32>
    %46 = arith.maximumf %44, %45 : vector<365x128xf32>
    %c0_41 = arith.constant 0 : index
    %c0_42 = arith.constant 0 : index
    %47 = vector.load %arg14[%c0_41, %c0_42] : memref<365x128xf32, #tpu.memory_space<vmem>>, vector<365x128xf32>
    tpu.vector_store %arg14[%c0_41, %c0_42], %46 {strides = array<i32>} : memref<365x128xf32, #tpu.memory_space<vmem>>, vector<365x128xf32>,
    return
  }
  func.func @transform_0(%arg0: i32) -> (i32, i32, i32) {
    %c0_i32 = arith.constant 0 : i32
    %c0_i32_0 = arith.constant 0 : i32
    %c0_i32_1 = arith.constant 0 : i32
    return %arg0, %c0_i32, %c0_i32_0 : i32, i32, i32
  }
  func.func @transform_1(%arg0: i32) -> (i32, i32, i32) {
    %c0_i32 = arith.constant 0 : i32
    %c0_i32_0 = arith.constant 0 : i32
    %c0_i32_1 = arith.constant 0 : i32
    return %arg0, %c0_i32, %c0_i32_0 : i32, i32, i32
  }
  func.func @transform_2(%arg0: i32) -> (i32, i32, i32) {
    %c0_i32 = arith.constant 0 : i32
    %c0_i32_0 = arith.constant 0 : i32
    %c0_i32_1 = arith.constant 0 : i32
    return %arg0, %c0_i32, %c0_i32_0 : i32, i32, i32
  }
  func.func @transform_3(%arg0: i32) -> (i32, i32, i32) {
    %c0_i32 = arith.constant 0 : i32
    %c0_i32_0 = arith.constant 0 : i32
    %c0_i32_1 = arith.constant 0 : i32
    return %arg0, %c0_i32, %c0_i32_0 : i32, i32, i32
  }
  func.func @transform_4(%arg0: i32) -> (i32, i32) {
    %c0_i32 = arith.constant 0 : i32
    %c0_i32_0 = arith.constant 0 : i32
    %c0_i32_1 = arith.constant 0 : i32
    return %c0_i32, %c0_i32_0 : i32, i32
  }
  func.func @transform_5(%arg0: i32) -> (i32, i32) {
    %c0_i32 = arith.constant 0 : i32
    %c0_i32_0 = arith.constant 0 : i32
    %c0_i32_1 = arith.constant 0 : i32
    return %c0_i32, %c0_i32_0 : i32, i32
  }
  func.func @transform_6(%arg0: i32) -> (i32, i32) {
    %c0_i32 = arith.constant 0 : i32
    %c0_i32_0 = arith.constant 0 : i32
    %c0_i32_1 = arith.constant 0 : i32
    return %c0_i32, %c0_i32_0 : i32, i32
  }
  func.func @transform_7(%arg0: i32) -> (i32, i32) {
    %c0_i32 = arith.constant 0 : i32
    %c0_i32_0 = arith.constant 0 : i32
    %c0_i32_1 = arith.constant 0 : i32
    return %c0_i32, %c0_i32_0 : i32, i32
  }
  func.func @transform_8(%arg0: i32) -> (i32, i32) {
    %c0_i32 = arith.constant 0 : i32
    %c0_i32_0 = arith.constant 0 : i32
    %c0_i32_1 = arith.constant 0 : i32
    return %c0_i32, %c0_i32_0 : i32, i32
  }
  func.func @transform_9(%arg0: i32) -> (i32, i32) {
    %c0_i32 = arith.constant 0 : i32
    %c0_i32_0 = arith.constant 0 : i32
    %c0_i32_1 = arith.constant 0 : i32
    return %c0_i32, %c0_i32_0 : i32, i32
  }
  func.func @transform_10(%arg0: i32) -> (i32, i32) {
    %c0_i32 = arith.constant 0 : i32
    %c0_i32_0 = arith.constant 0 : i32
    %c0_i32_1 = arith.constant 0 : i32
    return %c0_i32, %c0_i32_0 : i32, i32
  }
  func.func @transform_11(%arg0: i32) -> (i32, i32) {
    %c0_i32 = arith.constant 0 : i32
    %c0_i32_0 = arith.constant 0 : i32
    %c0_i32_1 = arith.constant 0 : i32
    return %c0_i32, %c0_i32_0 : i32, i32
  }
  func.func @transform_12(%arg0: i32) -> (i32, i32) {
    %c0_i32 = arith.constant 0 : i32
    %c0_i32_0 = arith.constant 0 : i32
    %c0_i32_1 = arith.constant 0 : i32
    return %c0_i32, %c0_i32_0 : i32, i32
  }
  func.func @transform_13(%arg0: i32) -> (i32, i32) {
    %c0_i32 = arith.constant 0 : i32
    %c0_i32_0 = arith.constant 0 : i32
    return %c0_i32, %arg0 : i32, i32
  }
}

module attributes {stable_mosaic.version = 11 : i64} {
  func.func @_graph_ode_bn_kernel(%arg0: i32, %arg1: memref<365x256xf32, #tpu.memory_space<vmem>>, %arg2: memref<256x256xf32, #tpu.memory_space<vmem>>, %arg3: memref<365x365xf32, #tpu.memory_space<vmem>>, %arg4: memref<256x256xf32, #tpu.memory_space<vmem>>, %arg5: memref<1x256xf32, #tpu.memory_space<vmem>>, %arg6: memref<1x256xf32, #tpu.memory_space<vmem>>, %arg7: memref<365x256xf32, #tpu.memory_space<vmem>>) attributes {dimension_semantics = [#tpu.dimension_semantics<arbitrary>], iteration_bounds = array<i64: 1>, scalar_prefetch = 0 : i64, scratch_operands = 0 : i64, tpu.core_type = #tpu.core_type<tc>, window_params = [{pipeline_mode = #tpu.pipeline_mode<synchronous>, transform_indices = @transform_0, window_bounds = array<i64: 365, 256>}, {pipeline_mode = #tpu.pipeline_mode<synchronous>, transform_indices = @transform_1, window_bounds = array<i64: 256, 256>}, {pipeline_mode = #tpu.pipeline_mode<synchronous>, transform_indices = @transform_2, window_bounds = array<i64: 365, 365>}, {pipeline_mode = #tpu.pipeline_mode<synchronous>, transform_indices = @transform_3, window_bounds = array<i64: 256, 256>}, {pipeline_mode = #tpu.pipeline_mode<synchronous>, transform_indices = @transform_4, window_bounds = array<i64: 1, 256>}, {pipeline_mode = #tpu.pipeline_mode<synchronous>, transform_indices = @transform_5, window_bounds = array<i64: 1, 256>}, {pipeline_mode = #tpu.pipeline_mode<synchronous>, transform_indices = @transform_6, window_bounds = array<i64: 365, 256>}]} {
    %c0 = arith.constant 0 : index
    %c0_0 = arith.constant 0 : index
    %0 = vector.load %arg1[%c0, %c0_0] : memref<365x256xf32, #tpu.memory_space<vmem>>, vector<365x256xf32>
    %c0_1 = arith.constant 0 : index
    %c0_2 = arith.constant 0 : index
    %1 = vector.load %arg2[%c0_1, %c0_2] : memref<256x256xf32, #tpu.memory_space<vmem>>, vector<256x256xf32>
    %cst = arith.constant dense<0.000000e+00> : vector<365x256xf32>
    %2 = tpu.matmul %0, %1, %cst {dimension_numbers = #tpu.dot_dimension_numbers<[1], [0], [0], [1], [0, 0, 1, 1], [], []>} : vector<365x256xf32>, vector<256x256xf32>, vector<365x256xf32> -> vector<365x256xf32>
    %c0_3 = arith.constant 0 : index
    %c0_4 = arith.constant 0 : index
    %3 = vector.load %arg3[%c0_3, %c0_4] : memref<365x365xf32, #tpu.memory_space<vmem>>, vector<365x365xf32>
    %cst_5 = arith.constant dense<0.000000e+00> : vector<365x256xf32>
    %4 = tpu.matmul %3, %0, %cst_5 {dimension_numbers = #tpu.dot_dimension_numbers<[1], [0], [0], [1], [0, 0, 1, 1], [], []>} : vector<365x365xf32>, vector<365x256xf32>, vector<365x256xf32> -> vector<365x256xf32>
    %5 = arith.addf %2, %4 : vector<365x256xf32>
    %cst_6 = arith.constant 0.000000e+00 : f32
    %6 = vector.broadcast %cst_6 : f32 to vector<365x256xf32>
    %7 = arith.maximumf %5, %6 : vector<365x256xf32>
    %cst_7 = arith.constant dense<0.000000e+00> : vector<256xf32>
    %8 = vector.multi_reduction <add>, %7, %cst_7 [0] : vector<365x256xf32> to vector<256xf32>
    %9 = vector.shape_cast %8 : vector<256xf32> to vector<1x256xf32>
    %c0_8 = arith.constant 0 : index
    %c0_9 = arith.constant 0 : index
    %10 = vector.load %arg4[%c0_8, %c0_9] : memref<256x256xf32, #tpu.memory_space<vmem>>, vector<256x256xf32>
    %cst_10 = arith.constant dense<0.000000e+00> : vector<1x256xf32>
    %11 = tpu.matmul %9, %10, %cst_10 {dimension_numbers = #tpu.dot_dimension_numbers<[1], [0], [0], [1], [0, 0, 1, 1], [], []>} : vector<1x256xf32>, vector<256x256xf32>, vector<1x256xf32> -> vector<1x256xf32>
    %12 = vector.broadcast %11 : vector<1x256xf32> to vector<365x256xf32>
    %13 = arith.subf %7, %12 : vector<365x256xf32>
    %14 = arith.mulf %13, %13 : vector<365x256xf32>
    %cst_11 = arith.constant dense<0.000000e+00> : vector<256xf32>
    %15 = vector.multi_reduction <add>, %14, %cst_11 [0] : vector<365x256xf32> to vector<256xf32>
    %16 = vector.shape_cast %15 : vector<256xf32> to vector<1x256xf32>
    %c0_12 = arith.constant 0 : index
    %c0_13 = arith.constant 0 : index
    %17 = vector.load %arg4[%c0_12, %c0_13] : memref<256x256xf32, #tpu.memory_space<vmem>>, vector<256x256xf32>
    %cst_14 = arith.constant dense<0.000000e+00> : vector<1x256xf32>
    %18 = tpu.matmul %16, %17, %cst_14 {dimension_numbers = #tpu.dot_dimension_numbers<[1], [0], [0], [1], [0, 0, 1, 1], [], []>} : vector<1x256xf32>, vector<256x256xf32>, vector<1x256xf32> -> vector<1x256xf32>
    %cst_15 = arith.constant 9.99999974E-6 : f32
    %19 = vector.broadcast %cst_15 : f32 to vector<1x256xf32>
    %20 = arith.addf %18, %19 : vector<1x256xf32>
    %21 = math.rsqrt %20 : vector<1x256xf32>
    %22 = vector.broadcast %21 : vector<1x256xf32> to vector<365x256xf32>
    %23 = arith.mulf %13, %22 : vector<365x256xf32>
    %c0_16 = arith.constant 0 : index
    %c0_17 = arith.constant 0 : index
    %24 = vector.load %arg5[%c0_16, %c0_17] : memref<1x256xf32, #tpu.memory_space<vmem>>, vector<1x256xf32>
    %25 = vector.broadcast %24 : vector<1x256xf32> to vector<365x256xf32>
    %26 = arith.mulf %23, %25 : vector<365x256xf32>
    %c0_18 = arith.constant 0 : index
    %c0_19 = arith.constant 0 : index
    %27 = vector.load %arg6[%c0_18, %c0_19] : memref<1x256xf32, #tpu.memory_space<vmem>>, vector<1x256xf32>
    %28 = vector.broadcast %27 : vector<1x256xf32> to vector<365x256xf32>
    %29 = arith.addf %26, %28 : vector<365x256xf32>
    %c0_20 = arith.constant 0 : index
    %c0_21 = arith.constant 0 : index
    %30 = vector.load %arg7[%c0_20, %c0_21] : memref<365x256xf32, #tpu.memory_space<vmem>>, vector<365x256xf32>
    tpu.vector_store %arg7[%c0_20, %c0_21], %29 {strides = array<i32>} : memref<365x256xf32, #tpu.memory_space<vmem>>, vector<365x256xf32>,
    return
  }
  func.func @transform_0(%arg0: i32) -> (i32, i32) {
    %c0_i32 = arith.constant 0 : i32
    %c0_i32_0 = arith.constant 0 : i32
    %c0_i32_1 = arith.constant 0 : i32
    return %c0_i32, %c0_i32_0 : i32, i32
  }
  func.func @transform_1(%arg0: i32) -> (i32, i32) {
    %c0_i32 = arith.constant 0 : i32
    %c0_i32_0 = arith.constant 0 : i32
    %c0_i32_1 = arith.constant 0 : i32
    return %c0_i32, %c0_i32_0 : i32, i32
  }
  func.func @transform_2(%arg0: i32) -> (i32, i32) {
    %c0_i32 = arith.constant 0 : i32
    %c0_i32_0 = arith.constant 0 : i32
    %c0_i32_1 = arith.constant 0 : i32
    return %c0_i32, %c0_i32_0 : i32, i32
  }
  func.func @transform_3(%arg0: i32) -> (i32, i32) {
    %c0_i32 = arith.constant 0 : i32
    %c0_i32_0 = arith.constant 0 : i32
    %c0_i32_1 = arith.constant 0 : i32
    return %c0_i32, %c0_i32_0 : i32, i32
  }
  func.func @transform_4(%arg0: i32) -> (i32, i32) {
    %c0_i32 = arith.constant 0 : i32
    %c0_i32_0 = arith.constant 0 : i32
    %c0_i32_1 = arith.constant 0 : i32
    return %c0_i32, %c0_i32_0 : i32, i32
  }
  func.func @transform_5(%arg0: i32) -> (i32, i32) {
    %c0_i32 = arith.constant 0 : i32
    %c0_i32_0 = arith.constant 0 : i32
    %c0_i32_1 = arith.constant 0 : i32
    return %c0_i32, %c0_i32_0 : i32, i32
  }
  func.func @transform_6(%arg0: i32) -> (i32, i32) {
    %c0_i32 = arith.constant 0 : i32
    %c0_i32_0 = arith.constant 0 : i32
    %c0_i32_1 = arith.constant 0 : i32
    return %c0_i32, %c0_i32_0 : i32, i32
  }
}

</mosaic_0001>

<bundles_post_ra>
// kernel: tile.18
= control target key start
LH: loop header
LB: loop body
LE: loop exit
PB: predicated region body
PF: predicated region fallthrough
CT: control target
= control target key end

     0   :  { %s22_s0 = inlined_call_operand.vmem [shape: f32[8], index: 0, kind: input, shape index: {}]   ;;  %s23_s1 = inlined_call_operand.vmem [shape: f32[8,8], index: 1, kind: output, shape index: {}]  }
   0x1   :  { %v4_v0 = vld [vmem:[%s22_s0] ss:$0 sm:$0xff] }
   0x2   :  { %5 = vst [vmem:[%s23_s1] sm:$0xff] %v4_v0 }

// kernel: tile.19
= control target key start
LH: loop header
LB: loop body
LE: loop exit
PB: predicated region body
PF: predicated region fallthrough
CT: control target
= control target key end

     0   :  { %s69_s10 = smov 56   ;;  %s70_s11 = smov 40   ;;  %vm3_vm0 = vcmask 64512   ;;  %vm9_vm1 = vcmask 523712   ;;  %vm15_vm2 = vcmask 458112   ;;  %vm21_vm3 = vcmask 392512   ;;  %s113_s0 = inlined_call_operand.vmem [shape: f32[8,8], index: 0, kind: input, shape index: {}]   ;;  %s114_s1 = inlined_call_operand.vmem [shape: f32[1,64], index: 1, kind: output, shape index: {}]  }
   0x1   :  { %v55_v0 = vld [vmem:[%s113_s0 + $0x7] sm:$0x1]   ;;  %v57_v1 = vld [vmem:[%s113_s0 + $0x5] sm:$0x1]   ;;  %v56_v2 = vld [vmem:[%s113_s0 + $0x6] sm:$0x1]  }
   0x2   :  { %7 = vrot.lane.b32.xlu0 %v55_v0, %s69_s10  ;;  %19 = vrot.lane.b32.xlu1 %v57_v1, %s70_s11  ;;  %v58_v3 = vld [vmem:[%s113_s0 + $0x4] sm:$0x1]   ;;  %v2_v4 = vld [vmem:[%s113_s0] sm:$0x1]   ;;  %s71_s18 = smov 48   ;;  %s72_s19 = smov 32  }
   0x3   :  { %4 = vst.msk [vmem:[#allocation0] sm:$0x1] %vm3_vm0, %v2_v4   ;;  %v59_v5 = vld [vmem:[%s113_s0 + $0x3] sm:$0x1]   ;;  %v60_v6 = vld [vmem:[%s113_s0 + $0x2] sm:$0x1]  }
   0x4   :  { %s73_s24 = smov 24   ;;  %s74_s25 = smov 16   ;;  %v61_v7 = vld [vmem:[%s113_s0 + $0x1] sm:$0x1]   ;;  %vm27_vm4 = vcmask 326912   ;;  %vm33_vm5 = vcmask 261312  }
   0x5   :  { %s75_s0 = smov 8   ;;  %vm39_vm6 = vcmask 195712   ;;  %vm45_vm7 = vcmask 130112  }
   0x6   :  { %13 = vrot.lane.b32.xlu0 %v56_v2, %s71_s18  ;;  %25 = vrot.lane.b32.xlu1 %v58_v3, %s72_s19 }
   0xa   :  { %31 = vrot.lane.b32.xlu0 %v59_v5, %s73_s24  ;;  %37 = vrot.lane.b32.xlu1 %v60_v6, %s74_s25 }
   0xe   :  { %43 = vrot.lane.b32.xlu0 %v61_v7, %s75_s0 }
  0x74   :  { %v8_v8 = vpop.permute.xlu0 %7   ;;  %v20_v9 = vpop.permute.xlu1 %19  }
  0x75   :  { %10 = vst.msk [vmem:[#allocation0] sm:$0x1] %vm9_vm1, %v8_v8  }
  0x78   :  { %v14_v10 = vpop.permute.xlu0 %13   ;;  %v26_v11 = vpop.permute.xlu1 %25  }
  0x79   :  { %16 = vst.msk [vmem:[#allocation0] sm:$0x1] %vm15_vm2, %v14_v10  }
  0x7a   :  { %22 = vst.msk [vmem:[#allocation0] sm:$0x1] %vm21_vm3, %v20_v9  }
  0x7b   :  { %28 = vst.msk [vmem:[#allocation0] sm:$0x1] %vm27_vm4, %v26_v11  }
  0x7c   :  { %v32_v12 = vpop.permute.xlu0 %31   ;;  %v38_v13 = vpop.permute.xlu1 %37  }
  0x7d   :  { %34 = vst.msk [vmem:[#allocation0] sm:$0x1] %vm33_vm5, %v32_v12  }
  0x7e   :  { %40 = vst.msk [vmem:[#allocation0] sm:$0x1] %vm39_vm6, %v38_v13  }
  0x80   :  { %v44_v14 = vpop.permute.xlu0 %43  }
  0x81   :  { %46 = vst.msk [vmem:[#allocation0] sm:$0x1] %vm45_vm7, %v44_v14  }
  0x88   :  { %v51_v15 = vld [vmem:[#allocation0] sm:$0x1] }
  0x89   :  { %54 = vst [vmem:[%s114_s1] sm:$0x1] %v51_v15 }

// kernel: tile.23
= control target key start
LH: loop header
LB: loop body
LE: loop exit
PB: predicated region body
PF: predicated region fallthrough
CT: control target
= control target key end

     0   :  { %s22_s0 = inlined_call_operand.vmem [shape: f32[16], index: 0, kind: input, shape index: {}]   ;;  %s23_s1 = inlined_call_operand.vmem [shape: f32[8,16], index: 1, kind: output, shape index: {}]  }
   0x1   :  { %v4_v0 = vld [vmem:[%s22_s0] ss:$0 sm:$0xff] }
   0x2   :  { %5 = vst [vmem:[%s23_s1] sm:$0xff] %v4_v0 }

// kernel: tile.24
= control target key start
LH: loop header
LB: loop body
LE: loop exit
PB: predicated region body
PF: predicated region fallthrough
CT: control target
= control target key end

     0   :  { %s69_s10 = smov 112   ;;  %s70_s11 = smov 80   ;;  %vm3_vm0 = vcmask 130048   ;;  %vm9_vm1 = vcmask 1048448   ;;  %vm15_vm2 = vcmask 917248   ;;  %vm21_vm3 = vcmask 786048   ;;  %s113_s0 = inlined_call_operand.vmem [shape: f32[8,16], index: 0, kind: input, shape index: {}]   ;;  %s114_s1 = inlined_call_operand.vmem [shape: f32[1,128], index: 1, kind: output, shape index: {}]  }
   0x1   :  { %v55_v0 = vld [vmem:[%s113_s0 + $0x7] sm:$0x1]   ;;  %v57_v1 = vld [vmem:[%s113_s0 + $0x5] sm:$0x1]   ;;  %v56_v2 = vld [vmem:[%s113_s0 + $0x6] sm:$0x1]  }
   0x2   :  { %7 = vrot.lane.b32.xlu0 %v55_v0, %s69_s10  ;;  %19 = vrot.lane.b32.xlu1 %v57_v1, %s70_s11  ;;  %v58_v3 = vld [vmem:[%s113_s0 + $0x4] sm:$0x1]   ;;  %v2_v4 = vld [vmem:[%s113_s0] sm:$0x1]   ;;  %s71_s18 = smov 96   ;;  %s72_s19 = smov 64  }
   0x3   :  { %4 = vst.msk [vmem:[#allocation0] sm:$0x1] %vm3_vm0, %v2_v4   ;;  %v59_v5 = vld [vmem:[%s113_s0 + $0x3] sm:$0x1]   ;;  %v60_v6 = vld [vmem:[%s113_s0 + $0x2] sm:$0x1]  }
   0x4   :  { %s73_s24 = smov 48   ;;  %s74_s25 = smov 32   ;;  %v61_v7 = vld [vmem:[%s113_s0 + $0x1] sm:$0x1]   ;;  %vm27_vm4 = vcmask 654848   ;;  %vm33_vm5 = vcmask 523648  }
   0x5   :  { %s75_s0 = smov 16   ;;  %vm39_vm6 = vcmask 392448   ;;  %vm45_vm7 = vcmask 261248  }
   0x6   :  { %13 = vrot.lane.b32.xlu0 %v56_v2, %s71_s18  ;;  %25 = vrot.lane.b32.xlu1 %v58_v3, %s72_s19 }
   0xa   :  { %31 = vrot.lane.b32.xlu0 %v59_v5, %s73_s24  ;;  %37 = vrot.lane.b32.xlu1 %v60_v6, %s74_s25 }
   0xe   :  { %43 = vrot.lane.b32.xlu0 %v61_v7, %s75_s0 }
  0x74   :  { %v8_v8 = vpop.permute.xlu0 %7   ;;  %v20_v9 = vpop.permute.xlu1 %19  }
  0x75   :  { %10 = vst.msk [vmem:[#allocation0] sm:$0x1] %vm9_vm1, %v8_v8  }
  0x78   :  { %v14_v10 = vpop.permute.xlu0 %13   ;;  %v26_v11 = vpop.permute.xlu1 %25  }
  0x79   :  { %16 = vst.msk [vmem:[#allocation0] sm:$0x1] %vm15_vm2, %v14_v10  }
  0x7a   :  { %22 = vst.msk [vmem:[#allocation0] sm:$0x1] %vm21_vm3, %v20_v9  }
  0x7b   :  { %28 = vst.msk [vmem:[#allocation0] sm:$0x1] %vm27_vm4, %v26_v11  }
  0x7c   :  { %v32_v12 = vpop.permute.xlu0 %31   ;;  %v38_v13 = vpop.permute.xlu1 %37  }
  0x7d   :  { %34 = vst.msk [vmem:[#allocation0] sm:$0x1] %vm33_vm5, %v32_v12  }
  0x7e   :  { %40 = vst.msk [vmem:[#allocation0] sm:$0x1] %vm39_vm6, %v38_v13  }
  0x80   :  { %v44_v14 = vpop.permute.xlu0 %43  }
  0x81   :  { %46 = vst.msk [vmem:[#allocation0] sm:$0x1] %vm45_vm7, %v44_v14  }
  0x88   :  { %v51_v15 = vld [vmem:[#allocation0] sm:$0x1] }
  0x89   :  { %54 = vst [vmem:[%s114_s1] sm:$0x1] %v51_v15 }

// kernel: stgcn_block_forward.2
= control target key start
LH: loop header
LB: loop body
LE: loop exit
PB: predicated region body
PF: predicated region fallthrough
CT: control target
= control target key end

     0   :  { %s6096_s25 = smov 0   ;;  %s6098_s26 = smov 0   ;;  %s7937_s0 = inlined_call_operand.vmem [shape: f32[2,365,32], index: 0, kind: input, shape index: {}]   ;;  %s7938_s1 = inlined_call_operand.vmem [shape: f32[2,365,32], index: 1, kind: input, shape index: {}]   ;;  %s7939_s2 = inlined_call_operand.vmem [shape: f32[2,365,32], index: 2, kind: input, shape index: {}]   ;;  %s7940_s3 = inlined_call_operand.vmem [shape: f32[2,365,32], index: 3, kind: input, shape index: {}]   ;;  %s7941_s4 = inlined_call_operand.vmem [shape: f32[365,1], index: 4, kind: input, shape index: {}]   ;;  %s7942_s5 = inlined_call_operand.vmem [shape: f32[32,64], index: 5, kind: input, shape index: {}]   ;;  %s7943_s6 = inlined_call_operand.vmem [shape: f32[32,64], index: 6, kind: input, shape index: {}]   ;;  %s7944_s7 = inlined_call_operand.vmem [shape: f32[1,64], index: 7, kind: input, shape index: {}]   ;;  %s7945_s8 = inlined_call_operand.vmem [shape: f32[64,128], index: 8, kind: input, shape index: {}]   ;;  %s7946_s9 = inlined_call_operand.vmem [shape: f32[64,128], index: 9, kind: input, shape index: {}]   ;;  %s7947_s10 = inlined_call_operand.vmem [shape: f32[1,128], index: 10, kind: input, shape index: {}]   ;;  %s7948_s11 = inlined_call_operand.vmem [shape: f32[32,128], index: 11, kind: input, shape index: {}]   ;;  %s7949_s12 = inlined_call_operand.vmem [shape: f32[1,128], index: 12, kind: input, shape index: {}]   ;;  %s7950_s13 = inlined_call_operand.vmem [shape: f32[365,256], index: 13, kind: output, shape index: {}]  }
   0x1   :  { %s6100_s27 = smov 0  }
   0x2 LB: > { %s6109_s28 = sadd.s32 4294967295, %s6023_s27   ;;  %s6111_s29 = sadd.s32 1, %s6023_s27   ;;  %s6023_s27 = sphi %s6100_s27, %s7994_s27   ;;  %s6019_s26 = sphi %s6098_s26, %s7993_s26   ;;  %s6015_s25 = sphi %s6096_s25, %s7992_s25  }
   0x3   : > { %s320_s30 = ssub.s32 %s6023_s27, %s6111_s29  ;;  %s323_s14 = sadd.s32 1, %s6019_s26 }
   0x4   : > { %p321_p0 = scmp.eq.s32.totalorder %s320_s30, 0  ;;  %p333_p1 = scmp.ne.s32.totalorder %s6019_s26, %s6015_s25 }
   0x5   : > { %p334_p2 = scmp.eq.s32.totalorder %s6109_s28, 1  ;;  %p4671_p3 = scmp.ge.s32.totalorder %s6023_s27, 1 }
   0x6   : > { %s6119_s15 = scalar_select %p321_p0, %s6019_s26, %s323_s14  }
   0x7   : > { %p6121_p4 = por %p334_p2, %p333_p1  ;;  %p417_p5 = scmp.lt.s32.totalorder %s6023_s27, 3 }
   0x9   : > { %p418_p6 = pnand %p4671_p3, %p417_p5 }
   0xb   : > { %421 = sbr.rel (%p418_p6) target bundleno = 755 (0x2f3), region = 72 }
  0x10   : > { %v682_v0 = vld [vmem:[%s7942_s5 + $0x18] sm:$0xff]  ;;  %v6131_v1 = vld [vmem:[%s7942_s5 + $0x10] sm:$0xff]  ;;  %p475_p7 = scmp.lt.s32.totalorder %s6109_s28, 1  ;;  %v6137_v2 = vld [vmem:[%s7942_s5 + $0x8] sm:$0xff]  ;;  %vm687_vm0 = vcmask 261120   ;;  %v6025_v22 = vmov 0  }
  0x11   : > { %5917 = vmatprep.subr.mxu1 %v682_v0  ;;  %5362 = vmatprep.subr.mxu0 %v682_v0  ;;  %v6146_v3 = vld [vmem:[%s7942_s5] sm:$0xff]  ;;  %v6163_v4 = vld [vmem:[%s7943_s6 + $0x18] sm:$0xff]  ;;  %v6176_v8 = vld [vmem:[%s7943_s6 + $0x10] sm:$0xff]  ;;  %vm2949_vm1 = vcmask 523264   ;;  %s472_s14 = sand.u32 1, %s6015_s25  }
  0x12   : > { %5921 = vmatpush3.msra.mxu1 %v682_v0  ;;  %s476_s23 = scalar_select %p475_p7, %s6109_s28, 1  ;;  %5363 = vmatpush3.msra.mxu0 %v682_v0  ;;  %v6186_v10 = vld [vmem:[%s7943_s6 + $0x8] sm:$0xff]  ;;  %v6195_v12 = vld [vmem:[%s7943_s6] sm:$0xff]  ;;  %v1655_v28 = vld [vmem:[%s7941_s4 + $0x10] sm:$0xff] }
  0x13   : > { %5918 = vmatprep.subr.mxu1 %v6131_v1  ;;  %5364 = vmatprep.subr.mxu0 %v6131_v1  ;;  %v1653_v23 = vld [vmem:[%s7941_s4] sm:$0xff]  ;;  %v1654_v30 = vld [vmem:[%s7941_s4 + $0x8] sm:$0xff]  ;;  %v1656_v43 = vld [vmem:[%s7941_s4 + $0x18] sm:$0xff]  ;;  %s5925_s22 = smul.u32 368, %s472_s14 }
  0x14   : > { %5922 = vmatpush3.msra.mxu1 %v6131_v1  ;;  %s6148_s30 = smul.u32 368, %s476_s23  ;;  %5365 = vmatpush3.msra.mxu0 %v6131_v1  ;;  %v1657_v44 = vld [vmem:[%s7941_s4 + $0x20] sm:$0xff]  ;;  %v1658_v48 = vld [vmem:[%s7941_s4 + $0x28] sm:$0xff]  ;;  %v1659_v49 = vld [vmem:[%s7941_s4 + $0x30] sm:$0xff]  ;;  %s5001_s23 = sshll.u32 (%p6121_p4), %s6109_s28, 3 }
  0x15   : > { %5919 = vmatprep.subr.mxu1 %v6137_v2  ;;  %5366 = vmatprep.subr.mxu0 %v6137_v2  ;;  %v1660_v54 = vld [vmem:[%s7941_s4 + $0x38] sm:$0xff]  ;;  %v1661_v55 = vld [vmem:[%s7941_s4 + $0x40] sm:$0xff]  ;;  %v1662_v60 = vld [vmem:[%s7941_s4 + $0x48] sm:$0xff]  ;;  %s7603_s25 = scalar_lea.vmem [#allocation2], %s5925_s22 }
  0x16   : > { %5923 = vmatpush3.msra.mxu1 %v6137_v2  ;;  %s6158_s18 = scalar_lea.vmem %s7938_s1, %s6148_s30  ;;  %5367 = vmatpush3.msra.mxu0 %v6137_v2  ;;  %s6300_s17 = scalar_lea.vmem %s7937_s0, %s6148_s30  ;;  %v1663_v61 = vld [vmem:[%s7941_s4 + $0x50] sm:$0xff] }
  0x17   : > { %5920 = vmatprep.subr.mxu1 %v6146_v3  ;;  %v565_v5 = vld [vmem:[%s6158_s18 + $0xc0] sm:$0xff]  ;;  %v566_v6 = vld [vmem:[%s6158_s18 + $0xc8] sm:$0xff]  ;;  %v567_v7 = vld [vmem:[%s6158_s18 + $0xd0] sm:$0xff]  ;;  %5368 = vmatprep.subr.mxu0 %v6146_v3  ;;  %s6344_s21 = scalar_lea.vmem %s7940_s3, %s6148_s30  ;;  %s6626_s24 = scalar_lea.vmem %s7939_s2, %s6148_s30 }
  0x18   : > { %5924 = vmatpush3.msra.mxu1 %v6146_v3  ;;  %5406 = vmatprep.mubr.msk.f32.mxu1 %vm687_vm0, %v565_v5  ;;  %v568_v9 = vld [vmem:[%s6158_s18 + $0xd8] sm:$0xff]  ;;  %v569_v11 = vld [vmem:[%s6158_s18 + $0xe0] sm:$0xff]  ;;  %v570_v13 = vld [vmem:[%s6158_s18 + $0xe8] sm:$0xff] }
  0x19   : > { %5407 = vmatmul.mubr.msk.f32.vlgmr.msra.gmra.mxu1 %vm687_vm0, %v566_v6  ;;  %5439 = vmatprep.subr.mxu1 %v6163_v4  ;;  %v541_v14 = vld [vmem:[%s6158_s18] sm:$0xff]  ;;  %v571_v15 = vld [vmem:[%s6158_s18 + $0xf0] sm:$0xff]  ;;  %v542_v16 = vld [vmem:[%s6158_s18 + $0x8] sm:$0xff] }
  0x1a   : > { %5440 = vmatpush3.msra.mxu1 %v6163_v4  ;;  %5409 = vmatprep.mubr.msk.f32.mxu1 %vm687_vm0, %v567_v7  ;;  %v543_v17 = vld [vmem:[%s6158_s18 + $0x10] sm:$0xff]  ;;  %v544_v18 = vld [vmem:[%s6158_s18 + $0x18] sm:$0xff]  ;;  %v545_v20 = vld [vmem:[%s6158_s18 + $0x20] sm:$0xff] }
  0x1b   : > { %5441 = vmatprep.subr.mxu1 %v6176_v8  ;;  %5369 = vmatpush3.msra.mxu0 %v6146_v3  ;;  %v572_v19 = vld [vmem:[%s6158_s18 + $0xf8] sm:$0xff]  ;;  %v573_v21 = vld [vmem:[%s6158_s18 + $0x100] sm:$0xff]  ;;  %v546_v24 = vld [vmem:[%s6158_s18 + $0x28] sm:$0xff] }
  0x1c   : > { %5442 = vmatpush3.msra.mxu1 %v6176_v8  ;;  %5516 = vmatprep.subr.mxu0 %v682_v0  ;;  %v574_v25 = vld [vmem:[%s6158_s18 + $0x108] sm:$0xff]  ;;  %v547_v26 = vld [vmem:[%s6158_s18 + $0x30] sm:$0xff]  ;;  %v548_v29 = vld [vmem:[%s6158_s18 + $0x38] sm:$0xff] }
  0x1d   : > { %5410 = vmatmul.mubr.msk.f32.gmra.mxu1 %vm687_vm0, %v568_v9  ;;  %5443 = vmatprep.subr.mxu1 %v6186_v10  ;;  %v575_v27 = vld [vmem:[%s6158_s18 + $0x110] sm:$0xff]  ;;  %v576_v31 = vld [vmem:[%s6158_s18 + $0x118] sm:$0xff]  ;;  %v549_v32 = vld [vmem:[%s6158_s18 + $0x40] sm:$0xff] }
  0x1e   : > { %5412 = vmatprep.mubr.msk.f32.mxu1 %vm687_vm0, %v569_v11  ;;  %5444 = vmatpush3.msra.mxu1 %v6186_v10  ;;  %v577_v33 = vld [vmem:[%s6158_s18 + $0x120] sm:$0xff]  ;;  %v550_v34 = vld [vmem:[%s6158_s18 + $0x48] sm:$0xff]  ;;  %v551_v36 = vld [vmem:[%s6158_s18 + $0x50] sm:$0xff] }
  0x1f   : > { %5445 = vmatprep.subr.mxu1 %v6195_v12  ;;  %5370 = vmatprep.mubr.msk.f32.mxu0 %vm687_vm0, %v541_v14  ;;  %v578_v35 = vld [vmem:[%s6158_s18 + $0x128] sm:$0xff]  ;;  %v579_v37 = vld [vmem:[%s6158_s18 + $0x130] sm:$0xff]  ;;  %v552_v38 = vld [vmem:[%s6158_s18 + $0x58] sm:$0xff] }
  0x20   : > { %5446 = vmatpush3.msra.mxu1 %v6195_v12  ;;  %5371 = vmatmul.mubr.msk.f32.vlgmr.msra.gmra.mxu0 %vm687_vm0, %v542_v16  ;;  %v580_v39 = vld [vmem:[%s6158_s18 + $0x138] sm:$0xff]  ;;  %v553_v40 = vld [vmem:[%s6158_s18 + $0x60] sm:$0xff]  ;;  %v554_v42 = vld [vmem:[%s6158_s18 + $0x68] sm:$0xff] }
  0x21   : > { %5413 = vmatmul.mubr.msk.f32.gmra.mxu1 %vm687_vm0, %v570_v13  ;;  %5593 = vmatprep.subr.mxu1 %v6163_v4  ;;  %v581_v41 = vld [vmem:[%s6158_s18 + $0x140] sm:$0xff]  ;;  %v582_v45 = vld [vmem:[%s6158_s18 + $0x148] sm:$0xff]  ;;  %v555_v46 = vld [vmem:[%s6158_s18 + $0x70] sm:$0xff] }
  0x22   : > { %5415 = vmatprep.mubr.msk.f32.mxu1 %vm687_vm0, %v571_v15  ;;  %5373 = vmatprep.mubr.msk.f32.mxu0 %vm687_vm0, %v543_v17  ;;  %v583_v47 = vld [vmem:[%s6158_s18 + $0x150] sm:$0xff]  ;;  %v556_v50 = vld [vmem:[%s6158_s18 + $0x78] sm:$0xff]  ;;  %v557_v52 = vld [vmem:[%s6158_s18 + $0x80] sm:$0xff] }
  0x23   : > { %5517 = vmatpush3.msra.mxu0 %v682_v0  ;;  %5952 = vset.pattern.permute.xlu0 %v6025_v22  ;;  %v584_v51 = vld [vmem:[%s6158_s18 + $0x158] sm:$0xff]  ;;  %v585_v53 = vld [vmem:[%s6158_s18 + $0x160] sm:$0xff]  ;;  %v558_v56 = vld [vmem:[%s6158_s18 + $0x88] sm:$0xff] }
  0x24   : > { %5374 = vmatmul.mubr.msk.f32.gmra.mxu0 %vm687_vm0, %v544_v18  ;;  %5518 = vmatprep.subr.mxu0 %v6131_v1  ;;  %v586_v57 = vld [vmem:[%s6158_s18 + $0x168] sm:$0x1f]  ;;  %v559_v58 = vld [vmem:[%s6158_s18 + $0x90] sm:$0xff]  ;;  %v495_v59 = vld [vmem:[%s6300_s17] sm:$0xff] }
  0x25   : > { %5416 = vmatmul.mubr.msk.f32.gmra.mxu1 %vm687_vm0, %v572_v19  ;;  %5376 = vmatprep.mubr.msk.f32.mxu0 %vm687_vm0, %v545_v20  ;;  %v560_v62 = vld [vmem:[%s6158_s18 + $0x98] sm:$0xff]  ;;  %v496_v63 = vld [vmem:[%s6300_s17 + $0x8] sm:$0xff]  ;;  %v561_v0 = vld [vmem:[%s6158_s18 + $0xa0] sm:$0xff] }
  0x26   : > { %5418 = vmatprep.mubr.msk.f32.mxu1 %vm687_vm0, %v573_v21  ;;  %5519 = vmatpush3.msra.mxu0 %v6131_v1  ;;  %v497_v1 = vld [vmem:[%s6300_s17 + $0x10] sm:$0xff]  ;;  %v498_v5 = vld [vmem:[%s6300_s17 + $0x18] sm:$0xff]  ;;  %v499_v7 = vld [vmem:[%s6300_s17 + $0x20] sm:$0xff] }
  0x27   : > { %5520 = vmatprep.subr.mxu0 %v6137_v2  ;;  %2659 = vperm.xlu0 %5952, %v1653_v23   ;;  %v563_v6 = vld [vmem:[%s6158_s18 + $0xb0] sm:$0xff]  ;;  %v564_v9 = vld [vmem:[%s6158_s18 + $0xb8] sm:$0xff]  ;;  %v500_v11 = vld [vmem:[%s6300_s17 + $0x28] sm:$0xff] }
  0x28   : > { %5377 = vmatmul.mubr.msk.f32.gmra.mxu0 %vm687_vm0, %v546_v24  ;;  %5953 = vset.pattern.permute.xlu1 %v6025_v22  ;;  %v501_v13 = vld [vmem:[%s6300_s17 + $0x30] sm:$0xff]  ;;  %v1666_v14 = vld [vmem:[%s7941_s4 + $0x68] sm:$0xff]  ;;  %v502_v16 = vld [vmem:[%s6300_s17 + $0x38] sm:$0xff] }
  0x29   : > { %5419 = vmatmul.mubr.msk.f32.gmra.mxu1 %vm687_vm0, %v574_v25  ;;  %5379 = vmatprep.mubr.msk.f32.mxu0 %vm687_vm0, %v547_v26  ;;  %v1667_v15 = vld [vmem:[%s7941_s4 + $0x70] sm:$0xff]  ;;  %v503_v18 = vld [vmem:[%s6300_s17 + $0x40] sm:$0xff]  ;;  %v1668_v19 = vld [vmem:[%s7941_s4 + $0x78] sm:$0xff] }
  0x2a   : > { %5421 = vmatprep.mubr.msk.f32.mxu1 %vm687_vm0, %v575_v27  ;;  %5521 = vmatpush3.msra.mxu0 %v6137_v2  ;;  %v1664_v2 = vld [vmem:[%s7941_s4 + $0x58] sm:$0xff]  ;;  %v635_v17 = vld [vmem:[%s6344_s21 + $0x10] sm:$0xff]  ;;  %v1669_v20 = vld [vmem:[%s7941_s4 + $0x80] sm:$0xff] }
  0x2b   : > { %5522 = vmatprep.subr.mxu0 %v6146_v3  ;;  %2669 = vperm.xlu1 %5953, %v1655_v28   ;;  %v504_v21 = vld [vmem:[%s6300_s17 + $0x48] sm:$0xff]  ;;  %v637_v22 = vld [vmem:[%s6344_s21 + $0x20] sm:$0xff]  ;;  %v505_v23 = vld [vmem:[%s6300_s17 + $0x50] sm:$0xff] }
  0x2c   : > { %5380 = vmatmul.mubr.msk.f32.gmra.mxu0 %vm687_vm0, %v548_v29  ;;  %2664 = vperm.xlu0 %5952, %v1654_v30   ;;  %v1670_v24 = vld [vmem:[%s7941_s4 + $0x88] sm:$0xff]  ;;  %v1671_v25 = vld [vmem:[%s7941_s4 + $0x90] sm:$0xff]  ;;  %v506_v27 = vld [vmem:[%s6300_s17 + $0x58] sm:$0xff] }
  0x2d   : > { %5422 = vmatmul.mubr.msk.f32.gmra.mxu1 %vm687_vm0, %v576_v31  ;;  %5382 = vmatprep.mubr.msk.f32.mxu0 %vm687_vm0, %v549_v32  ;;  %v638_v26 = vld [vmem:[%s6344_s21 + $0x28] sm:$0xff]  ;;  %v639_v28 = vld [vmem:[%s6344_s21 + $0x30] sm:$0xff]  ;;  %v507_v29 = vld [vmem:[%s6300_s17 + $0x60] sm:$0xff] }
  0x2e   : > { %5424 = vmatprep.mubr.msk.f32.mxu1 %vm687_vm0, %v577_v33  ;;  %5523 = vmatpush3.msra.mxu0 %v6146_v3  ;;  %v562_v3 = vld [vmem:[%s6158_s18 + $0xa8] sm:$0xff]  ;;  %v1672_v30 = vld [vmem:[%s7941_s4 + $0x98] sm:$0xff]  ;;  %v1673_v31 = vld [vmem:[%s7941_s4 + $0xa0] sm:$0xff] }
  0x2f   : > { %2674 = vperm.xlu1 %5953, %v1656_v43   ;;  %v640_v32 = vld [vmem:[%s6344_s21 + $0x38] sm:$0xff]  ;;  %v508_v33 = vld [vmem:[%s6300_s17 + $0x68] sm:$0xff]  ;;  %v1677_v43 = vld [vmem:[%s7941_s4 + $0xc0] sm:$0xff] }
  0x30   : > { %5383 = vmatmul.mubr.msk.f32.gmra.mxu0 %vm687_vm0, %v550_v34  ;;  %2679 = vperm.xlu0 %5952, %v1657_v44   ;;  %v641_v34 = vld [vmem:[%s6344_s21 + $0x40] sm:$0xff]  ;;  %v644_v44 = vld [vmem:[%s6344_s21 + $0x58] sm:$0xff] }
  0x31   : > { %5425 = vmatmul.mubr.msk.f32.gmra.mxu1 %vm687_vm0, %v578_v35  ;;  %5385 = vmatprep.mubr.msk.f32.mxu0 %vm687_vm0, %v551_v36  ;;  %v509_v35 = vld [vmem:[%s6300_s17 + $0x70] sm:$0xff]  ;;  %v1674_v36 = vld [vmem:[%s7941_s4 + $0xa8] sm:$0xff] }
  0x32   : > { %5427 = vmatprep.mubr.msk.f32.mxu1 %vm687_vm0, %v579_v37  ;;  %v1675_v37 = vld [vmem:[%s7941_s4 + $0xb0] sm:$0xff] }
  0x33   : > { %2684 = vperm.xlu1 %5953, %v1658_v48   ;;  %v1678_v48 = vld [vmem:[%s7941_s4 + $0xc8] sm:$0xff] }
  0x34   : > { %5386 = vmatmul.mubr.msk.f32.gmra.mxu0 %vm687_vm0, %v552_v38  ;;  %2689 = vperm.xlu0 %5952, %v1659_v49   ;;  %v642_v38 = vld [vmem:[%s6344_s21 + $0x48] sm:$0xff]  ;;  %v1679_v49 = vld [vmem:[%s7941_s4 + $0xd0] sm:$0xff] }
  0x35   : > { %5428 = vmatmul.mubr.msk.f32.gmra.mxu1 %vm687_vm0, %v580_v39  ;;  %5388 = vmatprep.mubr.msk.f32.mxu0 %vm687_vm0, %v553_v40  ;;  %v510_v39 = vld [vmem:[%s6300_s17 + $0x78] sm:$0xff]  ;;  %v643_v40 = vld [vmem:[%s6344_s21 + $0x50] sm:$0xff] }
  0x36   : > { %5430 = vmatprep.mubr.msk.f32.mxu1 %vm687_vm0, %v581_v41  ;;  %v511_v41 = vld [vmem:[%s6300_s17 + $0x80] sm:$0xff] }
  0x37   : > { %2694 = vperm.xlu1 %5953, %v1660_v54   ;;  %v1680_v54 = vld [vmem:[%s7941_s4 + $0xd8] sm:$0xff] }
  0x38   : > { %5389 = vmatmul.mubr.msk.f32.gmra.mxu0 %vm687_vm0, %v554_v42  ;;  %2699 = vperm.xlu0 %5952, %v1661_v55   ;;  %v1676_v42 = vld [vmem:[%s7941_s4 + $0xb8] sm:$0xff]  ;;  %v1681_v55 = vld [vmem:[%s7941_s4 + $0xe0] sm:$0xff] }
  0x39   : > { %5431 = vmatmul.mubr.msk.f32.gmra.mxu1 %vm687_vm0, %v582_v45  ;;  %5391 = vmatprep.mubr.msk.f32.mxu0 %vm687_vm0, %v555_v46  ;;  %v512_v45 = vld [vmem:[%s6300_s17 + $0x88] sm:$0xff]  ;;  %v645_v46 = vld [vmem:[%s6344_s21 + $0x60] sm:$0xff] }
  0x3a   : > { %5433 = vmatprep.mubr.msk.f32.mxu1 %vm687_vm0, %v583_v47  ;;  %v513_v47 = vld [vmem:[%s6300_s17 + $0x90] sm:$0xff] }
  0x3b   : > { %2704 = vperm.xlu1 %5953, %v1662_v60   ;;  %v1682_v60 = vld [vmem:[%s7941_s4 + $0xe8] sm:$0xff] }
  0x3c   : > { %5392 = vmatmul.mubr.msk.f32.gmra.mxu0 %vm687_vm0, %v556_v50  ;;  %2709 = vperm.xlu0 %5952, %v1663_v61   ;;  %v646_v50 = vld [vmem:[%s6344_s21 + $0x68] sm:$0xff]  ;;  %v1683_v61 = vld [vmem:[%s7941_s4 + $0xf0] sm:$0xff] }
  0x3d   : > { %5434 = vmatmul.mubr.msk.f32.gmra.mxu1 %vm687_vm0, %v584_v51  ;;  %5394 = vmatprep.mubr.msk.f32.mxu0 %vm687_vm0, %v557_v52  ;;  %v514_v51 = vld [vmem:[%s6300_s17 + $0x98] sm:$0xff]  ;;  %v647_v52 = vld [vmem:[%s6344_s21 + $0x70] sm:$0xff] }
  0x3e   : > { %5436 = vmatprep.mubr.msk.f32.mxu1 %vm687_vm0, %v585_v53  ;;  %v515_v53 = vld [vmem:[%s6300_s17 + $0xa0] sm:$0xff] }
  0x3f   : > { %2714 = vperm.xlu1 %5953, %v1664_v2   ;;  %v1684_v2 = vld [vmem:[%s7941_s4 + $0xf8] sm:$0xff] }
  0x40   : > { %5395 = vmatmul.mubr.msk.f32.gmra.mxu0 %vm687_vm0, %v558_v56  ;;  %v648_v56 = vld [vmem:[%s6344_s21 + $0x78] sm:$0xff] }
  0x41   : > { %5437 = vmatmul.mubr.msk.f32.gmra.mxu1 %vm687_vm0, %v586_v57  ;;  %5397 = vmatprep.mubr.msk.f32.mxu0 %vm687_vm0, %v559_v58  ;;  %v516_v57 = vld [vmem:[%s6300_s17 + $0xa8] sm:$0xff]  ;;  %v649_v58 = vld [vmem:[%s6344_s21 + $0x80] sm:$0xff] }
  0x42   : > { %5447 = vmatprep.mubr.msk.f32.mxu1 %vm687_vm0, %v495_v59  ;;  %v517_v59 = vld [vmem:[%s6300_s17 + $0xb0] sm:$0xff] }
  0x43   : > { %2724 = vperm.xlu1 %5953, %v1666_v14   ;;  %v655_v14 = vld [vmem:[%s6344_s21 + $0xb0] sm:$0xff] }
  0x44   : > { %5398 = vmatmul.mubr.msk.f32.gmra.mxu0 %vm687_vm0, %v560_v62  ;;  %v650_v62 = vld [vmem:[%s6344_s21 + $0x88] sm:$0xff] }
  0x45   : > { %5448 = vmatmul.mubr.msk.f32.vlgmr.msra.gmra.mxu1 %vm687_vm0, %v496_v63  ;;  %5400 = vmatprep.mubr.msk.f32.mxu0 %vm687_vm0, %v561_v0  ;;  %v518_v63 = vld [vmem:[%s6300_s17 + $0xb8] sm:$0xff]  ;;  %v651_v0 = vld [vmem:[%s6344_s21 + $0x90] sm:$0xff] }
  0x46   : > { %5594 = vmatpush3.msra.mxu1 %v6163_v4  ;;  %5450 = vmatprep.mubr.msk.f32.mxu1 %vm687_vm0, %v497_v1  ;;  %v1665_v4 = vld [vmem:[%s7941_s4 + $0x60] sm:$0xff] }
  0x47   : > { %5595 = vmatprep.subr.mxu1 %v6176_v8  ;;  %2719 = vperm.xlu0 %5952, %v1665_v4   ;;  %v519_v1 = vld [vmem:[%s6300_s17 + $0xc0] sm:$0xff]  ;;  %v521_v4 = vld [vmem:[%s6300_s17 + $0xd0] sm:$0xff] }
  0x48   : > { %5596 = vmatpush3.msra.mxu1 %v6176_v8  ;;  %5401 = vmatmul.mubr.msk.f32.gmra.mxu0 %vm687_vm0, %v562_v3  ;;  %v633_v8 = vld [vmem:[%s6344_s21] sm:$0xff] }
  0x49   : > { %5451 = vmatmul.mubr.msk.f32.gmra.mxu1 %vm687_vm0, %v498_v5  ;;  %5403 = vmatprep.mubr.msk.f32.mxu0 %vm687_vm0, %v563_v6  ;;  %v1685_v3 = vld [vmem:[%s7941_s4 + $0x100] sm:$0xff]  ;;  %v652_v5 = vld [vmem:[%s6344_s21 + $0x98] sm:$0xff]  ;;  %v520_v6 = vld [vmem:[%s6300_s17 + $0xc8] sm:$0xff] }
  0x4a   : > { %5453 = vmatprep.mubr.msk.f32.mxu1 %vm687_vm0, %v499_v7  ;;  %5597 = vmatprep.subr.mxu1 %v6186_v10  ;;  %v653_v7 = vld [vmem:[%s6344_s21 + $0xa0] sm:$0xff] }
  0x4b   : > { %5598 = vmatpush3.msra.mxu1 %v6186_v10  ;;  %v634_v10 = vld [vmem:[%s6344_s21 + $0x8] sm:$0xff]  ;;  %2729 = vperm.xlu0 %5952, %v1667_v15   ;;  %v523_v15 = vld [vmem:[%s6300_s17 + $0xe0] sm:$0xff] }
  0x4c   : > { %5404 = vmatmul.mubr.msk.f32.gmra.mxu0 %vm687_vm0, %v564_v9  ;;  %5599 = vmatprep.subr.mxu1 %v6195_v12  ;;  %v1686_v9 = vld [vmem:[%s7941_s4 + $0x108] sm:$0xff] }
  0x4d   : > { %5454 = vmatmul.mubr.msk.f32.gmra.mxu1 %vm687_vm0, %v500_v11  ;;  %5524 = vmatprep.mubr.msk.f32.mxu0 %vm687_vm0, %v633_v8  ;;  %v1687_v11 = vld [vmem:[%s7941_s4 + $0x110] sm:$0xff]  ;;  %v654_v8 = vld [vmem:[%s6344_s21 + $0xa8] sm:$0xff] }
  0x4e   : > { %5456 = vmatprep.mubr.msk.f32.mxu1 %vm687_vm0, %v501_v13  ;;  %5600 = vmatpush3.msra.mxu1 %v6195_v12  ;;  %v636_v12 = vld [vmem:[%s6344_s21 + $0x18] sm:$0xff] }
  0x4f   : > { %2734 = vperm.xlu1 %5953, %v1668_v19   ;;  %2739 = vperm.xlu0 %5952, %v1669_v20   ;;  %v522_v13 = vld [vmem:[%s6300_s17 + $0xd8] sm:$0xff]  ;;  %v657_v19 = vld [vmem:[%s6344_s21 + $0xc0] sm:$0xff]  ;;  %v525_v20 = vld [vmem:[%s6300_s17 + $0xf0] sm:$0xff] }
  0x50   : > { %5525 = vmatmul.mubr.msk.f32.vlgmr.msra.gmra.mxu0 %vm687_vm0, %v634_v10  ;;  %v1688_v10 = vld [vmem:[%s7941_s4 + $0x118] sm:$0xff] }
  0x51   : > { %5457 = vmatmul.mubr.msk.f32.gmra.mxu1 %vm687_vm0, %v502_v16  ;;  %5527 = vmatprep.mubr.msk.f32.mxu0 %vm687_vm0, %v635_v17  ;;  %v1689_v16 = vld [vmem:[%s7941_s4 + $0x120] sm:$0xff]  ;;  %v656_v17 = vld [vmem:[%s6344_s21 + $0xb8] sm:$0xff] }
  0x52   : > { %5459 = vmatprep.mubr.msk.f32.mxu1 %vm687_vm0, %v503_v18  ;;  %v524_v18 = vld [vmem:[%s6300_s17 + $0xe8] sm:$0xff] }
  0x53   : > { %2744 = vperm.xlu1 %5953, %v1670_v24   ;;  %2749 = vperm.xlu0 %5952, %v1671_v25   ;;  %v659_v24 = vld [vmem:[%s6344_s21 + $0xd0] sm:$0xff]  ;;  %v6546_v25 = vld [vmem:[%s7946_s9 + $0x38] sm:$0xff] }
  0x54   : > { %5528 = vmatmul.mubr.msk.f32.gmra.mxu0 %vm687_vm0, %v636_v12  ;;  %v1690_v12 = vld [vmem:[%s7941_s4 + $0x128] sm:$0xff]  ;;  %5755 = vmatprep.subr.mxu1 %v6546_v25 }
  0x55   : > { %5460 = vmatmul.mubr.msk.f32.gmra.mxu1 %vm687_vm0, %v504_v21  ;;  %5530 = vmatprep.mubr.msk.f32.mxu0 %vm687_vm0, %v637_v22  ;;  %v1691_v21 = vld [vmem:[%s7941_s4 + $0x130] sm:$0xff]  ;;  %v658_v22 = vld [vmem:[%s6344_s21 + $0xc8] sm:$0xff] }
  0x56   : > { %5462 = vmatprep.mubr.msk.f32.mxu1 %vm687_vm0, %v505_v23  ;;  %v526_v23 = vld [vmem:[%s6300_s17 + $0xf8] sm:$0xff] }
  0x57   : > { %2754 = vperm.xlu1 %5953, %v1672_v30   ;;  %2759 = vperm.xlu0 %5952, %v1673_v31   ;;  %v528_v30 = vld [vmem:[%s6300_s17 + $0x108] sm:$0xff]  ;;  %v661_v31 = vld [vmem:[%s6344_s21 + $0xe0] sm:$0xff] }
  0x58   : > { %5531 = vmatmul.mubr.msk.f32.gmra.mxu0 %vm687_vm0, %v638_v26  ;;  %v527_v26 = vld [vmem:[%s6300_s17 + $0x100] sm:$0xff] }
  0x59   : > { %5463 = vmatmul.mubr.msk.f32.gmra.mxu1 %vm687_vm0, %v506_v27  ;;  %5533 = vmatprep.mubr.msk.f32.mxu0 %vm687_vm0, %v639_v28  ;;  %v1692_v27 = vld [vmem:[%s7941_s4 + $0x138] sm:$0xff]  ;;  %v1693_v28 = vld [vmem:[%s7941_s4 + $0x140] sm:$0xff] }
  0x5a   : > { %5465 = vmatprep.mubr.msk.f32.mxu1 %vm687_vm0, %v507_v29  ;;  %v660_v29 = vld [vmem:[%s6344_s21 + $0xd8] sm:$0xff] }
  0x5b   : > { %2764 = vperm.xlu1 %5953, %v1674_v36   ;;  %2769 = vperm.xlu0 %5952, %v1675_v37   ;;  %v530_v36 = vld [vmem:[%s6300_s17 + $0x118] sm:$0xff]  ;;  %v663_v37 = vld [vmem:[%s6344_s21 + $0xf0] sm:$0xff] }
  0x5c   : > { %5534 = vmatmul.mubr.msk.f32.gmra.mxu0 %vm687_vm0, %v640_v32  ;;  %v529_v32 = vld [vmem:[%s6300_s17 + $0x110] sm:$0xff] }
  0x5d   : > { %5466 = vmatmul.mubr.msk.f32.gmra.mxu1 %vm687_vm0, %v508_v33  ;;  %5536 = vmatprep.mubr.msk.f32.mxu0 %vm687_vm0, %v641_v34  ;;  %v1694_v33 = vld [vmem:[%s7941_s4 + $0x148] sm:$0xff]  ;;  %v1695_v34 = vld [vmem:[%s7941_s4 + $0x150] sm:$0xff] }
  0x5e   : > { %5468 = vmatprep.mubr.msk.f32.mxu1 %vm687_vm0, %v509_v35  ;;  %v662_v35 = vld [vmem:[%s6344_s21 + $0xe8] sm:$0xff] }
  0x5f   : > { %2774 = vperm.xlu1 %5953, %v1676_v42   ;;  %2779 = vperm.xlu0 %5952, %v1677_v43   ;;  %v532_v42 = vld [vmem:[%s6300_s17 + $0x128] sm:$0xff]  ;;  %v665_v43 = vld [vmem:[%s6344_s21 + $0x100] sm:$0xff] }
  0x60   : > { %5537 = vmatmul.mubr.msk.f32.gmra.mxu0 %vm687_vm0, %v642_v38  ;;  %v531_v38 = vld [vmem:[%s6300_s17 + $0x120] sm:$0xff] }
  0x61   : > { %5469 = vmatmul.mubr.msk.f32.gmra.mxu1 %vm687_vm0, %v510_v39  ;;  %5539 = vmatprep.mubr.msk.f32.mxu0 %vm687_vm0, %v643_v40  ;;  %v1696_v39 = vld [vmem:[%s7941_s4 + $0x158] sm:$0xff]  ;;  %v1697_v40 = vld [vmem:[%s7941_s4 + $0x160] sm:$0xff] }
  0x62   : > { %5471 = vmatprep.mubr.msk.f32.mxu1 %vm687_vm0, %v511_v41  ;;  %v664_v41 = vld [vmem:[%s6344_s21 + $0xf8] sm:$0xff] }
  0x63   : > { %2784 = vperm.xlu1 %5953, %v1678_v48   ;;  %2789 = vperm.xlu0 %5952, %v1679_v49   ;;  %v667_v48 = vld [vmem:[%s6344_s21 + $0x110] sm:$0xff]  ;;  %v535_v49 = vld [vmem:[%s6300_s17 + $0x140] sm:$0xff] }
  0x64   : > { %5540 = vmatmul.mubr.msk.f32.gmra.mxu0 %vm687_vm0, %v644_v44  ;;  %v533_v44 = vld [vmem:[%s6300_s17 + $0x130] sm:$0xff] }
  0x65   : > { %5472 = vmatmul.mubr.msk.f32.gmra.mxu1 %vm687_vm0, %v512_v45  ;;  %5542 = vmatprep.mubr.msk.f32.mxu0 %vm687_vm0, %v645_v46  ;;  %v1698_v45 = vld [vmem:[%s7941_s4 + $0x168] sm:$0x1f] }
  0x66   : > { %5474 = vmatprep.mubr.msk.f32.mxu1 %vm687_vm0, %v513_v47  ;;  %v666_v46 = vld [vmem:[%s6344_s21 + $0x108] sm:$0xff]  ;;  %v534_v47 = vld [vmem:[%s6300_s17 + $0x138] sm:$0xff] }
  0x67   : > { %2794 = vperm.xlu1 %5953, %v1680_v54   ;;  %2799 = vperm.xlu0 %5952, %v1681_v55   ;;  %v670_v54 = vld [vmem:[%s6344_s21 + $0x128] sm:$0xff]  ;;  %v538_v55 = vld [vmem:[%s6300_s17 + $0x158] sm:$0xff] }
  0x68   : > { %5543 = vmatmul.mubr.msk.f32.gmra.mxu0 %vm687_vm0, %v646_v50  ;;  %v668_v50 = vld [vmem:[%s6344_s21 + $0x118] sm:$0xff] }
  0x69   : > { %5475 = vmatmul.mubr.msk.f32.gmra.mxu1 %vm687_vm0, %v514_v51  ;;  %5545 = vmatprep.mubr.msk.f32.mxu0 %vm687_vm0, %v647_v52  ;;  %v536_v51 = vld [vmem:[%s6300_s17 + $0x148] sm:$0xff]  ;;  %v669_v52 = vld [vmem:[%s6344_s21 + $0x120] sm:$0xff] }
  0x6a   : > { %5477 = vmatprep.mubr.msk.f32.mxu1 %vm687_vm0, %v515_v53  ;;  %v537_v53 = vld [vmem:[%s6300_s17 + $0x150] sm:$0xff] }
  0x6b   : > { %2804 = vperm.xlu1 %5953, %v1682_v60   ;;  %2809 = vperm.xlu0 %5952, %v1683_v61   ;;  %v540_v60 = vld [vmem:[%s6300_s17 + $0x168] sm:$0x1f]  ;;  %v673_v61 = vld [vmem:[%s6344_s21 + $0x140] sm:$0xff] }
  0x6c   : > { %5546 = vmatmul.mubr.msk.f32.gmra.mxu0 %vm687_vm0, %v648_v56  ;;  %v671_v56 = vld [vmem:[%s6344_s21 + $0x130] sm:$0xff] }
  0x6d   : > { %5478 = vmatmul.mubr.msk.f32.gmra.mxu1 %vm687_vm0, %v516_v57  ;;  %5548 = vmatprep.mubr.msk.f32.mxu0 %vm687_vm0, %v649_v58  ;;  %v2948_v57 = vld [vmem:[%s7945_s8 + $0x38] sm:$0xff]  ;;  %v539_v58 = vld [vmem:[%s6300_s17 + $0x160] sm:$0xff] }
  0x6e   : > { %5480 = vmatprep.mubr.msk.f32.mxu1 %vm687_vm0, %v517_v59  ;;  %5670 = vmatprep.subr.mxu0 %v2948_v57  ;;  %v672_v59 = vld [vmem:[%s6344_s21 + $0x138] sm:$0xff] }
  0x6f   : > { %2814 = vperm.xlu1 %5953, %v1684_v2   ;;  %2819 = vperm.xlu0 %5952, %v1685_v3   ;;  %v589_v2 = vld [vmem:[%s6626_s24 + $0x10] sm:$0xff] }
  0x70   : > { %5549 = vmatmul.mubr.msk.f32.gmra.mxu0 %vm687_vm0, %v650_v62  ;;  %v587_v62 = vld [vmem:[%s6626_s24] sm:$0xff]  ;;  %v2939_v3 = vld [vmem:[%s7946_s9 + $0x30] sm:$0xff] }
  0x71   : > { %5481 = vmatmul.mubr.msk.f32.gmra.mxu1 %vm687_vm0, %v518_v63  ;;  %5551 = vmatprep.mubr.msk.f32.mxu0 %vm687_vm0, %v651_v0  ;;  %v674_v63 = vld [vmem:[%s6344_s21 + $0x148] sm:$0xff] }
  0x72   : > { %5483 = vmatprep.mubr.msk.f32.mxu1 %vm687_vm0, %v519_v1  ;;  %5671 = vmatpush3.msra.mxu0 %v2948_v57  ;;  %v588_v0 = vld [vmem:[%s6626_s24 + $0x8] sm:$0xff]  ;;  %v675_v1 = vld [vmem:[%s6344_s21 + $0x150] sm:$0xff]  ;;  %v622_v57 = vld [vmem:[%s6626_s24 + $0x118] sm:$0xff] }
  0x73   : > { %2824 = vperm.xlu1 %5953, %v1686_v9   ;;  %2829 = vperm.xlu0 %5952, %v1687_v11   ;;  %v591_v9 = vld [vmem:[%s6626_s24 + $0x20] sm:$0xff]  ;;  %v2938_v11 = vld [vmem:[%s7946_s9 + $0x28] sm:$0xff] }
  0x74   : > { %5552 = vmatmul.mubr.msk.f32.gmra.mxu0 %vm687_vm0, %v652_v5  ;;  %v676_v5 = vld [vmem:[%s6344_s21 + $0x158] sm:$0xff] }
  0x75   : > { %5484 = vmatmul.mubr.msk.f32.gmra.mxu1 %vm687_vm0, %v520_v6  ;;  %5554 = vmatprep.mubr.msk.f32.mxu0 %vm687_vm0, %v653_v7  ;;  %v590_v6 = vld [vmem:[%s6626_s24 + $0x18] sm:$0xff]  ;;  %v677_v7 = vld [vmem:[%s6344_s21 + $0x160] sm:$0xff] }
  0x76   : > { %5486 = vmatprep.mubr.msk.f32.mxu1 %vm687_vm0, %v521_v4  ;;  %v2947_v4 = vld [vmem:[%s7945_s8 + $0x30] sm:$0xff] }
  0x77   : > { %2834 = vperm.xlu1 %5953, %v1688_v10   ;;  %2839 = vperm.xlu0 %5952, %v1689_v16   ;;  %v2936_v10 = vld [vmem:[%s7946_s9 + $0x18] sm:$0xff] }
  0x78   : > { %5555 = vmatmul.mubr.msk.f32.gmra.mxu0 %vm687_vm0, %v654_v8  ;;  %5672 = vmatprep.subr.mxu0 %v2947_v4  ;;  %v678_v8 = vld [vmem:[%s6344_s21 + $0x168] sm:$0x1f]  ;;  %v594_v16 = vld [vmem:[%s6626_s24 + $0x38] sm:$0xff]  ;;  %s7836_s21 = scalar_lea.vmem (%p6121_p4), %s7950_s13, %s5001_s23 }
  0x79   : > { %5487 = vmatmul.mubr.msk.f32.gmra.mxu1 %vm687_vm0, %v522_v13  ;;  %5557 = vmatprep.mubr.msk.f32.mxu0 %vm687_vm0, %v655_v14  ;;  %v2937_v13 = vld [vmem:[%s7946_s9 + $0x20] sm:$0xff]  ;;  %v592_v14 = vld [vmem:[%s6626_s24 + $0x28] sm:$0xff] }
  0x7a   : > { %5489 = vmatprep.mubr.msk.f32.mxu1 %vm687_vm0, %v523_v15  ;;  %v593_v15 = vld [vmem:[%s6626_s24 + $0x30] sm:$0xff]  ;;  %5673 = vmatpush3.msra.mxu0 %v2947_v4 }
  0x7b   : > { %2844 = vperm.xlu1 %5953, %v1690_v12   ;;  %2849 = vperm.xlu0 %5952, %v1691_v21   ;;  %v596_v12 = vld [vmem:[%s6626_s24 + $0x48] sm:$0xff]  ;;  %v2933_v21 = vld [vmem:[%s7946_s9] sm:$0xff] }
  0x7c   : > { %5558 = vmatmul.mubr.msk.f32.gmra.mxu0 %vm687_vm0, %v656_v17  ;;  %v2935_v17 = vld [vmem:[%s7946_s9 + $0x10] sm:$0xff] }
  0x7d   : > { %5490 = vmatmul.mubr.msk.f32.gmra.mxu1 %vm687_vm0, %v524_v18  ;;  %5560 = vmatprep.mubr.msk.f32.mxu0 %vm687_vm0, %v657_v19  ;;  %v595_v18 = vld [vmem:[%s6626_s24 + $0x40] sm:$0xff]  ;;  %v2934_v19 = vld [vmem:[%s7946_s9 + $0x8] sm:$0xff] }
  0x7e   : > { %5492 = vmatprep.mubr.msk.f32.mxu1 %vm687_vm0, %v525_v20  ;;  %v2946_v20 = vld [vmem:[%s7945_s8 + $0x28] sm:$0xff] }
  0x7f   : > { %2854 = vperm.xlu1 %5953, %v1692_v27   ;;  %2859 = vperm.xlu0 %5952, %v1693_v28   ;;  %v2945_v27 = vld [vmem:[%s7945_s8 + $0x20] sm:$0xff]  ;;  %v602_v28 = vld [vmem:[%s6626_s24 + $0x78] sm:$0xff] }
  0x80   : > { %5561 = vmatmul.mubr.msk.f32.gmra.mxu0 %vm687_vm0, %v658_v22  ;;  %v597_v22 = vld [vmem:[%s6626_s24 + $0x50] sm:$0xff]  ;;  %5674 = vmatprep.subr.mxu0 %v2946_v20 }
  0x81   : > { %5493 = vmatmul.mubr.msk.f32.gmra.mxu1 %vm687_vm0, %v526_v23  ;;  %5563 = vmatprep.mubr.msk.f32.mxu0 %vm687_vm0, %v659_v24  ;;  %v598_v23 = vld [vmem:[%s6626_s24 + $0x58] sm:$0xff]  ;;  %v599_v24 = vld [vmem:[%s6626_s24 + $0x60] sm:$0xff] }
  0x82   : > { %5495 = vmatprep.mubr.msk.f32.mxu1 %vm687_vm0, %v527_v26  ;;  %5675 = vmatpush3.msra.mxu0 %v2946_v20  ;;  %v601_v26 = vld [vmem:[%s6626_s24 + $0x70] sm:$0xff] }
  0x83   : > { %2864 = vperm.xlu1 %5953, %v1694_v33   ;;  %2869 = vperm.xlu0 %5952, %v1695_v34   ;;  %v607_v33 = vld [vmem:[%s6626_s24 + $0xa0] sm:$0xff]  ;;  %v2944_v34 = vld [vmem:[%s7945_s8 + $0x18] sm:$0xff] }
  0x84   : > { %5564 = vmatmul.mubr.msk.f32.gmra.mxu0 %vm687_vm0, %v660_v29  ;;  %5676 = vmatprep.subr.mxu0 %v2945_v27  ;;  %v603_v29 = vld [vmem:[%s6626_s24 + $0x80] sm:$0xff] }
  0x85   : > { %5496 = vmatmul.mubr.msk.f32.gmra.mxu1 %vm687_vm0, %v528_v30  ;;  %5566 = vmatprep.mubr.msk.f32.mxu0 %vm687_vm0, %v661_v31  ;;  %v604_v30 = vld [vmem:[%s6626_s24 + $0x88] sm:$0xff]  ;;  %v605_v31 = vld [vmem:[%s6626_s24 + $0x90] sm:$0xff] }
  0x86   : > { %5498 = vmatprep.mubr.msk.f32.mxu1 %vm687_vm0, %v529_v32  ;;  %5677 = vmatpush3.msra.mxu0 %v2945_v27  ;;  %v606_v32 = vld [vmem:[%s6626_s24 + $0x98] sm:$0xff] }
  0x87   : > { %2874 = vperm.xlu1 %5953, %v1696_v39   ;;  %2879 = vperm.xlu0 %5952, %v1697_v40   ;;  %v612_v39 = vld [vmem:[%s6626_s24 + $0xc8] sm:$0xff]  ;;  %v613_v40 = vld [vmem:[%s6626_s24 + $0xd0] sm:$0xff] }
  0x88   : > { %5567 = vmatmul.mubr.msk.f32.gmra.mxu0 %vm687_vm0, %v662_v35  ;;  %5678 = vmatprep.subr.mxu0 %v2944_v34  ;;  %v608_v35 = vld [vmem:[%s6626_s24 + $0xa8] sm:$0xff] }
  0x89   : > { %5499 = vmatmul.mubr.msk.f32.gmra.mxu1 %vm687_vm0, %v530_v36  ;;  %5569 = vmatprep.mubr.msk.f32.mxu0 %vm687_vm0, %v663_v37  ;;  %v609_v36 = vld [vmem:[%s6626_s24 + $0xb0] sm:$0xff]  ;;  %v610_v37 = vld [vmem:[%s6626_s24 + $0xb8] sm:$0xff] }
  0x8a   : > { %5501 = vmatprep.mubr.msk.f32.mxu1 %vm687_vm0, %v531_v38  ;;  %5679 = vmatpush3.msra.mxu0 %v2944_v34  ;;  %v611_v38 = vld [vmem:[%s6626_s24 + $0xc0] sm:$0xff] }
  0x8b   : > { %2884 = vperm.xlu1 %5953, %v1698_v45   ;;  %v617_v45 = vld [vmem:[%s6626_s24 + $0xf0] sm:$0xff] }
  0x8c   : > { %5570 = vmatmul.mubr.msk.f32.gmra.mxu0 %vm687_vm0, %v664_v41  ;;  %v2943_v41 = vld [vmem:[%s7945_s8 + $0x10] sm:$0xff] }
  0x8d   : > { %5502 = vmatmul.mubr.msk.f32.gmra.mxu1 %vm687_vm0, %v532_v42  ;;  %5572 = vmatprep.mubr.msk.f32.mxu0 %vm687_vm0, %v665_v43  ;;  %v614_v42 = vld [vmem:[%s6626_s24 + $0xd8] sm:$0xff]  ;;  %v615_v43 = vld [vmem:[%s6626_s24 + $0xe0] sm:$0xff] }
  0x8e   : > { %5504 = vmatprep.mubr.msk.f32.mxu1 %vm687_vm0, %v533_v44  ;;  %5680 = vmatprep.subr.mxu0 %v2943_v41  ;;  %v616_v44 = vld [vmem:[%s6626_s24 + $0xe8] sm:$0xff] }
  0x8f   : > { %5681 = vmatpush3.msra.mxu0 %v2943_v41 }
  0x90   : > { %5573 = vmatmul.mubr.msk.f32.gmra.mxu0 %vm687_vm0, %v666_v46 }
  0x91   : > { %5505 = vmatmul.mubr.msk.f32.gmra.mxu1 %vm687_vm0, %v534_v47  ;;  %5575 = vmatprep.mubr.msk.f32.mxu0 %vm687_vm0, %v667_v48  ;;  %v618_v47 = vld [vmem:[%s6626_s24 + $0xf8] sm:$0xff]  ;;  %v2942_v48 = vld [vmem:[%s7945_s8 + $0x8] sm:$0xff] }
  0x92   : > { %5507 = vmatprep.mubr.msk.f32.mxu1 %vm687_vm0, %v535_v49  ;;  %5682 = vmatprep.subr.mxu0 %v2942_v48 }
  0x93   : > { %5683 = vmatpush3.msra.mxu0 %v2942_v48 }
  0x94   : > { %5576 = vmatmul.mubr.msk.f32.gmra.mxu0 %vm687_vm0, %v668_v50  ;;  %v619_v50 = vld [vmem:[%s6626_s24 + $0x100] sm:$0xff] }
  0x95   : > { %5508 = vmatmul.mubr.msk.f32.gmra.mxu1 %vm687_vm0, %v536_v51  ;;  %5578 = vmatprep.mubr.msk.f32.mxu0 %vm687_vm0, %v669_v52  ;;  %v620_v52 = vld [vmem:[%s6626_s24 + $0x108] sm:$0xff] }
  0x96   : > { %5510 = vmatprep.mubr.msk.f32.mxu1 %vm687_vm0, %v537_v53 }
  0x98   : > { %5579 = vmatmul.mubr.msk.f32.gmra.mxu0 %vm687_vm0, %v670_v54  ;;  %v621_v54 = vld [vmem:[%s6626_s24 + $0x110] sm:$0xff] }
  0x99   : > { %5511 = vmatmul.mubr.msk.f32.gmra.mxu1 %vm687_vm0, %v538_v55  ;;  %5581 = vmatprep.mubr.msk.f32.mxu0 %vm687_vm0, %v671_v56 }
  0x9a   : > { %5513 = vmatprep.mubr.msk.f32.mxu1 %vm687_vm0, %v539_v58 }
  0x9c   : > { %5582 = vmatmul.mubr.msk.f32.gmra.mxu0 %vm687_vm0, %v672_v59 }
  0x9d   : > { %5514 = vmatmul.mubr.msk.f32.gmra.mxu1 %vm687_vm0, %v540_v60  ;;  %5584 = vmatprep.mubr.msk.f32.mxu0 %vm687_vm0, %v673_v61  ;;  %v623_v60 = vld [vmem:[%s6626_s24 + $0x120] sm:$0xff] }
  0x9e   : > { %5601 = vmatprep.mubr.msk.f32.mxu1 %vm687_vm0, %v587_v62 }
  0xa0   : > { %5585 = vmatmul.mubr.msk.f32.gmra.mxu0 %vm687_vm0, %v674_v63  ;;  %v624_v63 = vld [vmem:[%s6626_s24 + $0x128] sm:$0xff] }
  0xa1   : > { %5602 = vmatmul.mubr.msk.f32.vlgmr.msra.gmra.mxu1 %vm687_vm0, %v588_v0  ;;  %5587 = vmatprep.mubr.msk.f32.mxu0 %vm687_vm0, %v675_v1 }
  0xa2   : > { %5604 = vmatprep.mubr.msk.f32.mxu1 %vm687_vm0, %v589_v2  ;;  %5756 = vmatpush3.msra.mxu1 %v6546_v25  ;;  %v600_v25 = vld [vmem:[%s6626_s24 + $0x68] sm:$0xff]  ;;  %v625_v2 = vld [vmem:[%s6626_s24 + $0x130] sm:$0xff] }
  0xa3   : > { %5757 = vmatprep.subr.mxu1 %v2939_v3 }
  0xa4   : > { %5588 = vmatmul.mubr.msk.f32.gmra.mxu0 %vm687_vm0, %v676_v5  ;;  %5758 = vmatpush3.msra.mxu1 %v2939_v3  ;;  %v2941_v5 = vld [vmem:[%s7945_s8] sm:$0xff] }
  0xa5   : > { %5605 = vmatmul.mubr.msk.f32.gmra.mxu1 %vm687_vm0, %v590_v6  ;;  %5590 = vmatprep.mubr.msk.f32.mxu0 %vm687_vm0, %v677_v7  ;;  %v626_v7 = vld [vmem:[%s6626_s24 + $0x138] sm:$0xff] }
  0xa6   : > { %5607 = vmatprep.mubr.msk.f32.mxu1 %vm687_vm0, %v591_v9  ;;  %5759 = vmatprep.subr.mxu1 %v2938_v11 }
  0xa7   : > { %5760 = vmatpush3.msra.mxu1 %v2938_v11  ;;  %5684 = vmatprep.subr.mxu0 %v2941_v5  ;;  %v627_v11 = vld [vmem:[%s6626_s24 + $0x140] sm:$0xff] }
  0xa8   : > { %5591 = vmatmul.mubr.msk.f32.gmra.mxu0 %vm687_vm0, %v678_v8  ;;  %5761 = vmatprep.subr.mxu1 %v2937_v13 }
  0xa9   : > { %5608 = vmatmul.mubr.msk.f32.gmra.mxu1 %vm687_vm0, %v592_v14  ;;  %5685 = vmatpush3.msra.mxu0 %v2941_v5  ;;  %v628_v14 = vld [vmem:[%s6626_s24 + $0x148] sm:$0xff] }
  0xaa   : > { %5610 = vmatprep.mubr.msk.f32.mxu1 %vm687_vm0, %v593_v15  ;;  %5762 = vmatpush3.msra.mxu1 %v2937_v13 }
  0xab   : > { %5763 = vmatprep.subr.mxu1 %v2936_v10 }
  0xac   : > { %5764 = vmatpush3.msra.mxu1 %v2936_v10 }
  0xad   : > { %5611 = vmatmul.mubr.msk.f32.gmra.mxu1 %vm687_vm0, %v594_v16  ;;  %5765 = vmatprep.subr.mxu1 %v2935_v17  ;;  %v629_v16 = vld [vmem:[%s6626_s24 + $0x150] sm:$0xff] }
  0xae   : > { %5613 = vmatprep.mubr.msk.f32.mxu1 %vm687_vm0, %v595_v18  ;;  %5766 = vmatpush3.msra.mxu1 %v2935_v17 }
  0xaf   : > { %5767 = vmatprep.subr.mxu1 %v2934_v19 }
  0xb0   : > { %5768 = vmatpush3.msra.mxu1 %v2934_v19  ;;  %v630_v19 = vld [vmem:[%s6626_s24 + $0x158] sm:$0xff] }
  0xb1   : > { %5614 = vmatmul.mubr.msk.f32.gmra.mxu1 %vm687_vm0, %v596_v12  ;;  %5769 = vmatprep.subr.mxu1 %v2933_v21 }
  0xb2   : > { %5616 = vmatprep.mubr.msk.f32.mxu1 %vm687_vm0, %v597_v22  ;;  %5770 = vmatpush3.msra.mxu1 %v2933_v21  ;;  %v631_v21 = vld [vmem:[%s6626_s24 + $0x160] sm:$0xff] }
  0xb5   : > { %5617 = vmatmul.mubr.msk.f32.gmra.mxu1 %vm687_vm0, %v598_v23  ;;  %v6832_v23 = vld [vmem:[%s7948_s11 + $0x18] sm:$0xff] }
  0xb6   : > { %5619 = vmatprep.mubr.msk.f32.mxu1 %vm687_vm0, %v599_v24  ;;  %5840 = vmatprep.subr.mxu0 %v6832_v23 }
  0xb9   : > { %5620 = vmatmul.mubr.msk.f32.gmra.mxu1 %vm687_vm0, %v600_v25  ;;  %v632_v25 = vld [vmem:[%s6626_s24 + $0x168] sm:$0x1f] }
  0xba   : > { %5622 = vmatprep.mubr.msk.f32.mxu1 %vm687_vm0, %v601_v26 }
  0xbd   : > { %5623 = vmatmul.mubr.msk.f32.gmra.mxu1 %vm687_vm0, %v602_v28 }
  0xbe   : > { %5625 = vmatprep.mubr.msk.f32.mxu1 %vm687_vm0, %v603_v29 }
  0xc1   : > { %5626 = vmatmul.mubr.msk.f32.gmra.mxu1 %vm687_vm0, %v604_v30 }
  0xc2   : > { %5628 = vmatprep.mubr.msk.f32.mxu1 %vm687_vm0, %v605_v31 }
  0xc5   : > { %5629 = vmatmul.mubr.msk.f32.gmra.mxu1 %vm687_vm0, %v606_v32 }
  0xc6   : > { %5631 = vmatprep.mubr.msk.f32.mxu1 %vm687_vm0, %v607_v33 }
  0xc9   : > { %5632 = vmatmul.mubr.msk.f32.gmra.mxu1 %vm687_vm0, %v608_v35 }
  0xca   : > { %5634 = vmatprep.mubr.msk.f32.mxu1 %vm687_vm0, %v609_v36 }
  0xcd   : > { %5635 = vmatmul.mubr.msk.f32.gmra.mxu1 %vm687_vm0, %v610_v37 }
  0xce   : > { %5637 = vmatprep.mubr.msk.f32.mxu1 %vm687_vm0, %v611_v38 }
  0xd1   : > { %5638 = vmatmul.mubr.msk.f32.gmra.mxu1 %vm687_vm0, %v612_v39 }
  0xd2   : > { %5640 = vmatprep.mubr.msk.f32.mxu1 %vm687_vm0, %v613_v40 }
  0xd5   : > { %5641 = vmatmul.mubr.msk.f32.gmra.mxu1 %vm687_vm0, %v614_v42 }
  0xd6   : > { %5643 = vmatprep.mubr.msk.f32.mxu1 %vm687_vm0, %v615_v43  ;;  %v6875_v43 = vld [vmem:[%s7944_s7] ss:$0 sm:$0xff] }
  0xd9   : > { %v6745_v46 = vpop.f32.mrf.mxu1  ;;  %5644 = vmatmul.mubr.msk.f32.gmra.mxu1 %vm687_vm0, %v616_v44 }
  0xda   : > { %5646 = vmatprep.mubr.msk.f32.mxu1 %vm687_vm0, %v617_v45 }
  0xdb   : > { %v6753_v49 = vpop.f32.mrf.mxu1 }
  0xdd   : > { %v6756_v51 = vpop.f32.mrf.mxu1  ;;  %5647 = vmatmul.mubr.msk.f32.gmra.mxu1 %vm687_vm0, %v618_v47 }
  0xde   : > { %5649 = vmatprep.mubr.msk.f32.mxu1 %vm687_vm0, %v619_v50 }
  0xdf   : > { %v6761_v53 = vpop.f32.mrf.mxu1 }
  0xe0   : > { %v6764_v55 = vpop.f32.mrf.mxu0 }
  0xe1   : > { %v6766_v56 = vpop.f32.mrf.mxu1  ;;  %5650 = vmatmul.mubr.msk.f32.gmra.mxu1 %vm687_vm0, %v620_v52 }
  0xe2   : > { %5652 = vmatprep.mubr.msk.f32.mxu1 %vm687_vm0, %v621_v54  ;;  %v6771_v58 = vpop.f32.mrf.mxu0 }
  0xe3   : > { %v6773_v59 = vpop.f32.mrf.mxu1 }
  0xe4   : > { %v6776_v61 = vpop.f32.mrf.mxu0 }
  0xe5   : > { %v6778_v62 = vpop.f32.mrf.mxu1  ;;  %5653 = vmatmul.mubr.msk.f32.gmra.mxu1 %vm687_vm0, %v622_v57 }
  0xe6   : > { %5655 = vmatprep.mubr.msk.f32.mxu1 %vm687_vm0, %v623_v60  ;;  %v6783_v0 = vpop.f32.mrf.mxu0 }
  0xe7   : > { %v6785_v1 = vpop.f32.mrf.mxu1 }
  0xe8   : > { %v6788_v3 = vpop.f32.mrf.mxu0 }
  0xe9   : > { %v6793_v6 = vpop.f32.mrf.mxu1  ;;  %5656 = vmatmul.mubr.msk.f32.gmra.mxu1 %vm687_vm0, %v624_v63 }
  0xea   : > { %5658 = vmatprep.mubr.msk.f32.mxu1 %vm687_vm0, %v625_v2  ;;  %v6798_v4 = vpop.f32.mrf.mxu0 }
  0xeb   : > { %v6800_v9 = vpop.f32.mrf.mxu1 }
  0xec   : > { %v6803_v8 = vpop.f32.mrf.mxu0 }
  0xed   : > { %v6805_v13 = vpop.f32.mrf.mxu1  ;;  %5659 = vmatmul.mubr.msk.f32.gmra.mxu1 %vm687_vm0, %v626_v7 }
  0xee   : > { %5661 = vmatprep.mubr.msk.f32.mxu1 %vm687_vm0, %v627_v11  ;;  %v6810_v15 = vpop.f32.mrf.mxu0 }
  0xef   : > { %v6812_v10 = vpop.f32.mrf.mxu1 }
  0xf0   : > { %v6815_v17 = vpop.f32.mrf.mxu0 }
  0xf1   : > { %v6817_v18 = vpop.f32.mrf.mxu1  ;;  %5662 = vmatmul.mubr.msk.f32.gmra.mxu1 %vm687_vm0, %v628_v14 }
  0xf2   : > { %5664 = vmatprep.mubr.msk.f32.mxu1 %vm687_vm0, %v629_v16  ;;  %v6822_v20 = vpop.f32.mrf.mxu0 }
  0xf3   : > { %v6824_v12 = vpop.f32.mrf.mxu1 }
  0xf4   : > { %v6827_v22 = vpop.f32.mrf.mxu0 }
  0xf5   : > { %v6834_v24 = vpop.f32.mrf.mxu1  ;;  %5665 = vmatmul.mubr.msk.f32.gmra.mxu1 %vm687_vm0, %v630_v19 }
  0xf6   : > { %5667 = vmatprep.mubr.msk.f32.mxu1 %vm687_vm0, %v631_v21  ;;  %v6840_v26 = vpop.f32.mrf.mxu0 }
  0xf7   : > { %v6842_v27 = vpop.f32.mrf.mxu1 }
  0xf8   : > { %v6844_v28 = vpop.f32.mrf.mxu0 }
  0xf9   : > { %v6846_v29 = vpop.f32.mrf.mxu1  ;;  %5668 = vmatmul.mubr.msk.f32.gmra.mxu1 %vm687_vm0, %v632_v25 }
  0xfa   : > { %v6849_v30 = vpop.f32.mrf.mxu0 }
  0xfb   : > { %v6851_v31 = vpop.f32.mrf.mxu1 }
  0xfc   : > { %v6853_v32 = vpop.f32.mrf.mxu0 }
  0xfd   : > { %v6855_v33 = vpop.f32.mrf.mxu1 }
  0xfe   : > { %v6857_v34 = vpop.f32.mrf.mxu0 }
  0xff   : > { %v6859_v35 = vpop.f32.mrf.mxu1 }
 0x100   : > { %v6861_v36 = vpop.f32.mrf.mxu0 }
 0x101   : > { %v6863_v37 = vpop.f32.mrf.mxu1 }
 0x102   : > { %v6865_v38 = vpop.f32.mrf.mxu0 }
 0x103   : > { %v6867_v39 = vpop.f32.mrf.mxu1 }
 0x104   : > { %v6869_v40 = vpop.f32.mrf.mxu0 }
 0x105   : > { %v5449_v41 = vpop.f32.mrf.mxu1 }
 0x106   : > { %v1331_v42 = vadd.f32 %v5449_v41, %v6764_v55  ;;  %v6877_v44 = vpop.f32.mrf.mxu0 }
 0x107   : > { %v1325_v45 = vpop.f32.mrf.mxu1 }
 0x108   : > { %v1326_v47 = vadd.f32 %v1325_v45, %v6771_v58  ;;  %v6880_v48 = vpop.f32.mrf.mxu0  ;;  %v1562_v50 = vadd.f32 %v6875_v43, %v1331_v42 }
 0x109   : > { %v5452_v52 = vpop.f32.mrf.mxu1 }
 0x10a   : > { %v1561_v54 = vadd.f32 %v6875_v43, %v1326_v47  ;;  %v1341_v57 = vadd.f32 %v5452_v52, %v6776_v61  ;;  %v6885_v55 = vpop.f32.mrf.mxu0  ;;  %v1608_v7 = vmax.f32 %v1562_v50, 0.0 }
 0x10b   : > { %v1335_v60 = vpop.f32.mrf.mxu1 }
 0x10c   : > { %v1607_v63 = vmax.f32 %v1561_v54, 0.0  ;;  %v1336_v2 = vadd.f32 %v1335_v60, %v6783_v0  ;;  %v6888_v5 = vpop.f32.mrf.mxu0  ;;  %v1564_v58 = vadd.f32 %v6875_v43, %v1341_v57 }
 0x10d   : > { %v5455_v11 = vpop.f32.mrf.mxu1 }
 0x10e   : > { %v1563_v14 = vadd.f32 %v6875_v43, %v1336_v2  ;;  %v1351_v16 = vadd.f32 %v5455_v11, %v6788_v3  ;;  %5771 = vmatprep.mubr.msk.f32.mxu1 %vm2949_vm1, %v1607_v63  ;;  %v6894_v61 = vpop.f32.mrf.mxu0  ;;  %v1610_v41 = vmax.f32 %v1564_v58, 0.0 }
 0x10f   : > { %v1345_v19 = vpop.f32.mrf.mxu1  ;;  %5772 = vmatmul.mubr.msk.f32.vlgmr.msra.gmra.mxu1 %vm2949_vm1, %v1608_v7 }
 0x110   : > { %v1609_v21 = vmax.f32 %v1563_v14, 0.0  ;;  %v1346_v0 = vadd.f32 %v1345_v19, %v6798_v4  ;;  %v6898_v25 = vpop.f32.mrf.mxu0  ;;  %v1566_v42 = vadd.f32 %v6875_v43, %v1351_v16 }
 0x111   : > { %v5458_v45 = vpop.f32.mrf.mxu1 }
 0x112   : > { %v1565_v47 = vadd.f32 %v6875_v43, %v1346_v0  ;;  %v1361_v3 = vadd.f32 %v5458_v45, %v6803_v8  ;;  %5774 = vmatprep.mubr.msk.f32.mxu1 %vm2949_vm1, %v1609_v21  ;;  %v6904_v50 = vpop.f32.mrf.mxu0  ;;  %v1612_v60 = vmax.f32 %v1566_v42, 0.0 }
 0x113   : > { %v1355_v52 = vpop.f32.mrf.mxu1  ;;  %5775 = vmatmul.mubr.msk.f32.gmra.mxu1 %vm2949_vm1, %v1610_v41 }
 0x114   : > { %v1611_v54 = vmax.f32 %v1565_v47, 0.0  ;;  %v1356_v4 = vadd.f32 %v1355_v52, %v6810_v15  ;;  %v6908_v57 = vpop.f32.mrf.mxu0  ;;  %v1568_v63 = vadd.f32 %v6875_v43, %v1361_v3 }
 0x115   : > { %v5461_v2 = vpop.f32.mrf.mxu1 }
 0x116   : > { %v1567_v7 = vadd.f32 %v6875_v43, %v1356_v4  ;;  %v1371_v8 = vadd.f32 %v5461_v2, %v6815_v17  ;;  %5777 = vmatprep.mubr.msk.f32.mxu1 %vm2949_vm1, %v1611_v54  ;;  %v6914_v58 = vpop.f32.mrf.mxu0  ;;  %v1614_v19 = vmax.f32 %v1568_v63, 0.0 }
 0x117   : > { %v1365_v11 = vpop.f32.mrf.mxu1  ;;  %5778 = vmatmul.mubr.msk.f32.gmra.mxu1 %vm2949_vm1, %v1612_v60 }
 0x118   : > { %v1613_v14 = vmax.f32 %v1567_v7, 0.0  ;;  %v1366_v15 = vadd.f32 %v1365_v11, %v6822_v20  ;;  %v6918_v16 = vpop.f32.mrf.mxu0  ;;  %v1570_v21 = vadd.f32 %v6875_v43, %v1371_v8 }
 0x119   : > { %v5464_v0 = vpop.f32.mrf.mxu1 }
 0x11a   : > { %v1569_v41 = vadd.f32 %v6875_v43, %v1366_v15  ;;  %v1381_v17 = vadd.f32 %v5464_v0, %v6827_v22  ;;  %5780 = vmatprep.mubr.msk.f32.mxu1 %vm2949_vm1, %v1613_v14  ;;  %v6925_v45 = vpop.f32.mrf.mxu0  ;;  %v1616_v3 = vmax.f32 %v1570_v21, 0.0 }
 0x11b   : > { %v1375_v42 = vpop.f32.mrf.mxu1  ;;  %5781 = vmatmul.mubr.msk.f32.gmra.mxu1 %vm2949_vm1, %v1614_v19 }
 0x11c   : > { %v1615_v47 = vmax.f32 %v1569_v41, 0.0  ;;  %v1376_v20 = vadd.f32 %v1375_v42, %v6840_v26  ;;  %v1572_v52 = vadd.f32 %v6875_v43, %v1381_v17  ;;  %v6933_v63 = vpop.f32.mrf.mxu0 }
 0x11d   : > { %v5467_v54 = vpop.f32.mrf.mxu1 }
 0x11e   : > { %v1571_v4 = vadd.f32 %v6875_v43, %v1376_v20  ;;  %v1391_v60 = vadd.f32 %v5467_v54, %v6844_v28  ;;  %5783 = vmatprep.mubr.msk.f32.mxu1 %vm2949_vm1, %v1615_v47  ;;  %v1618_v8 = vmax.f32 %v1572_v52, 0.0  ;;  %v6941_v19 = vpop.f32.mrf.mxu0 }
 0x11f   : > { %v1385_v22 = vpop.f32.mrf.mxu1  ;;  %5784 = vmatmul.mubr.msk.f32.gmra.mxu1 %vm2949_vm1, %v1616_v3 }
 0x120   : > { %v1617_v2 = vmax.f32 %v1571_v4, 0.0  ;;  %v1386_v7 = vadd.f32 %v1385_v22, %v6849_v30  ;;  %v1574_v26 = vadd.f32 %v6875_v43, %v1391_v60  ;;  %v6949_v20 = vpop.f32.mrf.mxu0 }
 0x121   : > { %v5470_v11 = vpop.f32.mrf.mxu1 }
 0x122   : > { %v1573_v14 = vadd.f32 %v6875_v43, %v1386_v7  ;;  %v1401_v15 = vadd.f32 %v5470_v11, %v6853_v32  ;;  %5786 = vmatprep.mubr.msk.f32.mxu1 %vm2949_vm1, %v1617_v2  ;;  %v1620_v41 = vmax.f32 %v1574_v26, 0.0  ;;  %v6957_v2 = vpop.f32.mrf.mxu0 }
 0x123   : > { %v1395_v28 = vpop.f32.mrf.mxu1  ;;  %5787 = vmatmul.mubr.msk.f32.gmra.mxu1 %vm2949_vm1, %v1618_v8 }
 0x124   : > { %v1619_v21 = vmax.f32 %v1573_v14, 0.0  ;;  %v1396_v0 = vadd.f32 %v1395_v28, %v6857_v34  ;;  %v1576_v30 = vadd.f32 %v6875_v43, %v1401_v15  ;;  %v6965_v28 = vpop.f32.mrf.mxu0 }
 0x125   : > { %v5473_v17 = vpop.f32.mrf.mxu1 }
 0x126   : > { %v1575_v42 = vadd.f32 %v6875_v43, %v1396_v0  ;;  %v1411_v47 = vadd.f32 %v5473_v17, %v6861_v36  ;;  %5789 = vmatprep.mubr.msk.f32.mxu1 %vm2949_vm1, %v1619_v21  ;;  %v1622_v54 = vmax.f32 %v1576_v30, 0.0 }
 0x127   : > { %v1405_v32 = vpop.f32.mrf.mxu1  ;;  %5790 = vmatmul.mubr.msk.f32.gmra.mxu1 %vm2949_vm1, %v1620_v41 }
 0x128   : > { %v1621_v3 = vmax.f32 %v1575_v42, 0.0  ;;  %v1406_v52 = vadd.f32 %v1405_v32, %v6865_v38  ;;  %v1578_v34 = vadd.f32 %v6875_v43, %v1411_v47  ;;  %v6973_v47 = vpop.f32.mrf.mxu0 }
 0x129   : > { %v5476_v4 = vpop.f32.mrf.mxu1 }
 0x12a   : > { %v1577_v60 = vadd.f32 %v6875_v43, %v1406_v52  ;;  %v1421_v22 = vadd.f32 %v5476_v4, %v6869_v40  ;;  %5792 = vmatprep.mubr.msk.f32.mxu1 %vm2949_vm1, %v1621_v3  ;;  %v1624_v26 = vmax.f32 %v1578_v34, 0.0 }
 0x12b   : > { %v1415_v36 = vpop.f32.mrf.mxu1  ;;  %5793 = vmatmul.mubr.msk.f32.gmra.mxu1 %vm2949_vm1, %v1622_v54 }
 0x12c   : > { %v1623_v7 = vmax.f32 %v1577_v60, 0.0  ;;  %v1416_v8 = vadd.f32 %v1415_v36, %v6877_v44  ;;  %v1580_v38 = vadd.f32 %v6875_v43, %v1421_v22  ;;  %v6981_v60 = vpop.f32.mrf.mxu0 }
 0x12d   : > { %v5479_v11 = vpop.f32.mrf.mxu1 }
 0x12e   : > { %v1579_v14 = vadd.f32 %v6875_v43, %v1416_v8  ;;  %v1431_v15 = vadd.f32 %v5479_v11, %v6880_v48  ;;  %5795 = vmatprep.mubr.msk.f32.mxu1 %vm2949_vm1, %v1623_v7  ;;  %v1626_v41 = vmax.f32 %v1580_v38, 0.0  ;;  %v6989_v11 = vpop.f32.mrf.mxu0 }
 0x12f   : > { %v1425_v40 = vpop.f32.mrf.mxu1  ;;  %5796 = vmatmul.mubr.msk.f32.gmra.mxu1 %vm2949_vm1, %v1624_v26 }
 0x130   : > { %v1625_v21 = vmax.f32 %v1579_v14, 0.0  ;;  %v1426_v0 = vadd.f32 %v1425_v40, %v6885_v55  ;;  %v1582_v44 = vadd.f32 %v6875_v43, %v1431_v15  ;;  %v6991_v14 = vpop.permute.xlu0 %2659 }
 0x131   : > { %v5482_v30 = vpop.f32.mrf.mxu1 }
 0x132   : > { %v1581_v17 = vadd.f32 %v6875_v43, %v1426_v0  ;;  %v1441_v42 = vadd.f32 %v5482_v30, %v6888_v5  ;;  %5798 = vmatprep.mubr.msk.f32.mxu1 %vm2949_vm1, %v1625_v21  ;;  %v1628_v52 = vmax.f32 %v1582_v44, 0.0 }
 0x133   : > { %v1435_v48 = vpop.f32.mrf.mxu1  ;;  %5799 = vmatmul.mubr.msk.f32.gmra.mxu1 %vm2949_vm1, %v1626_v41  ;;  %v6995_v41 = vpop.permute.xlu1 %2669 }
 0x134   : > { %v1627_v32 = vmax.f32 %v1581_v17, 0.0  ;;  %v1436_v3 = vadd.f32 %v1435_v48, %v6894_v61  ;;  %v1584_v55 = vadd.f32 %v6875_v43, %v1441_v42  ;;  %v7001_v17 = vpop.f32.mrf.mxu0 }
 0x135   : > { %v5485_v54 = vpop.f32.mrf.mxu1 }
 0x136   : > { %v1583_v34 = vadd.f32 %v6875_v43, %v1436_v3  ;;  %v1451_v4 = vadd.f32 %v5485_v54, %v6745_v46  ;;  %5801 = vmatprep.mubr.msk.f32.mxu1 %vm2949_vm1, %v1627_v32  ;;  %v1630_v7 = vmax.f32 %v1584_v55, 0.0 }
 0x137   : > { %v1445_v5 = vpop.f32.mrf.mxu1  ;;  %5802 = vmatmul.mubr.msk.f32.gmra.mxu1 %vm2949_vm1, %v1628_v52  ;;  %v7005_v52 = vpop.permute.xlu0 %2664 }
 0x138   : > { %v1629_v22 = vmax.f32 %v1583_v34, 0.0  ;;  %v1446_v36 = vadd.f32 %v1445_v5, %v6753_v49  ;;  %v1586_v61 = vadd.f32 %v6875_v43, %v1451_v4  ;;  %v7011_v34 = vpop.f32.mrf.mxu0  ;;  %v7013_v4 = vpop.permute.xlu1 %2674 }
 0x139   : > { %v5488_v8 = vpop.f32.mrf.mxu1 }
 0x13a   : > { %v1585_v26 = vadd.f32 %v6875_v43, %v1446_v36  ;;  %v1461_v38 = vadd.f32 %v5488_v8, %v6756_v51  ;;  %5804 = vmatprep.mubr.msk.f32.mxu1 %vm2949_vm1, %v1629_v22  ;;  %v1632_v40 = vmax.f32 %v1586_v61, 0.0 }
 0x13b   : > { %v1455_v46 = vpop.f32.mrf.mxu1  ;;  %5805 = vmatmul.mubr.msk.f32.gmra.mxu1 %vm2949_vm1, %v1630_v7 }
 0x13c   : > { %v1631_v15 = vmax.f32 %v1585_v26, 0.0  ;;  %v1456_v49 = vadd.f32 %v1455_v46, %v6761_v53  ;;  %v1588_v21 = vadd.f32 %v6875_v43, %v1461_v38  ;;  %v7021_v26 = vpop.f32.mrf.mxu0  ;;  %v7023_v38 = vpop.permute.xlu0 %2679 }
 0x13d   : > { %v5491_v0 = vpop.f32.mrf.mxu1 }
 0x13e   : > { %v1587_v51 = vadd.f32 %v6875_v43, %v1456_v49  ;;  %v1471_v44 = vadd.f32 %v5491_v0, %v6766_v56  ;;  %5807 = vmatprep.mubr.msk.f32.mxu1 %vm2949_vm1, %v1631_v15  ;;  %v1634_v48 = vmax.f32 %v1588_v21, 0.0  ;;  %v7027_v21 = vpop.permute.xlu1 %2684 }
 0x13f   : > { %v1465_v30 = vpop.f32.mrf.mxu1  ;;  %5808 = vmatmul.mubr.msk.f32.gmra.mxu1 %vm2949_vm1, %v1632_v40 }
 0x140   : > { %v1633_v42 = vmax.f32 %v1587_v51, 0.0  ;;  %v1466_v53 = vadd.f32 %v1465_v30, %v6773_v59  ;;  %v1590_v32 = vadd.f32 %v6875_v43, %v1471_v44  ;;  %v7033_v44 = vpop.f32.mrf.mxu0 }
 0x141   : > { %v5494_v3 = vpop.f32.mrf.mxu1 }
 0x142   : > { %v1589_v55 = vadd.f32 %v6875_v43, %v1466_v53  ;;  %v1481_v56 = vadd.f32 %v5494_v3, %v6778_v62  ;;  %5810 = vmatprep.mubr.msk.f32.mxu1 %vm2949_vm1, %v1633_v42  ;;  %v1636_v22 = vmax.f32 %v1590_v32, 0.0  ;;  %v7037_v32 = vpop.permute.xlu0 %2689 }
 0x143   : > { %v1475_v54 = vpop.f32.mrf.mxu1  ;;  %5811 = vmatmul.mubr.msk.f32.gmra.mxu1 %vm2949_vm1, %v1634_v48 }
 0x144   : > { %v1635_v59 = vmax.f32 %v1589_v55, 0.0  ;;  %v1476_v5 = vadd.f32 %v1475_v54, %v6785_v1  ;;  %v1592_v36 = vadd.f32 %v6875_v43, %v1481_v56  ;;  %v7043_v56 = vpop.f32.mrf.mxu0  ;;  %v7045_v54 = vpop.permute.xlu1 %2694 }
 0x145   : > { %v5497_v7 = vpop.f32.mrf.mxu1 }
 0x146   : > { %v1591_v61 = vadd.f32 %v6875_v43, %v1476_v5  ;;  %v1491_v62 = vadd.f32 %v5497_v7, %v6793_v6  ;;  %5813 = vmatprep.mubr.msk.f32.mxu1 %vm2949_vm1, %v1635_v59  ;;  %v1638_v15 = vmax.f32 %v1592_v36, 0.0 }
 0x147   : > { %v1485_v8 = vpop.f32.mrf.mxu1  ;;  %5814 = vmatmul.mubr.msk.f32.gmra.mxu1 %vm2949_vm1, %v1636_v22 }
 0x148   : > { %v1637_v46 = vmax.f32 %v1591_v61, 0.0  ;;  %v1486_v1 = vadd.f32 %v1485_v8, %v6800_v9  ;;  %v1594_v49 = vadd.f32 %v6875_v43, %v1491_v62  ;;  %v7053_v62 = vpop.f32.mrf.mxu0  ;;  %v7055_v8 = vpop.permute.xlu0 %2699 }
 0x149   : > { %v5500_v40 = vpop.f32.mrf.mxu1 }
 0x14a   : > { %v1593_v6 = vadd.f32 %v6875_v43, %v1486_v1  ;;  %v1501_v0 = vadd.f32 %v5500_v40, %v6805_v13  ;;  %5816 = vmatprep.mubr.msk.f32.mxu1 %vm2949_vm1, %v1637_v46  ;;  %v1640_v42 = vmax.f32 %v1594_v49, 0.0  ;;  %v7059_v40 = vpop.permute.xlu1 %2704 }
 0x14b   : > { %v1495_v51 = vpop.f32.mrf.mxu1  ;;  %5817 = vmatmul.mubr.msk.f32.gmra.mxu1 %vm2949_vm1, %v1638_v15 }
 0x14c   : > { %v1639_v30 = vmax.f32 %v1593_v6, 0.0  ;;  %v1496_v9 = vadd.f32 %v1495_v51, %v6812_v10  ;;  %v1596_v53 = vadd.f32 %v6875_v43, %v1501_v0  ;;  %v7065_v51 = vpop.f32.mrf.mxu0 }
 0x14d   : > { %v5503_v48 = vpop.f32.mrf.mxu1 }
 0x14e   : > { %v1595_v3 = vadd.f32 %v6875_v43, %v1496_v9  ;;  %v1511_v13 = vadd.f32 %v5503_v48, %v6817_v18  ;;  %5819 = vmatprep.mubr.msk.f32.mxu1 %vm2949_vm1, %v1639_v30  ;;  %v1642_v5 = vmax.f32 %v1596_v53, 0.0  ;;  %v7069_v48 = vpop.permute.xlu0 %2709 }
 0x14f   : > { %v1505_v55 = vpop.f32.mrf.mxu1  ;;  %5820 = vmatmul.mubr.msk.f32.gmra.mxu1 %vm2949_vm1, %v1640_v42 }
 0x150   : > { %v1641_v10 = vmax.f32 %v1595_v3, 0.0  ;;  %v1506_v59 = vadd.f32 %v1505_v55, %v6824_v12  ;;  %v1598_v22 = vadd.f32 %v6875_v43, %v1511_v13  ;;  %v7075_v55 = vpop.f32.mrf.mxu0 }
 0x151   : > { %v5506_v36 = vpop.f32.mrf.mxu1 }
 0x152   : > { %v1597_v7 = vadd.f32 %v6875_v43, %v1506_v59  ;;  %v1521_v18 = vadd.f32 %v5506_v36, %v6834_v24  ;;  %5822 = vmatprep.mubr.msk.f32.mxu1 %vm2949_vm1, %v1641_v10  ;;  %v1644_v1 = vmax.f32 %v1598_v22, 0.0  ;;  %v7077_v10 = vpop.permute.xlu1 %2714 }
 0x153   : > { %v1515_v61 = vpop.f32.mrf.mxu1  ;;  %5823 = vmatmul.mubr.msk.f32.gmra.mxu1 %vm2949_vm1, %v1642_v5 }
 0x154   : > { %v1643_v46 = vmax.f32 %v1597_v7, 0.0  ;;  %v1516_v12 = vadd.f32 %v1515_v61, %v6842_v27  ;;  %v1600_v15 = vadd.f32 %v6875_v43, %v1521_v18  ;;  %v7085_v61 = vpop.f32.mrf.mxu0 }
 0x155   : > { %v5509_v49 = vpop.f32.mrf.mxu1 }
 0x156   : > { %v1599_v24 = vadd.f32 %v6875_v43, %v1516_v12  ;;  %v1531_v6 = vadd.f32 %v5509_v49, %v6846_v29  ;;  %5825 = vmatprep.mubr.msk.f32.mxu1 %vm2949_vm1, %v1643_v46  ;;  %v1646_v9 = vmax.f32 %v1600_v15, 0.0  ;;  %v7087_v46 = vpop.permute.xlu0 %2719 }
 0x157   : > { %v1525_v0 = vpop.f32.mrf.mxu1  ;;  %5826 = vmatmul.mubr.msk.f32.gmra.mxu1 %vm2949_vm1, %v1644_v1 }
 0x158   : > { %v1645_v30 = vmax.f32 %v1599_v24, 0.0  ;;  %v1526_v27 = vadd.f32 %v1525_v0, %v6851_v31  ;;  %v1602_v42 = vadd.f32 %v6875_v43, %v1531_v6  ;;  %v7091_v24 = vpop.permute.xlu1 %2724 }
 0x159   : > { %v5512_v53 = vpop.f32.mrf.mxu1 }
 0x15a   : > { %v1601_v3 = vadd.f32 %v6875_v43, %v1526_v27  ;;  %v1541_v29 = vadd.f32 %v5512_v53, %v6855_v33  ;;  %5828 = vmatprep.mubr.msk.f32.mxu1 %vm2949_vm1, %v1645_v30  ;;  %v1648_v5 = vmax.f32 %v1602_v42, 0.0  ;;  %v7097_v30 = vpop.f32.mrf.mxu0 }
 0x15b   : > { %v1535_v13 = vpop.f32.mrf.mxu1  ;;  %5829 = vmatmul.mubr.msk.f32.gmra.mxu1 %vm2949_vm1, %v1646_v9 }
 0x15c   : > { %v1647_v31 = vmax.f32 %v1601_v3, 0.0  ;;  %v1536_v59 = vadd.f32 %v1535_v13, %v6859_v35  ;;  %v1604_v22 = vadd.f32 %v6875_v43, %v1541_v29  ;;  %v7101_v3 = vpop.permute.xlu0 %2729 }
 0x15d   : > { %v5515_v36 = vpop.f32.mrf.mxu1 }
 0x15e   : > { %v1603_v7 = vadd.f32 %v6875_v43, %v1536_v59  ;;  %v1551_v33 = vadd.f32 %v5515_v36, %v6863_v37  ;;  %5831 = vmatprep.mubr.msk.f32.mxu1 %vm2949_vm1, %v1647_v31  ;;  %v1650_v1 = vmax.f32 %v1604_v22, 0.0  ;;  %v7107_v59 = vpop.f32.mrf.mxu0 }
 0x15f   : > { %v1545_v18 = vpop.f32.mrf.mxu1  ;;  %5832 = vmatmul.mubr.msk.f32.gmra.mxu1 %vm2949_vm1, %v1648_v5  ;;  %v7109_v5 = vpop.permute.xlu1 %2734 }
 0x160   : > { %v1649_v12 = vmax.f32 %v1603_v7, 0.0  ;;  %v1546_v35 = vadd.f32 %v1545_v18, %v6867_v39  ;;  %v1606_v15 = vadd.f32 %v6875_v43, %v1551_v33 }
 0x161   : > { %v5603_v49 = vpop.f32.mrf.mxu1 }
 0x162   : > { %v1605_v37 = vadd.f32 %v6875_v43, %v1546_v35  ;;  %v2342_v6 = vadd.f32 %v5603_v49, %v6898_v25  ;;  %5834 = vmatprep.mubr.msk.f32.mxu1 %vm2949_vm1, %v1649_v12  ;;  %v1652_v42 = vmax.f32 %v1606_v15, 0.0  ;;  %v7117_v15 = vpop.f32.mrf.mxu0  ;;  %v7119_v49 = vpop.permute.xlu0 %2739 }
 0x163   : > { %v2336_v0 = vpop.f32.mrf.mxu1  ;;  %5835 = vmatmul.mubr.msk.f32.gmra.mxu1 %vm2949_vm1, %v1650_v1 }
 0x164   : > { %v1651_v27 = vmax.f32 %v1605_v37, 0.0  ;;  %v2566_v39 = vadd.f32 %v6875_v43, %v2342_v6  ;;  %v2337_v9 = vadd.f32 %v2336_v0, %v6904_v50 }
 0x165   : > { %v5606_v53 = vpop.f32.mrf.mxu1 }
 0x166   : > { %v2565_v29 = vadd.f32 %v6875_v43, %v2337_v9  ;;  %v2352_v25 = vadd.f32 %v5606_v53, %v6908_v57  ;;  %5837 = vmatprep.mubr.msk.f32.mxu1 %vm2949_vm1, %v1651_v27  ;;  %v2612_v13 = vmax.f32 %v2566_v39, 0.0 }
 0x167   : > { %v2346_v31 = vpop.f32.mrf.mxu1  ;;  %5838 = vmatmul.mubr.msk.f32.gmra.mxu1 %vm2949_vm1, %v1652_v42 }
 0x168   : > { %v2611_v22 = vmax.f32 %v2565_v29, 0.0  ;;  %v2568_v50 = vadd.f32 %v6875_v43, %v2352_v25  ;;  %v2347_v36 = vadd.f32 %v2346_v31, %v6914_v58  ;;  %v2888_v12 = vmul.f32 %v7005_v52, %v2612_v13  ;;  %v7128_v52 = vpop.permute.xlu1 %2744  ;;  %v7138_v29 = vpop.f32.mrf.mxu0 }
 0x169   : > { %v5609_v7 = vpop.f32.mrf.mxu1 }
 0x16a   : > { %v2887_v33 = vmul.f32 %v6991_v14, %v2611_v22  ;;  %v2567_v57 = vadd.f32 %v6875_v43, %v2347_v36  ;;  %v2362_v18 = vadd.f32 %v5609_v7, %v6918_v16  ;;  %v2614_v35 = vmax.f32 %v2568_v50, 0.0  ;;  %v3917_v14 = vld [vmem:[%s7948_s11 + $0x10] sm:$0xff] }
 0x16b   : > { %v2356_v1 = vpop.f32.mrf.mxu1 }
 0x16c   : > { %v2613_v37 = vmax.f32 %v2567_v57, 0.0  ;;  %v2570_v6 = vadd.f32 %v6875_v43, %v2362_v18  ;;  %v2357_v58 = vadd.f32 %v2356_v1, %v6925_v45  ;;  %5686 = vmatprep.mubr.msk.f32.mxu0 %vm2949_vm1, %v2887_v33  ;;  %v3916_v45 = vld [vmem:[%s7948_s11 + $0x8] sm:$0xff]  ;;  %v2890_v9 = vmul.f32 %v7013_v4, %v2614_v35  ;;  %v7147_v4 = vpop.permute.xlu0 %2749  ;;  %v7153_v33 = vpop.f32.mrf.mxu0 }
 0x16d   : > { %v5612_v16 = vpop.f32.mrf.mxu1  ;;  %5687 = vmatmul.mubr.msk.f32.vlgmr.msra.gmra.mxu0 %vm2949_vm1, %v2888_v12  ;;  %v7155_v57 = vpop.permute.xlu1 %2754 }
 0x16e   : > { %v2889_v0 = vmul.f32 %v6995_v41, %v2613_v37  ;;  %v2569_v27 = vadd.f32 %v6875_v43, %v2357_v58  ;;  %v2372_v39 = vadd.f32 %v5612_v16, %v6933_v63  ;;  %5841 = vmatpush3.msra.mxu0 %v6832_v23  ;;  %v2616_v42 = vmax.f32 %v2570_v6, 0.0  ;;  %v3915_v23 = vld [vmem:[%s7948_s11] sm:$0xff] }
 0x16f   : > { %v2366_v53 = vpop.f32.mrf.mxu1  ;;  %5842 = vmatprep.subr.mxu0 %v3917_v14 }
 0x170   : > { %v2615_v25 = vmax.f32 %v2569_v27, 0.0  ;;  %v2572_v41 = vadd.f32 %v6875_v43, %v2372_v39  ;;  %v2367_v13 = vadd.f32 %v2366_v53, %v6941_v19  ;;  %5689 = vmatprep.mubr.msk.f32.mxu0 %vm2949_vm1, %v2889_v0  ;;  %5843 = vmatpush3.msra.mxu0 %v3917_v14  ;;  %v2892_v19 = vmul.f32 %v7027_v21, %v2616_v42  ;;  %v7165_v14 = vpop.f32.mrf.mxu0  ;;  %v7167_v16 = vpop.permute.xlu0 %2759 }
 0x171   : > { %v5615_v63 = vpop.f32.mrf.mxu1  ;;  %5690 = vmatmul.mubr.msk.f32.gmra.mxu0 %vm2949_vm1, %v2890_v9  ;;  %5844 = vmatprep.subr.mxu0 %v3916_v45  ;;  %v7173_v39 = vpop.permute.xlu1 %2764 }
 0x172   : > { %v2891_v31 = vmul.f32 %v7023_v38, %v2615_v25  ;;  %v2571_v22 = vadd.f32 %v6875_v43, %v2367_v13  ;;  %v2382_v50 = vadd.f32 %v5615_v63, %v6949_v20  ;;  %5845 = vmatpush3.msra.mxu0 %v3916_v45  ;;  %v2618_v36 = vmax.f32 %v2572_v41, 0.0  ;;  %v7179_v25 = vpop.f32.mrf.mxu0 }
 0x173   : > { %v2376_v7 = vpop.f32.mrf.mxu1  ;;  %5846 = vmatprep.subr.mxu0 %v3915_v23 }
 0x174   : > { %v2617_v18 = vmax.f32 %v2571_v22, 0.0  ;;  %v2574_v12 = vadd.f32 %v6875_v43, %v2382_v50  ;;  %v2377_v35 = vadd.f32 %v2376_v7, %v6957_v2  ;;  %5692 = vmatprep.mubr.msk.f32.mxu0 %vm2949_vm1, %v2891_v31  ;;  %5847 = vmatpush3.msra.mxu0 %v3915_v23  ;;  %v2894_v37 = vmul.f32 %v7045_v54, %v2618_v36 }
 0x175   : > { %v5618_v38 = vpop.f32.mrf.mxu1  ;;  %5693 = vmatmul.mubr.msk.f32.gmra.mxu0 %vm2949_vm1, %v2892_v19  ;;  %v7191_v19 = vpop.f32.mrf.mxu0 }
 0x176   : > { %v2893_v20 = vmul.f32 %v7037_v32, %v2617_v18  ;;  %v2573_v21 = vadd.f32 %v6875_v43, %v2377_v35  ;;  %v2392_v1 = vadd.f32 %v5618_v38, %v6965_v28  ;;  %v2620_v6 = vmax.f32 %v2574_v12, 0.0 }
 0x177   : > { %v2386_v58 = vpop.f32.mrf.mxu1 }
 0x178   : > { %v2619_v2 = vmax.f32 %v2573_v21, 0.0  ;;  %v2576_v0 = vadd.f32 %v6875_v43, %v2392_v1  ;;  %v2387_v27 = vadd.f32 %v2386_v58, %v6973_v47  ;;  %5695 = vmatprep.mubr.msk.f32.mxu0 %vm2949_vm1, %v2893_v20  ;;  %v2896_v9 = vmul.f32 %v7059_v40, %v2620_v6  ;;  %v7203_v21 = vpop.f32.mrf.mxu0 }
 0x179   : > { %v5621_v32 = vpop.f32.mrf.mxu1  ;;  %5696 = vmatmul.mubr.msk.f32.gmra.mxu0 %vm2949_vm1, %v2894_v37 }
 0x17a   : > { %v2895_v28 = vmul.f32 %v7055_v8, %v2619_v2  ;;  %v2575_v54 = vadd.f32 %v6875_v43, %v2387_v27  ;;  %v2402_v45 = vadd.f32 %v5621_v32, %v6981_v60  ;;  %v2622_v42 = vmax.f32 %v2576_v0, 0.0  ;;  %v7185_v8 = vpop.permute.xlu0 %2769 }
 0x17b   : > { %v2396_v53 = vpop.f32.mrf.mxu1 }
 0x17c   : > { %v2621_v47 = vmax.f32 %v2575_v54, 0.0  ;;  %v2578_v41 = vadd.f32 %v6875_v43, %v2402_v45  ;;  %v2397_v13 = vadd.f32 %v2396_v53, %v6989_v11  ;;  %5698 = vmatprep.mubr.msk.f32.mxu0 %vm2949_vm1, %v2895_v28  ;;  %v2898_v31 = vmul.f32 %v7077_v10, %v2622_v42  ;;  %v7193_v11 = vpop.permute.xlu1 %2774  ;;  %v7217_v28 = vpop.f32.mrf.mxu0 }
 0x17d   : > { %v5624_v23 = vpop.f32.mrf.mxu1  ;;  %5699 = vmatmul.mubr.msk.f32.gmra.mxu0 %vm2949_vm1, %v2896_v9 }
 0x17e   : > { %v2897_v60 = vmul.f32 %v7069_v48, %v2621_v47  ;;  %v2577_v40 = vadd.f32 %v6875_v43, %v2397_v13  ;;  %v2412_v63 = vadd.f32 %v5624_v23, %v7001_v17  ;;  %v2624_v22 = vmax.f32 %v2578_v41, 0.0  ;;  %v7205_v1 = vpop.permute.xlu0 %2779  ;;  %v7229_v13 = vpop.f32.mrf.mxu0 }
 0x17f   : > { %v2406_v50 = vpop.f32.mrf.mxu1 }
 0x180   : > { %v2623_v36 = vmax.f32 %v2577_v40, 0.0  ;;  %v2580_v7 = vadd.f32 %v6875_v43, %v2412_v63  ;;  %v2407_v18 = vadd.f32 %v2406_v50, %v7011_v34  ;;  %5701 = vmatprep.mubr.msk.f32.mxu0 %vm2949_vm1, %v2897_v60  ;;  %v2900_v35 = vmul.f32 %v7091_v24, %v2624_v22  ;;  %v7211_v58 = vpop.permute.xlu1 %2784 }
 0x181   : > { %v5627_v48 = vpop.f32.mrf.mxu1  ;;  %5702 = vmatmul.mubr.msk.f32.gmra.mxu0 %vm2949_vm1, %v2898_v31 }
 0x182   : > { %v2899_v17 = vmul.f32 %v7087_v46, %v2623_v36  ;;  %v2579_v10 = vadd.f32 %v6875_v43, %v2407_v18  ;;  %v2422_v12 = vadd.f32 %v5627_v48, %v7021_v26  ;;  %v2626_v38 = vmax.f32 %v2580_v7, 0.0  ;;  %v7241_v36 = vpop.f32.mrf.mxu0 }
 0x183   : > { %v2416_v20 = vpop.f32.mrf.mxu1 }
 0x184   : > { %v2625_v34 = vmax.f32 %v2579_v10, 0.0  ;;  %v2582_v37 = vadd.f32 %v6875_v43, %v2422_v12  ;;  %v2417_v6 = vadd.f32 %v2416_v20, %v7033_v44  ;;  %5704 = vmatprep.mubr.msk.f32.mxu0 %vm2949_vm1, %v2899_v17  ;;  %v2902_v0 = vmul.f32 %v7109_v5, %v2626_v38  ;;  %v7253_v20 = vpop.f32.mrf.mxu0 }
 0x185   : > { %v5630_v46 = vpop.f32.mrf.mxu1  ;;  %5705 = vmatmul.mubr.msk.f32.gmra.mxu0 %vm2949_vm1, %v2900_v35 }
 0x186   : > { %v2901_v26 = vmul.f32 %v7101_v3, %v2625_v34  ;;  %v2581_v24 = vadd.f32 %v6875_v43, %v2417_v6  ;;  %v2432_v2 = vadd.f32 %v5630_v46, %v7043_v56  ;;  %v2628_v27 = vmax.f32 %v2582_v37, 0.0  ;;  %v7223_v3 = vpop.permute.xlu0 %2789 }
 0x187   : > { %v2426_v32 = vpop.f32.mrf.mxu1 }
 0x188   : > { %v2627_v44 = vmax.f32 %v2581_v24, 0.0  ;;  %v2584_v54 = vadd.f32 %v6875_v43, %v2432_v2  ;;  %v2427_v45 = vadd.f32 %v2426_v32, %v7053_v62  ;;  %5707 = vmatprep.mubr.msk.f32.mxu0 %vm2949_vm1, %v2901_v26  ;;  %v2904_v53 = vmul.f32 %v7128_v52, %v2628_v27  ;;  %v7231_v62 = vpop.permute.xlu1 %2794 }
 0x189   : > { %v5633_v9 = vpop.f32.mrf.mxu1  ;;  %5708 = vmatmul.mubr.msk.f32.gmra.mxu0 %vm2949_vm1, %v2902_v0  ;;  %v7263_v0 = vpop.f32.mrf.mxu0 }
 0x18a   : > { %v2903_v56 = vmul.f32 %v7119_v49, %v2627_v44  ;;  %v2583_v5 = vadd.f32 %v6875_v43, %v2427_v45  ;;  %v2442_v42 = vadd.f32 %v5633_v9, %v7065_v51  ;;  %v2630_v47 = vmax.f32 %v2584_v54, 0.0  ;;  %v7243_v7 = vpop.permute.xlu0 %2799 }
 0x18b   : > { %v2436_v41 = vpop.f32.mrf.mxu1 }
 0x18c   : > { %v2629_v23 = vmax.f32 %v2583_v5, 0.0  ;;  %v2586_v60 = vadd.f32 %v6875_v43, %v2442_v42  ;;  %v2437_v40 = vadd.f32 %v2436_v41, %v7075_v55  ;;  %5710 = vmatprep.mubr.msk.f32.mxu0 %vm2949_vm1, %v2903_v56  ;;  %v2906_v31 = vmul.f32 %v7155_v57, %v2630_v47  ;;  %v2805_v17 = vpop.permute.xlu1 %2804  ;;  %v2083_v5 = vpop.f32.mrf.mxu0 }
 0x18d   : > { %v5636_v49 = vpop.f32.mrf.mxu1  ;;  %5711 = vmatmul.mubr.msk.f32.gmra.mxu0 %vm2949_vm1, %v2904_v53 }
 0x18e   : > { %v2905_v51 = vmul.f32 %v7147_v4, %v2629_v23  ;;  %v2585_v52 = vadd.f32 %v6875_v43, %v2437_v40  ;;  %v2452_v63 = vadd.f32 %v5636_v49, %v7085_v61  ;;  %v2632_v22 = vmax.f32 %v2586_v60, 0.0 }
 0x18f   : > { %v2446_v50 = vpop.f32.mrf.mxu1 }
 0x190   : > { %v2631_v55 = vmax.f32 %v2585_v52, 0.0  ;;  %v2588_v18 = vadd.f32 %v6875_v43, %v2452_v63  ;;  %v2447_v48 = vadd.f32 %v2446_v50, %v7097_v30  ;;  %5713 = vmatprep.mubr.msk.f32.mxu0 %vm2949_vm1, %v2905_v51  ;;  %v2908_v12 = vmul.f32 %v7173_v39, %v2632_v22  ;;  %v2815_v27 = vpop.permute.xlu1 %2814  ;;  %v5583_v51 = vpop.f32.mrf.mxu0 }
 0x191   : > { %v5639_v4 = vpop.f32.mrf.mxu1  ;;  %5714 = vmatmul.mubr.msk.f32.gmra.mxu0 %vm2949_vm1, %v2906_v31 }
 0x192   : > { %v2907_v61 = vmul.f32 %v7167_v16, %v2631_v55  ;;  %v2587_v57 = vadd.f32 %v6875_v43, %v2447_v48  ;;  %v2462_v10 = vadd.f32 %v5639_v4, %v7107_v59  ;;  %v2634_v35 = vmax.f32 %v2588_v18, 0.0  ;;  %v2810_v16 = vpop.permute.xlu0 %2809  ;;  %v2093_v48 = vpop.f32.mrf.mxu0 }
 0x193   : > { %v2456_v38 = vpop.f32.mrf.mxu1 }
 0x194   : > { %v2633_v34 = vmax.f32 %v2587_v57, 0.0  ;;  %v2590_v30 = vadd.f32 %v6875_v43, %v2462_v10  ;;  %v2457_v37 = vadd.f32 %v2456_v38, %v7117_v15  ;;  %5716 = vmatprep.mubr.msk.f32.mxu0 %vm2949_vm1, %v2907_v61  ;;  %v2910_v26 = vmul.f32 %v7193_v11, %v2634_v35 }
 0x195   : > { %v5642_v6 = vpop.f32.mrf.mxu1  ;;  %5717 = vmatmul.mubr.msk.f32.gmra.mxu0 %vm2949_vm1, %v2908_v12 }
 0x196   : > { %v2909_v46 = vmul.f32 %v7185_v8, %v2633_v34  ;;  %v2589_v59 = vadd.f32 %v6875_v43, %v2457_v37  ;;  %v2472_v39 = vadd.f32 %v5642_v6, %v7138_v29  ;;  %v2636_v24 = vmax.f32 %v2590_v30, 0.0  ;;  %v2820_v42 = vpop.permute.xlu0 %2819  ;;  %v5586_v34 = vpop.f32.mrf.mxu0 }
 0x197   : > { %v2466_v2 = vpop.f32.mrf.mxu1 }
 0x198   : > { %v2635_v15 = vmax.f32 %v2589_v59, 0.0  ;;  %v2592_v32 = vadd.f32 %v6875_v43, %v2472_v39  ;;  %v2467_v44 = vadd.f32 %v2466_v2, %v7153_v33  ;;  %5719 = vmatprep.mubr.msk.f32.mxu0 %vm2949_vm1, %v2909_v46  ;;  %v2912_v45 = vmul.f32 %v7211_v58, %v2636_v24 }
 0x199   : > { %v5645_v54 = vpop.f32.mrf.mxu1  ;;  %5720 = vmatmul.mubr.msk.f32.gmra.mxu0 %vm2949_vm1, %v2910_v26 }
 0x19a   : > { %v2911_v8 = vmul.f32 %v7205_v1, %v2635_v15  ;;  %v2591_v29 = vadd.f32 %v6875_v43, %v2467_v44  ;;  %v2482_v11 = vadd.f32 %v5645_v54, %v7165_v14  ;;  %v2638_v9 = vmax.f32 %v2592_v32, 0.0  ;;  %v2825_v1 = vpop.permute.xlu1 %2824 }
 0x19b   : > { %v2476_v56 = vpop.f32.mrf.mxu1 }
 0x19c   : > { %v2637_v53 = vmax.f32 %v2591_v29, 0.0  ;;  %v2594_v33 = vadd.f32 %v6875_v43, %v2482_v11  ;;  %v2477_v47 = vadd.f32 %v2476_v56, %v7179_v25  ;;  %5722 = vmatprep.mubr.msk.f32.mxu0 %vm2949_vm1, %v2911_v8  ;;  %v2914_v60 = vmul.f32 %v7231_v62, %v2638_v9 }
 0x19d   : > { %v5648_v41 = vpop.f32.mrf.mxu1  ;;  %5723 = vmatmul.mubr.msk.f32.gmra.mxu0 %vm2949_vm1, %v2912_v45 }
 0x19e   : > { %v2913_v23 = vmul.f32 %v7223_v3, %v2637_v53  ;;  %v2593_v14 = vadd.f32 %v6875_v43, %v2477_v47  ;;  %v2492_v58 = vadd.f32 %v5648_v41, %v7191_v19  ;;  %v2640_v40 = vmax.f32 %v2594_v33, 0.0  ;;  %v2830_v3 = vpop.permute.xlu0 %2829  ;;  %v2835_v4 = vpop.permute.xlu1 %2834 }
 0x19f   : > { %v2486_v49 = vpop.f32.mrf.mxu1 }
 0x1a0   : > { %v2639_v52 = vmax.f32 %v2593_v14, 0.0  ;;  %v2596_v25 = vadd.f32 %v6875_v43, %v2492_v58  ;;  %v2487_v63 = vadd.f32 %v2486_v49, %v7203_v21  ;;  %5725 = vmatprep.mubr.msk.f32.mxu0 %vm2949_vm1, %v2913_v23  ;;  %v2916_v50 = vmul.f32 %v2805_v17, %v2640_v40 }
 0x1a1   : > { %v5651_v31 = vpop.f32.mrf.mxu1  ;;  %5726 = vmatmul.mubr.msk.f32.gmra.mxu0 %vm2949_vm1, %v2914_v60 }
 0x1a2   : > { %v2915_v22 = vmul.f32 %v7243_v7, %v2639_v52  ;;  %v2595_v19 = vadd.f32 %v6875_v43, %v2487_v63  ;;  %v2502_v62 = vadd.f32 %v5651_v31, %v7217_v28  ;;  %v2642_v55 = vmax.f32 %v2596_v25, 0.0  ;;  %v7295_v28 = vld [vmem:[%s7944_s7] ss:$0 sm:$0xff]  ;;  %v2845_v46 = vpop.permute.xlu1 %2844 }
 0x1a3   : > { %v2496_v18 = vpop.f32.mrf.mxu1 }
 0x1a4   : > { %v2641_v61 = vmax.f32 %v2595_v19, 0.0  ;;  %v2598_v21 = vadd.f32 %v6875_v43, %v2502_v62  ;;  %v2497_v57 = vadd.f32 %v2496_v18, %v7229_v13  ;;  %5728 = vmatprep.mubr.msk.f32.mxu0 %vm2949_vm1, %v2915_v22  ;;  %v2918_v35 = vmul.f32 %v2815_v27, %v2642_v55  ;;  %v2840_v13 = vpop.permute.xlu0 %2839  ;;  %v2103_v27 = vpop.f32.mrf.mxu0 }
 0x1a5   : > { %v5654_v10 = vpop.f32.mrf.mxu1  ;;  %5729 = vmatmul.mubr.msk.f32.gmra.mxu0 %vm2949_vm1, %v2916_v50 }
 0x1a6   : > { %v2917_v7 = vmul.f32 %v2810_v16, %v2641_v61  ;;  %v2597_v17 = vadd.f32 %v7295_v28, %v2497_v57  ;;  %v2512_v12 = vadd.f32 %v5654_v10, %v7241_v36  ;;  %v2644_v38 = vmax.f32 %v2598_v21, 0.0  ;;  %v5589_v56 = vpop.f32.mrf.mxu0 }
 0x1a7   : > { %v2506_v43 = vpop.f32.mrf.mxu1 }
 0x1a8   : > { %v2643_v30 = vmax.f32 %v2597_v17, 0.0  ;;  %v2600_v37 = vadd.f32 %v7295_v28, %v2512_v12  ;;  %v2507_v6 = vadd.f32 %v2506_v43, %v7253_v20  ;;  %5731 = vmatprep.mubr.msk.f32.mxu0 %vm2949_vm1, %v2917_v7  ;;  %v2920_v26 = vmul.f32 %v2825_v1, %v2644_v38  ;;  %v2850_v54 = vpop.permute.xlu0 %2849  ;;  %v2113_v40 = vpop.f32.mrf.mxu0 }
 0x1a9   : > { %v5657_v16 = vpop.f32.mrf.mxu1  ;;  %5732 = vmatmul.mubr.msk.f32.gmra.mxu0 %vm2949_vm1, %v2918_v35 }
 0x1aa   : > { %v2919_v59 = vmul.f32 %v2820_v42, %v2643_v30  ;;  %v2599_v39 = vadd.f32 %v7295_v28, %v2507_v6  ;;  %v2522_v36 = vadd.f32 %v5657_v16, %v7263_v0  ;;  %v2646_v24 = vmax.f32 %v2600_v37, 0.0  ;;  %v2855_v42 = vpop.permute.xlu1 %2854  ;;  %v5592_v18 = vpop.f32.mrf.mxu0 }
 0x1ab   : > { %v2516_v2 = vpop.f32.mrf.mxu1 }
 0x1ac   : > { %v2645_v15 = vmax.f32 %v2599_v39, 0.0  ;;  %v2602_v32 = vadd.f32 %v7295_v28, %v2522_v36  ;;  %v2517_v44 = vadd.f32 %v2516_v2, %v2083_v5  ;;  %5734 = vmatprep.mubr.msk.f32.mxu0 %vm2949_vm1, %v2919_v59  ;;  %v2922_v45 = vmul.f32 %v2835_v4, %v2646_v24  ;;  %v2860_v49 = vpop.permute.xlu0 %2859  ;;  %v2123_v38 = vpop.f32.mrf.mxu0 }
 0x1ad   : > { %v5660_v20 = vpop.f32.mrf.mxu1  ;;  %5735 = vmatmul.mubr.msk.f32.gmra.mxu0 %vm2949_vm1, %v2920_v26 }
 0x1ae   : > { %v2921_v8 = vmul.f32 %v2830_v3, %v2645_v15  ;;  %v2601_v29 = vadd.f32 %v7295_v28, %v2517_v44  ;;  %v2532_v11 = vadd.f32 %v5660_v20, %v5583_v51  ;;  %v2648_v0 = vmax.f32 %v2602_v32, 0.0  ;;  %v2865_v31 = vpop.permute.xlu1 %2864  ;;  %v5957_v15 = vld [vmem:[%s6300_s17 + $0x10] sm:$0xff]  ;;  %v5958_v32 = vld [vmem:[%s6300_s17 + $0x18] sm:$0xff]  ;;  %v5959_v44 = vld [vmem:[%s6300_s17 + $0x20] sm:$0xff] }
 0x1af   : > { %v2526_v9 = vpop.f32.mrf.mxu1  ;;  %v5960_v20 = vld [vmem:[%s6300_s17 + $0x28] sm:$0xff] }
 0x1b0   : > { %v2647_v53 = vmax.f32 %v2601_v29, 0.0  ;;  %v2604_v33 = vadd.f32 %v7295_v28, %v2532_v11  ;;  %v2527_v47 = vadd.f32 %v2526_v9, %v2093_v48  ;;  %5737 = vmatprep.mubr.msk.f32.mxu0 %vm2949_vm1, %v2921_v8  ;;  %v2924_v14 = vmul.f32 %v2845_v46, %v2648_v0  ;;  %v2870_v57 = vpop.permute.xlu0 %2869  ;;  %v5962_v8 = vld [vmem:[%s6300_s17 + $0x38] sm:$0xff]  ;;  %v5963_v29 = vld [vmem:[%s6300_s17 + $0x40] sm:$0xff]  ;;  %v5964_v11 = vld [vmem:[%s6300_s17 + $0x48] sm:$0xff] }
 0x1b1   : > { %v5663_v5 = vpop.f32.mrf.mxu1  ;;  %5738 = vmatmul.mubr.msk.f32.gmra.mxu0 %vm2949_vm1, %v2922_v45  ;;  %v5965_v45 = vld [vmem:[%s6300_s17 + $0x50] sm:$0xff]  ;;  %v5966_v0 = vld [vmem:[%s6300_s17 + $0x58] sm:$0xff]  ;;  %v5967_v9 = vld [vmem:[%s6300_s17 + $0x60] sm:$0xff] }
 0x1b2   : > { %v2923_v41 = vmul.f32 %v2840_v13, %v2647_v53  ;;  %v2603_v1 = vadd.f32 %v7295_v28, %v2527_v47  ;;  %v2542_v23 = vadd.f32 %v5663_v5, %v5586_v34  ;;  %v2650_v58 = vmax.f32 %v2604_v33, 0.0  ;;  %v2875_v34 = vpop.permute.xlu1 %2874  ;;  %v5970_v53 = vld [vmem:[%s6300_s17 + $0x78] sm:$0xff]  ;;  %v5971_v33 = vld [vmem:[%s6300_s17 + $0x80] sm:$0xff]  ;;  %v5972_v47 = vld [vmem:[%s6300_s17 + $0x88] sm:$0xff] }
 0x1b3   : > { %v2536_v60 = vpop.f32.mrf.mxu1  ;;  %v5973_v5 = vld [vmem:[%s6300_s17 + $0x90] sm:$0xff] }
 0x1b4   : > { %v2649_v51 = vmax.f32 %v2603_v1, 0.0  ;;  %v2606_v52 = vadd.f32 %v7295_v28, %v2542_v23  ;;  %v2537_v25 = vadd.f32 %v2536_v60, %v2103_v27  ;;  %5740 = vmatprep.mubr.msk.f32.mxu0 %vm2949_vm1, %v2923_v41  ;;  %v2926_v62 = vmul.f32 %v2855_v42, %v2650_v58  ;;  %v2880_v36 = vpop.permute.xlu0 %2879  ;;  %v5956_v27 = vld [vmem:[%s6300_s17 + $0x8] sm:$0xff]  ;;  %v5969_v42 = vld [vmem:[%s6300_s17 + $0x70] sm:$0xff]  ;;  %v5974_v41 = vld [vmem:[%s6300_s17 + $0x98] sm:$0xff] }
 0x1b5   : > { %v5666_v63 = vpop.f32.mrf.mxu1  ;;  %5741 = vmatmul.mubr.msk.f32.gmra.mxu0 %vm2949_vm1, %v2924_v14  ;;  %v5975_v1 = vld [vmem:[%s6300_s17 + $0xa0] sm:$0xff]  ;;  %v5976_v23 = vld [vmem:[%s6300_s17 + $0xa8] sm:$0xff]  ;;  %v5977_v14 = vld [vmem:[%s6300_s17 + $0xb0] sm:$0xff] }
 0x1b6   : > { %v2925_v3 = vmul.f32 %v2850_v54, %v2649_v51  ;;  %v2605_v22 = vadd.f32 %v7295_v28, %v2537_v25  ;;  %v2552_v19 = vadd.f32 %v5666_v63, %v5589_v56  ;;  %v2652_v50 = vmax.f32 %v2606_v52, 0.0  ;;  %v2885_v26 = vpop.permute.xlu1 %2884  ;;  %v5961_v54 = vld [vmem:[%s6300_s17 + $0x30] sm:$0xff]  ;;  %v5968_v56 = vld [vmem:[%s6300_s17 + $0x68] sm:$0xff]  ;;  %v5978_v58 = vld [vmem:[%s6300_s17 + $0xb8] sm:$0xff] }
 0x1b7   : > { %v2546_v55 = vpop.f32.mrf.mxu1  ;;  %v5979_v60 = vld [vmem:[%s6300_s17 + $0xc0] sm:$0xff]  ;;  %v5982_v51 = vld [vmem:[%s6300_s17 + $0xd8] sm:$0xff]  ;;  %v5984_v25 = vld [vmem:[%s6300_s17 + $0xe8] sm:$0xff] }
 0x1b8   : > { %v2651_v48 = vmax.f32 %v2605_v22, 0.0  ;;  %v2608_v4 = vadd.f32 %v7295_v28, %v2552_v19  ;;  %v2547_v61 = vadd.f32 %v2546_v55, %v2113_v40  ;;  %5743 = vmatprep.mubr.msk.f32.mxu0 %vm2949_vm1, %v2925_v3  ;;  %v2928_v12 = vmul.f32 %v2865_v31, %v2652_v50  ;;  %v5980_v40 = vld [vmem:[%s6300_s17 + $0xc8] sm:$0xff]  ;;  %v5983_v52 = vld [vmem:[%s6300_s17 + $0xe0] sm:$0xff]  ;;  %v5985_v63 = vld [vmem:[%s6300_s17 + $0xf0] sm:$0xff] }
 0x1b9   : > { %v5669_v21 = vpop.f32.mrf.mxu1  ;;  %5744 = vmatmul.mubr.msk.f32.gmra.mxu0 %vm2949_vm1, %v2926_v62  ;;  %v5986_v31 = vld [vmem:[%s6300_s17 + $0xf8] sm:$0xff]  ;;  %v5987_v3 = vld [vmem:[%s6300_s17 + $0x100] sm:$0xff]  ;;  %v5988_v22 = vld [vmem:[%s6300_s17 + $0x108] sm:$0xff] }
 0x1ba   : > { %v2927_v10 = vmul.f32 %v2860_v49, %v2651_v48  ;;  %v2607_v7 = vadd.f32 %v7295_v28, %v2547_v61  ;;  %v2562_v17 = vadd.f32 %v5669_v21, %v5592_v18  ;;  %v2654_v35 = vmax.f32 %v2608_v4, 0.0  ;;  %v5981_v49 = vld [vmem:[%s6300_s17 + $0xd0] sm:$0xff]  ;;  %v5990_v62 = vld [vmem:[%s6300_s17 + $0x118] sm:$0xff]  ;;  %v5991_v50 = vld [vmem:[%s6300_s17 + $0x120] sm:$0xff] }
 0x1bb   : > { %v2556_v43 = vpop.f32.mrf.mxu1  ;;  %v5989_v19 = vld [vmem:[%s6300_s17 + $0x110] sm:$0xff]  ;;  %v5992_v55 = vld [vmem:[%s6300_s17 + $0x128] sm:$0xff]  ;;  %v5994_v48 = vld [vmem:[%s6300_s17 + $0x138] sm:$0xff] }
 0x1bc   : > { %v2653_v13 = vmax.f32 %v2607_v7, 0.0  ;;  %v2610_v30 = vadd.f32 %v7295_v28, %v2562_v17  ;;  %v2557_v37 = vadd.f32 %v2556_v43, %v2123_v38  ;;  %5746 = vmatprep.mubr.msk.f32.mxu0 %vm2949_vm1, %v2927_v10  ;;  %v2930_v46 = vmul.f32 %v2875_v34, %v2654_v35  ;;  %v5993_v18 = vld [vmem:[%s6300_s17 + $0x130] sm:$0xff]  ;;  %v5995_v4 = vld [vmem:[%s6300_s17 + $0x140] sm:$0xff]  ;;  %v5996_v61 = vld [vmem:[%s6300_s17 + $0x148] sm:$0xff] }
 0x1bd   : > { %5747 = vmatmul.mubr.msk.f32.gmra.mxu0 %vm2949_vm1, %v2928_v12  ;;  %v5997_v21 = vld [vmem:[%s6300_s17 + $0x150] sm:$0xff]  ;;  %v5999_v10 = vld [vmem:[%s6300_s17 + $0x160] sm:$0xff]  ;;  %v6000_v7 = vld [vmem:[%s6300_s17 + $0x168] sm:$0x1f] }
 0x1be   : > { %v2929_v6 = vmul.f32 %v2870_v57, %v2653_v13  ;;  %v2609_v16 = vadd.f32 %v7295_v28, %v2557_v37  ;;  %v2656_v59 = vmax.f32 %v2610_v30, 0.0  ;;  %v5955_v28 = vld [vmem:[%s6300_s17] sm:$0xff]  ;;  %v5998_v57 = vld [vmem:[%s6300_s17 + $0x158] sm:$0xff] }
 0x1c0   : > { %v2655_v39 = vmax.f32 %v2609_v16, 0.0  ;;  %5749 = vmatprep.mubr.msk.f32.mxu0 %vm2949_vm1, %v2929_v6  ;;  %v2932_v2 = vmul.f32 %v2885_v26, %v2656_v59 }
 0x1c1   : > { %5750 = vmatmul.mubr.msk.f32.gmra.mxu0 %vm2949_vm1, %v2930_v46 }
 0x1c2   : > { %v2931_v24 = vmul.f32 %v2880_v36, %v2655_v39 }
 0x1c4   : > { %5752 = vmatprep.mubr.msk.f32.mxu0 %vm2949_vm1, %v2931_v24 }
 0x1c5   : > { %5753 = vmatmul.mubr.msk.f32.gmra.mxu0 %vm2949_vm1, %v2932_v2 }
 0x1c6   : > { %5848 = vmatprep.mubr.msk.f32.mxu0 %vm687_vm0, %v5955_v28 }
 0x1c9   : > { %5849 = vmatmul.mubr.msk.f32.vlgmr.msra.gmra.mxu0 %vm687_vm0, %v5956_v27 }
 0x1ca   : > { %5851 = vmatprep.mubr.msk.f32.mxu0 %vm687_vm0, %v5957_v15 }
 0x1cd   : > { %5852 = vmatmul.mubr.msk.f32.gmra.mxu0 %vm687_vm0, %v5958_v32 }
 0x1ce   : > { %5854 = vmatprep.mubr.msk.f32.mxu0 %vm687_vm0, %v5959_v44 }
 0x1cf   : > { %v7421_v17 = vpop.f32.mrf.mxu1 }
 0x1d1   : > { %5855 = vmatmul.mubr.msk.f32.gmra.mxu0 %vm687_vm0, %v5960_v20  ;;  %v7423_v12 = vpop.f32.mrf.mxu1 }
 0x1d2   : > { %5857 = vmatprep.mubr.msk.f32.mxu0 %vm687_vm0, %v5961_v54 }
 0x1d3   : > { %v7427_v38 = vpop.f32.mrf.mxu1 }
 0x1d5   : > { %5858 = vmatmul.mubr.msk.f32.gmra.mxu0 %vm687_vm0, %v5962_v8  ;;  %v7433_v13 = vpop.f32.mrf.mxu1 }
 0x1d6   : > { %5860 = vmatprep.mubr.msk.f32.mxu0 %vm687_vm0, %v5963_v29 }
 0x1d7   : > { %v7439_v6 = vpop.f32.mrf.mxu1 }
 0x1d9   : > { %5861 = vmatmul.mubr.msk.f32.gmra.mxu0 %vm687_vm0, %v5964_v11  ;;  %v7445_v59 = vpop.f32.mrf.mxu1 }
 0x1da   : > { %5863 = vmatprep.mubr.msk.f32.mxu0 %vm687_vm0, %v5965_v45 }
 0x1db   : > { %v7451_v26 = vpop.f32.mrf.mxu1 }
 0x1dd   : > { %5864 = vmatmul.mubr.msk.f32.gmra.mxu0 %vm687_vm0, %v5966_v0  ;;  %v7457_v28 = vpop.f32.mrf.mxu1 }
 0x1de   : > { %5866 = vmatprep.mubr.msk.f32.mxu0 %vm687_vm0, %v5967_v9 }
 0x1df   : > { %v7463_v32 = vpop.f32.mrf.mxu1 }
 0x1e1   : > { %5867 = vmatmul.mubr.msk.f32.gmra.mxu0 %vm687_vm0, %v5968_v56  ;;  %v7469_v54 = vpop.f32.mrf.mxu1 }
 0x1e2   : > { %5869 = vmatprep.mubr.msk.f32.mxu0 %vm687_vm0, %v5969_v42 }
 0x1e3   : > { %v7475_v11 = vpop.f32.mrf.mxu1 }
 0x1e5   : > { %5870 = vmatmul.mubr.msk.f32.gmra.mxu0 %vm687_vm0, %v5970_v53  ;;  %v7481_v9 = vpop.f32.mrf.mxu1 }
 0x1e6   : > { %5872 = vmatprep.mubr.msk.f32.mxu0 %vm687_vm0, %v5971_v33 }
 0x1e7   : > { %v7487_v53 = vpop.f32.mrf.mxu1 }
 0x1e9   : > { %5873 = vmatmul.mubr.msk.f32.gmra.mxu0 %vm687_vm0, %v5972_v47 }
 0x1ea   : > { %5875 = vmatprep.mubr.msk.f32.mxu0 %vm687_vm0, %v5973_v5  ;;  %v7493_v5 = vpop.f32.mrf.mxu1 }
 0x1ed   : > { %5876 = vmatmul.mubr.msk.f32.gmra.mxu0 %vm687_vm0, %v5974_v41 }
 0x1ee   : > { %5878 = vmatprep.mubr.msk.f32.mxu0 %vm687_vm0, %v5975_v1 }
 0x1f1   : > { %5879 = vmatmul.mubr.msk.f32.gmra.mxu0 %vm687_vm0, %v5976_v23  ;;  %v7499_v23 = vpop.f32.mrf.mxu1 }
 0x1f2   : > { %5881 = vmatprep.mubr.msk.f32.mxu0 %vm687_vm0, %v5977_v14 }
 0x1f5   : > { %5882 = vmatmul.mubr.msk.f32.gmra.mxu0 %vm687_vm0, %v5978_v58 }
 0x1f6   : > { %5884 = vmatprep.mubr.msk.f32.mxu0 %vm687_vm0, %v5979_v60  ;;  %v7505_v60 = vpop.f32.mrf.mxu1 }
 0x1f9   : > { %5885 = vmatmul.mubr.msk.f32.gmra.mxu0 %vm687_vm0, %v5980_v40 }
 0x1fa   : > { %5887 = vmatprep.mubr.msk.f32.mxu0 %vm687_vm0, %v5981_v49 }
 0x1fd   : > { %5888 = vmatmul.mubr.msk.f32.gmra.mxu0 %vm687_vm0, %v5982_v51  ;;  %v7511_v51 = vpop.f32.mrf.mxu1 }
 0x1fe   : > { %5890 = vmatprep.mubr.msk.f32.mxu0 %vm687_vm0, %v5983_v52 }
 0x201   : > { %5891 = vmatmul.mubr.msk.f32.gmra.mxu0 %vm687_vm0, %v5984_v25 }
 0x202   : > { %5893 = vmatprep.mubr.msk.f32.mxu0 %vm687_vm0, %v5985_v63  ;;  %v7517_v63 = vpop.f32.mrf.mxu1 }
 0x205   : > { %5894 = vmatmul.mubr.msk.f32.gmra.mxu0 %vm687_vm0, %v5986_v31 }
 0x206   : > { %5896 = vmatprep.mubr.msk.f32.mxu0 %vm687_vm0, %v5987_v3 }
 0x209   : > { %5897 = vmatmul.mubr.msk.f32.gmra.mxu0 %vm687_vm0, %v5988_v22  ;;  %v7523_v22 = vpop.f32.mrf.mxu1 }
 0x20a   : > { %5899 = vmatprep.mubr.msk.f32.mxu0 %vm687_vm0, %v5989_v19 }
 0x20d   : > { %5900 = vmatmul.mubr.msk.f32.gmra.mxu0 %vm687_vm0, %v5990_v62 }
 0x20e   : > { %5902 = vmatprep.mubr.msk.f32.mxu0 %vm687_vm0, %v5991_v50  ;;  %v7529_v50 = vpop.f32.mrf.mxu1 }
 0x211   : > { %5903 = vmatmul.mubr.msk.f32.gmra.mxu0 %vm687_vm0, %v5992_v55 }
 0x212   : > { %5905 = vmatprep.mubr.msk.f32.mxu0 %vm687_vm0, %v5993_v18 }
 0x215   : > { %5906 = vmatmul.mubr.msk.f32.gmra.mxu0 %vm687_vm0, %v5994_v48  ;;  %v7535_v48 = vpop.f32.mrf.mxu1 }
 0x216   : > { %5908 = vmatprep.mubr.msk.f32.mxu0 %vm687_vm0, %v5995_v4 }
 0x219   : > { %5909 = vmatmul.mubr.msk.f32.gmra.mxu0 %vm687_vm0, %v5996_v61 }
 0x21a   : > { %5911 = vmatprep.mubr.msk.f32.mxu0 %vm687_vm0, %v5997_v21  ;;  %v7541_v21 = vpop.f32.mrf.mxu1 }
 0x21d   : > { %5912 = vmatmul.mubr.msk.f32.gmra.mxu0 %vm687_vm0, %v5998_v57 }
 0x21e   : > { %5914 = vmatprep.mubr.msk.f32.mxu0 %vm687_vm0, %v5999_v10 }
 0x221   : > { %5915 = vmatmul.mubr.msk.f32.gmra.mxu0 %vm687_vm0, %v6000_v7  ;;  %v7547_v7 = vpop.f32.mrf.mxu1 }
 0x22d   : > { %v7425_v35 = vpop.f32.mrf.mxu0 }
 0x22f   : > { %v7429_v43 = vpop.f32.mrf.mxu0 }
 0x231   : > { %v7431_v34 = vpop.f32.mrf.mxu0 }
 0x233   : > { %v7435_v30 = vpop.f32.mrf.mxu0 }
 0x235   : > { %v7437_v37 = vpop.f32.mrf.mxu0 }
 0x237   : > { %v7441_v16 = vpop.f32.mrf.mxu0 }
 0x239   : > { %v7443_v46 = vpop.f32.mrf.mxu0 }
 0x23b   : > { %v7447_v39 = vpop.f32.mrf.mxu0 }
 0x23d   : > { %v7449_v36 = vpop.f32.mrf.mxu0 }
 0x23f   : > { %v7453_v24 = vpop.f32.mrf.mxu0 }
 0x241   : > { %v7455_v2 = vpop.f32.mrf.mxu0 }
 0x243   : > { %v7459_v27 = vpop.f32.mrf.mxu0 }
 0x245   : > { %v7461_v15 = vpop.f32.mrf.mxu0 }
 0x247   : > { %v7465_v44 = vpop.f32.mrf.mxu0 }
 0x249   : > { %v7467_v20 = vpop.f32.mrf.mxu0 }
 0x24b   : > { %v7471_v8 = vpop.f32.mrf.mxu0 }
 0x24d   : > { %v7473_v29 = vpop.f32.mrf.mxu0 }
 0x24f   : > { %v7477_v45 = vpop.f32.mrf.mxu0 }
 0x251   : > { %v7479_v0 = vpop.f32.mrf.mxu0 }
 0x253   : > { %v7483_v56 = vpop.f32.mrf.mxu0 }
 0x255   : > { %v7485_v42 = vpop.f32.mrf.mxu0 }
 0x257   : > { %v7489_v33 = vpop.f32.mrf.mxu0 }
 0x259   : > { %v7491_v47 = vpop.f32.mrf.mxu0 }
 0x25b   : > { %v7495_v41 = vpop.f32.mrf.mxu0 }
 0x25d   : > { %v7497_v1 = vpop.f32.mrf.mxu0 }
 0x25f   : > { %v7501_v14 = vpop.f32.mrf.mxu0 }
 0x261   : > { %v7503_v58 = vpop.f32.mrf.mxu0 }
 0x262   : > { %7952 = vst [vmem:[#allocation3_spill] sm:$0xff] %v7503_v58 }
 0x263   : > { %v7507_v40 = vpop.f32.mrf.mxu0 }
 0x264   : > { %7953 = vst [vmem:[#allocation4_spill] sm:$0xff] %v7507_v40 }
 0x265   : > { %v7509_v49 = vpop.f32.mrf.mxu0 }
 0x266   : > { %7954 = vst [vmem:[#allocation5_spill] sm:$0xff] %v7509_v49 }
 0x267   : > { %v7513_v52 = vpop.f32.mrf.mxu0 }
 0x268   : > { %7955 = vst [vmem:[#allocation6_spill] sm:$0xff] %v7513_v52 }
 0x269   : > { %v7515_v25 = vpop.f32.mrf.mxu0 }
 0x26a   : > { %7956 = vst [vmem:[#allocation7_spill] sm:$0xff] %v7515_v25 }
 0x26b   : > { %v7519_v31 = vpop.f32.mrf.mxu0 }
 0x26c   : > { %7957 = vst [vmem:[#allocation8_spill] sm:$0xff] %v7519_v31  ;;  %v3608_v31 = vadd.f32 %v7445_v59, %v7441_v16  ;;  %v3618_v59 = vadd.f32 %v7457_v28, %v7447_v39 }
 0x26d   : > { %v7521_v3 = vpop.f32.mrf.mxu0 }
 0x26e   : > { %7958 = vst [vmem:[#allocation9_spill] sm:$0xff] %v7521_v3  ;;  %v7579_v3 = vld [vmem:[%s7949_s12] ss:$0 sm:$0xff] }
 0x26f   : > { %v7525_v19 = vpop.f32.mrf.mxu0 }
 0x270   : > { %7959 = vst [vmem:[#allocation10_spill] sm:$0xff] %v7525_v19  ;;  %v7555_v19 = vpop.f32.mrf.mxu1 }
 0x271   : > { %v7527_v62 = vpop.f32.mrf.mxu0 }
 0x272   : > { %7960 = vst [vmem:[#allocation11_spill] sm:$0xff] %v7527_v62 }
 0x273   : > { %v7531_v55 = vpop.f32.mrf.mxu0 }
 0x274   : > { %7961 = vst [vmem:[#allocation12_spill] sm:$0xff] %v7531_v55 }
 0x275   : > { %v7533_v18 = vpop.f32.mrf.mxu0 }
 0x276   : > { %7962 = vst [vmem:[#allocation13_spill] sm:$0xff] %v7533_v18  ;;  %v3593_v18 = vadd.f32 %v7421_v17, %v7425_v35  ;;  %v7572_v17 = vpop.f32.mrf.mxu1 }
 0x277   : > { %v7537_v4 = vpop.f32.mrf.mxu0 }
 0x278   : > { %7963 = vst [vmem:[#allocation14_spill] sm:$0xff] %v7537_v4 }
 0x279   : > { %v7539_v61 = vpop.f32.mrf.mxu0 }
 0x27a   : > { %7964 = vst [vmem:[#allocation15_spill] sm:$0xff] %v7539_v61  ;;  %v7560_v61 = vld [vmem:[%s7947_s10] ss:$0 sm:$0xff] }
 0x27b   : > { %v7543_v57 = vpop.f32.mrf.mxu0  ;;  %v3827_v16 = vadd.f32 %v7560_v61, %v3608_v31  ;;  %v3633_v31 = vadd.f32 %v7463_v32, %v7449_v36 }
 0x27c   : > { %7965 = vst [vmem:[#allocation16_spill] sm:$0xff] %v7543_v57 }
 0x27d   : > { %v7545_v10 = vpop.f32.mrf.mxu0 }
 0x27e   : > { %7966 = vst [vmem:[#allocation17_spill] sm:$0xff] %v7545_v10  ;;  %v3588_v10 = vadd.f32 %v7423_v12, %v7429_v43  ;;  %v3598_v12 = vadd.f32 %v7433_v13, %v7435_v30  ;;  %v3613_v43 = vadd.f32 %v7439_v6, %v7437_v37  ;;  %v3623_v6 = vadd.f32 %v7451_v26, %v7443_v46 }
 0x27f   : > { %v7549_v62 = vpop.f32.mrf.mxu0 }
 0x280   : > { %7967 = vst [vmem:[#allocation18_spill] sm:$0xff] %v7549_v62  ;;  %v3824_v62 = vadd.f32 %v7560_v61, %v3593_v18  ;;  %v3825_v52 = vadd.f32 %v7560_v61, %v3598_v12  ;;  %v3828_v37 = vadd.f32 %v7560_v61, %v3613_v43  ;;  %v3830_v43 = vadd.f32 %v7560_v61, %v3623_v6 }
 0x281   : > { %v7551_v55 = vpop.f32.mrf.mxu0  ;;  %v3643_v6 = vadd.f32 %v7475_v11, %v7455_v2 }
 0x282   : > { %7968 = vst [vmem:[#allocation19_spill] sm:$0xff] %v7551_v55  ;;  %v3603_v55 = vadd.f32 %v7427_v38, %v7431_v34  ;;  %v3870_v34 = vmax.f32 %v3824_v62, 0.0  ;;  %v3874_v12 = vmax.f32 %v3828_v37, 0.0  ;;  %v3876_v32 = vmax.f32 %v3830_v43, 0.0 }
 0x283   : > { %v7562_v4 = vpop.f32.mrf.mxu0 }
 0x284   : > { %7969 = vst [vmem:[#allocation20_spill] sm:$0xff] %v7562_v4  ;;  %v3823_v4 = vadd.f32 %v7560_v61, %v3588_v10  ;;  %v3826_v18 = vadd.f32 %v7560_v61, %v3603_v55 }
 0x285   : > { %v7566_v57 = vpop.f32.mrf.mxu0 }
 0x286   : > { %7970 = vst [vmem:[#allocation21_spill] sm:$0xff] %v7566_v57  ;;  %v7588_v57 = vpop.f32.mrf.mxu1  ;;  %v3869_v10 = vmax.f32 %v3823_v4, 0.0  ;;  %v3872_v55 = vmax.f32 %v3826_v18, 0.0 }
 0x287   : > { %v7574_v35 = vpop.f32.mrf.mxu0 }
 0x288   : > { %7971 = vst [vmem:[#allocation22_spill] sm:$0xff] %v7574_v35  ;;  %v7598_v58 = vpop.f32.mrf.mxu1 }
 0x289   : > { %v5850_v38 = vpop.f32.mrf.mxu0 }
 0x28a   : > { %v3998_v35 = vadd.f32 %v5850_v38, %v7579_v3  ;;  %v7612_v18 = vpop.f32.mrf.mxu1 }
 0x28b   : > { %v3992_v25 = vpop.f32.mrf.mxu0 }
 0x28c   : > { %v4222_v13 = vadd.f32 %v3998_v35, %v3870_v34  ;;  %v3993_v30 = vadd.f32 %v7579_v3, %v3992_v25  ;;  %v3871_v25 = vmax.f32 %v3825_v52, 0.0 }
 0x28d   : > { %v5853_v62 = vpop.f32.mrf.mxu0 }
 0x28e   : > { %v4268_v38 = vmax.f32 %v4222_v13, 0.0  ;;  %v4221_v49 = vadd.f32 %v3993_v30, %v3869_v10  ;;  %v4008_v40 = vadd.f32 %v5853_v62, %v7579_v3  ;;  %v3628_v13 = vadd.f32 %v7469_v54, %v7453_v24  ;;  %v7624_v24 = vpop.f32.mrf.mxu1 }
 0x28f   : > { %v4002_v4 = vpop.f32.mrf.mxu0 }
 0x290   : > { %4314 = vst [vmem:[%s7603_s25 + $0x8] sm:$0xff] %v4268_v38  ;;  %v4267_v46 = vmax.f32 %v4221_v49, 0.0  ;;  %v4224_v26 = vadd.f32 %v4008_v40, %v3872_v55  ;;  %v4003_v35 = vadd.f32 %v7579_v3, %v4002_v4  ;;  %v3873_v49 = vmax.f32 %v3827_v16, 0.0 }
 0x291   : > { %v5856_v34 = vpop.f32.mrf.mxu0  ;;  %v3829_v40 = vadd.f32 %v7560_v61, %v3618_v59  ;;  %v3832_v55 = vadd.f32 %v7560_v61, %v3633_v31  ;;  %v3638_v4 = vadd.f32 %v7481_v9, %v7459_v27 }
 0x292   : > { %4313 = vst [vmem:[%s7603_s25] sm:$0xff] %v4267_v46  ;;  %v4270_v39 = vmax.f32 %v4224_v26, 0.0  ;;  %v4223_v28 = vadd.f32 %v4003_v35, %v3871_v25  ;;  %v4018_v52 = vadd.f32 %v5856_v34, %v7579_v3  ;;  %v3831_v46 = vadd.f32 %v7560_v61, %v3628_v13 }
 0x293   : > { %v4012_v10 = vpop.f32.mrf.mxu0  ;;  %v3875_v54 = vmax.f32 %v3829_v40, 0.0  ;;  %v3834_v35 = vadd.f32 %v7560_v61, %v3643_v6  ;;  %v3878_v34 = vmax.f32 %v3832_v55, 0.0 }
 0x294   : > { %4316 = vst [vmem:[%s7603_s25 + $0x18] sm:$0xff] %v4270_v39  ;;  %v4269_v30 = vmax.f32 %v4223_v28, 0.0  ;;  %v4226_v37 = vadd.f32 %v4018_v52, %v3874_v12  ;;  %v4013_v36 = vadd.f32 %v7579_v3, %v4012_v10  ;;  %v3653_v12 = vadd.f32 %v7487_v53, %v7461_v15  ;;  %v7636_v39 = vpop.f32.mrf.mxu1 }
 0x295   : > { %v5859_v62 = vpop.f32.mrf.mxu0  ;;  %v3833_v28 = vadd.f32 %v7560_v61, %v3638_v4  ;;  %v3648_v52 = vadd.f32 %v7493_v5, %v7465_v44  ;;  %v3877_v40 = vmax.f32 %v3831_v46, 0.0  ;;  %v3880_v13 = vmax.f32 %v3834_v35, 0.0 }
 0x296   : > { %4315 = vst [vmem:[%s7603_s25 + $0x10] sm:$0xff] %v4269_v30  ;;  %v4272_v38 = vmax.f32 %v4226_v37, 0.0  ;;  %v4225_v16 = vadd.f32 %v4013_v36, %v3873_v49  ;;  %v4028_v59 = vadd.f32 %v5859_v62, %v7579_v3  ;;  %v3836_v30 = vadd.f32 %v7560_v61, %v3653_v12  ;;  %v7648_v5 = vpop.f32.mrf.mxu1 }
 0x297   : > { %v4022_v25 = vpop.f32.mrf.mxu0  ;;  %v3663_v36 = vadd.f32 %v7499_v23, %v7467_v20  ;;  %v3879_v62 = vmax.f32 %v3833_v28, 0.0  ;;  %v3835_v55 = vadd.f32 %v7560_v61, %v3648_v52  ;;  %v3673_v4 = vadd.f32 %v7511_v51, %v7473_v29 }
 0x298   : > { %4318 = vst [vmem:[%s7603_s25 + $0x28] sm:$0xff] %v4272_v38  ;;  %v4271_v2 = vmax.f32 %v4225_v16, 0.0  ;;  %v4228_v11 = vadd.f32 %v4028_v59, %v3876_v32  ;;  %v4023_v26 = vadd.f32 %v7579_v3, %v4022_v25  ;;  %v3658_v16 = vadd.f32 %v7505_v60, %v7471_v8  ;;  %v7660_v8 = vpop.f32.mrf.mxu1 }
 0x299   : > { %v5862_v43 = vpop.f32.mrf.mxu0  ;;  %v3882_v23 = vmax.f32 %v3836_v30, 0.0  ;;  %v3838_v46 = vadd.f32 %v7560_v61, %v3663_v36  ;;  %v3881_v60 = vmax.f32 %v3835_v55, 0.0  ;;  %v3668_v35 = vadd.f32 %v7517_v63, %v7477_v45 }
 0x29a   : > { %4317 = vst [vmem:[%s7603_s25 + $0x20] sm:$0xff] %v4271_v2  ;;  %v4274_v31 = vmax.f32 %v4228_v11, 0.0  ;;  %v4227_v27 = vadd.f32 %v4023_v26, %v3875_v54  ;;  %v4038_v9 = vadd.f32 %v5862_v43, %v7579_v3  ;;  %v3837_v43 = vadd.f32 %v7560_v61, %v3658_v16 }
 0x29b   : > { %v4032_v49 = vpop.f32.mrf.mxu0  ;;  %v3884_v28 = vmax.f32 %v3838_v46, 0.0  ;;  %v3688_v16 = vadd.f32 %v7541_v21, %v7489_v33 }
 0x29c   : > { %4320 = vst [vmem:[%s7603_s25 + $0x38] sm:$0xff] %v4274_v31  ;;  %v4273_v10 = vmax.f32 %v4227_v27, 0.0  ;;  %v4230_v15 = vadd.f32 %v4038_v9, %v3878_v34  ;;  %v4033_v53 = vadd.f32 %v7579_v3, %v4032_v49  ;;  %v3840_v31 = vadd.f32 %v7560_v61, %v3673_v4  ;;  %v7672_v49 = vpop.f32.mrf.mxu1 }
 0x29d   : > { %v5865_v37 = vpop.f32.mrf.mxu0  ;;  %v3683_v27 = vadd.f32 %v7523_v22, %v7479_v0 }
 0x29e   : > { %4319 = vst [vmem:[%s7603_s25 + $0x30] sm:$0xff] %v4273_v10  ;;  %v4276_v32 = vmax.f32 %v4230_v15, 0.0  ;;  %v4229_v6 = vadd.f32 %v4033_v53, %v3877_v40  ;;  %v4048_v44 = vadd.f32 %v5865_v37, %v7579_v3  ;;  %v3839_v40 = vadd.f32 %v7560_v61, %v3668_v35 }
 0x29f   : > { %v4042_v38 = vpop.f32.mrf.mxu0  ;;  %v3678_v10 = vadd.f32 %v7529_v50, %v7483_v56  ;;  %v3883_v53 = vmax.f32 %v3837_v43, 0.0  ;;  %v3886_v30 = vmax.f32 %v3840_v31, 0.0  ;;  %v3842_v37 = vadd.f32 %v7560_v61, %v3683_v27  ;;  %v7684_v50 = vpop.f32.mrf.mxu1 }
 0x2a0   : > { %4322 = vst [vmem:[%s7603_s25 + $0x48] sm:$0xff] %v4276_v32  ;;  %v4275_v59 = vmax.f32 %v4229_v6, 0.0  ;;  %v4232_v54 = vadd.f32 %v4048_v44, %v3880_v13  ;;  %v4043_v20 = vadd.f32 %v7579_v3, %v4042_v38  ;;  %v3693_v32 = vadd.f32 %v7535_v48, %v7485_v42 }
 0x2a1   : > { %v5868_v25 = vpop.f32.mrf.mxu0  ;;  %v3841_v55 = vadd.f32 %v7560_v61, %v3678_v10  ;;  %v3888_v48 = vmax.f32 %v3842_v37, 0.0  ;;  %v7696_v33 = vpop.f32.mrf.mxu1  ;;  %v3713_v43 = vadd.f32 %v7572_v17, %v7497_v1 }
 0x2a2   : > { %4321 = vst [vmem:[%s7603_s25 + $0x40] sm:$0xff] %v4275_v59  ;;  %v4278_v2 = vmax.f32 %v4232_v54, 0.0  ;;  %v4231_v11 = vadd.f32 %v4043_v20, %v3879_v62  ;;  %v4058_v26 = vadd.f32 %v5868_v25, %v7579_v3  ;;  %v3885_v62 = vmax.f32 %v3839_v40, 0.0 }
 0x2a3   : > { %v4052_v12 = vpop.f32.mrf.mxu0  ;;  %v3703_v20 = vadd.f32 %v7547_v7, %v7491_v47  ;;  %v3844_v4 = vadd.f32 %v7560_v61, %v3693_v32  ;;  %v3887_v21 = vmax.f32 %v3841_v55, 0.0  ;;  %v7708_v31 = vpop.f32.mrf.mxu1  ;;  %v3848_v40 = vadd.f32 %v7560_v61, %v3713_v43 }
 0x2a4   : > { %4324 = vst [vmem:[%s7603_s25 + $0x58] sm:$0xff] %v4278_v2  ;;  %v4277_v29 = vmax.f32 %v4231_v11, 0.0  ;;  %v4234_v51 = vadd.f32 %v4058_v26, %v3882_v23  ;;  %v4053_v34 = vadd.f32 %v7579_v3, %v4052_v12  ;;  %v3698_v11 = vadd.f32 %v7555_v19, %v7495_v41 }
 0x2a5   : > { %v5871_v9 = vpop.f32.mrf.mxu0  ;;  %v3846_v12 = vadd.f32 %v7560_v61, %v3703_v20  ;;  %v7975_v20 = vld [vmem:[#allocation6_spill] sm:$0xff] }
 0x2a6   : > { %4323 = vst [vmem:[%s7603_s25 + $0x50] sm:$0xff] %v4277_v29  ;;  %v4280_v52 = vmax.f32 %v4234_v51, 0.0  ;;  %v4233_v45 = vadd.f32 %v4053_v34, %v3881_v60  ;;  %v4068_v63 = vadd.f32 %v5871_v9, %v7579_v3  ;;  %v3843_v60 = vadd.f32 %v7560_v61, %v3688_v16 }
 0x2a7   : > { %v4062_v15 = vpop.f32.mrf.mxu0  ;;  %v3890_v51 = vmax.f32 %v3844_v4, 0.0  ;;  %v3845_v27 = vadd.f32 %v7560_v61, %v3698_v11  ;;  %v3708_v9 = vadd.f32 %v7588_v57, %v7501_v14  ;;  %v7720_v57 = vpop.f32.mrf.mxu1  ;;  %v7976_v11 = vld [vmem:[#allocation7_spill] sm:$0xff] }
 0x2a8   : > { %4326 = vst [vmem:[%s7603_s25 + $0x68] sm:$0xff] %v4280_v52  ;;  %v4279_v13 = vmax.f32 %v4233_v45, 0.0  ;;  %v4236_v0 = vadd.f32 %v4068_v63, %v3884_v28  ;;  %v4063_v22 = vadd.f32 %v7579_v3, %v4062_v15  ;;  %v3889_v52 = vmax.f32 %v3843_v60, 0.0  ;;  %v7972_v15 = vld [vmem:[#allocation3_spill] sm:$0xff] }
 0x2a9   : > { %v5874_v36 = vpop.f32.mrf.mxu0  ;;  %v3892_v63 = vmax.f32 %v3846_v12, 0.0 }
 0x2aa   : > { %4325 = vst [vmem:[%s7603_s25 + $0x60] sm:$0xff] %v4279_v13  ;;  %v4282_v6 = vmax.f32 %v4236_v0, 0.0  ;;  %v4235_v44 = vadd.f32 %v4063_v22, %v3883_v53  ;;  %v4078_v56 = vadd.f32 %v5874_v36, %v7579_v3  ;;  %v3723_v53 = vadd.f32 %v7598_v58, %v7972_v15  ;;  %v7973_v36 = vld [vmem:[#allocation4_spill] sm:$0xff] }
 0x2ab   : > { %v4072_v38 = vpop.f32.mrf.mxu0  ;;  %v3891_v22 = vmax.f32 %v3845_v27, 0.0  ;;  %v3718_v32 = vadd.f32 %v7612_v18, %v7973_v36  ;;  %v7732_v18 = vpop.f32.mrf.mxu1 }
 0x2ac   : > { %4328 = vst [vmem:[%s7603_s25 + $0x78] sm:$0xff] %v4282_v6  ;;  %v4281_v59 = vmax.f32 %v4235_v44, 0.0  ;;  %v4238_v54 = vadd.f32 %v4078_v56, %v3886_v30  ;;  %v4073_v42 = vadd.f32 %v7579_v3, %v4072_v38  ;;  %v3847_v30 = vadd.f32 %v7560_v61, %v3708_v9 }
 0x2ad   : > { %v5877_v23 = vpop.f32.mrf.mxu0  ;;  %v3894_v56 = vmax.f32 %v3848_v40, 0.0  ;;  %v3850_v16 = vadd.f32 %v7560_v61, %v3723_v53  ;;  %v7744_v12 = vpop.f32.mrf.mxu1 }
 0x2ae   : > { %4327 = vst [vmem:[%s7603_s25 + $0x70] sm:$0xff] %v4281_v59  ;;  %v4284_v25 = vmax.f32 %v4238_v54, 0.0  ;;  %v4237_v46 = vadd.f32 %v4073_v42, %v3885_v62  ;;  %v4088_v2 = vadd.f32 %v5877_v23, %v7579_v3  ;;  %v7974_v62 = vld [vmem:[#allocation5_spill] sm:$0xff]  ;;  %v3728_v23 = vadd.f32 %v7636_v39, %v7975_v20 }
 0x2af   : > { %v4082_v26 = vpop.f32.mrf.mxu0  ;;  %v3733_v55 = vadd.f32 %v7624_v24, %v7974_v62  ;;  %v3777_v40 = vpop.f32.mrf.mxu1  ;;  %v7982_v20 = vld [vmem:[#allocation13_spill] sm:$0xff] }
 0x2b0   : > { %4330 = vst [vmem:[%s7603_s25 + $0x88] sm:$0xff] %v4284_v25  ;;  %v4283_v47 = vmax.f32 %v4237_v46, 0.0  ;;  %v4240_v7 = vadd.f32 %v4088_v2, %v3888_v48  ;;  %v4083_v35 = vadd.f32 %v7579_v3, %v4082_v26  ;;  %v3893_v48 = vmax.f32 %v3847_v30, 0.0 }
 0x2b1   : > { %v5880_v29 = vpop.f32.mrf.mxu0  ;;  %v3849_v25 = vadd.f32 %v7560_v61, %v3718_v32  ;;  %v3743_v26 = vadd.f32 %v7648_v5, %v7976_v11  ;;  %v3851_v43 = vadd.f32 %v7560_v61, %v3728_v23  ;;  %v3773_v23 = vadd.f32 %v7720_v57, %v7982_v20  ;;  %v7983_v11 = vld [vmem:[#allocation14_spill] sm:$0xff] }
 0x2b2   : > { %4329 = vst [vmem:[%s7603_s25 + $0x80] sm:$0xff] %v4283_v47  ;;  %v4286_v34 = vmax.f32 %v4240_v7, 0.0  ;;  %v4239_v41 = vadd.f32 %v4083_v35, %v3887_v21  ;;  %v4098_v19 = vadd.f32 %v5880_v29, %v7579_v3  ;;  %v3852_v21 = vadd.f32 %v7560_v61, %v3733_v55  ;;  %v7977_v29 = vld [vmem:[#allocation8_spill] sm:$0xff] }
 0x2b3   : > { %v4092_v28 = vpop.f32.mrf.mxu0  ;;  %v3896_v47 = vmax.f32 %v3850_v16, 0.0  ;;  %v7981_v55 = vld [vmem:[#allocation12_spill] sm:$0xff] }
 0x2b4   : > { %4332 = vst [vmem:[%s7603_s25 + $0x98] sm:$0xff] %v4286_v34  ;;  %v4285_v45 = vmax.f32 %v4239_v41, 0.0  ;;  %v4242_v1 = vadd.f32 %v4098_v19, %v3890_v51  ;;  %v4093_v17 = vadd.f32 %v7579_v3, %v4092_v28  ;;  %v3738_v51 = vadd.f32 %v7660_v8, %v7977_v29 }
 0x2b5   : > { %v5883_v10 = vpop.f32.mrf.mxu0  ;;  %v3895_v41 = vmax.f32 %v3849_v25, 0.0  ;;  %v3898_v9 = vmax.f32 %v3852_v21, 0.0  ;;  %v3854_v28 = vadd.f32 %v7560_v61, %v3743_v26  ;;  %v3768_v26 = vadd.f32 %v7732_v18, %v7983_v11 }
 0x2b6   : > { %4331 = vst [vmem:[%s7603_s25 + $0x90] sm:$0xff] %v4285_v45  ;;  %v4288_v13 = vmax.f32 %v4242_v1, 0.0  ;;  %v4241_v0 = vadd.f32 %v4093_v17, %v3889_v52  ;;  %v4108_v14 = vadd.f32 %v5883_v10, %v7579_v3  ;;  %v7978_v45 = vld [vmem:[#allocation9_spill] sm:$0xff]  ;;  %v3897_v10 = vmax.f32 %v3851_v43, 0.0 }
 0x2b7   : > { %v4102_v37 = vpop.f32.mrf.mxu0  ;;  %v3753_v1 = vadd.f32 %v7672_v49, %v7978_v45  ;;  %v3853_v15 = vadd.f32 %v7560_v61, %v3738_v51  ;;  %v3900_v30 = vmax.f32 %v3854_v28, 0.0  ;;  %v3860_v43 = vadd.f32 %v7560_v61, %v3773_v23  ;;  %v7984_v51 = vld [vmem:[#allocation15_spill] sm:$0xff] }
 0x2b8   : > { %4334 = vst [vmem:[%s7603_s25 + $0xa8] sm:$0xff] %v4288_v13  ;;  %v4287_v6 = vmax.f32 %v4241_v0, 0.0  ;;  %v4244_v44 = vadd.f32 %v4108_v14, %v3892_v63  ;;  %v4103_v58 = vadd.f32 %v7579_v3, %v4102_v37  ;;  %v7979_v13 = vld [vmem:[#allocation10_spill] sm:$0xff]  ;;  %v7980_v37 = vld [vmem:[#allocation11_spill] sm:$0xff] }
 0x2b9   : > { %v5886_v38 = vpop.f32.mrf.mxu0  ;;  %v3748_v0 = vadd.f32 %v7684_v50, %v7979_v13  ;;  %v3763_v36 = vadd.f32 %v7696_v33, %v7980_v37  ;;  %v5833_v50 = vpop.f32.mrf.mxu1  ;;  %v3899_v62 = vmax.f32 %v3853_v15, 0.0 }
 0x2ba   : > { %4333 = vst [vmem:[%s7603_s25 + $0xa0] sm:$0xff] %v4287_v6  ;;  %v4290_v59 = vmax.f32 %v4244_v44, 0.0  ;;  %v4243_v54 = vadd.f32 %v4103_v58, %v3891_v22  ;;  %v4118_v42 = vadd.f32 %v5886_v38, %v7579_v3  ;;  %v3856_v6 = vadd.f32 %v7560_v61, %v3753_v1 }
 0x2bb   : > { %v4112_v4 = vpop.f32.mrf.mxu0  ;;  %v3758_v38 = vadd.f32 %v7708_v31, %v7981_v55 }
 0x2bc   : > { %4336 = vst [vmem:[%s7603_s25 + $0xb8] sm:$0xff] %v4290_v59  ;;  %v4289_v24 = vmax.f32 %v4243_v54, 0.0  ;;  %v4246_v46 = vadd.f32 %v4118_v42, %v3894_v56  ;;  %v4113_v2 = vadd.f32 %v7579_v3, %v4112_v4  ;;  %v3855_v59 = vadd.f32 %v7560_v61, %v3748_v0 }
 0x2bd   : > { %v5889_v60 = vpop.f32.mrf.mxu0  ;;  %v3902_v25 = vmax.f32 %v3856_v6, 0.0  ;;  %v3857_v21 = vadd.f32 %v7560_v61, %v3758_v38 }
 0x2be   : > { %4335 = vst [vmem:[%s7603_s25 + $0xb0] sm:$0xff] %v4289_v24  ;;  %v4292_v7 = vmax.f32 %v4246_v46, 0.0  ;;  %v4245_v39 = vadd.f32 %v4113_v2, %v3893_v48  ;;  %v4128_v35 = vadd.f32 %v5889_v60, %v7579_v3  ;;  %v3858_v48 = vadd.f32 %v7560_v61, %v3763_v36  ;;  %v3787_v2 = vpop.f32.mrf.mxu1 }
 0x2bf   : > { %v4122_v34 = vpop.f32.mrf.mxu0 }
 0x2c0   : > { %4338 = vst [vmem:[%s7603_s25 + $0xc8] sm:$0xff] %v4292_v7  ;;  %v4291_v19 = vmax.f32 %v4245_v39, 0.0  ;;  %v4248_v5 = vadd.f32 %v4128_v35, %v3896_v47  ;;  %v4123_v27 = vadd.f32 %v7579_v3, %v4122_v34  ;;  %v3901_v47 = vmax.f32 %v3855_v59, 0.0 }
 0x2c1   : > { %v5892_v52 = vpop.f32.mrf.mxu0  ;;  %v3904_v35 = vmax.f32 %v3858_v48, 0.0  ;;  %v3783_v34 = vadd.f32 %v7744_v12, %v7984_v51  ;;  %v3906_v12 = vmax.f32 %v3860_v43, 0.0  ;;  %v7991_v43 = vld [vmem:[#allocation22_spill] sm:$0xff] }
 0x2c2   : > { %4337 = vst [vmem:[%s7603_s25 + $0xc0] sm:$0xff] %v4291_v19  ;;  %v4294_v17 = vmax.f32 %v4248_v5, 0.0  ;;  %v4247_v63 = vadd.f32 %v4123_v27, %v3895_v41  ;;  %v4138_v8 = vadd.f32 %v5892_v52, %v7579_v3  ;;  %v5836_v5 = vpop.f32.mrf.mxu1  ;;  %v3903_v27 = vmax.f32 %v3857_v21, 0.0  ;;  %v7985_v52 = vld [vmem:[#allocation16_spill] sm:$0xff]  ;;  %v7990_v21 = vld [vmem:[#allocation21_spill] sm:$0xff] }
 0x2c3   : > { %v4132_v53 = vpop.f32.mrf.mxu0  ;;  %v3778_v45 = vadd.f32 %v3777_v40, %v7985_v52 }
 0x2c4   : > { %4340 = vst [vmem:[%s7603_s25 + $0xd8] sm:$0xff] %v4294_v17  ;;  %v4293_v14 = vmax.f32 %v4247_v63, 0.0  ;;  %v4250_v22 = vadd.f32 %v4138_v8, %v3898_v9  ;;  %v4133_v49 = vadd.f32 %v7579_v3, %v4132_v53  ;;  %v3859_v9 = vadd.f32 %v7560_v61, %v3768_v26  ;;  %v7986_v8 = vld [vmem:[#allocation17_spill] sm:$0xff] }
 0x2c5   : > { %v5895_v32 = vpop.f32.mrf.mxu0  ;;  %v3862_v53 = vadd.f32 %v7560_v61, %v3783_v34  ;;  %v3861_v36 = vadd.f32 %v7560_v61, %v3778_v45 }
 0x2c6   : > { %4339 = vst [vmem:[%s7603_s25 + $0xd0] sm:$0xff] %v4293_v14  ;;  %v4296_v44 = vmax.f32 %v4250_v22, 0.0  ;;  %v4249_v58 = vadd.f32 %v4133_v49, %v3897_v10  ;;  %v4148_v56 = vadd.f32 %v5895_v32, %v7579_v3  ;;  %v3793_v10 = vadd.f32 %v5833_v50, %v7986_v8  ;;  %v3797_v22 = vpop.f32.mrf.mxu1  ;;  %v7987_v49 = vld [vmem:[#allocation18_spill] sm:$0xff] }
 0x2c7   : > { %v4142_v16 = vpop.f32.mrf.mxu0  ;;  %v3905_v40 = vmax.f32 %v3859_v9, 0.0  ;;  %v3908_v55 = vmax.f32 %v3862_v53, 0.0  ;;  %v3907_v23 = vmax.f32 %v3861_v36, 0.0  ;;  %v4488_v36 = vld [vmem:[%s7603_s25 + $0x8] sm:$0xff] (%p6121_p4) }
 0x2c8   : > { %4342 = vst [vmem:[%s7603_s25 + $0xe8] sm:$0xff] %v4296_v44  ;;  %v4295_v54 = vmax.f32 %v4249_v58, 0.0  ;;  %v4252_v33 = vadd.f32 %v4148_v56, %v3900_v30  ;;  %v4143_v42 = vadd.f32 %v7579_v3, %v4142_v16  ;;  %v3788_v30 = vadd.f32 %v3787_v2, %v7987_v49  ;;  %v7988_v56 = vld [vmem:[#allocation19_spill] sm:$0xff]  ;;  %4489 = vst [vmem:[%s7836_s21 + $0x10] sm:$0xff] (%p6121_p4), %v4488_v36 }
 0x2c9   : > { %v5898_v4 = vpop.f32.mrf.mxu0  ;;  %v3864_v58 = vadd.f32 %v7560_v61, %v3793_v10  ;;  %v3803_v50 = vadd.f32 %v5836_v5, %v7988_v56  ;;  %v4498_v56 = vld [vmem:[%s7603_s25 + $0x30] sm:$0xff] (%p6121_p4) }
 0x2ca   : > { %4341 = vst [vmem:[%s7603_s25 + $0xe0] sm:$0xff] %v4295_v54  ;;  %v4298_v24 = vmax.f32 %v4252_v33, 0.0  ;;  %v4251_v31 = vadd.f32 %v4143_v42, %v3899_v62  ;;  %v4158_v46 = vadd.f32 %v5898_v4, %v7579_v3  ;;  %v5839_v54 = vpop.f32.mrf.mxu1  ;;  %v3863_v33 = vadd.f32 %v7560_v61, %v3788_v30  ;;  %v7989_v42 = vld [vmem:[#allocation20_spill] sm:$0xff]  ;;  %4499 = vst [vmem:[%s7836_s21 + $0x60] sm:$0xff] (%p6121_p4), %v4498_v56 }
 0x2cb   : > { %v4152_v60 = vpop.f32.mrf.mxu0  ;;  %v3798_v48 = vadd.f32 %v3797_v22, %v7989_v42  ;;  %v3813_v11 = vadd.f32 %v5839_v54, %v7990_v21  ;;  %v4512_v54 = vld [vmem:[%s7603_s25 + $0x68] sm:$0xff] (%p6121_p4)  ;;  %v4516_v42 = vld [vmem:[%s7603_s25 + $0x78] sm:$0xff] (%p6121_p4) }
 0x2cc   : > { %4344 = vst [vmem:[%s7603_s25 + $0xf8] sm:$0xff] %v4298_v24  ;;  %v4297_v7 = vmax.f32 %v4251_v31, 0.0  ;;  %v4254_v57 = vadd.f32 %v4158_v46, %v3902_v25  ;;  %v4153_v39 = vadd.f32 %v7579_v3, %v4152_v60  ;;  %v3910_v31 = vmax.f32 %v3864_v58, 0.0  ;;  %v4496_v58 = vld [vmem:[%s7603_s25 + $0x28] sm:$0xff] (%p6121_p4)  ;;  %4513 = vst [vmem:[%s7836_s21 + $0xd0] sm:$0xff] (%p6121_p4), %v4512_v54 }
 0x2cd   : > { %v5901_v29 = vpop.f32.mrf.mxu0  ;;  %v3866_v46 = vadd.f32 %v7560_v61, %v3803_v50  ;;  %v3868_v5 = vadd.f32 %v7560_v61, %v3813_v11  ;;  %4497 = vst [vmem:[%s7836_s21 + $0x50] sm:$0xff] (%p6121_p4), %v4496_v58  ;;  %v4500_v50 = vld [vmem:[%s7603_s25 + $0x38] sm:$0xff] (%p6121_p4)  ;;  %4517 = vst [vmem:[%s7836_s21 + $0xf0] sm:$0xff] (%p6121_p4), %v4516_v42  ;;  %v4536_v21 = vld [vmem:[%s7603_s25 + $0xc8] sm:$0xff] (%p6121_p4) }
 0x2ce   : > { %4343 = vst [vmem:[%s7603_s25 + $0xf0] sm:$0xff] %v4297_v7  ;;  %v4300_v41 = vmax.f32 %v4254_v57, 0.0  ;;  %v4253_v19 = vadd.f32 %v4153_v39, %v3901_v47  ;;  %v4168_v18 = vadd.f32 %v5901_v29, %v7579_v3  ;;  %v3807_v7 = vpop.f32.mrf.mxu1  ;;  %v3909_v57 = vmax.f32 %v3863_v33, 0.0  ;;  %4501 = vst [vmem:[%s7836_s21 + $0x70] sm:$0xff] (%p6121_p4), %v4500_v50  ;;  %v4514_v33 = vld [vmem:[%s7603_s25 + $0x70] sm:$0xff] (%p6121_p4) }
 0x2cf   : > { %v4162_v28 = vpop.f32.mrf.mxu0  ;;  %v3865_v39 = vadd.f32 %v7560_v61, %v3798_v48  ;;  %v3808_v29 = vadd.f32 %v3807_v7, %v7991_v43  ;;  %v3914_v10 = vmax.f32 %v3868_v5, 0.0  ;;  %4515 = vst [vmem:[%s7836_s21 + $0xe0] sm:$0xff] (%p6121_p4), %v4514_v33  ;;  %v4518_v48 = vld [vmem:[%s7603_s25 + $0x80] sm:$0xff] (%p6121_p4)  ;;  %v4538_v11 = vld [vmem:[%s7603_s25 + $0xd0] sm:$0xff] (%p6121_p4)  ;;  %4537 = vst [vmem:[%s7836_s21 + $0x190] sm:$0xff] (%p6121_p4), %v4536_v21 }
 0x2d0   : > { %4346 = vst [vmem:[%s7603_s25 + $0x108] sm:$0xff] %v4300_v41  ;;  %v4299_v1 = vmax.f32 %v4253_v19, 0.0  ;;  %v4256_v17 = vadd.f32 %v4168_v18, %v3904_v35  ;;  %v4163_v63 = vadd.f32 %v7579_v3, %v4162_v28  ;;  %v3912_v19 = vmax.f32 %v3866_v46, 0.0  ;;  %4519 = vst [vmem:[%s7836_s21 + $0x100] sm:$0xff] (%p6121_p4), %v4518_v48  ;;  %v4532_v46 = vld [vmem:[%s7603_s25 + $0xb8] sm:$0xff] (%p6121_p4) }
 0x2d1   : > { %v5904_v15 = vpop.f32.mrf.mxu0  ;;  %v3911_v52 = vmax.f32 %v3865_v39, 0.0  ;;  %4533 = vst [vmem:[%s7836_s21 + $0x170] sm:$0xff] (%p6121_p4), %v4532_v46  ;;  %4539 = vst [vmem:[%s7836_s21 + $0x1a0] sm:$0xff] (%p6121_p4), %v4538_v11 }
 0x2d2   : > { %4345 = vst [vmem:[%s7603_s25 + $0x100] sm:$0xff] %v4299_v1  ;;  %v4302_v13 = vmax.f32 %v4256_v17, 0.0  ;;  %v4255_v0 = vadd.f32 %v4163_v63, %v3903_v27  ;;  %v4178_v14 = vadd.f32 %v5904_v15, %v7579_v3  ;;  %v3867_v1 = vadd.f32 %v7560_v61, %v3808_v29 }
 0x2d3   : > { %v4172_v37 = vpop.f32.mrf.mxu0 }
 0x2d4   : > { %4348 = vst [vmem:[%s7603_s25 + $0x118] sm:$0xff] %v4302_v13  ;;  %v4301_v32 = vmax.f32 %v4255_v0, 0.0  ;;  %v4258_v6 = vadd.f32 %v4178_v14, %v3906_v12  ;;  %v4173_v44 = vadd.f32 %v7579_v3, %v4172_v37  ;;  %v3913_v14 = vmax.f32 %v3867_v1, 0.0 }
 0x2d5   : > { %v5907_v62 = vpop.f32.mrf.mxu0  ;;  %v4546_v7 = vld [vmem:[%s7603_s25 + $0xf0] sm:$0xff] (%p6121_p4) }
 0x2d6   : > { %4347 = vst [vmem:[%s7603_s25 + $0x110] sm:$0xff] %v4301_v32  ;;  %v4304_v38 = vmax.f32 %v4258_v6, 0.0  ;;  %v4257_v16 = vadd.f32 %v4173_v44, %v3905_v40  ;;  %v4188_v59 = vadd.f32 %v5907_v62, %v7579_v3  ;;  %v4490_v32 = vld [vmem:[%s7603_s25 + $0x10] sm:$0xff] (%p6121_p4)  ;;  %v4492_v6 = vld [vmem:[%s7603_s25 + $0x18] sm:$0xff] (%p6121_p4)  ;;  %v4494_v44 = vld [vmem:[%s7603_s25 + $0x20] sm:$0xff] (%p6121_p4) }
 0x2d7   : > { %v4182_v20 = vpop.f32.mrf.mxu0  ;;  %4491 = vst [vmem:[%s7836_s21 + $0x20] sm:$0xff] (%p6121_p4), %v4490_v32  ;;  %4493 = vst [vmem:[%s7836_s21 + $0x30] sm:$0xff] (%p6121_p4), %v4492_v6  ;;  %v4502_v62 = vld [vmem:[%s7603_s25 + $0x40] sm:$0xff] (%p6121_p4) }
 0x2d8   : > { %4350 = vst [vmem:[%s7603_s25 + $0x128] sm:$0xff] %v4304_v38  ;;  %v4303_v4 = vmax.f32 %v4257_v16, 0.0  ;;  %v4260_v25 = vadd.f32 %v4188_v59, %v3908_v55  ;;  %v4183_v24 = vadd.f32 %v7579_v3, %v4182_v20  ;;  %4495 = vst [vmem:[%s7836_s21 + $0x40] sm:$0xff] (%p6121_p4), %v4494_v44  ;;  %v4504_v55 = vld [vmem:[%s7603_s25 + $0x48] sm:$0xff] (%p6121_p4)  ;;  %v4506_v38 = vld [vmem:[%s7603_s25 + $0x50] sm:$0xff] (%p6121_p4) }
 0x2d9   : > { %v5910_v2 = vpop.f32.mrf.mxu0  ;;  %4503 = vst [vmem:[%s7836_s21 + $0x80] sm:$0xff] (%p6121_p4), %v4502_v62  ;;  %v4508_v16 = vld [vmem:[%s7603_s25 + $0x58] sm:$0xff] (%p6121_p4)  ;;  %4505 = vst [vmem:[%s7836_s21 + $0x90] sm:$0xff] (%p6121_p4), %v4504_v55  ;;  %v4510_v59 = vld [vmem:[%s7603_s25 + $0x60] sm:$0xff] (%p6121_p4) }
 0x2da   : > { %4349 = vst [vmem:[%s7603_s25 + $0x120] sm:$0xff] %v4303_v4  ;;  %v4306_v26 = vmax.f32 %v4260_v25, 0.0  ;;  %v4259_v60 = vadd.f32 %v4183_v24, %v3907_v23  ;;  %v4198_v47 = vadd.f32 %v5910_v2, %v7579_v3  ;;  %4507 = vst [vmem:[%s7836_s21 + $0xa0] sm:$0xff] (%p6121_p4), %v4506_v38  ;;  %v4520_v20 = vld [vmem:[%s7603_s25 + $0x88] sm:$0xff] (%p6121_p4)  ;;  %v4522_v23 = vld [vmem:[%s7603_s25 + $0x90] sm:$0xff] (%p6121_p4) }
 0x2db   : > { %v4192_v35 = vpop.f32.mrf.mxu0  ;;  %4509 = vst [vmem:[%s7836_s21 + $0xb0] sm:$0xff] (%p6121_p4), %v4508_v16  ;;  %4511 = vst [vmem:[%s7836_s21 + $0xc0] sm:$0xff] (%p6121_p4), %v4510_v59  ;;  %v4524_v4 = vld [vmem:[%s7603_s25 + $0x98] sm:$0xff] (%p6121_p4)  ;;  %v4526_v25 = vld [vmem:[%s7603_s25 + $0xa0] sm:$0xff] (%p6121_p4) }
 0x2dc   : > { %4352 = vst [vmem:[%s7603_s25 + $0x138] sm:$0xff] %v4306_v26  ;;  %v4305_v51 = vmax.f32 %v4259_v60, 0.0  ;;  %v4262_v34 = vadd.f32 %v4198_v47, %v3910_v31  ;;  %v4193_v41 = vadd.f32 %v7579_v3, %v4192_v35  ;;  %4521 = vst [vmem:[%s7836_s21 + $0x110] sm:$0xff] (%p6121_p4), %v4520_v20  ;;  %v4528_v24 = vld [vmem:[%s7603_s25 + $0xa8] sm:$0xff] (%p6121_p4)  ;;  %v4530_v31 = vld [vmem:[%s7603_s25 + $0xb0] sm:$0xff] (%p6121_p4) }
 0x2dd   : > { %v5913_v18 = vpop.f32.mrf.mxu0  ;;  %4523 = vst [vmem:[%s7836_s21 + $0x120] sm:$0xff] (%p6121_p4), %v4522_v23  ;;  %4525 = vst [vmem:[%s7836_s21 + $0x130] sm:$0xff] (%p6121_p4), %v4524_v4  ;;  %v4534_v2 = vld [vmem:[%s7603_s25 + $0xc0] sm:$0xff] (%p6121_p4)  ;;  %v4540_v26 = vld [vmem:[%s7603_s25 + $0xd8] sm:$0xff] (%p6121_p4) }
 0x2de   : > { %4351 = vst [vmem:[%s7603_s25 + $0x130] sm:$0xff] %v4305_v51  ;;  %v4308_v27 = vmax.f32 %v4262_v34, 0.0  ;;  %v4261_v9 = vadd.f32 %v4193_v41, %v3909_v57  ;;  %v4208_v28 = vadd.f32 %v5913_v18, %v7579_v3  ;;  %4527 = vst [vmem:[%s7836_s21 + $0x140] sm:$0xff] (%p6121_p4), %v4526_v25  ;;  %v4542_v60 = vld [vmem:[%s7603_s25 + $0xe0] sm:$0xff] (%p6121_p4)  ;;  %v4544_v47 = vld [vmem:[%s7603_s25 + $0xe8] sm:$0xff] (%p6121_p4) }
 0x2df   : > { %v4202_v45 = vpop.f32.mrf.mxu0  ;;  %4529 = vst [vmem:[%s7836_s21 + $0x150] sm:$0xff] (%p6121_p4), %v4528_v24  ;;  %4531 = vst [vmem:[%s7836_s21 + $0x160] sm:$0xff] (%p6121_p4), %v4530_v31  ;;  %v4548_v57 = vld [vmem:[%s7603_s25 + $0xf8] sm:$0xff] (%p6121_p4)  ;;  %v4550_v39 = vld [vmem:[%s7603_s25 + $0x100] sm:$0xff] (%p6121_p4) }
 0x2e0   : > { %4354 = vst [vmem:[%s7603_s25 + $0x148] sm:$0xff] %v4308_v27  ;;  %v4307_v17 = vmax.f32 %v4261_v9, 0.0  ;;  %v4264_v63 = vadd.f32 %v4208_v28, %v3912_v19  ;;  %v4203_v12 = vadd.f32 %v7579_v3, %v4202_v45  ;;  %4535 = vst [vmem:[%s7836_s21 + $0x180] sm:$0xff] (%p6121_p4), %v4534_v2  ;;  %v4552_v35 = vld [vmem:[%s7603_s25 + $0x108] sm:$0xff] (%p6121_p4)  ;;  %v4554_v43 = vld [vmem:[%s7603_s25 + $0x110] sm:$0xff] (%p6121_p4) }
 0x2e1   : > { %v5916_v8 = vpop.f32.mrf.mxu0  ;;  %4541 = vst [vmem:[%s7836_s21 + $0x1b0] sm:$0xff] (%p6121_p4), %v4540_v26  ;;  %4543 = vst [vmem:[%s7836_s21 + $0x1c0] sm:$0xff] (%p6121_p4), %v4542_v60  ;;  %v4556_v29 = vld [vmem:[%s7603_s25 + $0x118] sm:$0xff] (%p6121_p4)  ;;  %v4558_v51 = vld [vmem:[%s7603_s25 + $0x120] sm:$0xff] (%p6121_p4) }
 0x2e2   : > { %4353 = vst [vmem:[%s7603_s25 + $0x140] sm:$0xff] %v4307_v17  ;;  %v4310_v15 = vmax.f32 %v4264_v63, 0.0  ;;  %v4263_v53 = vadd.f32 %v4203_v12, %v3911_v52  ;;  %v4218_v13 = vadd.f32 %v5916_v8, %v7579_v3  ;;  %4545 = vst [vmem:[%s7836_s21 + $0x1d0] sm:$0xff] (%p6121_p4), %v4544_v47  ;;  %v4560_v34 = vld [vmem:[%s7603_s25 + $0x128] sm:$0xff] (%p6121_p4) }
 0x2e3   : > { %v4212_v0 = vpop.f32.mrf.mxu0  ;;  %4547 = vst [vmem:[%s7836_s21 + $0x1e0] sm:$0xff] (%p6121_p4), %v4546_v7  ;;  %4549 = vst [vmem:[%s7836_s21 + $0x1f0] sm:$0xff] (%p6121_p4), %v4548_v57  ;;  %v4564_v19 = vld [vmem:[%s7603_s25 + $0x138] sm:$0xff] (%p6121_p4) }
 0x2e4   : > { %4356 = vst [vmem:[%s7603_s25 + $0x158] sm:$0xff] %v4310_v15  ;;  %v4309_v22 = vmax.f32 %v4263_v53, 0.0  ;;  %v4266_v61 = vadd.f32 %v4218_v13, %v3914_v10  ;;  %v4213_v40 = vadd.f32 %v7579_v3, %v4212_v0  ;;  %v4486_v3 = vld [vmem:[%s7603_s25] sm:$0xff] (%p6121_p4)  ;;  %4551 = vst [vmem:[%s7836_s21 + $0x200] sm:$0xff] (%p6121_p4), %v4550_v39 }
 0x2e5   : > { %4487 = vst [vmem:[%s7836_s21] sm:$0xff] (%p6121_p4), %v4486_v3  ;;  %4553 = vst [vmem:[%s7836_s21 + $0x210] sm:$0xff] (%p6121_p4), %v4552_v35  ;;  %v4562_v41 = vld [vmem:[%s7603_s25 + $0x130] sm:$0xff] (%p6121_p4) }
 0x2e6   : > { %4355 = vst [vmem:[%s7603_s25 + $0x150] sm:$0xff] %v4309_v22  ;;  %v4312_v49 = vmax.f32 %v4266_v61, 0.0  ;;  %v4265_v30 = vadd.f32 %v4213_v40, %v3913_v14  ;;  %4365 = sbr.rel (!%p6121_p4) target bundleno = 755 (0x2f3), region = 76  ;;  %4555 = vst [vmem:[%s7836_s21 + $0x220] sm:$0xff] (%p6121_p4), %v4554_v43 }
 0x2e7   : > { %4557 = vst [vmem:[%s7836_s21 + $0x230] sm:$0xff] (%p6121_p4), %v4556_v29  ;;  %4559 = vst [vmem:[%s7836_s21 + $0x240] sm:$0xff] (%p6121_p4), %v4558_v51  ;;  %v4568_v5 = vld [vmem:[%s7603_s25 + $0x148] sm:$0xff] (%p6121_p4) }
 0x2e8   : > { %4358 = vst [vmem:[%s7603_s25 + $0x168] sm:$0x1f] %v4312_v49  ;;  %v4311_v37 = vmax.f32 %v4265_v30, 0.0  ;;  %4561 = vst [vmem:[%s7836_s21 + $0x250] sm:$0xff] (%p6121_p4), %v4560_v34 }
 0x2e9   : > { %4563 = vst [vmem:[%s7836_s21 + $0x260] sm:$0xff] (%p6121_p4), %v4562_v41  ;;  %v4566_v18 = vld [vmem:[%s7603_s25 + $0x140] sm:$0xff] (%p6121_p4)  ;;  %4565 = vst [vmem:[%s7836_s21 + $0x270] sm:$0xff] (%p6121_p4), %v4564_v19 }
 0x2ea   : > { %4357 = vst [vmem:[%s7603_s25 + $0x160] sm:$0xff] %v4311_v37  ;;  %4567 = vst [vmem:[%s7836_s21 + $0x280] sm:$0xff] (%p6121_p4), %v4566_v18 }
 0x2eb   : > { %4569 = vst [vmem:[%s7836_s21 + $0x290] sm:$0xff] %v4568_v5  ;;  %v4572_v9 = vld [vmem:[%s7603_s25 + $0x158] sm:$0xff] }
 0x2ec   : > { %4573 = vst [vmem:[%s7836_s21 + $0x2b0] sm:$0xff] %v4572_v9 }
 0x2ed   : > { %v4570_v27 = vld [vmem:[%s7603_s25 + $0x150] sm:$0xff] }
 0x2ee   : > { %4571 = vst [vmem:[%s7836_s21 + $0x2a0] sm:$0xff] %v4570_v27 }
 0x2ef   : > { %v4576_v52 = vld [vmem:[%s7603_s25 + $0x168] sm:$0xff] }
 0x2f0   : > { %4577 = vst [vmem:[%s7836_s21 + $0x2d0] sm:$0xff] %v4576_v52 }
 0x2f1   : > { %v4574_v28 = vld [vmem:[%s7603_s25 + $0x160] sm:$0xff] }
 0x2f2   : > { %4575 = vst [vmem:[%s7836_s21 + $0x2c0] sm:$0xff] %v4574_v28 }
 0x2f3 PF: > { %p20_p8 = scmp.ge.s32.totalorder %s6111_s29, 4   ;;  %s7992_s25 = smov %s6019_s26 }
 0x2f4   : > { %s7993_s26 = smov %s6119_s15  ;;  %s7994_s27 = smov %s6111_s29 }
 0x2f5   :  { %22 = sbr.rel (!%p20_p8) target bundleno = 2 (0x2), region = 149 }

// kernel: stgcn_block_forward.3
= control target key start
LH: loop header
LB: loop body
LE: loop exit
PB: predicated region body
PF: predicated region fallthrough
CT: control target
= control target key end

     0   :  { %vm456_vm0 = vcmask 1044480   ;;  %v2776_v3 = vmov 0.0   ;;  %vm317_vm1 = vcmask 891904   ;;  %s6959_s0 = inlined_call_operand.vmem [shape: f32[365,256], index: 0, kind: input, shape index: {}]   ;;  %s6960_s2 = inlined_call_operand.vmem [shape: f32[365,365], index: 2, kind: input, shape index: {}]   ;;  %s6961_s1 = inlined_call_operand.vmem [shape: f32[256,256], index: 1, kind: input, shape index: {}]   ;;  %s6962_s3 = inlined_call_operand.vmem [shape: f32[256,256], index: 3, kind: input, shape index: {}]   ;;  %s6963_s4 = inlined_call_operand.vmem [shape: f32[1,256], index: 4, kind: input, shape index: {}]   ;;  %s6964_s5 = inlined_call_operand.vmem [shape: f32[1,256], index: 5, kind: input, shape index: {}]   ;;  %s6965_s6 = inlined_call_operand.vmem [shape: f32[365,256], index: 6, kind: output, shape index: {}]  }
   0x1   :  { %v54_v0 = vld [vmem:[%s6959_s0 + $0xf8] sm:$0xff]  ;;  %v53_v2 = vld [vmem:[%s6959_s0 + $0xf0] sm:$0xff]  ;;  %868 = vmatprep.mubr.f32.mxu1 %v2776_v3  ;;  %v52_v5 = vld [vmem:[%s6959_s0 + $0xe8] sm:$0xff] }
   0x2   :  { %v114_v1 = vld [vmem:[%s6959_s0 + $0x2d8] sm:$0x1f]  ;;  %463 = vmatprep.subr.mxu0 %v54_v0  ;;  %v113_v4 = vld [vmem:[%s6959_s0 + $0x2d0] sm:$0x1f]  ;;  %v112_v6 = vld [vmem:[%s6959_s0 + $0x2c8] sm:$0xff] }
   0x3   :  { %2590 = vmatprep.subr.msk.mxu1 %vm456_vm0, %v114_v1  ;;  %464 = vmatpush1.msra.mxu0 %v53_v2  ;;  %v51_v7 = vld [vmem:[%s6959_s0 + $0xe0] sm:$0xff]  ;;  %v50_v9 = vld [vmem:[%s6959_s0 + $0xd8] sm:$0xff]  ;;  %v49_v11 = vld [vmem:[%s6959_s0 + $0xd0] sm:$0xff] }
   0x4   :  { %2591 = vmatpush1.msk.msra.mxu1 %vm456_vm0, %v113_v4  ;;  %v111_v8 = vld [vmem:[%s6959_s0 + $0x2c0] sm:$0xff]  ;;  %465 = vmatprep.subr.mxu0 %v52_v5  ;;  %v110_v10 = vld [vmem:[%s6959_s0 + $0x2b8] sm:$0xff]  ;;  %v109_v12 = vld [vmem:[%s6959_s0 + $0x2b0] sm:$0xff] }
   0x5   :  { %810 = vmatprep.subr.mxu1 %v112_v6  ;;  %466 = vmatpush1.msra.mxu0 %v51_v7  ;;  %v48_v13 = vld [vmem:[%s6959_s0 + $0xc8] sm:$0xff]  ;;  %v47_v15 = vld [vmem:[%s6959_s0 + $0xc0] sm:$0xff]  ;;  %v46_v17 = vld [vmem:[%s6959_s0 + $0xb8] sm:$0xff] }
   0x6   :  { %811 = vmatpush1.msra.mxu1 %v111_v8  ;;  %v108_v14 = vld [vmem:[%s6959_s0 + $0x2a8] sm:$0xff]  ;;  %467 = vmatprep.subr.mxu0 %v50_v9  ;;  %v107_v16 = vld [vmem:[%s6959_s0 + $0x2a0] sm:$0xff]  ;;  %v106_v18 = vld [vmem:[%s6959_s0 + $0x298] sm:$0xff] }
   0x7   :  { %812 = vmatprep.subr.mxu1 %v110_v10  ;;  %468 = vmatpush1.msra.mxu0 %v49_v11  ;;  %v45_v19 = vld [vmem:[%s6959_s0 + $0xb0] sm:$0xff]  ;;  %v44_v21 = vld [vmem:[%s6959_s0 + $0xa8] sm:$0xff]  ;;  %v43_v23 = vld [vmem:[%s6959_s0 + $0xa0] sm:$0xff] }
   0x8   :  { %813 = vmatpush1.msra.mxu1 %v109_v12  ;;  %469 = vmatprep.subr.mxu0 %v48_v13  ;;  %v105_v20 = vld [vmem:[%s6959_s0 + $0x290] sm:$0xff]  ;;  %v104_v22 = vld [vmem:[%s6959_s0 + $0x288] sm:$0xff]  ;;  %v103_v24 = vld [vmem:[%s6959_s0 + $0x280] sm:$0xff] }
   0x9   :  { %814 = vmatprep.subr.mxu1 %v108_v14  ;;  %470 = vmatpush1.msra.mxu0 %v47_v15  ;;  %v42_v25 = vld [vmem:[%s6959_s0 + $0x98] sm:$0xff]  ;;  %v41_v27 = vld [vmem:[%s6959_s0 + $0x90] sm:$0xff]  ;;  %v40_v29 = vld [vmem:[%s6959_s0 + $0x88] sm:$0xff] }
   0xa   :  { %815 = vmatpush1.msra.mxu1 %v107_v16  ;;  %471 = vmatprep.subr.mxu0 %v46_v17  ;;  %v102_v26 = vld [vmem:[%s6959_s0 + $0x278] sm:$0xff]  ;;  %v101_v28 = vld [vmem:[%s6959_s0 + $0x270] sm:$0xff]  ;;  %v100_v30 = vld [vmem:[%s6959_s0 + $0x268] sm:$0xff] }
   0xb   :  { %816 = vmatprep.subr.mxu1 %v106_v18  ;;  %472 = vmatpush1.msra.mxu0 %v45_v19  ;;  %v39_v31 = vld [vmem:[%s6959_s0 + $0x80] sm:$0xff]  ;;  %v38_v33 = vld [vmem:[%s6959_s0 + $0x78] sm:$0xff]  ;;  %v37_v35 = vld [vmem:[%s6959_s0 + $0x70] sm:$0xff] }
   0xc   :  { %817 = vmatpush1.msra.mxu1 %v105_v20  ;;  %473 = vmatprep.subr.mxu0 %v44_v21  ;;  %v99_v32 = vld [vmem:[%s6959_s0 + $0x260] sm:$0xff]  ;;  %v98_v34 = vld [vmem:[%s6959_s0 + $0x258] sm:$0xff]  ;;  %v97_v36 = vld [vmem:[%s6959_s0 + $0x250] sm:$0xff] }
   0xd   :  { %818 = vmatprep.subr.mxu1 %v104_v22  ;;  %474 = vmatpush1.msra.mxu0 %v43_v23  ;;  %v36_v37 = vld [vmem:[%s6959_s0 + $0x68] sm:$0xff]  ;;  %v35_v39 = vld [vmem:[%s6959_s0 + $0x60] sm:$0xff]  ;;  %v34_v41 = vld [vmem:[%s6959_s0 + $0x58] sm:$0xff] }
   0xe   :  { %819 = vmatpush1.msra.mxu1 %v103_v24  ;;  %475 = vmatprep.subr.mxu0 %v42_v25  ;;  %v96_v38 = vld [vmem:[%s6959_s0 + $0x248] sm:$0xff]  ;;  %v95_v40 = vld [vmem:[%s6959_s0 + $0x240] sm:$0xff]  ;;  %v94_v42 = vld [vmem:[%s6959_s0 + $0x238] sm:$0xff] }
   0xf   :  { %820 = vmatprep.subr.mxu1 %v102_v26  ;;  %476 = vmatpush1.msra.mxu0 %v41_v27  ;;  %v33_v43 = vld [vmem:[%s6959_s0 + $0x50] sm:$0xff]  ;;  %v32_v45 = vld [vmem:[%s6959_s0 + $0x48] sm:$0xff]  ;;  %v31_v47 = vld [vmem:[%s6959_s0 + $0x40] sm:$0xff] }
  0x10   :  { %821 = vmatpush1.msra.mxu1 %v101_v28  ;;  %477 = vmatprep.subr.mxu0 %v40_v29  ;;  %v93_v44 = vld [vmem:[%s6959_s0 + $0x230] sm:$0xff]  ;;  %v92_v46 = vld [vmem:[%s6959_s0 + $0x228] sm:$0xff]  ;;  %v91_v48 = vld [vmem:[%s6959_s0 + $0x220] sm:$0xff] }
  0x11   :  { %822 = vmatprep.subr.mxu1 %v100_v30  ;;  %478 = vmatpush1.msra.mxu0 %v39_v31  ;;  %v30_v49 = vld [vmem:[%s6959_s0 + $0x38] sm:$0xff]  ;;  %v29_v51 = vld [vmem:[%s6959_s0 + $0x30] sm:$0xff]  ;;  %v28_v53 = vld [vmem:[%s6959_s0 + $0x28] sm:$0xff] }
  0x12   :  { %823 = vmatpush1.msra.mxu1 %v99_v32  ;;  %479 = vmatprep.subr.mxu0 %v38_v33  ;;  %v90_v50 = vld [vmem:[%s6959_s0 + $0x218] sm:$0xff]  ;;  %v89_v52 = vld [vmem:[%s6959_s0 + $0x210] sm:$0xff]  ;;  %v88_v54 = vld [vmem:[%s6959_s0 + $0x208] sm:$0xff] }
  0x13   :  { %824 = vmatprep.subr.mxu1 %v98_v34  ;;  %480 = vmatpush1.msra.mxu0 %v37_v35  ;;  %v27_v55 = vld [vmem:[%s6959_s0 + $0x20] sm:$0xff]  ;;  %v2986_v57 = vld [vmem:[%s6959_s0 + $0x18] sm:$0xff]  ;;  %v181_v58 = vld [vmem:[%s6960_s2 + $0x10] sm:$0xff] }
  0x14   :  { %825 = vmatpush1.msra.mxu1 %v97_v36  ;;  %481 = vmatprep.subr.mxu0 %v36_v37  ;;  %v87_v56 = vld [vmem:[%s6959_s0 + $0x200] sm:$0xff]  ;;  %v146_v59 = vld [vmem:[%s6961_s1 + $0xf8] sm:$0xff]  ;;  %v2997_v60 = vld [vmem:[%s6959_s0 + $0x10] sm:$0xff] }
  0x15   :  { %826 = vmatprep.subr.mxu1 %v96_v38  ;;  %482 = vmatpush1.msra.mxu0 %v35_v39  ;;  %v145_v61 = vld [vmem:[%s6961_s1 + $0xf0] sm:$0xff]  ;;  %v3005_v62 = vld [vmem:[%s6959_s0 + $0x8] sm:$0xff]  ;;  %v3012_v63 = vld [vmem:[%s6959_s0] sm:$0xff] }
  0x16   :  { %827 = vmatpush1.msra.mxu1 %v95_v40  ;;  %483 = vmatprep.subr.mxu0 %v34_v41  ;;  %v86_v0 = vld [vmem:[%s6959_s0 + $0x1f8] sm:$0xff]  ;;  %v184_v1 = vld [vmem:[%s6960_s2 + $0x28] sm:$0xff]  ;;  %v85_v2 = vld [vmem:[%s6959_s0 + $0x1f0] sm:$0xff] }
  0x17   :  { %828 = vmatprep.subr.mxu1 %v94_v42  ;;  %484 = vmatpush1.msra.mxu0 %v33_v43  ;;  %v144_v4 = vld [vmem:[%s6961_s1 + $0xe8] sm:$0xff]  ;;  %v83_v6 = vld [vmem:[%s6959_s0 + $0x1e0] sm:$0xff]  ;;  %v82_v8 = vld [vmem:[%s6959_s0 + $0x1d8] sm:$0xff] }
  0x18   :  { %829 = vmatpush1.msra.mxu1 %v93_v44  ;;  %485 = vmatprep.subr.mxu0 %v32_v45  ;;  %v84_v5 = vld [vmem:[%s6959_s0 + $0x1e8] sm:$0xff]  ;;  %v143_v7 = vld [vmem:[%s6961_s1 + $0xe0] sm:$0xff]  ;;  %v81_v10 = vld [vmem:[%s6959_s0 + $0x1d0] sm:$0xff] }
  0x19   :  { %830 = vmatprep.subr.mxu1 %v92_v46  ;;  %486 = vmatpush1.msra.mxu0 %v31_v47  ;;  %v187_v9 = vld [vmem:[%s6960_s2 + $0x40] sm:$0xff]  ;;  %v80_v11 = vld [vmem:[%s6959_s0 + $0x1c8] sm:$0xff]  ;;  %v142_v12 = vld [vmem:[%s6961_s1 + $0xd8] sm:$0xff] }
  0x1a   :  { %831 = vmatpush1.msra.mxu1 %v91_v48  ;;  %487 = vmatprep.subr.mxu0 %v30_v49  ;;  %v79_v13 = vld [vmem:[%s6959_s0 + $0x1c0] sm:$0xff]  ;;  %v141_v14 = vld [vmem:[%s6961_s1 + $0xd0] sm:$0xff]  ;;  %v78_v15 = vld [vmem:[%s6959_s0 + $0x1b8] sm:$0xff] }
  0x1b   :  { %832 = vmatprep.subr.mxu1 %v90_v50  ;;  %488 = vmatpush1.msra.mxu0 %v29_v51  ;;  %v190_v16 = vld [vmem:[%s6960_s2 + $0x58] sm:$0xff]  ;;  %v77_v17 = vld [vmem:[%s6959_s0 + $0x1b0] sm:$0xff]  ;;  %v76_v18 = vld [vmem:[%s6959_s0 + $0x1a8] sm:$0xff] }
  0x1c   :  { %833 = vmatpush1.msra.mxu1 %v89_v52  ;;  %489 = vmatprep.subr.mxu0 %v28_v53  ;;  %v140_v19 = vld [vmem:[%s6961_s1 + $0xc8] sm:$0xff]  ;;  %v75_v20 = vld [vmem:[%s6959_s0 + $0x1a0] sm:$0xff]  ;;  %v74_v22 = vld [vmem:[%s6959_s0 + $0x198] sm:$0xff] }
  0x1d   :  { %834 = vmatprep.subr.mxu1 %v88_v54  ;;  %490 = vmatpush1.msra.mxu0 %v27_v55  ;;  %v139_v21 = vld [vmem:[%s6961_s1 + $0xc0] sm:$0xff]  ;;  %v193_v23 = vld [vmem:[%s6960_s2 + $0x70] sm:$0xff]  ;;  %v72_v25 = vld [vmem:[%s6959_s0 + $0x188] sm:$0xff] }
  0x1e   :  { %835 = vmatpush1.msra.mxu1 %v87_v56  ;;  %491 = vmatprep.subr.mxu0 %v2986_v57  ;;  %v73_v24 = vld [vmem:[%s6959_s0 + $0x190] sm:$0xff]  ;;  %v138_v26 = vld [vmem:[%s6961_s1 + $0xb8] sm:$0xff]  ;;  %v71_v27 = vld [vmem:[%s6959_s0 + $0x180] sm:$0xff] }
  0x1f   :  { %2592 = vmatmul.mubr.msk.f32.vlgmr.msra.gmra.mxu1 %vm317_vm1, %v181_v58  ;;  %1145 = vmatprep.subr.mxu1 %v146_v59  ;;  %v137_v28 = vld [vmem:[%s6961_s1 + $0xb0] sm:$0xff]  ;;  %v70_v29 = vld [vmem:[%s6959_s0 + $0x178] sm:$0xff]  ;;  %v196_v30 = vld [vmem:[%s6960_s2 + $0x88] sm:$0xff] }
  0x20   :  { %492 = vmatpush1.msra.mxu0 %v2997_v60  ;;  %1146 = vmatpush1.msra.mxu1 %v145_v61  ;;  %v69_v31 = vld [vmem:[%s6959_s0 + $0x170] sm:$0xff]  ;;  %v68_v32 = vld [vmem:[%s6959_s0 + $0x168] sm:$0xff]  ;;  %v67_v34 = vld [vmem:[%s6959_s0 + $0x160] sm:$0xff] }
  0x21   :  { %493 = vmatprep.subr.mxu0 %v3005_v62  ;;  %874 = vmatprep.mubr.f32.mxu1 %v2776_v3  ;;  %v136_v33 = vld [vmem:[%s6961_s1 + $0xa8] sm:$0xff]  ;;  %v135_v35 = vld [vmem:[%s6961_s1 + $0xa0] sm:$0xff]  ;;  %v66_v36 = vld [vmem:[%s6959_s0 + $0x158] sm:$0xff] }
  0x22   :  { %494 = vmatpush1.msra.mxu0 %v3012_v63  ;;  %1147 = vmatprep.subr.mxu1 %v144_v4  ;;  %v199_v37 = vld [vmem:[%s6960_s2 + $0xa0] sm:$0xff]  ;;  %v65_v38 = vld [vmem:[%s6959_s0 + $0x150] sm:$0xff]  ;;  %v64_v39 = vld [vmem:[%s6959_s0 + $0x148] sm:$0xff] }
  0x23   :  { %495 = vmatprep.subr.mxu0 %v86_v0  ;;  %2593 = vmatmul.mubr.msk.f32.gmra.mxu1 %vm317_vm1, %v184_v1  ;;  %v180_v40 = vld [vmem:[%s6960_s2 + $0x8] sm:$0xff]  ;;  %v63_v41 = vld [vmem:[%s6959_s0 + $0x140] sm:$0xff]  ;;  %v134_v42 = vld [vmem:[%s6961_s1 + $0x98] sm:$0xff] }
  0x24   :  { %496 = vmatpush2.msra.mxu0 %v85_v2  ;;  %880 = vmatprep.mubr.f32.mxu1 %v2776_v3  ;;  %v62_v43 = vld [vmem:[%s6959_s0 + $0x138] sm:$0xff]  ;;  %v61_v45 = vld [vmem:[%s6959_s0 + $0x130] sm:$0xff]  ;;  %v3168_v46 = vld [vmem:[%s6959_s0 + $0x128] sm:$0xff] }
  0x25   :  { %497 = vmatprep.subr.mxu0 %v84_v5  ;;  %1148 = vmatpush1.msra.mxu1 %v143_v7  ;;  %v202_v44 = vld [vmem:[%s6960_s2 + $0xb8] sm:$0xff]  ;;  %v133_v47 = vld [vmem:[%s6961_s1 + $0x90] sm:$0xff]  ;;  %v3177_v48 = vld [vmem:[%s6959_s0 + $0x120] sm:$0xff] }
  0x26   :  { %498 = vmatpush2.msra.mxu0 %v83_v6  ;;  %1149 = vmatprep.subr.mxu1 %v142_v12  ;;  %v132_v49 = vld [vmem:[%s6961_s1 + $0x88] sm:$0xff]  ;;  %v3186_v50 = vld [vmem:[%s6959_s0 + $0x118] sm:$0xff]  ;;  %v205_v51 = vld [vmem:[%s6960_s2 + $0xd0] sm:$0xff] }
  0x27   :  { %499 = vmatprep.subr.mxu0 %v82_v8  ;;  %2594 = vmatmul.mubr.msk.f32.gmra.mxu1 %vm317_vm1, %v187_v9  ;;  %v3195_v52 = vld [vmem:[%s6959_s0 + $0x110] sm:$0xff]  ;;  %v3201_v53 = vld [vmem:[%s6959_s0 + $0x108] sm:$0xff]  ;;  %v131_v54 = vld [vmem:[%s6961_s1 + $0x80] sm:$0xff] }
  0x28   :  { %500 = vmatpush2.msra.mxu0 %v81_v10  ;;  %886 = vmatprep.mubr.f32.mxu1 %v2776_v3  ;;  %v3211_v55 = vld [vmem:[%s6959_s0 + $0x100] sm:$0xff]  ;;  %v130_v56 = vld [vmem:[%s6961_s1 + $0x78] sm:$0xff]  ;;  %v208_v59 = vld [vmem:[%s6960_s2 + $0xe8] sm:$0xff] }
  0x29   :  { %501 = vmatprep.subr.mxu0 %v80_v11  ;;  %1150 = vmatpush1.msra.mxu1 %v141_v14  ;;  %v179_v58 = vld [vmem:[%s6960_s2] sm:$0xff]  ;;  %v129_v0 = vld [vmem:[%s6961_s1 + $0x70] sm:$0xff]  ;;  %v128_v1 = vld [vmem:[%s6961_s1 + $0x68] sm:$0xff] }
  0x2a   :  { %502 = vmatpush2.msra.mxu0 %v79_v13  ;;  %1151 = vmatprep.subr.mxu1 %v140_v19  ;;  %v183_v61 = vld [vmem:[%s6960_s2 + $0x20] sm:$0xff]  ;;  %v182_v2 = vld [vmem:[%s6960_s2 + $0x18] sm:$0xff]  ;;  %v185_v8 = vld [vmem:[%s6960_s2 + $0x30] sm:$0xff] }
  0x2b   :  { %503 = vmatprep.subr.mxu0 %v78_v15  ;;  %2595 = vmatmul.mubr.msk.f32.gmra.mxu1 %vm317_vm1, %v190_v16  ;;  %v211_v4 = vld [vmem:[%s6960_s2 + $0x100] sm:$0xff]  ;;  %v186_v5 = vld [vmem:[%s6960_s2 + $0x38] sm:$0xff]  ;;  %v189_v10 = vld [vmem:[%s6960_s2 + $0x50] sm:$0xff] }
  0x2c   :  { %504 = vmatpush2.msra.mxu0 %v77_v17  ;;  %892 = vmatprep.mubr.f32.mxu1 %v2776_v3  ;;  %v127_v6 = vld [vmem:[%s6961_s1 + $0x60] sm:$0xff]  ;;  %v126_v7 = vld [vmem:[%s6961_s1 + $0x58] sm:$0xff]  ;;  %v125_v11 = vld [vmem:[%s6961_s1 + $0x50] sm:$0xff] }
  0x2d   :  { %505 = vmatprep.subr.mxu0 %v76_v18  ;;  %1152 = vmatpush1.msra.mxu1 %v139_v21  ;;  %v214_v9 = vld [vmem:[%s6960_s2 + $0x118] sm:$0xff]  ;;  %v124_v12 = vld [vmem:[%s6961_s1 + $0x48] sm:$0xff]  ;;  %v217_v14 = vld [vmem:[%s6960_s2 + $0x130] sm:$0xff] }
  0x2e   :  { %506 = vmatpush2.msra.mxu0 %v75_v20  ;;  %1153 = vmatprep.subr.mxu1 %v138_v26  ;;  %v188_v13 = vld [vmem:[%s6960_s2 + $0x48] sm:$0xff]  ;;  %v123_v16 = vld [vmem:[%s6961_s1 + $0x40] sm:$0xff]  ;;  %v122_v17 = vld [vmem:[%s6961_s1 + $0x38] sm:$0xff] }
  0x2f   :  { %507 = vmatprep.subr.mxu0 %v74_v22  ;;  %2596 = vmatmul.mubr.msk.f32.gmra.mxu1 %vm317_vm1, %v193_v23  ;;  %v192_v15 = vld [vmem:[%s6960_s2 + $0x68] sm:$0xff]  ;;  %v191_v18 = vld [vmem:[%s6960_s2 + $0x60] sm:$0xff]  ;;  %v121_v21 = vld [vmem:[%s6961_s1 + $0x30] sm:$0xff] }
  0x30   :  { %508 = vmatpush2.msra.mxu0 %v73_v24  ;;  %898 = vmatprep.mubr.f32.mxu1 %v2776_v3  ;;  %v220_v19 = vld [vmem:[%s6960_s2 + $0x148] sm:$0xff]  ;;  %v195_v20 = vld [vmem:[%s6960_s2 + $0x80] sm:$0xff]  ;;  %v194_v23 = vld [vmem:[%s6960_s2 + $0x78] sm:$0xff] }
  0x31   :  { %509 = vmatprep.subr.mxu0 %v72_v25  ;;  %1154 = vmatpush1.msra.mxu1 %v137_v28  ;;  %v120_v22 = vld [vmem:[%s6961_s1 + $0x28] sm:$0xff]  ;;  %v223_v24 = vld [vmem:[%s6960_s2 + $0x160] sm:$0xff]  ;;  %v198_v25 = vld [vmem:[%s6960_s2 + $0x98] sm:$0xff] }
  0x32   :  { %510 = vmatpush2.msra.mxu0 %v71_v27  ;;  %1155 = vmatprep.subr.mxu1 %v136_v33  ;;  %v119_v26 = vld [vmem:[%s6961_s1 + $0x20] sm:$0xff]  ;;  %v118_v27 = vld [vmem:[%s6961_s1 + $0x18] sm:$0xff]  ;;  %v197_v28 = vld [vmem:[%s6960_s2 + $0x90] sm:$0xff] }
  0x33   :  { %511 = vmatprep.subr.mxu0 %v70_v29  ;;  %2597 = vmatmul.mubr.msk.f32.gmra.mxu1 %vm317_vm1, %v196_v30  ;;  %v226_v29 = vld [vmem:[%s6960_s2 + $0x178] sm:$0xff]  ;;  %v201_v30 = vld [vmem:[%s6960_s2 + $0xb0] sm:$0xff]  ;;  %v200_v33 = vld [vmem:[%s6960_s2 + $0xa8] sm:$0xff] }
  0x34   :  { %512 = vmatpush2.msra.mxu0 %v69_v31  ;;  %904 = vmatprep.mubr.f32.mxu1 %v2776_v3  ;;  %v117_v31 = vld [vmem:[%s6961_s1 + $0x10] sm:$0xff] }
  0x35   :  { %513 = vmatprep.subr.mxu0 %v68_v32  ;;  %1156 = vmatpush1.msra.mxu1 %v135_v35  ;;  %v116_v32 = vld [vmem:[%s6961_s1 + $0x8] sm:$0xff] }
  0x36   :  { %514 = vmatpush2.msra.mxu0 %v67_v34  ;;  %527 = vmatprep.mubr.f32.mxu0 %v180_v40  ;;  %v229_v34 = vld [vmem:[%s6960_s2 + $0x190] sm:$0xff]  ;;  %v204_v35 = vld [vmem:[%s6960_s2 + $0xc8] sm:$0xff]  ;;  %v207_v40 = vld [vmem:[%s6960_s2 + $0xe0] sm:$0xff] }
  0x37   :  { %515 = vmatprep.subr.mxu0 %v66_v36  ;;  %2598 = vmatmul.mubr.msk.f32.gmra.mxu1 %vm317_vm1, %v199_v37  ;;  %v115_v36 = vld [vmem:[%s6961_s1] sm:$0xff]  ;;  %v178_v37 = vld [vmem:[%s6961_s1 + $0x1f8] sm:$0xff] }
  0x38   :  { %516 = vmatpush2.msra.mxu0 %v65_v38  ;;  %910 = vmatprep.mubr.f32.mxu1 %v2776_v3  ;;  %v203_v38 = vld [vmem:[%s6960_s2 + $0xc0] sm:$0xff] }
  0x39   :  { %517 = vmatprep.subr.mxu0 %v64_v39  ;;  %1157 = vmatprep.subr.mxu1 %v134_v42  ;;  %v232_v39 = vld [vmem:[%s6960_s2 + $0x1a8] sm:$0xff] }
  0x3a   :  { %518 = vmatpush2.msra.mxu0 %v63_v41  ;;  %1158 = vmatpush1.msra.mxu1 %v133_v47  ;;  %v177_v41 = vld [vmem:[%s6961_s1 + $0x1f0] sm:$0xff]  ;;  %v176_v42 = vld [vmem:[%s6961_s1 + $0x1e8] sm:$0xff]  ;;  %v175_v47 = vld [vmem:[%s6961_s1 + $0x1e0] sm:$0xff] }
  0x3b   :  { %519 = vmatprep.subr.mxu0 %v62_v43  ;;  %2599 = vmatmul.mubr.msk.f32.gmra.mxu1 %vm317_vm1, %v202_v44  ;;  %v206_v43 = vld [vmem:[%s6960_s2 + $0xd8] sm:$0xff]  ;;  %v235_v44 = vld [vmem:[%s6960_s2 + $0x1c0] sm:$0xff] }
  0x3c   :  { %520 = vmatpush2.msra.mxu0 %v61_v45  ;;  %916 = vmatprep.mubr.f32.mxu1 %v2776_v3  ;;  %v210_v45 = vld [vmem:[%s6960_s2 + $0xf8] sm:$0xff] }
  0x3d   :  { %521 = vmatprep.subr.mxu0 %v3168_v46  ;;  %1159 = vmatprep.subr.mxu1 %v132_v49  ;;  %v174_v49 = vld [vmem:[%s6961_s1 + $0x1d8] sm:$0xff] }
  0x3e   :  { %522 = vmatpush2.msra.mxu0 %v3177_v48  ;;  %1160 = vmatpush1.msra.mxu1 %v131_v54  ;;  %v238_v54 = vld [vmem:[%s6960_s2 + $0x1d8] sm:$0xff] }
  0x3f   :  { %523 = vmatprep.subr.mxu0 %v3186_v50  ;;  %2600 = vmatmul.mubr.msk.f32.gmra.mxu1 %vm317_vm1, %v205_v51  ;;  %v209_v51 = vld [vmem:[%s6960_s2 + $0xf0] sm:$0xff] }
  0x40   :  { %524 = vmatpush2.msra.mxu0 %v3195_v52  ;;  %922 = vmatprep.mubr.f32.mxu1 %v2776_v3 }
  0x41   :  { %525 = vmatprep.subr.mxu0 %v3201_v53  ;;  %1161 = vmatprep.subr.mxu1 %v130_v56  ;;  %v213_v56 = vld [vmem:[%s6960_s2 + $0x110] sm:$0xff] }
  0x42   :  { %526 = vmatpush2.msra.mxu0 %v3211_v55  ;;  %1162 = vmatpush1.msra.mxu1 %v129_v0  ;;  %v241_v0 = vld [vmem:[%s6960_s2 + $0x1f0] sm:$0xff] }
  0x43   :  { %528 = vmatmul.mubr.f32.vlgmr.msra.gmra.mxu0 %v179_v58  ;;  %2601 = vmatmul.mubr.msk.f32.gmra.mxu1 %vm317_vm1, %v208_v59  ;;  %v173_v58 = vld [vmem:[%s6961_s1 + $0x1d0] sm:$0xff]  ;;  %v172_v59 = vld [vmem:[%s6961_s1 + $0x1c8] sm:$0xff] }
  0x44   :  { %533 = vmatprep.mubr.f32.mxu0 %v183_v61  ;;  %928 = vmatprep.mubr.f32.mxu1 %v2776_v3  ;;  %v212_v61 = vld [vmem:[%s6960_s2 + $0x108] sm:$0xff] }
  0x45   :  { %1163 = vmatprep.subr.mxu1 %v128_v1  ;;  %v216_v1 = vld [vmem:[%s6960_s2 + $0x128] sm:$0xff] }
  0x46   :  { %1164 = vmatpush1.msra.mxu1 %v127_v6  ;;  %v244_v6 = vld [vmem:[%s6960_s2 + $0x208] sm:$0xff] }
  0x47   :  { %534 = vmatmul.mubr.f32.gmra.mxu0 %v182_v2  ;;  %2602 = vmatmul.mubr.msk.f32.gmra.mxu1 %vm317_vm1, %v211_v4  ;;  %v171_v2 = vld [vmem:[%s6961_s1 + $0x1c0] sm:$0xff]  ;;  %v170_v4 = vld [vmem:[%s6961_s1 + $0x1b8] sm:$0xff] }
  0x48   :  { %539 = vmatprep.mubr.f32.mxu0 %v186_v5  ;;  %934 = vmatprep.mubr.f32.mxu1 %v2776_v3  ;;  %v215_v5 = vld [vmem:[%s6960_s2 + $0x120] sm:$0xff] }
  0x49   :  { %1165 = vmatprep.subr.mxu1 %v126_v7  ;;  %v219_v7 = vld [vmem:[%s6960_s2 + $0x140] sm:$0xff] }
  0x4a   :  { %1166 = vmatpush1.msra.mxu1 %v125_v11  ;;  %v247_v11 = vld [vmem:[%s6960_s2 + $0x220] sm:$0xff] }
  0x4b   :  { %540 = vmatmul.mubr.f32.gmra.mxu0 %v185_v8  ;;  %2603 = vmatmul.mubr.msk.f32.gmra.mxu1 %vm317_vm1, %v214_v9  ;;  %v169_v8 = vld [vmem:[%s6961_s1 + $0x1b0] sm:$0xff]  ;;  %v168_v9 = vld [vmem:[%s6961_s1 + $0x1a8] sm:$0xff] }
  0x4c   :  { %545 = vmatprep.mubr.f32.mxu0 %v189_v10  ;;  %940 = vmatprep.mubr.f32.mxu1 %v2776_v3  ;;  %v218_v10 = vld [vmem:[%s6960_s2 + $0x138] sm:$0xff] }
  0x4d   :  { %1167 = vmatprep.subr.mxu1 %v124_v12  ;;  %v222_v12 = vld [vmem:[%s6960_s2 + $0x158] sm:$0xff] }
  0x4e   :  { %1168 = vmatpush1.msra.mxu1 %v123_v16  ;;  %v250_v16 = vld [vmem:[%s6960_s2 + $0x238] sm:$0xff] }
  0x4f   :  { %546 = vmatmul.mubr.f32.gmra.mxu0 %v188_v13  ;;  %2604 = vmatmul.mubr.msk.f32.gmra.mxu1 %vm317_vm1, %v217_v14  ;;  %v167_v13 = vld [vmem:[%s6961_s1 + $0x1a0] sm:$0xff]  ;;  %v166_v14 = vld [vmem:[%s6961_s1 + $0x198] sm:$0xff] }
  0x50   :  { %551 = vmatprep.mubr.f32.mxu0 %v192_v15  ;;  %946 = vmatprep.mubr.f32.mxu1 %v2776_v3  ;;  %v221_v15 = vld [vmem:[%s6960_s2 + $0x150] sm:$0xff] }
  0x51   :  { %1169 = vmatprep.subr.mxu1 %v122_v17  ;;  %v225_v17 = vld [vmem:[%s6960_s2 + $0x170] sm:$0xff] }
  0x52   :  { %1170 = vmatpush1.msra.mxu1 %v121_v21  ;;  %v253_v21 = vld [vmem:[%s6960_s2 + $0x250] sm:$0xff] }
  0x53   :  { %552 = vmatmul.mubr.f32.gmra.mxu0 %v191_v18  ;;  %2605 = vmatmul.mubr.msk.f32.gmra.mxu1 %vm317_vm1, %v220_v19  ;;  %v165_v18 = vld [vmem:[%s6961_s1 + $0x190] sm:$0xff]  ;;  %v164_v19 = vld [vmem:[%s6961_s1 + $0x188] sm:$0xff] }
  0x54   :  { %557 = vmatprep.mubr.f32.mxu0 %v195_v20  ;;  %952 = vmatprep.mubr.f32.mxu1 %v2776_v3  ;;  %v224_v20 = vld [vmem:[%s6960_s2 + $0x168] sm:$0xff] }
  0x55   :  { %1171 = vmatprep.subr.mxu1 %v120_v22  ;;  %v228_v22 = vld [vmem:[%s6960_s2 + $0x188] sm:$0xff] }
  0x56   :  { %1172 = vmatpush1.msra.mxu1 %v119_v26  ;;  %v256_v26 = vld [vmem:[%s6960_s2 + $0x268] sm:$0xff] }
  0x57   :  { %558 = vmatmul.mubr.f32.gmra.mxu0 %v194_v23  ;;  %2606 = vmatmul.mubr.msk.f32.gmra.mxu1 %vm317_vm1, %v223_v24  ;;  %v163_v23 = vld [vmem:[%s6961_s1 + $0x180] sm:$0xff]  ;;  %v162_v24 = vld [vmem:[%s6961_s1 + $0x178] sm:$0xff] }
  0x58   :  { %563 = vmatprep.mubr.f32.mxu0 %v198_v25  ;;  %958 = vmatprep.mubr.f32.mxu1 %v2776_v3  ;;  %v227_v25 = vld [vmem:[%s6960_s2 + $0x180] sm:$0xff] }
  0x59   :  { %1173 = vmatprep.subr.mxu1 %v118_v27  ;;  %v231_v27 = vld [vmem:[%s6960_s2 + $0x1a0] sm:$0xff] }
  0x5a   :  { %1174 = vmatpush1.msra.mxu1 %v117_v31  ;;  %v259_v31 = vld [vmem:[%s6960_s2 + $0x280] sm:$0xff] }
  0x5b   :  { %564 = vmatmul.mubr.f32.gmra.mxu0 %v197_v28  ;;  %2607 = vmatmul.mubr.msk.f32.gmra.mxu1 %vm317_vm1, %v226_v29  ;;  %v161_v28 = vld [vmem:[%s6961_s1 + $0x170] sm:$0xff]  ;;  %v160_v29 = vld [vmem:[%s6961_s1 + $0x168] sm:$0xff] }
  0x5c   :  { %569 = vmatprep.mubr.f32.mxu0 %v201_v30  ;;  %964 = vmatprep.mubr.f32.mxu1 %v2776_v3  ;;  %v230_v30 = vld [vmem:[%s6960_s2 + $0x198] sm:$0xff] }
  0x5d   :  { %1175 = vmatprep.subr.mxu1 %v116_v32  ;;  %v234_v32 = vld [vmem:[%s6960_s2 + $0x1b8] sm:$0xff] }
  0x5e   :  { %1176 = vmatpush1.msra.mxu1 %v115_v36  ;;  %v262_v36 = vld [vmem:[%s6960_s2 + $0x298] sm:$0xff] }
  0x5f   :  { %570 = vmatmul.mubr.f32.gmra.mxu0 %v200_v33  ;;  %2608 = vmatmul.mubr.msk.f32.gmra.mxu1 %vm317_vm1, %v229_v34  ;;  %v159_v33 = vld [vmem:[%s6961_s1 + $0x160] sm:$0xff]  ;;  %v158_v34 = vld [vmem:[%s6961_s1 + $0x158] sm:$0xff] }
  0x60   :  { %575 = vmatprep.mubr.f32.mxu0 %v204_v35  ;;  %970 = vmatprep.mubr.f32.mxu1 %v2776_v3  ;;  %v233_v35 = vld [vmem:[%s6960_s2 + $0x1b0] sm:$0xff] }
  0x61   :  { %1177 = vmatprep.subr.mxu1 %v178_v37  ;;  %v237_v37 = vld [vmem:[%s6960_s2 + $0x1d0] sm:$0xff] }
  0x62   :  { %1178 = vmatpush2.msra.mxu1 %v177_v41  ;;  %v265_v41 = vld [vmem:[%s6960_s2 + $0x2b0] sm:$0xff] }
  0x63   :  { %576 = vmatmul.mubr.f32.gmra.mxu0 %v203_v38  ;;  %2609 = vmatmul.mubr.msk.f32.gmra.mxu1 %vm317_vm1, %v232_v39  ;;  %v157_v38 = vld [vmem:[%s6961_s1 + $0x150] sm:$0xff]  ;;  %v156_v39 = vld [vmem:[%s6961_s1 + $0x148] sm:$0xff] }
  0x64   :  { %581 = vmatprep.mubr.f32.mxu0 %v207_v40  ;;  %976 = vmatprep.mubr.f32.mxu1 %v2776_v3  ;;  %v236_v40 = vld [vmem:[%s6960_s2 + $0x1c8] sm:$0xff] }
  0x65   :  { %1179 = vmatprep.subr.mxu1 %v176_v42  ;;  %v240_v42 = vld [vmem:[%s6960_s2 + $0x1e8] sm:$0xff] }
  0x66   :  { %1180 = vmatpush2.msra.mxu1 %v175_v47  ;;  %v268_v47 = vld [vmem:[%s6960_s2 + $0x2c8] sm:$0xff] }
  0x67   :  { %582 = vmatmul.mubr.f32.gmra.mxu0 %v206_v43  ;;  %2610 = vmatmul.mubr.msk.f32.gmra.mxu1 %vm317_vm1, %v235_v44  ;;  %v155_v43 = vld [vmem:[%s6961_s1 + $0x140] sm:$0xff]  ;;  %v154_v44 = vld [vmem:[%s6961_s1 + $0x138] sm:$0xff] }
  0x68   :  { %587 = vmatprep.mubr.f32.mxu0 %v210_v45  ;;  %982 = vmatprep.mubr.f32.mxu1 %v2776_v3  ;;  %v239_v45 = vld [vmem:[%s6960_s2 + $0x1e0] sm:$0xff] }
  0x69   :  { %1181 = vmatprep.subr.mxu1 %v174_v49  ;;  %v243_v49 = vld [vmem:[%s6960_s2 + $0x200] sm:$0xff] }
  0x6a   :  { %1182 = vmatpush2.msra.mxu1 %v173_v58  ;;  %v271_v58 = vld [vmem:[%s6960_s2 + $0x2e0] sm:$0xff] }
  0x6b   :  { %588 = vmatmul.mubr.f32.gmra.mxu0 %v209_v51  ;;  %2611 = vmatmul.mubr.msk.f32.gmra.mxu1 %vm317_vm1, %v238_v54  ;;  %v153_v51 = vld [vmem:[%s6961_s1 + $0x130] sm:$0xff]  ;;  %v152_v54 = vld [vmem:[%s6961_s1 + $0x128] sm:$0xff] }
  0x6c   :  { %593 = vmatprep.mubr.f32.mxu0 %v213_v56  ;;  %988 = vmatprep.mubr.f32.mxu1 %v2776_v3  ;;  %v242_v56 = vld [vmem:[%s6960_s2 + $0x1f8] sm:$0xff] }
  0x6d   :  { %1183 = vmatprep.subr.mxu1 %v172_v59  ;;  %v246_v59 = vld [vmem:[%s6960_s2 + $0x218] sm:$0xff] }
  0x6e   :  { %1184 = vmatpush2.msra.mxu1 %v171_v2  ;;  %v274_v2 = vld [vmem:[%s6960_s2 + $0x2f8] sm:$0xff] }
  0x6f   :  { %594 = vmatmul.mubr.f32.gmra.mxu0 %v212_v61  ;;  %2612 = vmatmul.mubr.msk.f32.gmra.mxu1 %vm317_vm1, %v241_v0  ;;  %v151_v61 = vld [vmem:[%s6961_s1 + $0x120] sm:$0xff]  ;;  %v150_v0 = vld [vmem:[%s6961_s1 + $0x118] sm:$0xff] }
  0x70   :  { %599 = vmatprep.mubr.f32.mxu0 %v216_v1  ;;  %994 = vmatprep.mubr.f32.mxu1 %v2776_v3  ;;  %v245_v1 = vld [vmem:[%s6960_s2 + $0x210] sm:$0xff] }
  0x71   :  { %1185 = vmatprep.subr.mxu1 %v170_v4  ;;  %v249_v4 = vld [vmem:[%s6960_s2 + $0x230] sm:$0xff] }
  0x72   :  { %1186 = vmatpush2.msra.mxu1 %v169_v8  ;;  %v277_v8 = vld [vmem:[%s6960_s2 + $0x310] sm:$0xff] }
  0x73   :  { %600 = vmatmul.mubr.f32.gmra.mxu0 %v215_v5  ;;  %2613 = vmatmul.mubr.msk.f32.gmra.mxu1 %vm317_vm1, %v244_v6  ;;  %v149_v5 = vld [vmem:[%s6961_s1 + $0x110] sm:$0xff]  ;;  %v148_v6 = vld [vmem:[%s6961_s1 + $0x108] sm:$0xff] }
  0x74   :  { %605 = vmatprep.mubr.f32.mxu0 %v219_v7  ;;  %1000 = vmatprep.mubr.f32.mxu1 %v2776_v3  ;;  %v248_v7 = vld [vmem:[%s6960_s2 + $0x228] sm:$0xff] }
  0x75   :  { %1187 = vmatprep.subr.mxu1 %v168_v9  ;;  %v252_v9 = vld [vmem:[%s6960_s2 + $0x248] sm:$0xff] }
  0x76   :  { %1188 = vmatpush2.msra.mxu1 %v167_v13  ;;  %v255_v13 = vld [vmem:[%s6960_s2 + $0x260] sm:$0xff] }
  0x77   :  { %606 = vmatmul.mubr.f32.gmra.mxu0 %v218_v10  ;;  %2614 = vmatmul.mubr.msk.f32.gmra.mxu1 %vm317_vm1, %v247_v11  ;;  %v147_v10 = vld [vmem:[%s6961_s1 + $0x100] sm:$0xff] }
  0x78   :  { %611 = vmatprep.mubr.f32.mxu0 %v222_v12  ;;  %1006 = vmatprep.mubr.f32.mxu1 %v2776_v3  ;;  %v251_v11 = vld [vmem:[%s6960_s2 + $0x240] sm:$0xff]  ;;  %v280_v12 = vld [vmem:[%s6960_s2 + $0x328] sm:$0xff] }
  0x79   :  { %1189 = vmatprep.subr.mxu1 %v166_v14  ;;  %v254_v14 = vld [vmem:[%s6960_s2 + $0x258] sm:$0xff] }
  0x7a   :  { %1190 = vmatpush2.msra.mxu1 %v165_v18  ;;  %v286_v18 = vld [vmem:[%s6960_s2 + $0x358] sm:$0xff] }
  0x7b   :  { %612 = vmatmul.mubr.f32.gmra.mxu0 %v221_v15  ;;  %2615 = vmatmul.mubr.msk.f32.gmra.mxu1 %vm317_vm1, %v250_v16  ;;  %v283_v15 = vld [vmem:[%s6960_s2 + $0x340] sm:$0xff]  ;;  %v258_v16 = vld [vmem:[%s6960_s2 + $0x278] sm:$0xff] }
  0x7c   :  { %617 = vmatprep.mubr.f32.mxu0 %v225_v17  ;;  %1012 = vmatprep.mubr.f32.mxu1 %v2776_v3  ;;  %v257_v17 = vld [vmem:[%s6960_s2 + $0x270] sm:$0xff] }
  0x7d   :  { %1191 = vmatprep.subr.mxu1 %v164_v19  ;;  %v261_v19 = vld [vmem:[%s6960_s2 + $0x290] sm:$0xff] }
  0x7e   :  { %1192 = vmatpush2.msra.mxu1 %v163_v23  ;;  %v263_v23 = vld [vmem:[%s6960_s2 + $0x2a0] sm:$0xff] }
  0x7f   :  { %618 = vmatmul.mubr.f32.gmra.mxu0 %v224_v20  ;;  %2616 = vmatmul.mubr.msk.f32.gmra.mxu1 %vm317_vm1, %v253_v21  ;;  %v260_v20 = vld [vmem:[%s6960_s2 + $0x288] sm:$0xff]  ;;  %v289_v21 = vld [vmem:[%s6960_s2 + $0x370] sm:$0xff] }
  0x80   :  { %623 = vmatprep.mubr.f32.mxu0 %v228_v22  ;;  %1018 = vmatprep.mubr.f32.mxu1 %v2776_v3  ;;  %v264_v22 = vld [vmem:[%s6960_s2 + $0x2a8] sm:$0xff] }
  0x81   :  { %1193 = vmatprep.subr.mxu1 %v162_v24  ;;  %v292_v24 = vld [vmem:[%s6960_s2 + $0x388] sm:$0xff] }
  0x82   :  { %1194 = vmatpush2.msra.mxu1 %v161_v28  ;;  %v270_v28 = vld [vmem:[%s6960_s2 + $0x2d8] sm:$0xff] }
  0x83   :  { %624 = vmatmul.mubr.f32.gmra.mxu0 %v227_v25  ;;  %2617 = vmatmul.mubr.msk.f32.gmra.mxu1 %vm317_vm1, %v256_v26  ;;  %v267_v25 = vld [vmem:[%s6960_s2 + $0x2c0] sm:$0xff]  ;;  %v266_v26 = vld [vmem:[%s6960_s2 + $0x2b8] sm:$0xff] }
  0x84   :  { %629 = vmatprep.mubr.f32.mxu0 %v231_v27  ;;  %1024 = vmatprep.mubr.f32.mxu1 %v2776_v3  ;;  %v295_v27 = vld [vmem:[%s6960_s2 + $0x3a0] sm:$0xff] }
  0x85   :  { %1195 = vmatprep.subr.mxu1 %v160_v29  ;;  %v269_v29 = vld [vmem:[%s6960_s2 + $0x2d0] sm:$0xff] }
  0x86   :  { %1196 = vmatpush2.msra.mxu1 %v159_v33  ;;  %v301_v33 = vld [vmem:[%s6960_s2 + $0x3d0] sm:$0xff] }
  0x87   :  { %630 = vmatmul.mubr.f32.gmra.mxu0 %v230_v30  ;;  %2618 = vmatmul.mubr.msk.f32.gmra.mxu1 %vm317_vm1, %v259_v31  ;;  %v298_v30 = vld [vmem:[%s6960_s2 + $0x3b8] sm:$0xff]  ;;  %v273_v31 = vld [vmem:[%s6960_s2 + $0x2f0] sm:$0xff] }
  0x88   :  { %635 = vmatprep.mubr.f32.mxu0 %v234_v32  ;;  %1030 = vmatprep.mubr.f32.mxu1 %v2776_v3  ;;  %v272_v32 = vld [vmem:[%s6960_s2 + $0x2e8] sm:$0xff] }
  0x89   :  { %1197 = vmatprep.subr.mxu1 %v158_v34  ;;  %v276_v34 = vld [vmem:[%s6960_s2 + $0x308] sm:$0xff] }
  0x8a   :  { %1198 = vmatpush2.msra.mxu1 %v157_v38  ;;  %v278_v38 = vld [vmem:[%s6960_s2 + $0x318] sm:$0xff] }
  0x8b   :  { %636 = vmatmul.mubr.f32.gmra.mxu0 %v233_v35  ;;  %2619 = vmatmul.mubr.msk.f32.gmra.mxu1 %vm317_vm1, %v262_v36  ;;  %v275_v35 = vld [vmem:[%s6960_s2 + $0x300] sm:$0xff]  ;;  %v304_v36 = vld [vmem:[%s6960_s2 + $0x3e8] sm:$0xff] }
  0x8c   :  { %641 = vmatprep.mubr.f32.mxu0 %v237_v37  ;;  %1036 = vmatprep.mubr.f32.mxu1 %v2776_v3  ;;  %v279_v37 = vld [vmem:[%s6960_s2 + $0x320] sm:$0xff] }
  0x8d   :  { %1199 = vmatprep.subr.mxu1 %v156_v39  ;;  %v307_v39 = vld [vmem:[%s6960_s2 + $0x400] sm:$0xff] }
  0x8e   :  { %1200 = vmatpush2.msra.mxu1 %v155_v43  ;;  %v285_v43 = vld [vmem:[%s6960_s2 + $0x350] sm:$0xff] }
  0x8f   :  { %642 = vmatmul.mubr.f32.gmra.mxu0 %v236_v40  ;;  %2620 = vmatmul.mubr.msk.f32.gmra.mxu1 %vm317_vm1, %v265_v41  ;;  %v282_v40 = vld [vmem:[%s6960_s2 + $0x338] sm:$0xff]  ;;  %v281_v41 = vld [vmem:[%s6960_s2 + $0x330] sm:$0xff] }
  0x90   :  { %647 = vmatprep.mubr.f32.mxu0 %v240_v42  ;;  %1042 = vmatprep.mubr.f32.mxu1 %v2776_v3  ;;  %v310_v42 = vld [vmem:[%s6960_s2 + $0x418] sm:$0xff] }
  0x91   :  { %1201 = vmatprep.subr.mxu1 %v154_v44  ;;  %v284_v44 = vld [vmem:[%s6960_s2 + $0x348] sm:$0xff] }
  0x92   :  { %1202 = vmatpush2.msra.mxu1 %v153_v51  ;;  %v316_v51 = vld [vmem:[%s6960_s2 + $0x448] sm:$0x1f] }
  0x93   :  { %648 = vmatmul.mubr.f32.gmra.mxu0 %v239_v45  ;;  %2621 = vmatmul.mubr.msk.f32.gmra.mxu1 %vm317_vm1, %v268_v47  ;;  %v313_v45 = vld [vmem:[%s6960_s2 + $0x430] sm:$0xff]  ;;  %v288_v47 = vld [vmem:[%s6960_s2 + $0x368] sm:$0xff] }
  0x94   :  { %653 = vmatprep.mubr.f32.mxu0 %v243_v49  ;;  %1048 = vmatprep.mubr.f32.mxu1 %v2776_v3  ;;  %v287_v49 = vld [vmem:[%s6960_s2 + $0x360] sm:$0xff] }
  0x95   :  { %1203 = vmatprep.subr.mxu1 %v152_v54  ;;  %v291_v54 = vld [vmem:[%s6960_s2 + $0x380] sm:$0xff] }
  0x96   :  { %1204 = vmatpush2.msra.mxu1 %v151_v61 }
  0x97   :  { %654 = vmatmul.mubr.f32.gmra.mxu0 %v242_v56  ;;  %2622 = vmatmul.mubr.msk.f32.gmra.mxu1 %vm317_vm1, %v271_v58  ;;  %v294_v56 = vld [vmem:[%s6960_s2 + $0x398] sm:$0xff]  ;;  %v293_v58 = vld [vmem:[%s6960_s2 + $0x390] sm:$0xff] }
  0x98   :  { %659 = vmatprep.mubr.f32.mxu0 %v246_v59  ;;  %1054 = vmatprep.mubr.f32.mxu1 %v2776_v3  ;;  %v2643_v59 = vld [vmem:[%s6959_s0 + $0x28] sm:$0xff] }
  0x99   :  { %1205 = vmatprep.subr.mxu1 %v150_v0  ;;  %v2645_v0 = vld [vmem:[%s6959_s0 + $0x38] sm:$0xff] }
  0x9a   :  { %1206 = vmatpush2.msra.mxu1 %v149_v5 }
  0x9b   :  { %660 = vmatmul.mubr.f32.gmra.mxu0 %v245_v1  ;;  %2623 = vmatmul.mubr.msk.f32.gmra.mxu1 %vm317_vm1, %v274_v2  ;;  %v299_v1 = vld [vmem:[%s6960_s2 + $0x3c0] sm:$0xff] }
  0x9c   :  { %665 = vmatprep.mubr.f32.mxu0 %v249_v4  ;;  %1060 = vmatprep.mubr.f32.mxu1 %v2776_v3  ;;  %v303_v4 = vld [vmem:[%s6960_s2 + $0x3e0] sm:$0xff] }
  0x9d   :  { %1207 = vmatprep.subr.mxu1 %v148_v6  ;;  %v2646_v6 = vld [vmem:[%s6959_s0 + $0x30] sm:$0xff] }
  0x9e   :  { %1208 = vmatpush2.msra.mxu1 %v147_v10  ;;  %v306_v10 = vld [vmem:[%s6960_s2 + $0x3f8] sm:$0xff] }
  0x9f   :  { %666 = vmatmul.mubr.f32.gmra.mxu0 %v248_v7  ;;  %2624 = vmatmul.mubr.msk.f32.gmra.mxu1 %vm317_vm1, %v277_v8  ;;  %v2647_v7 = vld [vmem:[%s6959_s0 + $0x48] sm:$0xff]  ;;  %v302_v8 = vld [vmem:[%s6960_s2 + $0x3d8] sm:$0xff] }
  0xa0   :  { %671 = vmatprep.mubr.f32.mxu0 %v252_v9  ;;  %1066 = vmatprep.mubr.f32.mxu1 %v2776_v3 }
  0xa3   :  { %672 = vmatmul.mubr.f32.gmra.mxu0 %v251_v11  ;;  %2625 = vmatmul.mubr.msk.f32.gmra.mxu1 %vm317_vm1, %v280_v12  ;;  %v2648_v12 = vld [vmem:[%s6959_s0 + $0x40] sm:$0xff] }
  0xa4   :  { %677 = vmatprep.mubr.f32.mxu0 %v255_v13  ;;  %1072 = vmatprep.mubr.f32.mxu1 %v2776_v3  ;;  %v2649_v13 = vld [vmem:[%s6959_s0 + $0x58] sm:$0xff] }
  0xa7   :  { %678 = vmatmul.mubr.f32.gmra.mxu0 %v254_v14  ;;  %2626 = vmatmul.mubr.msk.f32.gmra.mxu1 %vm317_vm1, %v283_v15  ;;  %v305_v14 = vld [vmem:[%s6960_s2 + $0x3f0] sm:$0xff] }
  0xa8   :  { %683 = vmatprep.mubr.f32.mxu0 %v258_v16  ;;  %1078 = vmatprep.mubr.f32.mxu1 %v2776_v3  ;;  %v309_v16 = vld [vmem:[%s6960_s2 + $0x410] sm:$0xff] }
  0xab   :  { %684 = vmatmul.mubr.f32.gmra.mxu0 %v257_v17  ;;  %2627 = vmatmul.mubr.msk.f32.gmra.mxu1 %vm317_vm1, %v286_v18  ;;  %v2650_v18 = vld [vmem:[%s6959_s0 + $0x50] sm:$0xff] }
  0xac   :  { %689 = vmatprep.mubr.f32.mxu0 %v261_v19  ;;  %1084 = vmatprep.mubr.f32.mxu1 %v2776_v3  ;;  %v2651_v19 = vld [vmem:[%s6959_s0 + $0x68] sm:$0xff] }
  0xaf   :  { %690 = vmatmul.mubr.f32.gmra.mxu0 %v260_v20  ;;  %2628 = vmatmul.mubr.msk.f32.gmra.mxu1 %vm317_vm1, %v289_v21  ;;  %v308_v20 = vld [vmem:[%s6960_s2 + $0x408] sm:$0xff] }
  0xb0   :  { %695 = vmatprep.mubr.f32.mxu0 %v264_v22  ;;  %1090 = vmatprep.mubr.f32.mxu1 %v2776_v3  ;;  %v312_v22 = vld [vmem:[%s6960_s2 + $0x428] sm:$0xff] }
  0xb3   :  { %696 = vmatmul.mubr.f32.gmra.mxu0 %v263_v23  ;;  %2629 = vmatmul.mubr.msk.f32.gmra.mxu1 %vm317_vm1, %v292_v24  ;;  %v2652_v24 = vld [vmem:[%s6959_s0 + $0x60] sm:$0xff] }
  0xb4   :  { %701 = vmatprep.mubr.f32.mxu0 %v267_v25  ;;  %1096 = vmatprep.mubr.f32.mxu1 %v2776_v3  ;;  %v2653_v25 = vld [vmem:[%s6959_s0 + $0x78] sm:$0xff] }
  0xb7   :  { %702 = vmatmul.mubr.f32.gmra.mxu0 %v266_v26  ;;  %2630 = vmatmul.mubr.msk.f32.gmra.mxu1 %vm317_vm1, %v295_v27  ;;  %v311_v26 = vld [vmem:[%s6960_s2 + $0x420] sm:$0xff] }
  0xb8   :  { %707 = vmatprep.mubr.f32.mxu0 %v270_v28  ;;  %1102 = vmatprep.mubr.f32.mxu1 %v2776_v3  ;;  %v315_v28 = vld [vmem:[%s6960_s2 + $0x440] sm:$0x1f] }
  0xbb   :  { %708 = vmatmul.mubr.f32.gmra.mxu0 %v269_v29  ;;  %2631 = vmatmul.mubr.msk.f32.gmra.mxu1 %vm317_vm1, %v298_v30  ;;  %v2654_v30 = vld [vmem:[%s6959_s0 + $0x70] sm:$0xff] }
  0xbc   :  { %713 = vmatprep.mubr.f32.mxu0 %v273_v31  ;;  %1108 = vmatprep.mubr.f32.mxu1 %v2776_v3  ;;  %v2655_v31 = vld [vmem:[%s6959_s0 + $0x88] sm:$0xff] }
  0xbf   :  { %714 = vmatmul.mubr.f32.gmra.mxu0 %v272_v32  ;;  %2632 = vmatmul.mubr.msk.f32.gmra.mxu1 %vm317_vm1, %v301_v33  ;;  %v314_v32 = vld [vmem:[%s6960_s2 + $0x438] sm:$0x1f] }
  0xc0   :  { %719 = vmatprep.mubr.f32.mxu0 %v276_v34  ;;  %1114 = vmatprep.mubr.f32.mxu1 %v2776_v3 }
  0xc3   :  { %720 = vmatmul.mubr.f32.gmra.mxu0 %v275_v35  ;;  %2633 = vmatmul.mubr.msk.f32.gmra.mxu1 %vm317_vm1, %v304_v36  ;;  %v2656_v35 = vld [vmem:[%s6959_s0 + $0x80] sm:$0xff]  ;;  %v2657_v36 = vld [vmem:[%s6959_s0 + $0x98] sm:$0xff] }
  0xc4   :  { %725 = vmatprep.mubr.f32.mxu0 %v279_v37  ;;  %1120 = vmatprep.mubr.f32.mxu1 %v2776_v3 }
  0xc7   :  { %726 = vmatmul.mubr.f32.gmra.mxu0 %v278_v38  ;;  %2634 = vmatmul.mubr.msk.f32.gmra.mxu1 %vm317_vm1, %v307_v39  ;;  %v2658_v39 = vld [vmem:[%s6959_s0 + $0x90] sm:$0xff] }
  0xc8   :  { %731 = vmatprep.mubr.f32.mxu0 %v282_v40  ;;  %1126 = vmatprep.mubr.f32.mxu1 %v2776_v3  ;;  %v2659_v40 = vld [vmem:[%s6959_s0 + $0xa8] sm:$0xff] }
  0xcb   :  { %732 = vmatmul.mubr.f32.gmra.mxu0 %v281_v41  ;;  %2635 = vmatmul.mubr.msk.f32.gmra.mxu1 %vm317_vm1, %v310_v42 }
  0xcc   :  { %737 = vmatprep.mubr.f32.mxu0 %v285_v43  ;;  %1132 = vmatprep.mubr.f32.mxu1 %v2776_v3  ;;  %v2660_v43 = vld [vmem:[%s6959_s0 + $0xa0] sm:$0xff] }
  0xcf   :  { %738 = vmatmul.mubr.f32.gmra.mxu0 %v284_v44  ;;  %2636 = vmatmul.mubr.msk.f32.gmra.mxu1 %vm317_vm1, %v313_v45  ;;  %v2661_v44 = vld [vmem:[%s6959_s0 + $0xb8] sm:$0xff] }
  0xd0   :  { %743 = vmatprep.mubr.f32.mxu0 %v288_v47  ;;  %1138 = vmatprep.mubr.f32.mxu1 %v2776_v3  ;;  %v290_v3 = vld [vmem:[%s6960_s2 + $0x378] sm:$0xff] }
  0xd3   :  { %744 = vmatmul.mubr.f32.gmra.mxu0 %v287_v49  ;;  %2637 = vmatmul.mubr.msk.f32.gmra.mxu1 %vm317_vm1, %v316_v51  ;;  %v2662_v51 = vld [vmem:[%s6959_s0 + $0xb0] sm:$0xff] }
  0xd4   :  { %749 = vmatprep.mubr.f32.mxu0 %v291_v54  ;;  %1209 = vmatprep.mubr.f32.mxu1 %v3005_v62  ;;  %v297_v62 = vld [vmem:[%s6960_s2 + $0x3b0] sm:$0xff] }
  0xd7   :  { %750 = vmatmul.mubr.f32.gmra.mxu0 %v290_v3  ;;  %1210 = vmatmul.mubr.f32.vlgmr.msra.gmra.mxu1 %v3012_v63  ;;  %v300_v63 = vld [vmem:[%s6960_s2 + $0x3c8] sm:$0xff] }
  0xd8   :  { %755 = vmatprep.mubr.f32.mxu0 %v294_v56  ;;  %1215 = vmatprep.mubr.f32.mxu1 %v2986_v57  ;;  %v296_v57 = vld [vmem:[%s6960_s2 + $0x3a8] sm:$0xff] }
  0xd9   :  { %v2663_v3 = vld [vmem:[%s6959_s0 + $0xc8] sm:$0xff] }
  0xdb   :  { %756 = vmatmul.mubr.f32.gmra.mxu0 %v293_v58  ;;  %1216 = vmatmul.mubr.f32.gmra.mxu1 %v2997_v60  ;;  %v2644_v60 = vld [vmem:[%s6959_s0 + $0x20] sm:$0xff] }
  0xdc   :  { %761 = vmatprep.mubr.f32.mxu0 %v297_v62  ;;  %1221 = vmatprep.mubr.f32.mxu1 %v2643_v59 }
  0xdf   :  { %762 = vmatmul.mubr.f32.gmra.mxu0 %v296_v57  ;;  %v3792_v61 = vpop.f32.mrf.mxu1  ;;  %1222 = vmatmul.mubr.f32.gmra.mxu1 %v2644_v60  ;;  %v2665_v60 = vld [vmem:[%s6959_s0 + $0xd8] sm:$0xff] }
  0xe0   :  { %767 = vmatprep.mubr.f32.mxu0 %v300_v63  ;;  %1227 = vmatprep.mubr.f32.mxu1 %v2645_v0  ;;  %v2664_v63 = vld [vmem:[%s6959_s0 + $0xc0] sm:$0xff] }
  0xe1   :  { %v3803_v2 = vpop.f32.mrf.mxu1 }
  0xe3   :  { %768 = vmatmul.mubr.f32.gmra.mxu0 %v299_v1  ;;  %v3808_v5 = vpop.f32.mrf.mxu1  ;;  %1228 = vmatmul.mubr.f32.gmra.mxu1 %v2646_v6 }
  0xe4   :  { %773 = vmatprep.mubr.f32.mxu0 %v303_v4  ;;  %1233 = vmatprep.mubr.f32.mxu1 %v2647_v7  ;;  %v2666_v7 = vld [vmem:[%s6959_s0 + $0xd0] sm:$0xff] }
  0xe5   :  { %v3819_v9 = vpop.f32.mrf.mxu1 }
  0xe7   :  { %774 = vmatmul.mubr.f32.gmra.mxu0 %v302_v8  ;;  %v3824_v11 = vpop.f32.mrf.mxu1  ;;  %1234 = vmatmul.mubr.f32.gmra.mxu1 %v2648_v12  ;;  %v2667_v8 = vld [vmem:[%s6959_s0 + $0xe8] sm:$0xff] }
  0xe8   :  { %779 = vmatprep.mubr.f32.mxu0 %v306_v10  ;;  %1239 = vmatprep.mubr.f32.mxu1 %v2649_v13 }
  0xe9   :  { %v3835_v15 = vpop.f32.mrf.mxu1 }
  0xeb   :  { %780 = vmatmul.mubr.f32.gmra.mxu0 %v305_v14  ;;  %v3840_v17 = vpop.f32.mrf.mxu1  ;;  %1240 = vmatmul.mubr.f32.gmra.mxu1 %v2650_v18  ;;  %v2669_v18 = vld [vmem:[%s6959_s0 + $0xf8] sm:$0xff] }
  0xec   :  { %785 = vmatprep.mubr.f32.mxu0 %v309_v16  ;;  %1245 = vmatprep.mubr.f32.mxu1 %v2651_v19  ;;  %v2668_v16 = vld [vmem:[%s6959_s0 + $0xe0] sm:$0xff] }
  0xed   :  { %v3851_v21 = vpop.f32.mrf.mxu1 }
  0xef   :  { %786 = vmatmul.mubr.f32.gmra.mxu0 %v308_v20  ;;  %v3856_v23 = vpop.f32.mrf.mxu1  ;;  %1246 = vmatmul.mubr.f32.gmra.mxu1 %v2652_v24 }
  0xf0   :  { %791 = vmatprep.mubr.f32.mxu0 %v312_v22  ;;  %1251 = vmatprep.mubr.f32.mxu1 %v2653_v25  ;;  %v2670_v25 = vld [vmem:[%s6959_s0 + $0xf0] sm:$0xff] }
  0xf1   :  { %v3867_v27 = vpop.f32.mrf.mxu1 }
  0xf3   :  { %792 = vmatmul.mubr.f32.gmra.mxu0 %v311_v26  ;;  %v3872_v29 = vpop.f32.mrf.mxu1  ;;  %1252 = vmatmul.mubr.f32.gmra.mxu1 %v2654_v30 }
  0xf4   :  { %797 = vmatprep.mubr.f32.mxu0 %v315_v28  ;;  %1257 = vmatprep.mubr.f32.mxu1 %v2655_v31 }
  0xf5   :  { %v3883_v33 = vpop.f32.mrf.mxu1 }
  0xf7   :  { %798 = vmatmul.mubr.f32.gmra.mxu0 %v314_v32  ;;  %v3885_v34 = vpop.f32.mrf.mxu1  ;;  %1258 = vmatmul.mubr.f32.gmra.mxu1 %v2656_v35 }
  0xf8   :  { %1263 = vmatprep.mubr.f32.mxu1 %v2657_v36 }
  0xf9   :  { %v3893_v37 = vpop.f32.mrf.mxu1 }
  0xfb   :  { %v3895_v38 = vpop.f32.mrf.mxu1  ;;  %1264 = vmatmul.mubr.f32.gmra.mxu1 %v2658_v39 }
  0xfc   :  { %1269 = vmatprep.mubr.f32.mxu1 %v2659_v40 }
  0xfd   :  { %v3903_v41 = vpop.f32.mrf.mxu1 }
  0xff   :  { %v3905_v42 = vpop.f32.mrf.mxu1  ;;  %1270 = vmatmul.mubr.f32.gmra.mxu1 %v2660_v43 }
 0x100   :  { %1275 = vmatprep.mubr.f32.mxu1 %v2661_v44 }
 0x101   :  { %v3913_v45 = vpop.f32.mrf.mxu1 }
 0x103   :  { %v529_v47 = vpop.f32.mrf.mxu0  ;;  %v3915_v49 = vpop.f32.mrf.mxu1  ;;  %1276 = vmatmul.mubr.f32.gmra.mxu1 %v2662_v51  ;;  %v2673_v51 = vld [vmem:[%s6959_s0 + $0x148] sm:$0xff] }
 0x104   :  { %v3921_v54 = vadd.f32 %v3792_v61, %v529_v47  ;;  %1281 = vmatprep.mubr.f32.mxu1 %v2663_v3 }
 0x105   :  { %v531_v56 = vpop.f32.mrf.mxu0  ;;  %v3926_v58 = vpop.f32.mrf.mxu1 }
 0x106   :  { %v3929_v62 = vadd.f32 %v3803_v2, %v531_v56 }
 0x107   :  { %v535_v59 = vpop.f32.mrf.mxu0  ;;  %v3931_v57 = vpop.f32.mrf.mxu1  ;;  %1282 = vmatmul.mubr.f32.gmra.mxu1 %v2664_v63 }
 0x108   :  { %v3937_v61 = vadd.f32 %v3808_v5, %v535_v59  ;;  %1287 = vmatprep.mubr.f32.mxu1 %v2665_v60  ;;  %v2674_v60 = vld [vmem:[%s6959_s0 + $0x140] sm:$0xff] }
 0x109   :  { %v537_v0 = vpop.f32.mrf.mxu0  ;;  %v3942_v1 = vpop.f32.mrf.mxu1 }
 0x10a   :  { %v3945_v2 = vadd.f32 %v3819_v9, %v537_v0  ;;  %v2675_v0 = vld [vmem:[%s6959_s0 + $0x158] sm:$0xff] }
 0x10b   :  { %v541_v4 = vpop.f32.mrf.mxu0  ;;  %v3947_v6 = vpop.f32.mrf.mxu1  ;;  %1288 = vmatmul.mubr.f32.gmra.mxu1 %v2666_v7 }
 0x10c   :  { %v3953_v5 = vadd.f32 %v3824_v11, %v541_v4  ;;  %1293 = vmatprep.mubr.f32.mxu1 %v2667_v8 }
 0x10d   :  { %v543_v10 = vpop.f32.mrf.mxu0  ;;  %v3958_v12 = vpop.f32.mrf.mxu1 }
 0x10e   :  { %v3961_v9 = vadd.f32 %v3835_v15, %v543_v10 }
 0x10f   :  { %v547_v13 = vpop.f32.mrf.mxu0  ;;  %v3963_v14 = vpop.f32.mrf.mxu1  ;;  %1294 = vmatmul.mubr.f32.gmra.mxu1 %v2668_v16  ;;  %v2677_v16 = vld [vmem:[%s6959_s0 + $0x168] sm:$0xff] }
 0x110   :  { %v3969_v11 = vadd.f32 %v3840_v17, %v547_v13  ;;  %1299 = vmatprep.mubr.f32.mxu1 %v2669_v18  ;;  %v2676_v13 = vld [vmem:[%s6959_s0 + $0x150] sm:$0xff] }
 0x111   :  { %v549_v19 = vpop.f32.mrf.mxu0  ;;  %v3974_v20 = vpop.f32.mrf.mxu1 }
 0x112   :  { %v3977_v15 = vadd.f32 %v3851_v21, %v549_v19 }
 0x113   :  { %v553_v22 = vpop.f32.mrf.mxu0  ;;  %v3979_v24 = vpop.f32.mrf.mxu1  ;;  %1300 = vmatmul.mubr.f32.gmra.mxu1 %v2670_v25 }
 0x114   :  { %v3985_v17 = vadd.f32 %v3856_v23, %v553_v22  ;;  %1305 = vmatprep.mubr.f32.mxu1 %v3201_v53 }
 0x115   :  { %v555_v26 = vpop.f32.mrf.mxu0  ;;  %v3988_v28 = vpop.f32.mrf.mxu1 }
 0x116   :  { %v3991_v30 = vadd.f32 %v3867_v27, %v555_v26  ;;  %v2678_v26 = vld [vmem:[%s6959_s0 + $0x160] sm:$0xff] }
 0x117   :  { %v559_v21 = vpop.f32.mrf.mxu0  ;;  %v3993_v31 = vpop.f32.mrf.mxu1  ;;  %1306 = vmatmul.mubr.f32.gmra.mxu1 %v3211_v55 }
 0x118   :  { %v3997_v32 = vadd.f32 %v3872_v29, %v559_v21  ;;  %1311 = vmatprep.mubr.f32.mxu1 %v3186_v50 }
 0x119   :  { %v561_v23 = vpop.f32.mrf.mxu0  ;;  %v4000_v35 = vpop.f32.mrf.mxu1 }
 0x11a   :  { %v4003_v53 = vadd.f32 %v3883_v33, %v561_v23  ;;  %v1712_v23 = vld [vmem:[%s6962_s3 + $0xf0] sm:$0xff] }
 0x11b   :  { %v565_v36 = vpop.f32.mrf.mxu0  ;;  %v4005_v39 = vpop.f32.mrf.mxu1  ;;  %1312 = vmatmul.mubr.f32.gmra.mxu1 %v3195_v52  ;;  %v2671_v52 = vld [vmem:[%s6959_s0 + $0x138] sm:$0xff] }
 0x11c   :  { %v4009_v27 = vadd.f32 %v3885_v34, %v565_v36  ;;  %1317 = vmatprep.mubr.f32.mxu1 %v3168_v46 }
 0x11d   :  { %v567_v55 = vpop.f32.mrf.mxu0  ;;  %v4012_v29 = vpop.f32.mrf.mxu1 }
 0x11e   :  { %v4015_v50 = vadd.f32 %v3893_v37, %v567_v55 }
 0x11f   :  { %v571_v40 = vpop.f32.mrf.mxu0  ;;  %v4017_v43 = vpop.f32.mrf.mxu1  ;;  %1318 = vmatmul.mubr.f32.gmra.mxu1 %v3177_v48  ;;  %v2672_v48 = vld [vmem:[%s6959_s0 + $0x130] sm:$0xff] }
 0x120   :  { %v4021_v33 = vadd.f32 %v3895_v38, %v571_v40  ;;  %1323 = vmatprep.mubr.f32.mxu1 %v2671_v52 }
 0x121   :  { %v573_v46 = vpop.f32.mrf.mxu0  ;;  %v4026_v34 = vpop.f32.mrf.mxu1 }
 0x122   :  { %v4029_v44 = vadd.f32 %v3903_v41, %v573_v46  ;;  %v2680_v46 = vld [vmem:[%s6959_s0 + $0x170] sm:$0xff] }
 0x123   :  { %v577_v37 = vpop.f32.mrf.mxu0  ;;  %v4031_v47 = vpop.f32.mrf.mxu1  ;;  %1324 = vmatmul.mubr.f32.gmra.mxu1 %v2672_v48  ;;  %v2681_v48 = vld [vmem:[%s6959_s0 + $0x188] sm:$0xff] }
 0x124   :  { %v4037_v38 = vadd.f32 %v3905_v42, %v577_v37  ;;  %1329 = vmatprep.mubr.f32.mxu1 %v2673_v51 }
 0x125   :  { %v579_v3 = vpop.f32.mrf.mxu0  ;;  %v4042_v56 = vpop.f32.mrf.mxu1 }
 0x126   :  { %v4045_v41 = vadd.f32 %v3913_v45, %v579_v3 }
 0x127   :  { %v583_v59 = vpop.f32.mrf.mxu0  ;;  %v4047_v63 = vpop.f32.mrf.mxu1  ;;  %1330 = vmatmul.mubr.f32.gmra.mxu1 %v2674_v60 }
 0x128   :  { %v4053_v42 = vadd.f32 %v3915_v49, %v583_v59  ;;  %1335 = vmatprep.mubr.f32.mxu1 %v2675_v0 }
 0x129   :  { %v585_v4 = vpop.f32.mrf.mxu0  ;;  %v4058_v7 = vpop.f32.mrf.mxu1 }
 0x12a   :  { %v4061_v45 = vadd.f32 %v3926_v58, %v585_v4  ;;  %v2682_v4 = vld [vmem:[%s6959_s0 + $0x180] sm:$0xff] }
 0x12b   :  { %v589_v8 = vpop.f32.mrf.mxu0  ;;  %v4063_v10 = vpop.f32.mrf.mxu1  ;;  %1336 = vmatmul.mubr.f32.gmra.mxu1 %v2676_v13 }
 0x12c   :  { %7141 = vst [vmem:[#allocation2_spill] sm:$0xff] %v4063_v10  ;;  %v4069_v49 = vadd.f32 %v3931_v57, %v589_v8  ;;  %1341 = vmatprep.mubr.f32.mxu1 %v2677_v16  ;;  %v4087_v57 = vld [vmem:[%s6962_s3 + $0xf8] sm:$0xff] }
 0x12d   :  { %v591_v18 = vpop.f32.mrf.mxu0  ;;  %v4074_v19 = vpop.f32.mrf.mxu1  ;;  %1746 = vmatprep.subr.mxu0 %v4087_v57 }
 0x12e   :  { %7142 = vst [vmem:[#allocation3_spill] sm:$0xff] %v4074_v19  ;;  %v4077_v58 = vadd.f32 %v3942_v1, %v591_v18  ;;  %v2679_v1 = vld [vmem:[%s6959_s0 + $0x178] sm:$0xff]  ;;  %1747 = vmatpush1.msra.mxu0 %v1712_v23 }
 0x12f   :  { %v595_v22 = vpop.f32.mrf.mxu0  ;;  %v4079_v25 = vpop.f32.mrf.mxu1  ;;  %1342 = vmatmul.mubr.f32.gmra.mxu1 %v2678_v26 }
 0x130   :  { %7143 = vst [vmem:[#allocation4_spill] sm:$0xff] %v4079_v25  ;;  %v4090_v21 = vadd.f32 %v3947_v6, %v595_v22  ;;  %1347 = vmatprep.mubr.f32.mxu1 %v2679_v1  ;;  %v1709_v22 = vld [vmem:[%s6962_s3 + $0xd8] sm:$0xff] }
 0x131   :  { %v597_v36 = vpop.f32.mrf.mxu0  ;;  %v4099_v55 = vpop.f32.mrf.mxu1 }
 0x132   :  { %7144 = vst [vmem:[#allocation5_spill] sm:$0xff] %v4099_v55  ;;  %v4102_v40 = vadd.f32 %v3958_v12, %v597_v36  ;;  %v1711_v12 = vld [vmem:[%s6962_s3 + $0xe8] sm:$0xff]  ;;  %v1708_v36 = vld [vmem:[%s6962_s3 + $0xd0] sm:$0xff] }
 0x133   :  { %v601_v6 = vpop.f32.mrf.mxu0  ;;  %v4104_v52 = vpop.f32.mrf.mxu1  ;;  %1348 = vmatmul.mubr.f32.gmra.mxu1 %v2680_v46  ;;  %1748 = vmatprep.subr.mxu0 %v1711_v12 }
 0x134   :  { %7145 = vst [vmem:[#allocation6_spill] sm:$0xff] %v4104_v52  ;;  %v4110_v37 = vadd.f32 %v3963_v14, %v601_v6  ;;  %1353 = vmatprep.mubr.f32.mxu1 %v2681_v48  ;;  %v1710_v14 = vld [vmem:[%s6962_s3 + $0xe0] sm:$0xff] }
 0x135   :  { %v603_v51 = vpop.f32.mrf.mxu0  ;;  %v4118_v3 = vpop.f32.mrf.mxu1  ;;  %1749 = vmatpush1.msra.mxu0 %v1710_v14  ;;  %v2687_v14 = vld [vmem:[%s6959_s0 + $0x1b8] sm:$0xff] }
 0x136   :  { %7146 = vst [vmem:[#allocation7_spill] sm:$0xff] %v4118_v3  ;;  %v4121_v59 = vadd.f32 %v3974_v20, %v603_v51  ;;  %v2683_v20 = vld [vmem:[%s6959_s0 + $0x198] sm:$0xff]  ;;  %1750 = vmatprep.subr.mxu0 %v1709_v22  ;;  %v2689_v22 = vld [vmem:[%s6959_s0 + $0x1c8] sm:$0xff] }
 0x137   :  { %v607_v60 = vpop.f32.mrf.mxu0  ;;  %v4126_v0 = vpop.f32.mrf.mxu1  ;;  %1354 = vmatmul.mubr.f32.gmra.mxu1 %v2682_v4  ;;  %1751 = vmatpush1.msra.mxu0 %v1708_v36 }
 0x138   :  { %7147 = vst [vmem:[#allocation8_spill] sm:$0xff] %v4126_v0  ;;  %v4132_v8 = vadd.f32 %v3979_v24, %v607_v60  ;;  %1359 = vmatprep.mubr.f32.mxu1 %v2683_v20  ;;  %v2684_v24 = vld [vmem:[%s6959_s0 + $0x190] sm:$0xff]  ;;  %v1707_v60 = vld [vmem:[%s6962_s3 + $0xc8] sm:$0xff]  ;;  %v1706_v20 = vld [vmem:[%s6962_s3 + $0xc0] sm:$0xff] }
 0x139   :  { %v609_v13 = vpop.f32.mrf.mxu0  ;;  %v4137_v16 = vpop.f32.mrf.mxu1  ;;  %1752 = vmatprep.subr.mxu0 %v1707_v60 }
 0x13a   :  { %7148 = vst [vmem:[#allocation9_spill] sm:$0xff] %v4137_v16  ;;  %v4140_v18 = vadd.f32 %v3988_v28, %v609_v13  ;;  %v2685_v28 = vld [vmem:[%s6959_s0 + $0x1a8] sm:$0xff]  ;;  %1753 = vmatpush1.msra.mxu0 %v1706_v20  ;;  %v2692_v20 = vld [vmem:[%s6959_s0 + $0x1d0] sm:$0xff] }
 0x13b   :  { %v613_v26 = vpop.f32.mrf.mxu0  ;;  %v4145_v1 = vpop.f32.mrf.mxu1  ;;  %1360 = vmatmul.mubr.f32.gmra.mxu1 %v2684_v24  ;;  %v1705_v24 = vld [vmem:[%s6962_s3 + $0xb8] sm:$0xff] }
 0x13c   :  { %7149 = vst [vmem:[#allocation10_spill] sm:$0xff] %v4145_v1  ;;  %v4151_v23 = vadd.f32 %v3993_v31, %v613_v26  ;;  %1365 = vmatprep.mubr.f32.mxu1 %v2685_v28  ;;  %v2686_v31 = vld [vmem:[%s6959_s0 + $0x1a0] sm:$0xff]  ;;  %v1704_v28 = vld [vmem:[%s6962_s3 + $0xb0] sm:$0xff]  ;;  %1754 = vmatprep.subr.mxu0 %v1705_v24 }
 0x13d   :  { %v4159_v6 = vpop.f32.mrf.mxu0  ;;  %v4161_v46 = vpop.f32.mrf.mxu1  ;;  %1755 = vmatpush1.msra.mxu0 %v1704_v28  ;;  %v1702_v24 = vld [vmem:[%s6962_s3 + $0xa0] sm:$0xff] }
 0x13e   :  { %7150 = vst [vmem:[#allocation11_spill] sm:$0xff] %v4161_v46 }
 0x13f   :  { %v619_v48 = vpop.f32.mrf.mxu0  ;;  %v4163_v12 = vpop.f32.mrf.mxu1  ;;  %1366 = vmatmul.mubr.f32.gmra.mxu1 %v2686_v31  ;;  %v2691_v31 = vld [vmem:[%s6959_s0 + $0x1d8] sm:$0xff] }
 0x140   :  { %7151 = vst [vmem:[#allocation12_spill] sm:$0xff] %v4163_v12  ;;  %v4169_v51 = vadd.f32 %v4005_v39, %v619_v48  ;;  %1371 = vmatprep.mubr.f32.mxu1 %v2687_v14  ;;  %v2688_v39 = vld [vmem:[%s6959_s0 + $0x1b0] sm:$0xff]  ;;  %v2690_v48 = vld [vmem:[%s6959_s0 + $0x1c0] sm:$0xff]  ;;  %v2715_v12 = vld [vmem:[%s6959_s0 + $0x298] sm:$0xff] }
 0x141   :  { %v4177_v4 = vpop.f32.mrf.mxu1 }
 0x142   :  { %7152 = vst [vmem:[#allocation13_spill] sm:$0xff] %v4177_v4 }
 0x143   :  { %v4182_v13 = vpop.f32.mrf.mxu1  ;;  %1372 = vmatmul.mubr.f32.gmra.mxu1 %v2688_v39  ;;  %v2693_v39 = vld [vmem:[%s6959_s0 + $0x1e8] sm:$0xff] }
 0x144   :  { %7153 = vst [vmem:[#allocation14_spill] sm:$0xff] %v4182_v13  ;;  %1377 = vmatprep.mubr.f32.mxu1 %v2689_v22  ;;  %v1703_v22 = vld [vmem:[%s6962_s3 + $0xa8] sm:$0xff] }
 0x145   :  { %v4190_v26 = vpop.f32.mrf.mxu1  ;;  %1756 = vmatprep.subr.mxu0 %v1703_v22  ;;  %v1700_v22 = vld [vmem:[%s6962_s3 + $0x90] sm:$0xff] }
 0x146   :  { %7154 = vst [vmem:[#allocation15_spill] sm:$0xff] %v4190_v26  ;;  %1757 = vmatpush1.msra.mxu0 %v1702_v24 }
 0x147   :  { %v4198_v36 = vpop.f32.mrf.mxu1  ;;  %1378 = vmatmul.mubr.f32.gmra.mxu1 %v2690_v48 }
 0x148   :  { %7155 = vst [vmem:[#allocation16_spill] sm:$0xff] %v4198_v36  ;;  %1383 = vmatprep.mubr.f32.mxu1 %v2691_v31  ;;  %v2694_v31 = vld [vmem:[%s6959_s0 + $0x1e0] sm:$0xff] }
 0x149   :  { %v4206_v14 = vpop.f32.mrf.mxu1 }
 0x14a   :  { %7156 = vst [vmem:[#allocation17_spill] sm:$0xff] %v4206_v14 }
 0x14b   :  { %v4208_v60 = vpop.f32.mrf.mxu1  ;;  %1384 = vmatmul.mubr.f32.gmra.mxu1 %v2692_v20  ;;  %v2695_v20 = vld [vmem:[%s6959_s0 + $0x1f8] sm:$0xff] }
 0x14c   :  { %7157 = vst [vmem:[#allocation18_spill] sm:$0xff] %v4208_v60  ;;  %1389 = vmatprep.mubr.f32.mxu1 %v2693_v39  ;;  %v1697_v60 = vld [vmem:[%s6962_s3 + $0x78] sm:$0xff] }
 0x14d   :  { %v4222_v28 = vpop.f32.mrf.mxu1 }
 0x14e   :  { %7158 = vst [vmem:[#allocation19_spill] sm:$0xff] %v4222_v28  ;;  %v1701_v28 = vld [vmem:[%s6962_s3 + $0x98] sm:$0xff] }
 0x14f   :  { %v4224_v48 = vpop.f32.mrf.mxu1  ;;  %1390 = vmatmul.mubr.f32.gmra.mxu1 %v2694_v31  ;;  %v2696_v31 = vld [vmem:[%s6959_s0 + $0x1f0] sm:$0xff]  ;;  %1758 = vmatprep.subr.mxu0 %v1701_v28  ;;  %v1699_v28 = vld [vmem:[%s6962_s3 + $0x88] sm:$0xff] }
 0x150   :  { %7159 = vst [vmem:[#allocation20_spill] sm:$0xff] %v4224_v48  ;;  %1395 = vmatprep.mubr.f32.mxu1 %v2695_v20  ;;  %v2697_v20 = vld [vmem:[%s6959_s0 + $0x208] sm:$0xff]  ;;  %1759 = vmatpush1.msra.mxu0 %v1700_v22  ;;  %v1698_v22 = vld [vmem:[%s6962_s3 + $0x80] sm:$0xff] }
 0x151   :  { %v4232_v39 = vpop.f32.mrf.mxu1  ;;  %1760 = vmatprep.subr.mxu0 %v1699_v28 }
 0x152   :  { %7160 = vst [vmem:[#allocation21_spill] sm:$0xff] %v4232_v39  ;;  %1761 = vmatpush1.msra.mxu0 %v1698_v22  ;;  %v1696_v22 = vld [vmem:[%s6962_s3 + $0x70] sm:$0xff] }
 0x153   :  { %v4240_v24 = vpop.f32.mrf.mxu1  ;;  %1396 = vmatmul.mubr.f32.gmra.mxu1 %v2696_v31  ;;  %v2699_v31 = vld [vmem:[%s6959_s0 + $0x218] sm:$0xff]  ;;  %1762 = vmatprep.subr.mxu0 %v1697_v60 }
 0x154   :  { %7161 = vst [vmem:[#allocation22_spill] sm:$0xff] %v4240_v24  ;;  %1401 = vmatprep.mubr.f32.mxu1 %v2697_v20  ;;  %v2698_v24 = vld [vmem:[%s6959_s0 + $0x200] sm:$0xff]  ;;  %v4264_v20 = vpop.f32.mrf.mxu0  ;;  %1763 = vmatpush1.msra.mxu0 %v1696_v22  ;;  %v2705_v22 = vld [vmem:[%s6959_s0 + $0x248] sm:$0xff] }
 0x155   :  { %v4248_v39 = vpop.f32.mrf.mxu1 }
 0x156   :  { %7162 = vst [vmem:[#allocation23_spill] sm:$0xff] %v4248_v39  ;;  %v2701_v39 = vld [vmem:[%s6959_s0 + $0x228] sm:$0xff]  ;;  %v4279_v14 = vpop.f32.mrf.mxu0 }
 0x157   :  { %v4250_v48 = vpop.f32.mrf.mxu1  ;;  %1402 = vmatmul.mubr.f32.gmra.mxu1 %v2698_v24 }
 0x158   :  { %7163 = vst [vmem:[#allocation24_spill] sm:$0xff] %v4250_v48  ;;  %1407 = vmatprep.mubr.f32.mxu1 %v2699_v31  ;;  %v2700_v31 = vld [vmem:[%s6959_s0 + $0x210] sm:$0xff] }
 0x159   :  { %v4266_v48 = vpop.f32.mrf.mxu1 }
 0x15a   :  { %7164 = vst [vmem:[#allocation25_spill] sm:$0xff] %v4266_v48  ;;  %v4294_v48 = vpop.f32.mrf.mxu0 }
 0x15b   :  { %v4268_v24 = vpop.f32.mrf.mxu1  ;;  %1408 = vmatmul.mubr.f32.gmra.mxu1 %v2700_v31  ;;  %v2702_v31 = vld [vmem:[%s6959_s0 + $0x220] sm:$0xff] }
 0x15c   :  { %7165 = vst [vmem:[#allocation26_spill] sm:$0xff] %v4268_v24  ;;  %1413 = vmatprep.mubr.f32.mxu1 %v2701_v39  ;;  %v2703_v39 = vld [vmem:[%s6959_s0 + $0x238] sm:$0xff] }
 0x15d   :  { %v4281_v28 = vpop.f32.mrf.mxu1 }
 0x15e   :  { %7166 = vst [vmem:[#allocation27_spill] sm:$0xff] %v4281_v28  ;;  %v1695_v28 = vld [vmem:[%s6962_s3 + $0x68] sm:$0xff] }
 0x15f   :  { %v4286_v24 = vpop.f32.mrf.mxu1  ;;  %1414 = vmatmul.mubr.f32.gmra.mxu1 %v2702_v31  ;;  %v2704_v31 = vld [vmem:[%s6959_s0 + $0x230] sm:$0xff]  ;;  %1764 = vmatprep.subr.mxu0 %v1695_v28  ;;  %v2706_v28 = vld [vmem:[%s6959_s0 + $0x240] sm:$0xff] }
 0x160   :  { %7167 = vst [vmem:[#allocation28_spill] sm:$0xff] %v4286_v24  ;;  %1419 = vmatprep.mubr.f32.mxu1 %v2703_v39  ;;  %v1694_v39 = vld [vmem:[%s6962_s3 + $0x60] sm:$0xff] }
 0x161   :  { %v4296_v60 = vpop.f32.mrf.mxu1  ;;  %1765 = vmatpush1.msra.mxu0 %v1694_v39  ;;  %v1692_v39 = vld [vmem:[%s6962_s3 + $0x50] sm:$0xff] }
 0x162   :  { %7168 = vst [vmem:[#allocation29_spill] sm:$0xff] %v4296_v60  ;;  %v4312_v60 = vpop.f32.mrf.mxu0 }
 0x163   :  { %v4301_v24 = vpop.f32.mrf.mxu1  ;;  %1420 = vmatmul.mubr.f32.gmra.mxu1 %v2704_v31  ;;  %v2707_v31 = vld [vmem:[%s6959_s0 + $0x258] sm:$0xff] }
 0x164   :  { %7169 = vst [vmem:[#allocation30_spill] sm:$0xff] %v4301_v24  ;;  %1425 = vmatprep.mubr.f32.mxu1 %v2705_v22  ;;  %v1693_v22 = vld [vmem:[%s6962_s3 + $0x58] sm:$0xff]  ;;  %v4327_v26 = vpop.f32.mrf.mxu0 }
 0x165   :  { %v4314_v36 = vpop.f32.mrf.mxu1  ;;  %1766 = vmatprep.subr.mxu0 %v1693_v22 }
 0x166   :  { %7170 = vst [vmem:[#allocation31_spill] sm:$0xff] %v4314_v36  ;;  %1767 = vmatpush1.msra.mxu0 %v1692_v39  ;;  %v4342_v13 = vpop.f32.mrf.mxu0  ;;  %v2711_v39 = vld [vmem:[%s6959_s0 + $0x278] sm:$0xff] }
 0x167   :  { %v4316_v24 = vpop.f32.mrf.mxu1  ;;  %1426 = vmatmul.mubr.f32.gmra.mxu1 %v2706_v28  ;;  %v2708_v28 = vld [vmem:[%s6959_s0 + $0x250] sm:$0xff] }
 0x168   :  { %7171 = vst [vmem:[#allocation32_spill] sm:$0xff] %v4316_v24  ;;  %1431 = vmatprep.mubr.f32.mxu1 %v2707_v31  ;;  %v2709_v31 = vld [vmem:[%s6959_s0 + $0x268] sm:$0xff] }
 0x169   :  { %v4329_v36 = vpop.f32.mrf.mxu1 }
 0x16a   :  { %7172 = vst [vmem:[#allocation33_spill] sm:$0xff] %v4329_v36  ;;  %v1691_v36 = vld [vmem:[%s6962_s3 + $0x48] sm:$0xff] }
 0x16b   :  { %v4334_v24 = vpop.f32.mrf.mxu1  ;;  %1432 = vmatmul.mubr.f32.gmra.mxu1 %v2708_v28  ;;  %v2710_v28 = vld [vmem:[%s6959_s0 + $0x260] sm:$0xff]  ;;  %1768 = vmatprep.subr.mxu0 %v1691_v36  ;;  %v2712_v36 = vld [vmem:[%s6959_s0 + $0x270] sm:$0xff] }
 0x16c   :  { %7173 = vst [vmem:[#allocation34_spill] sm:$0xff] %v4334_v24  ;;  %1437 = vmatprep.mubr.f32.mxu1 %v2709_v31  ;;  %v1690_v31 = vld [vmem:[%s6962_s3 + $0x40] sm:$0xff] }
 0x16d   :  { %v4344_v22 = vpop.f32.mrf.mxu1  ;;  %1769 = vmatpush1.msra.mxu0 %v1690_v31  ;;  %v1688_v31 = vld [vmem:[%s6962_s3 + $0x30] sm:$0xff] }
 0x16e   :  { %7174 = vst [vmem:[#allocation35_spill] sm:$0xff] %v4344_v22  ;;  %v4360_v22 = vpop.f32.mrf.mxu0 }
 0x16f   :  { %v4349_v24 = vpop.f32.mrf.mxu1  ;;  %1438 = vmatmul.mubr.f32.gmra.mxu1 %v2710_v28  ;;  %v2713_v28 = vld [vmem:[%s6959_s0 + $0x288] sm:$0xff] }
 0x170   :  { %7175 = vst [vmem:[#allocation36_spill] sm:$0xff] %v4349_v24  ;;  %1443 = vmatprep.mubr.f32.mxu1 %v2711_v39  ;;  %v1689_v39 = vld [vmem:[%s6962_s3 + $0x38] sm:$0xff] }
 0x171   :  { %v4362_v4 = vpop.f32.mrf.mxu1  ;;  %1770 = vmatprep.subr.mxu0 %v1689_v39  ;;  %v1687_v39 = vld [vmem:[%s6962_s3 + $0x28] sm:$0xff] }
 0x172   :  { %7176 = vst [vmem:[#allocation37_spill] sm:$0xff] %v4362_v4  ;;  %v4378_v4 = vpop.f32.mrf.mxu0  ;;  %1771 = vmatpush1.msra.mxu0 %v1688_v31  ;;  %v1686_v31 = vld [vmem:[%s6962_s3 + $0x20] sm:$0xff] }
 0x173   :  { %v4364_v24 = vpop.f32.mrf.mxu1  ;;  %1444 = vmatmul.mubr.f32.gmra.mxu1 %v2712_v36  ;;  %1772 = vmatprep.subr.mxu0 %v1687_v39  ;;  %v2719_v39 = vld [vmem:[%s6959_s0 + $0x2b8] sm:$0xff] }
 0x174   :  { %7177 = vst [vmem:[#allocation38_spill] sm:$0xff] %v4364_v24  ;;  %1449 = vmatprep.mubr.f32.mxu1 %v2713_v28  ;;  %v2714_v28 = vld [vmem:[%s6959_s0 + $0x280] sm:$0xff]  ;;  %v4390_v46 = vpop.f32.mrf.mxu0  ;;  %1773 = vmatpush1.msra.mxu0 %v1686_v31  ;;  %v1685_v31 = vld [vmem:[%s6962_s3 + $0x18] sm:$0xff] }
 0x175   :  { %v4380_v24 = vpop.f32.mrf.mxu1  ;;  %7180 = vst [vmem:[#allocation41_spill] sm:$0xff] %v4390_v46  ;;  %1774 = vmatprep.subr.mxu0 %v1685_v31  ;;  %v1683_v31 = vld [vmem:[%s6962_s3 + $0x8] sm:$0xff] }
 0x176   :  { %7178 = vst [vmem:[#allocation39_spill] sm:$0xff] %v4380_v24 }
 0x177   :  { %v4382_v36 = vpop.f32.mrf.mxu1  ;;  %1450 = vmatmul.mubr.f32.gmra.mxu1 %v2714_v28  ;;  %v2716_v28 = vld [vmem:[%s6959_s0 + $0x290] sm:$0xff] }
 0x178   :  { %7179 = vst [vmem:[#allocation40_spill] sm:$0xff] %v4382_v36  ;;  %1455 = vmatprep.mubr.f32.mxu1 %v2715_v12  ;;  %v2717_v12 = vld [vmem:[%s6959_s0 + $0x2a8] sm:$0xff] }
 0x179   :  { %v4392_v1 = vpop.f32.mrf.mxu1 }
 0x17a   :  { %7181 = vst [vmem:[#allocation42_spill] sm:$0xff] %v4392_v1  ;;  %v4408_v1 = vpop.f32.mrf.mxu0 }
 0x17b   :  { %v4400_v36 = vpop.f32.mrf.mxu1  ;;  %1456 = vmatmul.mubr.f32.gmra.mxu1 %v2716_v28  ;;  %7183 = vst [vmem:[#allocation44_spill] sm:$0xff] %v4408_v1  ;;  %v1684_v28 = vld [vmem:[%s6962_s3 + $0x10] sm:$0xff] }
 0x17c   :  { %7182 = vst [vmem:[#allocation43_spill] sm:$0xff] %v4400_v36  ;;  %1461 = vmatprep.mubr.f32.mxu1 %v2717_v12  ;;  %v2718_v36 = vld [vmem:[%s6959_s0 + $0x2a0] sm:$0xff]  ;;  %v4426_v12 = vpop.f32.mrf.mxu0  ;;  %1775 = vmatpush1.msra.mxu0 %v1684_v28 }
 0x17d   :  { %v4410_v24 = vpop.f32.mrf.mxu1  ;;  %7186 = vst [vmem:[#allocation47_spill] sm:$0xff] %v4426_v12  ;;  %v1682_v28 = vld [vmem:[%s6962_s3] sm:$0xff]  ;;  %1776 = vmatprep.subr.mxu0 %v1683_v31  ;;  %v2724_v31 = vld [vmem:[%s6959_s0 + $0x2d0] sm:$0x1f] }
 0x17e   :  { %7184 = vst [vmem:[#allocation45_spill] sm:$0xff] %v4410_v24  ;;  %v2721_v24 = vld [vmem:[%s6959_s0 + $0x2c8] sm:$0xff]  ;;  %v4438_v0 = vpop.f32.mrf.mxu0  ;;  %1777 = vmatpush1.msra.mxu0 %v1682_v28  ;;  %v1744_v28 = vld [vmem:[%s6962_s3 + $0x1f0] sm:$0xff] }
 0x17f   :  { %v4412_v16 = vpop.f32.mrf.mxu1  ;;  %1462 = vmatmul.mubr.f32.gmra.mxu1 %v2718_v36  ;;  %7189 = vst [vmem:[#allocation50_spill] sm:$0xff] %v4438_v0 }
 0x180   :  { %7185 = vst [vmem:[#allocation46_spill] sm:$0xff] %v4412_v16  ;;  %1467 = vmatprep.mubr.f32.mxu1 %v2719_v39  ;;  %v2720_v39 = vld [vmem:[%s6959_s0 + $0x2b0] sm:$0xff] }
 0x181   :  { %v4428_v16 = vpop.f32.mrf.mxu1 }
 0x182   :  { %7187 = vst [vmem:[#allocation48_spill] sm:$0xff] %v4428_v16 }
 0x183   :  { %v4430_v36 = vpop.f32.mrf.mxu1  ;;  %1468 = vmatmul.mubr.f32.gmra.mxu1 %v2720_v39  ;;  %v2722_v39 = vld [vmem:[%s6959_s0 + $0x2c0] sm:$0xff] }
 0x184   :  { %7188 = vst [vmem:[#allocation49_spill] sm:$0xff] %v4430_v36  ;;  %1473 = vmatprep.mubr.f32.mxu1 %v2721_v24  ;;  %v2723_v24 = vld [vmem:[%s6959_s0 + $0x2d8] sm:$0x1f] }
 0x185   :  { %v4440_v3 = vpop.f32.mrf.mxu1 }
 0x186   :  { %7190 = vst [vmem:[#allocation51_spill] sm:$0xff] %v4440_v3  ;;  %v4456_v3 = vpop.f32.mrf.mxu0 }
 0x187   :  { %v4448_v36 = vpop.f32.mrf.mxu1  ;;  %1474 = vmatmul.mubr.f32.gmra.mxu1 %v2722_v39  ;;  %7192 = vst [vmem:[#allocation53_spill] sm:$0xff] %v4456_v3 }
 0x188   :  { %7191 = vst [vmem:[#allocation52_spill] sm:$0xff] %v4448_v36  ;;  %1479 = vmatprep.mubr.f32.mxu1 %v2723_v24  ;;  %v1745_v36 = vld [vmem:[%s6962_s3 + $0x1f8] sm:$0xff]  ;;  %v4471_v39 = vpop.f32.mrf.mxu0 }
 0x189   :  { %v4458_v16 = vpop.f32.mrf.mxu1  ;;  %1778 = vmatprep.subr.mxu0 %v1745_v36  ;;  %7195 = vst [vmem:[#allocation56_spill] sm:$0xff] %v4471_v39  ;;  %v1742_v36 = vld [vmem:[%s6962_s3 + $0x1e0] sm:$0xff] }
 0x18a   :  { %7193 = vst [vmem:[#allocation54_spill] sm:$0xff] %v4458_v16  ;;  %1779 = vmatpush2.msra.mxu0 %v1744_v28  ;;  %v4480_v3 = vpop.f32.mrf.mxu0 }
 0x18b   :  { %v4463_v52 = vpop.f32.mrf.mxu1  ;;  %1480 = vmatmul.mubr.f32.gmra.mxu1 %v2724_v31  ;;  %7198 = vst [vmem:[#allocation59_spill] sm:$0xff] %v4480_v3 }
 0x18c   :  { %7194 = vst [vmem:[#allocation55_spill] sm:$0xff] %v4463_v52  ;;  %v1743_v52 = vld [vmem:[%s6962_s3 + $0x1e8] sm:$0xff] }
 0x18d   :  { %v4473_v24 = vpop.f32.mrf.mxu1  ;;  %1780 = vmatprep.subr.mxu0 %v1743_v52  ;;  %v1740_v52 = vld [vmem:[%s6962_s3 + $0x1d0] sm:$0xff] }
 0x18e   :  { %7196 = vst [vmem:[#allocation57_spill] sm:$0xff] %v4473_v24  ;;  %1781 = vmatpush2.msra.mxu0 %v1742_v36  ;;  %v4489_v24 = vpop.f32.mrf.mxu0 }
 0x18f   :  { %v4475_v16 = vpop.f32.mrf.mxu1  ;;  %7201 = vst [vmem:[#allocation62_spill] sm:$0xff] %v4489_v24 }
 0x190   :  { %7197 = vst [vmem:[#allocation58_spill] sm:$0xff] %v4475_v16  ;;  %v1741_v16 = vld [vmem:[%s6962_s3 + $0x1d8] sm:$0xff]  ;;  %v4502_v3 = vpop.f32.mrf.mxu0 }
 0x191   :  { %v4482_v0 = vpop.f32.mrf.mxu1  ;;  %1782 = vmatprep.subr.mxu0 %v1741_v16  ;;  %7204 = vst [vmem:[#allocation65_spill] sm:$0xff] %v4502_v3 }
 0x192   :  { %7199 = vst [vmem:[#allocation60_spill] sm:$0xff] %v4482_v0  ;;  %1783 = vmatpush2.msra.mxu0 %v1740_v52  ;;  %v4513_v16 = vpop.f32.mrf.mxu0 }
 0x193   :  { %v4487_v31 = vpop.f32.mrf.mxu1  ;;  %7206 = vst [vmem:[#allocation67_spill] sm:$0xff] %v4513_v16  ;;  %v1735_v16 = vld [vmem:[%s6962_s3 + $0x1a8] sm:$0xff] }
 0x194   :  { %7200 = vst [vmem:[#allocation61_spill] sm:$0xff] %v4487_v31 }
 0x195   :  { %v4491_v28 = vpop.f32.mrf.mxu1 }
 0x196   :  { %7202 = vst [vmem:[#allocation63_spill] sm:$0xff] %v4491_v28 }
 0x197   :  { %v1211_v39 = vpop.f32.mrf.mxu1 }
 0x198   :  { %v4497_v0 = vadd.f32 %v1211_v39, %v3921_v54  ;;  %v1739_v54 = vld [vmem:[%s6962_s3 + $0x1c8] sm:$0xff] }
 0x199   :  { %v1213_v36 = vpop.f32.mrf.mxu1  ;;  %1784 = vmatprep.subr.mxu0 %v1739_v54  ;;  %v1736_v54 = vld [vmem:[%s6962_s3 + $0x1b0] sm:$0xff] }
 0x19a   :  { %7203 = vst [vmem:[#allocation64_spill] sm:$0xff] %v4497_v0  ;;  %v4505_v31 = vadd.f32 %v1213_v36, %v3929_v62  ;;  %v1738_v62 = vld [vmem:[%s6962_s3 + $0x1c0] sm:$0xff] }
 0x19b   :  { %v1217_v28 = vpop.f32.mrf.mxu1  ;;  %1785 = vmatpush2.msra.mxu0 %v1738_v62 }
 0x19c   :  { %7205 = vst [vmem:[#allocation66_spill] sm:$0xff] %v4505_v31  ;;  %v4508_v24 = vadd.f32 %v1217_v28, %v3937_v61  ;;  %v4524_v28 = vpop.f32.mrf.mxu0 }
 0x19d   :  { %v1219_v39 = vpop.f32.mrf.mxu1  ;;  %7209 = vst [vmem:[#allocation70_spill] sm:$0xff] %v4524_v28 }
 0x19e   :  { %v4516_v55 = vadd.f32 %v1219_v39, %v3945_v2  ;;  %v1737_v2 = vld [vmem:[%s6962_s3 + $0x1b8] sm:$0xff] }
 0x19f   :  { %v1223_v52 = vpop.f32.mrf.mxu1  ;;  %1786 = vmatprep.subr.mxu0 %v1737_v2 }
 0x1a0   :  { %7207 = vst [vmem:[#allocation68_spill] sm:$0xff] %v4516_v55  ;;  %v4522_v61 = vadd.f32 %v1223_v52, %v3953_v5  ;;  %1787 = vmatpush2.msra.mxu0 %v1736_v54  ;;  %v4538_v5 = vpop.f32.mrf.mxu0 }
 0x1a1   :  { %v1225_v36 = vpop.f32.mrf.mxu1  ;;  %7212 = vst [vmem:[#allocation73_spill] sm:$0xff] %v4538_v5  ;;  %1788 = vmatprep.subr.mxu0 %v1735_v16 }
 0x1a2   :  { %7208 = vst [vmem:[#allocation69_spill] sm:$0xff] %v4522_v61  ;;  %v4527_v3 = vadd.f32 %v1225_v36, %v3961_v9  ;;  %v4552_v2 = vpop.f32.mrf.mxu0 }
 0x1a3   :  { %v1229_v39 = vpop.f32.mrf.mxu1  ;;  %7214 = vst [vmem:[#allocation75_spill] sm:$0xff] %v4552_v2  ;;  %v1733_v2 = vld [vmem:[%s6962_s3 + $0x198] sm:$0xff] }
 0x1a4   :  { %7210 = vst [vmem:[#allocation71_spill] sm:$0xff] %v4527_v3  ;;  %v4536_v62 = vadd.f32 %v1229_v39, %v3969_v11  ;;  %v1734_v11 = vld [vmem:[%s6962_s3 + $0x1a0] sm:$0xff] }
 0x1a5   :  { %v1231_v52 = vpop.f32.mrf.mxu1  ;;  %1789 = vmatpush2.msra.mxu0 %v1734_v11 }
 0x1a6   :  { %7211 = vst [vmem:[#allocation72_spill] sm:$0xff] %v4536_v62  ;;  %v4541_v9 = vadd.f32 %v1231_v52, %v3977_v15  ;;  %v4560_v52 = vpop.f32.mrf.mxu0  ;;  %1790 = vmatprep.subr.mxu0 %v1733_v2 }
 0x1a7   :  { %v1235_v36 = vpop.f32.mrf.mxu1  ;;  %7217 = vst [vmem:[#allocation78_spill] sm:$0xff] %v4560_v52  ;;  %v1731_v52 = vld [vmem:[%s6962_s3 + $0x188] sm:$0xff] }
 0x1a8   :  { %v4544_v28 = vadd.f32 %v1235_v36, %v3985_v17 }
 0x1a9   :  { %v1237_v54 = vpop.f32.mrf.mxu1 }
 0x1aa   :  { %7213 = vst [vmem:[#allocation74_spill] sm:$0xff] %v4544_v28  ;;  %v4555_v39 = vadd.f32 %v1237_v54, %v3991_v30  ;;  %v1732_v30 = vld [vmem:[%s6962_s3 + $0x190] sm:$0xff] }
 0x1ab   :  { %v1241_v15 = vpop.f32.mrf.mxu1  ;;  %1791 = vmatpush2.msra.mxu0 %v1732_v30 }
 0x1ac   :  { %7215 = vst [vmem:[#allocation76_spill] sm:$0xff] %v4555_v39  ;;  %v4558_v17 = vadd.f32 %v1241_v15, %v3997_v32  ;;  %v4574_v32 = vpop.f32.mrf.mxu0  ;;  %1792 = vmatprep.subr.mxu0 %v1731_v52 }
 0x1ad   :  { %v1243_v36 = vpop.f32.mrf.mxu1  ;;  %7219 = vst [vmem:[#allocation80_spill] sm:$0xff] %v4574_v32 }
 0x1ae   :  { %7216 = vst [vmem:[#allocation77_spill] sm:$0xff] %v4558_v17  ;;  %v4563_v5 = vadd.f32 %v1243_v36, %v4003_v53  ;;  %v4588_v2 = vpop.f32.mrf.mxu0 }
 0x1af   :  { %v1247_v16 = vpop.f32.mrf.mxu1  ;;  %7222 = vst [vmem:[#allocation83_spill] sm:$0xff] %v4588_v2 }
 0x1b0   :  { %v4572_v11 = vadd.f32 %v1247_v16, %v4009_v27  ;;  %v1730_v27 = vld [vmem:[%s6962_s3 + $0x180] sm:$0xff] }
 0x1b1   :  { %v1249_v54 = vpop.f32.mrf.mxu1  ;;  %1793 = vmatpush2.msra.mxu0 %v1730_v27 }
 0x1b2   :  { %7218 = vst [vmem:[#allocation79_spill] sm:$0xff] %v4572_v11  ;;  %v4577_v53 = vadd.f32 %v1249_v54, %v4015_v50  ;;  %v1729_v54 = vld [vmem:[%s6962_s3 + $0x178] sm:$0xff] }
 0x1b3   :  { %v1253_v15 = vpop.f32.mrf.mxu1  ;;  %1794 = vmatprep.subr.mxu0 %v1729_v54 }
 0x1b4   :  { %7220 = vst [vmem:[#allocation81_spill] sm:$0xff] %v4577_v53  ;;  %v4580_v36 = vadd.f32 %v1253_v15, %v4021_v33  ;;  %v4599_v15 = vpop.f32.mrf.mxu0 }
 0x1b5   :  { %v1255_v30 = vpop.f32.mrf.mxu1  ;;  %7224 = vst [vmem:[#allocation85_spill] sm:$0xff] %v4599_v15 }
 0x1b6   :  { %7221 = vst [vmem:[#allocation82_spill] sm:$0xff] %v4580_v36  ;;  %v4591_v16 = vadd.f32 %v1255_v30, %v4029_v44  ;;  %v1728_v44 = vld [vmem:[%s6962_s3 + $0x170] sm:$0xff]  ;;  %v4610_v27 = vpop.f32.mrf.mxu0 }
 0x1b7   :  { %v1259_v50 = vpop.f32.mrf.mxu1  ;;  %1795 = vmatpush2.msra.mxu0 %v1728_v44  ;;  %7225 = vst [vmem:[#allocation86_spill] sm:$0xff] %v4610_v27 }
 0x1b8   :  { %v4594_v33 = vadd.f32 %v1259_v50, %v4037_v38  ;;  %v4624_v44 = vpop.f32.mrf.mxu0 }
 0x1b9   :  { %v1261_v32 = vpop.f32.mrf.mxu1  ;;  %7227 = vst [vmem:[#allocation88_spill] sm:$0xff] %v4624_v44 }
 0x1ba   :  { %7223 = vst [vmem:[#allocation84_spill] sm:$0xff] %v4594_v33  ;;  %v4602_v2 = vadd.f32 %v1261_v32, %v4045_v41  ;;  %v1727_v41 = vld [vmem:[%s6962_s3 + $0x168] sm:$0xff] }
 0x1bb   :  { %v1265_v52 = vpop.f32.mrf.mxu1  ;;  %1796 = vmatprep.subr.mxu0 %v1727_v41  ;;  %v4637_v41 = vpop.f32.mrf.mxu0 }
 0x1bc   :  { %v4608_v38 = vadd.f32 %v1265_v52, %v4053_v42  ;;  %v1726_v42 = vld [vmem:[%s6962_s3 + $0x160] sm:$0xff]  ;;  %7229 = vst [vmem:[#allocation90_spill] sm:$0xff] %v4637_v41 }
 0x1bd   :  { %v1267_v30 = vpop.f32.mrf.mxu1  ;;  %1797 = vmatpush2.msra.mxu0 %v1726_v42 }
 0x1be   :  { %v4613_v50 = vadd.f32 %v1267_v30, %v4061_v45 }
 0x1bf   :  { %v1271_v32 = vpop.f32.mrf.mxu1 }
 0x1c0   :  { %7226 = vst [vmem:[#allocation87_spill] sm:$0xff] %v4613_v50  ;;  %v4619_v54 = vadd.f32 %v1271_v32, %v4069_v49  ;;  %v4635_v49 = vld [vmem:[%s6962_s3 + $0x158] sm:$0xff] }
 0x1c1   :  { %v1273_v52 = vpop.f32.mrf.mxu1  ;;  %7228 = vst [vmem:[#allocation89_spill] sm:$0xff] %v4635_v49  ;;  %1798 = vmatprep.subr.mxu0 %v4635_v49 }
 0x1c2   :  { %v4627_v45 = vadd.f32 %v1273_v52, %v4077_v58  ;;  %v4646_v58 = vld [vmem:[%s6962_s3 + $0x150] sm:$0xff]  ;;  %v4652_v52 = vpop.f32.mrf.mxu0 }
 0x1c3   :  { %v1277_v30 = vpop.f32.mrf.mxu1  ;;  %7230 = vst [vmem:[#allocation91_spill] sm:$0xff] %v4646_v58  ;;  %1799 = vmatpush2.msra.mxu0 %v4646_v58  ;;  %7232 = vst [vmem:[#allocation93_spill] sm:$0xff] %v4652_v52 }
 0x1c4   :  { %v4630_v27 = vadd.f32 %v1277_v30, %v4090_v21 }
 0x1c5   :  { %v1279_v32 = vpop.f32.mrf.mxu1 }
 0x1c6   :  { %v4641_v44 = vadd.f32 %v1279_v32, %v4102_v40  ;;  %v4660_v40 = vld [vmem:[%s6962_s3 + $0x148] sm:$0xff] }
 0x1c7   :  { %v1283_v21 = vpop.f32.mrf.mxu1  ;;  %7234 = vst [vmem:[#allocation95_spill] sm:$0xff] %v4660_v40  ;;  %1800 = vmatprep.subr.mxu0 %v4660_v40 }
 0x1c8   :  { %v4650_v42 = vadd.f32 %v1283_v21, %v4110_v37  ;;  %v4669_v37 = vld [vmem:[%s6962_s3 + $0x140] sm:$0xff]  ;;  %v4671_v21 = vpop.f32.mrf.mxu0 }
 0x1c9   :  { %v1285_v30 = vpop.f32.mrf.mxu1  ;;  %7236 = vst [vmem:[#allocation97_spill] sm:$0xff] %v4669_v37  ;;  %7237 = vst [vmem:[#allocation98_spill] sm:$0xff] %v4671_v21  ;;  %1801 = vmatpush2.msra.mxu0 %v4669_v37 }
 0x1ca   :  { %7231 = vst [vmem:[#allocation92_spill] sm:$0xff] %v4650_v42  ;;  %v4655_v41 = vadd.f32 %v1285_v30, %v4121_v59  ;;  %v4680_v40 = vpop.f32.mrf.mxu0 }
 0x1cb   :  { %v1289_v32 = vpop.f32.mrf.mxu1  ;;  %7240 = vst [vmem:[#allocation101_spill] sm:$0xff] %v4680_v40  ;;  %v4740_v40 = vld [vmem:[%s6962_s3 + $0x108] sm:$0xff] }
 0x1cc   :  { %7233 = vst [vmem:[#allocation94_spill] sm:$0xff] %v4655_v41  ;;  %v4664_v49 = vadd.f32 %v1289_v32, %v4132_v8  ;;  %v4687_v12 = vpop.f32.mrf.mxu0  ;;  %7252 = vst [vmem:[#allocation113_spill] sm:$0xff] %v4740_v40 }
 0x1cd   :  { %v1291_v59 = vpop.f32.mrf.mxu1  ;;  %7242 = vst [vmem:[#allocation103_spill] sm:$0xff] %v4687_v12 }
 0x1ce   :  { %7235 = vst [vmem:[#allocation96_spill] sm:$0xff] %v4664_v49  ;;  %v4675_v30 = vadd.f32 %v1291_v59, %v4140_v18  ;;  %v4693_v18 = vpop.f32.mrf.mxu0 }
 0x1cf   :  { %v1295_v58 = vpop.f32.mrf.mxu1  ;;  %7243 = vst [vmem:[#allocation104_spill] sm:$0xff] %v4693_v18 }
 0x1d0   :  { %7238 = vst [vmem:[#allocation99_spill] sm:$0xff] %v4675_v30  ;;  %v4678_v52 = vadd.f32 %v1295_v58, %v4151_v23  ;;  %v4700_v23 = vld [vmem:[%s6962_s3 + $0x138] sm:$0xff]  ;;  %v4722_v18 = vpop.f32.mrf.mxu0 }
 0x1d1   :  { %v4682_v8 = vpop.f32.mrf.mxu1  ;;  %7244 = vst [vmem:[#allocation105_spill] sm:$0xff] %v4700_v23  ;;  %1802 = vmatprep.subr.mxu0 %v4700_v23  ;;  %v4720_v23 = vld [vmem:[%s6962_s3 + $0x120] sm:$0xff]  ;;  %7248 = vst [vmem:[#allocation109_spill] sm:$0xff] %v4722_v18 }
 0x1d2   :  { %7239 = vst [vmem:[#allocation100_spill] sm:$0xff] %v4678_v52  ;;  %7247 = vst [vmem:[#allocation108_spill] sm:$0xff] %v4720_v23  ;;  %v4752_v25 = vpop.f32.mrf.mxu0 }
 0x1d3   :  { %v1301_v32 = vpop.f32.mrf.mxu1  ;;  %7255 = vst [vmem:[#allocation116_spill] sm:$0xff] %v4752_v25 }
 0x1d4   :  { %v4685_v15 = vadd.f32 %v1301_v32, %v4169_v51  ;;  %v4706_v51 = vld [vmem:[%s6962_s3 + $0x130] sm:$0xff]  ;;  %v4714_v32 = vld [vmem:[%s6962_s3 + $0x128] sm:$0xff]  ;;  %v4760_v19 = vpop.f32.mrf.mxu0 }
 0x1d5   :  { %v4689_v21 = vpop.f32.mrf.mxu1  ;;  %7245 = vst [vmem:[#allocation106_spill] sm:$0xff] %v4706_v51  ;;  %1803 = vmatpush2.msra.mxu0 %v4706_v51  ;;  %7246 = vst [vmem:[#allocation107_spill] sm:$0xff] %v4714_v32  ;;  %v4730_v51 = vld [vmem:[%s6962_s3 + $0x118] sm:$0xff] }
 0x1d6   :  { %7241 = vst [vmem:[#allocation102_spill] sm:$0xff] %v4685_v15  ;;  %1804 = vmatprep.subr.mxu0 %v4714_v32  ;;  %7250 = vst [vmem:[#allocation111_spill] sm:$0xff] %v4730_v51  ;;  %v4735_v32 = vld [vmem:[%s6962_s3 + $0x110] sm:$0xff] }
 0x1d7   :  { %v4691_v37 = vpop.f32.mrf.mxu1  ;;  %1805 = vmatpush2.msra.mxu0 %v4720_v23  ;;  %7251 = vst [vmem:[#allocation112_spill] sm:$0xff] %v4735_v32  ;;  %v4746_v23 = vld [vmem:[%s6962_s3 + $0x100] sm:$0xff]  ;;  %7258 = vst [vmem:[#allocation119_spill] sm:$0xff] %v4760_v19  ;;  %v6980_v19 = vmax.f32 %v4497_v0, 0.0 }
 0x1d8   :  { %1806 = vmatprep.subr.mxu0 %v4730_v51  ;;  %7253 = vst [vmem:[#allocation114_spill] sm:$0xff] %v4746_v23 }
 0x1d9   :  { %v4695_v59 = vpop.f32.mrf.mxu1  ;;  %1807 = vmatpush2.msra.mxu0 %v4735_v32 }
 0x1da   :  { %1808 = vmatprep.subr.mxu0 %v4740_v40 }
 0x1db   :  { %v4708_v58 = vpop.f32.mrf.mxu1  ;;  %1809 = vmatpush2.msra.mxu0 %v4746_v23  ;;  %v6990_v23 = vmax.f32 %v4555_v39, 0.0 }
 0x1dc   :  { %2113 = vmatprep.subr.mxu0 %v4087_v57  ;;  %v6979_v57 = vmax.f32 %v4508_v24, 0.0 }
 0x1dd   :  { %v4724_v12 = vpop.f32.mrf.mxu1 }
 0x1de   :  { %7249 = vst [vmem:[#allocation110_spill] sm:$0xff] %v4724_v12 }
 0x1df   :  { %v4748_v18 = vpop.f32.mrf.mxu1 }
 0x1e0   :  { %7254 = vst [vmem:[#allocation115_spill] sm:$0xff] %v4748_v18  ;;  %v4766_v18 = vpop.f32.mrf.mxu0 }
 0x1e1   :  { %v4754_v1 = vpop.f32.mrf.mxu1  ;;  %7261 = vst [vmem:[#allocation122_spill] sm:$0xff] %v4766_v18  ;;  %v6982_v18 = vmax.f32 %v4505_v31, 0.0 }
 0x1e2   :  { %7256 = vst [vmem:[#allocation117_spill] sm:$0xff] %v4754_v1  ;;  %v4772_v25 = vpop.f32.mrf.mxu0 }
 0x1e3   :  { %v4758_v51 = vpop.f32.mrf.mxu1  ;;  %7264 = vst [vmem:[#allocation125_spill] sm:$0xff] %v4772_v25  ;;  %v1578_v25 = vadd.f32 %v6979_v57, %v6980_v19  ;;  %v7271_v57 = vmax.f32 %v4527_v3, 0.0 }
 0x1e4   :  { %7257 = vst [vmem:[#allocation118_spill] sm:$0xff] %v4758_v51 }
 0x1e5   :  { %v4762_v46 = vpop.f32.mrf.mxu1 }
 0x1e6   :  { %7259 = vst [vmem:[#allocation120_spill] sm:$0xff] %v4762_v46  ;;  %v4782_v46 = vpop.f32.mrf.mxu0 }
 0x1e7   :  { %v4764_v12 = vpop.f32.mrf.mxu1  ;;  %7267 = vst [vmem:[#allocation128_spill] sm:$0xff] %v4782_v46  ;;  %v6992_v46 = vmax.f32 %v4558_v17, 0.0 }
 0x1e8   :  { %7260 = vst [vmem:[#allocation121_spill] sm:$0xff] %v4764_v12  ;;  %v4803_v0 = vpop.f32.mrf.mxu0 }
 0x1e9   :  { %v4768_v32 = vpop.f32.mrf.mxu1 }
 0x1ea   :  { %7262 = vst [vmem:[#allocation123_spill] sm:$0xff] %v4768_v32 }
 0x1eb   :  { %v4770_v40 = vpop.f32.mrf.mxu1 }
 0x1ec   :  { %7263 = vst [vmem:[#allocation124_spill] sm:$0xff] %v4770_v40  ;;  %v7270_v40 = vmax.f32 %v4522_v61, 0.0 }
 0x1ed   :  { %v4774_v1 = vpop.f32.mrf.mxu1 }
 0x1ee   :  { %7265 = vst [vmem:[#allocation126_spill] sm:$0xff] %v4774_v1  ;;  %v1579_v10 = vadd.f32 %v1578_v25, %v7270_v40  ;;  %v6993_v25 = vmax.f32 %v4563_v5, 0.0 }
 0x1ef   :  { %v4778_v51 = vpop.f32.mrf.mxu1 }
 0x1f0   :  { %7266 = vst [vmem:[#allocation127_spill] sm:$0xff] %v4778_v51  ;;  %v7269_v51 = vmax.f32 %v4516_v55, 0.0  ;;  %v7273_v55 = vmax.f32 %v4541_v9, 0.0 }
 0x1f1   :  { %v4786_v32 = vpop.f32.mrf.mxu1 }
 0x1f2   :  { %7268 = vst [vmem:[#allocation129_spill] sm:$0xff] %v4786_v32  ;;  %v1630_v12 = vadd.f32 %v7269_v51, %v6982_v18  ;;  %v6988_v32 = vmax.f32 %v4544_v28, 0.0  ;;  %v7272_v51 = vmax.f32 %v4536_v62, 0.0 }
 0x1f3   :  { %v4798_v1 = vpop.f32.mrf.mxu1 }
 0x1f4   :  { %v1631_v19 = vadd.f32 %v1630_v12, %v7271_v57  ;;  %v1580_v18 = vadd.f32 %v1579_v10, %v7272_v51  ;;  %v6995_v12 = vmax.f32 %v4572_v11, 0.0  ;;  %v4821_v57 = vpop.f32.mrf.mxu0  ;;  %v6997_v10 = vmax.f32 %v4577_v53, 0.0 }
 0x1f5   :  { %v4808_v31 = vpop.f32.mrf.mxu1 }
 0x1f6   :  { %v1632_v61 = vadd.f32 %v1631_v19, %v7273_v55  ;;  %v1581_v3 = vadd.f32 %v1580_v18, %v6988_v32  ;;  %v6999_v55 = vmax.f32 %v4580_v36, 0.0  ;;  %v7000_v18 = vmax.f32 %v4591_v16, 0.0 }
 0x1f7   :  { %v4816_v40 = vpop.f32.mrf.mxu1 }
 0x1f8   :  { %v1633_v62 = vadd.f32 %v1632_v61, %v6990_v23  ;;  %v1582_v19 = vadd.f32 %v1581_v3, %v6992_v46  ;;  %v7002_v61 = vmax.f32 %v4594_v33, 0.0  ;;  %v4839_v23 = vpop.f32.mrf.mxu0  ;;  %v7003_v3 = vmax.f32 %v4602_v2, 0.0 }
 0x1f9   :  { %v4826_v51 = vpop.f32.mrf.mxu1 }
 0x1fa   :  { %v1634_v28 = vadd.f32 %v1633_v62, %v6993_v25  ;;  %v1583_v39 = vadd.f32 %v1582_v19, %v6995_v12  ;;  %v7004_v25 = vmax.f32 %v4608_v38, 0.0  ;;  %v7005_v19 = vmax.f32 %v4613_v50, 0.0 }
 0x1fb   :  { %v4834_v32 = vpop.f32.mrf.mxu1 }
 0x1fc   :  { %v1635_v17 = vadd.f32 %v1634_v28, %v6997_v10  ;;  %v1584_v62 = vadd.f32 %v1583_v39, %v6999_v55  ;;  %v4857_v10 = vpop.f32.mrf.mxu0  ;;  %v957_v28 = vadd.f32 %v4000_v35, %v4159_v6  ;;  %v7009_v35 = vmax.f32 %v4655_v41, 0.0 }
 0x1fd   :  { %v4844_v46 = vpop.f32.mrf.mxu1 }
 0x1fe   :  { %v1636_v11 = vadd.f32 %v1635_v17, %v7000_v18  ;;  %v1585_v53 = vadd.f32 %v1584_v62, %v7002_v61  ;;  %v7275_v18 = vmax.f32 %v4627_v45, 0.0  ;;  %v7276_v62 = vmax.f32 %v4630_v27, 0.0 }
 0x1ff   :  { %v4852_v12 = vpop.f32.mrf.mxu1 }
 0x200   :  { %v1637_v36 = vadd.f32 %v1636_v11, %v7003_v3  ;;  %v1586_v17 = vadd.f32 %v1585_v53, %v7004_v25  ;;  %v7274_v11 = vmax.f32 %v4619_v54, 0.0  ;;  %v963_v53 = vadd.f32 %v4012_v29, %v4264_v20  ;;  %v4879_v25 = vpop.f32.mrf.mxu0 }
 0x201   :  { %v4862_v55 = vpop.f32.mrf.mxu1  ;;  %v967_v29 = vadd.f32 %v4017_v43, %v4279_v14  ;;  %v7278_v20 = vmax.f32 %v4641_v44, 0.0  ;;  %v973_v43 = vadd.f32 %v4031_v47, %v4312_v60  ;;  %v975_v47 = vadd.f32 %v4042_v56, %v4327_v26 }
 0x202   :  { %v1638_v33 = vadd.f32 %v1637_v36, %v7005_v19  ;;  %v1587_v3 = vadd.f32 %v1586_v17, %v7274_v11  ;;  %v4890_v17 = vadd.f32 %v4682_v8, %v957_v28  ;;  %v4903_v6 = vadd.f32 %v4689_v21, %v963_v53  ;;  %v4909_v14 = vpop.f32.mrf.mxu0 }
 0x203   :  { %v4870_v61 = vpop.f32.mrf.mxu1  ;;  %v969_v8 = vadd.f32 %v4026_v34, %v4294_v48  ;;  %v4912_v28 = vadd.f32 %v4691_v37, %v967_v29  ;;  %v7011_v34 = vmax.f32 %v4685_v15, 0.0  ;;  %v979_v48 = vadd.f32 %v4047_v63, %v4342_v13  ;;  %v7285_v63 = vld [vmem:[#allocation2_spill] sm:$0xff]  ;;  %v7302_v15 = vld [vmem:[#allocation5_spill] sm:$0xff] }
 0x204   :  { %v1639_v36 = vadd.f32 %v1638_v33, %v7275_v18  ;;  %v1588_v50 = vadd.f32 %v1587_v3, %v7276_v62  ;;  %7277 = vst [vmem:[#allocation130_spill] sm:$0xff] %v4890_v17  ;;  %v7279_v33 = vmax.f32 %v4650_v42, 0.0  ;;  %v7008_v3 = vmax.f32 %v4675_v30, 0.0  ;;  %7280 = vst [vmem:[#allocation131_spill] sm:$0xff] %v4903_v6  ;;  %v7311_v30 = vld [vmem:[#allocation56_spill] sm:$0xff] }
 0x205   :  { %v4883_v19 = vpop.f32.mrf.mxu1  ;;  %v7007_v62 = vmax.f32 %v4678_v52, 0.0  ;;  %7281 = vst [vmem:[#allocation132_spill] sm:$0xff] %v4912_v28  ;;  %v7010_v53 = vmax.f32 %v4890_v17, 0.0  ;;  %v4927_v60 = vadd.f32 %v4695_v59, %v969_v8  ;;  %v4930_v37 = vadd.f32 %v4708_v58, %v973_v43  ;;  %v4943_v59 = vpop.f32.mrf.mxu0  ;;  %v7288_v43 = vld [vmem:[#allocation115_spill] sm:$0xff]  ;;  %v7296_v58 = vld [vmem:[#allocation44_spill] sm:$0xff]  ;;  %v7309_v52 = vld [vmem:[#allocation53_spill] sm:$0xff] }
 0x206   :  { %v1640_v11 = vadd.f32 %v1639_v36, %v7278_v20  ;;  %v1589_v18 = vadd.f32 %v1588_v50, %v7279_v33  ;;  %v7282_v20 = vmax.f32 %v4664_v49, 0.0  ;;  %v7014_v26 = vmax.f32 %v4903_v6, 0.0  ;;  %v7304_v6 = vld [vmem:[#allocation6_spill] sm:$0xff] }
 0x207   :  { %v4896_v39 = vpop.f32.mrf.mxu1  ;;  %7283 = vst [vmem:[#allocation133_spill] sm:$0xff] %v4927_v60  ;;  %7284 = vst [vmem:[#allocation134_spill] sm:$0xff] %v4930_v37  ;;  %v985_v13 = vadd.f32 %v7285_v63, %v4378_v4  ;;  %v7301_v63 = vld [vmem:[#allocation47_spill] sm:$0xff] }
 0x208   :  { %v1641_v50 = vadd.f32 %v1640_v11, %v7009_v35  ;;  %v1590_v21 = vadd.f32 %v1589_v18, %v7282_v20  ;;  %v981_v11 = vadd.f32 %v4058_v7, %v4360_v22  ;;  %v7286_v18 = vld [vmem:[#allocation110_spill] sm:$0xff]  ;;  %v4950_v7 = vadd.f32 %v7288_v43, %v979_v48  ;;  %v7291_v20 = vld [vmem:[#allocation3_spill] sm:$0xff] }
 0x209   :  { %v4914_v36 = vpop.f32.mrf.mxu1  ;;  %v4947_v8 = vadd.f32 %v7286_v18, %v975_v47  ;;  %v7292_v47 = vld [vmem:[#allocation117_spill] sm:$0xff]  ;;  %v7294_v48 = vld [vmem:[#allocation118_spill] sm:$0xff] }
 0x20a   :  { %v1642_v33 = vadd.f32 %v1641_v50, %v7008_v3  ;;  %v1591_v56 = vadd.f32 %v1590_v21, %v7007_v62  ;;  %7289 = vst [vmem:[#allocation110_spill] sm:$0xff] %v4950_v7  ;;  %v7290_v50 = vld [vmem:[#allocation41_spill] sm:$0xff]  ;;  %v4963_v18 = vadd.f32 %v7292_v47, %v981_v11  ;;  %v4966_v43 = vadd.f32 %v7294_v48, %v985_v13  ;;  %v7299_v47 = vld [vmem:[#allocation120_spill] sm:$0xff] }
 0x20b   :  { %v4932_v29 = vpop.f32.mrf.mxu1  ;;  %7287 = vst [vmem:[#allocation2_spill] sm:$0xff] %v4947_v8  ;;  %v987_v21 = vadd.f32 %v7291_v20, %v7290_v50  ;;  %v7297_v50 = vld [vmem:[#allocation4_spill] sm:$0xff]  ;;  %v7308_v3 = vmax.f32 %v4930_v37, 0.0  ;;  %v7320_v49 = vmax.f32 %v4950_v7, 0.0 }
 0x20c   :  { %v1643_v62 = vadd.f32 %v1642_v33, %v7010_v53  ;;  %v1592_v4 = vadd.f32 %v1591_v56, %v7011_v34  ;;  %7293 = vst [vmem:[#allocation115_spill] sm:$0xff] %v4963_v18  ;;  %7295 = vst [vmem:[#allocation41_spill] sm:$0xff] %v4966_v43  ;;  %v991_v20 = vadd.f32 %v7297_v50, %v7296_v58  ;;  %v4974_v53 = vpop.f32.mrf.mxu0  ;;  %v7298_v56 = vmax.f32 %v4912_v28, 0.0  ;;  %v7303_v50 = vld [vmem:[#allocation50_spill] sm:$0xff] }
 0x20d   :  { %v4952_v22 = vpop.f32.mrf.mxu1  ;;  %v4981_v13 = vadd.f32 %v7299_v47, %v987_v21  ;;  %v993_v58 = vadd.f32 %v7302_v15, %v7301_v63  ;;  %v7310_v15 = vld [vmem:[#allocation7_spill] sm:$0xff]  ;;  %v7319_v47 = vmax.f32 %v4947_v8, 0.0  ;;  %v7326_v8 = vld [vmem:[#allocation65_spill] sm:$0xff] }
 0x20e   :  { %v1644_v33 = vadd.f32 %v1643_v62, %v7014_v26  ;;  %v1593_v34 = vadd.f32 %v1592_v4, %v7298_v56  ;;  %v997_v62 = vadd.f32 %v7304_v6, %v7303_v50  ;;  %v7305_v26 = vld [vmem:[#allocation121_spill] sm:$0xff]  ;;  %v7307_v4 = vmax.f32 %v4927_v60, 0.0  ;;  %v7312_v6 = vld [vmem:[#allocation8_spill] sm:$0xff]  ;;  %v5012_v21 = vpop.f32.mrf.mxu0 }
 0x20f   :  { %v4968_v35 = vpop.f32.mrf.mxu1  ;;  %7300 = vst [vmem:[#allocation3_spill] sm:$0xff] %v4981_v13  ;;  %v4990_v17 = vadd.f32 %v7305_v26, %v991_v20  ;;  %v999_v63 = vadd.f32 %v7310_v15, %v7309_v52  ;;  %v1003_v50 = vadd.f32 %v7312_v6, %v7311_v30  ;;  %v7313_v26 = vld [vmem:[#allocation123_spill] sm:$0xff]  ;;  %v7315_v60 = vld [vmem:[#allocation124_spill] sm:$0xff]  ;;  %v7322_v6 = vld [vmem:[#allocation10_spill] sm:$0xff]  ;;  %v7329_v15 = vmax.f32 %v4966_v43, 0.0 }
 0x210   :  { %v1645_v56 = vadd.f32 %v1644_v33, %v7307_v4  ;;  %v1594_v11 = vadd.f32 %v1593_v34, %v7308_v3  ;;  %v5005_v20 = vadd.f32 %v7313_v26, %v993_v58  ;;  %v5008_v33 = vadd.f32 %v7315_v60, %v997_v62  ;;  %v7317_v4 = vld [vmem:[#allocation59_spill] sm:$0xff]  ;;  %v7318_v3 = vld [vmem:[#allocation9_spill] sm:$0xff]  ;;  %v7321_v58 = vld [vmem:[#allocation62_spill] sm:$0xff]  ;;  %v5048_v60 = vpop.f32.mrf.mxu0 }
 0x211   :  { %v4983_v48 = vpop.f32.mrf.mxu1  ;;  %7306 = vst [vmem:[#allocation117_spill] sm:$0xff] %v4990_v17  ;;  %v1005_v34 = vadd.f32 %v7318_v3, %v7317_v4  ;;  %v1009_v26 = vadd.f32 %v7322_v6, %v7321_v58  ;;  %v7323_v62 = vld [vmem:[#allocation126_spill] sm:$0xff]  ;;  %v7324_v4 = vld [vmem:[#allocation127_spill] sm:$0xff] }
 0x212   :  { %7314 = vst [vmem:[#allocation118_spill] sm:$0xff] %v5005_v20  ;;  %7316 = vst [vmem:[#allocation44_spill] sm:$0xff] %v5008_v33  ;;  %v1646_v37 = vadd.f32 %v1645_v56, %v7319_v47  ;;  %v1595_v52 = vadd.f32 %v1594_v11, %v7320_v49  ;;  %v5025_v41 = vadd.f32 %v7323_v62, %v999_v63  ;;  %v7327_v56 = vld [vmem:[#allocation11_spill] sm:$0xff]  ;;  %v7328_v49 = vmax.f32 %v4963_v18, 0.0  ;;  %v7330_v63 = vld [vmem:[#allocation129_spill] sm:$0xff] }
 0x213   :  { %v4998_v28 = vpop.f32.mrf.mxu1  ;;  %v5028_v3 = vadd.f32 %v7324_v4, %v1003_v50  ;;  %v1011_v47 = vadd.f32 %v7327_v56, %v7326_v8  ;;  %v5041_v62 = vadd.f32 %v7330_v63, %v1005_v34  ;;  %v5044_v50 = vadd.f32 %v4798_v1, %v1009_v26  ;;  %v7333_v4 = vld [vmem:[#allocation67_spill] sm:$0xff]  ;;  %v7334_v8 = vld [vmem:[#allocation12_spill] sm:$0xff]  ;;  %v7338_v26 = vld [vmem:[#allocation70_spill] sm:$0xff] }
 0x214   :  { %v1647_v11 = vadd.f32 %v1646_v37, %v7328_v49  ;;  %v1596_v7 = vadd.f32 %v1595_v52, %v7329_v15  ;;  %v1015_v56 = vadd.f32 %v7334_v8, %v7333_v4  ;;  %v7335_v37 = vmax.f32 %v4981_v13, 0.0  ;;  %v7339_v63 = vld [vmem:[#allocation13_spill] sm:$0xff]  ;;  %v7341_v43 = vld [vmem:[#allocation14_spill] sm:$0xff] }
 0x215   :  { %v5019_v30 = vpop.f32.mrf.mxu1  ;;  %7325 = vst [vmem:[#allocation4_spill] sm:$0xff] %v5028_v3  ;;  %7331 = vst [vmem:[#allocation120_spill] sm:$0xff] %v5041_v62  ;;  %v7336_v49 = vmax.f32 %v4990_v17, 0.0  ;;  %v5059_v1 = vadd.f32 %v4808_v31, %v1011_v47  ;;  %v1017_v4 = vadd.f32 %v7339_v63, %v7338_v26  ;;  %v7340_v8 = vld [vmem:[#allocation73_spill] sm:$0xff]  ;;  %v7344_v6 = vmax.f32 %v5008_v33, 0.0  ;;  %v7345_v17 = vld [vmem:[#allocation75_spill] sm:$0xff] }
 0x216   :  { %7332 = vst [vmem:[#allocation47_spill] sm:$0xff] %v5044_v50  ;;  %v1648_v52 = vadd.f32 %v1647_v11, %v7335_v37  ;;  %v1021_v18 = vadd.f32 %v7341_v43, %v7340_v8  ;;  %v5066_v11 = vadd.f32 %v4816_v40, %v1015_v56  ;;  %v7346_v26 = vld [vmem:[#allocation15_spill] sm:$0xff]  ;;  %v7347_v13 = vld [vmem:[#allocation78_spill] sm:$0xff]  ;;  %v7348_v43 = vld [vmem:[#allocation16_spill] sm:$0xff]  ;;  %v5080_v40 = vpop.f32.mrf.mxu0  ;;  %v7353_v47 = vmax.f32 %v5025_v41, 0.0 }
 0x217   :  { %v5036_v42 = vpop.f32.mrf.mxu1  ;;  %v1597_v58 = vadd.f32 %v1596_v7, %v7336_v49  ;;  %7337 = vst [vmem:[#allocation5_spill] sm:$0xff] %v5059_v1  ;;  %v7343_v7 = vmax.f32 %v5005_v20, 0.0  ;;  %v1023_v63 = vadd.f32 %v7346_v26, %v7345_v17  ;;  %v1027_v8 = vadd.f32 %v7348_v43, %v7347_v13  ;;  %v7355_v43 = vld [vmem:[#allocation83_spill] sm:$0xff]  ;;  %v7356_v20 = vld [vmem:[#allocation18_spill] sm:$0xff] }
 0x218   :  { %7342 = vst [vmem:[#allocation50_spill] sm:$0xff] %v5066_v11  ;;  %v5083_v56 = vadd.f32 %v4826_v51, %v1017_v4  ;;  %v7354_v17 = vmax.f32 %v5028_v3, 0.0  ;;  %v1033_v51 = vadd.f32 %v7356_v20, %v7355_v43  ;;  %v7035_v4 = vmax.f32 %v5066_v11, 0.0  ;;  %v5114_v20 = vpop.f32.mrf.mxu0 }
 0x219   :  { %v5052_v15 = vpop.f32.mrf.mxu1  ;;  %v1649_v49 = vadd.f32 %v1648_v52, %v7343_v7  ;;  %v1598_v34 = vadd.f32 %v1597_v58, %v7344_v6  ;;  %v5086_v52 = vadd.f32 %v4834_v32, %v1021_v18  ;;  %v7351_v58 = vld [vmem:[#allocation80_spill] sm:$0xff]  ;;  %v7352_v6 = vld [vmem:[#allocation17_spill] sm:$0xff]  ;;  %v5101_v32 = vadd.f32 %v4844_v46, %v1023_v63 }
 0x21a   :  { %7349 = vst [vmem:[#allocation6_spill] sm:$0xff] %v5083_v56  ;;  %v1029_v31 = vadd.f32 %v7352_v6, %v7351_v58  ;;  %v5104_v18 = vadd.f32 %v4852_v12, %v1027_v8  ;;  %v7358_v6 = vld [vmem:[#allocation85_spill] sm:$0xff]  ;;  %v7361_v13 = vmax.f32 %v5044_v50, 0.0  ;;  %v5122_v63 = vadd.f32 %v4870_v61, %v1033_v51 }
 0x21b   :  { %v5068_v37 = vpop.f32.mrf.mxu1  ;;  %7350 = vst [vmem:[#allocation121_spill] sm:$0xff] %v5086_v52  ;;  %v1650_v33 = vadd.f32 %v1649_v49, %v7353_v47  ;;  %v1599_v26 = vadd.f32 %v1598_v34, %v7354_v17  ;;  %v7359_v49 = vld [vmem:[#allocation19_spill] sm:$0xff]  ;;  %v7360_v34 = vmax.f32 %v5041_v62, 0.0  ;;  %v7369_v51 = vld [vmem:[#allocation21_spill] sm:$0xff]  ;;  %v7370_v62 = vld [vmem:[#allocation90_spill] sm:$0xff]  ;;  %v7374_v46 = vmax.f32 %v5086_v52, 0.0 }
 0x21c   :  { %7357 = vst [vmem:[#allocation53_spill] sm:$0xff] %v5104_v18  ;;  %v1035_v47 = vadd.f32 %v7359_v49, %v7358_v6  ;;  %v5119_v12 = vadd.f32 %v4862_v55, %v1029_v31  ;;  %7363 = vst [vmem:[#allocation56_spill] sm:$0xff] %v5122_v63  ;;  %v7364_v6 = vld [vmem:[#allocation86_spill] sm:$0xff]  ;;  %v7365_v49 = vld [vmem:[#allocation20_spill] sm:$0xff]  ;;  %v7384_v52 = vmax.f32 %v5104_v18, 0.0 }
 0x21d   :  { %v5088_v7 = vpop.f32.mrf.mxu1  ;;  %v1651_v17 = vadd.f32 %v1650_v33, %v7360_v34  ;;  %v1600_v3 = vadd.f32 %v1599_v26, %v7361_v13  ;;  %v1039_v33 = vadd.f32 %v7365_v49, %v7364_v6  ;;  %v7366_v34 = vmax.f32 %v5059_v1, 0.0  ;;  %v7368_v31 = vld [vmem:[#allocation88_spill] sm:$0xff]  ;;  %v7371_v6 = vld [vmem:[#allocation22_spill] sm:$0xff] }
 0x21e   :  { %7362 = vst [vmem:[#allocation7_spill] sm:$0xff] %v5119_v12  ;;  %v5135_v55 = vadd.f32 %v4883_v19, %v1035_v47  ;;  %v1041_v50 = vadd.f32 %v7369_v51, %v7368_v31  ;;  %v1045_v49 = vadd.f32 %v7371_v6, %v7370_v62  ;;  %v7375_v31 = vld [vmem:[#allocation93_spill] sm:$0xff]  ;;  %v7376_v51 = vld [vmem:[#allocation23_spill] sm:$0xff]  ;;  %v7377_v6 = vld [vmem:[#allocation98_spill] sm:$0xff]  ;;  %v7383_v47 = vmax.f32 %v5101_v32, 0.0 }
 0x21f   :  { %v5106_v58 = vpop.f32.mrf.mxu1  ;;  %v1652_v26 = vadd.f32 %v1651_v17, %v7366_v34  ;;  %v1601_v13 = vadd.f32 %v1600_v3, %v7035_v4  ;;  %v5144_v17 = vadd.f32 %v4896_v39, %v1039_v33  ;;  %v5146_v34 = vpop.f32.mrf.mxu0  ;;  %v7373_v3 = vmax.f32 %v5083_v56, 0.0  ;;  %v7378_v39 = vld [vmem:[#allocation24_spill] sm:$0xff] }
 0x220   :  { %7367 = vst [vmem:[#allocation8_spill] sm:$0xff] %v5135_v55  ;;  %v1047_v62 = vadd.f32 %v7376_v51, %v7375_v31  ;;  %v1051_v33 = vadd.f32 %v7378_v39, %v7377_v6  ;;  %v5161_v1 = vadd.f32 %v4914_v36, %v1041_v50  ;;  %v7385_v6 = vld [vmem:[#allocation103_spill] sm:$0xff]  ;;  %v7386_v39 = vld [vmem:[#allocation26_spill] sm:$0xff]  ;;  %v7390_v31 = vmax.f32 %v5122_v63, 0.0 }
 0x221   :  { %v5124_v8 = vpop.f32.mrf.mxu1  ;;  %7372 = vst [vmem:[#allocation123_spill] sm:$0xff] %v5144_v17  ;;  %v1653_v4 = vadd.f32 %v1652_v26, %v7373_v3  ;;  %v1602_v19 = vadd.f32 %v1601_v13, %v7374_v46  ;;  %v5164_v26 = vadd.f32 %v4932_v29, %v1045_v49  ;;  %v7381_v3 = vld [vmem:[#allocation101_spill] sm:$0xff]  ;;  %v1057_v36 = vadd.f32 %v7386_v39, %v7385_v6  ;;  %v7397_v63 = vld [vmem:[#allocation119_spill] sm:$0xff] }
 0x222   :  { %7379 = vst [vmem:[#allocation124_spill] sm:$0xff] %v5161_v1  ;;  %v7382_v46 = vld [vmem:[#allocation25_spill] sm:$0xff]  ;;  %v5179_v29 = vadd.f32 %v4952_v22, %v1047_v62  ;;  %v5182_v49 = vadd.f32 %v4968_v35, %v1051_v33  ;;  %v7393_v50 = vmax.f32 %v5135_v55, 0.0 }
 0x223   :  { %v5137_v61 = vpop.f32.mrf.mxu1  ;;  %7380 = vst [vmem:[#allocation59_spill] sm:$0xff] %v5164_v26  ;;  %v1053_v13 = vadd.f32 %v7382_v46, %v7381_v3  ;;  %v1654_v43 = vadd.f32 %v1653_v4, %v7383_v47  ;;  %v1603_v56 = vadd.f32 %v1602_v19, %v7384_v52  ;;  %v7387_v3 = vld [vmem:[#allocation104_spill] sm:$0xff]  ;;  %v7388_v4 = vld [vmem:[#allocation27_spill] sm:$0xff]  ;;  %v5186_v46 = vpop.f32.mrf.mxu0  ;;  %v7389_v52 = vmax.f32 %v5119_v12, 0.0  ;;  %v7391_v33 = vld [vmem:[#allocation109_spill] sm:$0xff] }
 0x224   :  { %v1059_v47 = vadd.f32 %v7388_v4, %v7387_v3  ;;  %v5198_v35 = vadd.f32 %v4998_v28, %v1057_v36  ;;  %v7392_v3 = vld [vmem:[#allocation28_spill] sm:$0xff]  ;;  %v7396_v28 = vld [vmem:[#allocation29_spill] sm:$0xff]  ;;  %v7398_v12 = vld [vmem:[#allocation30_spill] sm:$0xff]  ;;  %v7400_v22 = vmax.f32 %v5164_v26, 0.0 }
 0x225   :  { %v5154_v11 = vpop.f32.mrf.mxu1  ;;  %v1655_v19 = vadd.f32 %v1654_v43, %v7389_v52  ;;  %v1604_v18 = vadd.f32 %v1603_v56, %v7390_v31  ;;  %v5195_v62 = vadd.f32 %v4983_v48, %v1053_v13  ;;  %v1063_v4 = vadd.f32 %v7392_v3, %v7391_v33  ;;  %v7395_v13 = vld [vmem:[#allocation116_spill] sm:$0xff]  ;;  %v5215_v3 = vpop.f32.mrf.mxu0  ;;  %v7406_v26 = vld [vmem:[#allocation33_spill] sm:$0xff] }
 0x226   :  { %v7394_v56 = vmax.f32 %v5144_v17, 0.0  ;;  %v5209_v48 = vadd.f32 %v5019_v30, %v1059_v47  ;;  %v1065_v36 = vadd.f32 %v7396_v28, %v7395_v13  ;;  %v1069_v33 = vadd.f32 %v7398_v12, %v7397_v63  ;;  %v7401_v13 = vld [vmem:[#allocation122_spill] sm:$0xff]  ;;  %v7402_v28 = vld [vmem:[#allocation31_spill] sm:$0xff]  ;;  %v7403_v12 = vld [vmem:[#allocation125_spill] sm:$0xff] }
 0x227   :  { %v5173_v51 = vpop.f32.mrf.mxu1  ;;  %v1656_v43 = vadd.f32 %v1655_v19, %v7393_v50  ;;  %v5218_v50 = vadd.f32 %v5036_v42, %v1063_v4  ;;  %v1071_v17 = vadd.f32 %v7402_v28, %v7401_v13  ;;  %v7404_v63 = vld [vmem:[#allocation32_spill] sm:$0xff]  ;;  %v7408_v47 = vmax.f32 %v5182_v49, 0.0  ;;  %v7409_v28 = vld [vmem:[#allocation34_spill] sm:$0xff] }
 0x228   :  { %v1605_v31 = vadd.f32 %v1604_v18, %v7394_v56  ;;  %v7399_v18 = vmax.f32 %v5161_v1, 0.0  ;;  %v1075_v55 = vadd.f32 %v7404_v63, %v7403_v12  ;;  %v5231_v42 = vadd.f32 %v5052_v15, %v1065_v36  ;;  %v5245_v15 = vpop.f32.mrf.mxu0 }
 0x229   :  { %v1429_v6 = vpop.f32.mrf.mxu1  ;;  %v5234_v4 = vadd.f32 %v5068_v37, %v1069_v33  ;;  %v7048_v13 = vmax.f32 %v5209_v48, 0.0  ;;  %v1081_v12 = vadd.f32 %v7409_v28, %v4803_v0  ;;  %v7047_v37 = vmax.f32 %v5218_v50, 0.0 }
 0x22a   :  { %v1657_v56 = vadd.f32 %v1656_v43, %v7399_v18  ;;  %v1606_v39 = vadd.f32 %v1605_v31, %v7400_v22  ;;  %v7405_v18 = vld [vmem:[#allocation128_spill] sm:$0xff]  ;;  %v7407_v31 = vmax.f32 %v5179_v29, 0.0  ;;  %v5249_v36 = vadd.f32 %v5088_v7, %v1071_v17 }
 0x22b   :  { %v1433_v52 = vpop.f32.mrf.mxu1  ;;  %v1077_v22 = vadd.f32 %v7406_v26, %v7405_v18  ;;  %v5252_v26 = vadd.f32 %v5106_v58, %v1075_v55  ;;  %v7412_v18 = vmax.f32 %v5198_v35, 0.0  ;;  %v7050_v28 = vmax.f32 %v5234_v4, 0.0  ;;  %v7413_v17 = vld [vmem:[#allocation36_spill] sm:$0xff] }
 0x22c   :  { %v1658_v30 = vadd.f32 %v1657_v56, %v7407_v31  ;;  %v1607_v1 = vadd.f32 %v1606_v39, %v7408_v47  ;;  %v7410_v56 = vld [vmem:[#allocation35_spill] sm:$0xff]  ;;  %v7411_v39 = vmax.f32 %v5195_v62, 0.0  ;;  %v7049_v31 = vmax.f32 %v5231_v42, 0.0 }
 0x22d   :  { %v1435_v19 = vpop.f32.mrf.mxu1  ;;  %v1083_v63 = vadd.f32 %v7410_v56, %v4821_v57  ;;  %v5263_v7 = vadd.f32 %v5124_v8, %v1077_v22  ;;  %v5266_v58 = vadd.f32 %v5137_v61, %v1081_v12  ;;  %v1087_v57 = vadd.f32 %v7413_v17, %v4839_v23  ;;  %v787_v56 = vpop.f32.mrf.mxu0  ;;  %v7414_v22 = vld [vmem:[#allocation37_spill] sm:$0xff]  ;;  %v7415_v23 = vld [vmem:[#allocation38_spill] sm:$0xff] }
 0x22e   :  { %v1659_v47 = vadd.f32 %v1658_v30, %v7411_v39  ;;  %v1608_v0 = vadd.f32 %v1607_v1, %v7412_v18  ;;  %v7051_v39 = vmax.f32 %v5249_v36, 0.0  ;;  %v1089_v12 = vadd.f32 %v7414_v22, %v4857_v10  ;;  %v7416_v18 = vld [vmem:[#allocation39_spill] sm:$0xff]  ;;  %v7417_v22 = vld [vmem:[#allocation40_spill] sm:$0xff] }
 0x22f   :  { %v1439_v43 = vpop.f32.mrf.mxu1  ;;  %v5277_v8 = vadd.f32 %v5154_v11, %v1083_v63  ;;  %v1093_v17 = vadd.f32 %v7415_v23, %v4879_v25  ;;  %v1095_v10 = vadd.f32 %v7416_v18, %v4909_v14  ;;  %v1099_v25 = vadd.f32 %v7417_v22, %v4943_v59  ;;  %v7420_v18 = vld [vmem:[#allocation43_spill] sm:$0xff] }
 0x230   :  { %v1660_v30 = vadd.f32 %v1659_v47, %v7048_v13  ;;  %v1609_v1 = vadd.f32 %v1608_v0, %v7047_v37  ;;  %v5284_v47 = vadd.f32 %v5173_v51, %v1087_v57  ;;  %v5296_v23 = vadd.f32 %v1429_v6, %v1089_v12  ;;  %v7418_v57 = vld [vmem:[#allocation42_spill] sm:$0xff] }
 0x231   :  { %v1441_v33 = vpop.f32.mrf.mxu1  ;;  %v5298_v51 = vadd.f32 %v1433_v52, %v1093_v17  ;;  %v7053_v13 = vmax.f32 %v5277_v8, 0.0  ;;  %v1105_v59 = vadd.f32 %v7420_v18, %v5012_v21  ;;  %v5310_v52 = vadd.f32 %v1435_v19, %v1095_v10 }
 0x232   :  { %v1661_v0 = vadd.f32 %v1660_v30, %v7049_v31  ;;  %v1610_v37 = vadd.f32 %v1609_v1, %v7050_v28  ;;  %v1101_v30 = vadd.f32 %v7418_v57, %v4974_v53  ;;  %v789_v31 = vpop.f32.mrf.mxu0  ;;  %v7419_v28 = vmax.f32 %v5252_v26, 0.0  ;;  %v7421_v53 = vld [vmem:[#allocation45_spill] sm:$0xff] }
 0x233   :  { %v1445_v55 = vpop.f32.mrf.mxu1  ;;  %v7052_v6 = vmax.f32 %v5284_v47, 0.0  ;;  %v5312_v12 = vadd.f32 %v1439_v43, %v1099_v25  ;;  %v1107_v17 = vadd.f32 %v7421_v53, %v5048_v60  ;;  %v7055_v21 = vmax.f32 %v5298_v51, 0.0  ;;  %v7424_v43 = vld [vmem:[#allocation46_spill] sm:$0xff] }
 0x234   :  { %v1662_v1 = vadd.f32 %v1661_v0, %v7051_v39  ;;  %v1611_v11 = vadd.f32 %v1610_v37, %v7419_v28  ;;  %v7422_v0 = vmax.f32 %v5263_v7, 0.0  ;;  %v7423_v37 = vmax.f32 %v5266_v58, 0.0  ;;  %v793_v25 = vpop.f32.mrf.mxu0 }
 0x235   :  { %v1447_v61 = vpop.f32.mrf.mxu1  ;;  %v7054_v39 = vmax.f32 %v5296_v23, 0.0  ;;  %v5322_v18 = vadd.f32 %v1441_v33, %v1101_v30  ;;  %v5324_v19 = vadd.f32 %v1445_v55, %v1105_v59  ;;  %v1111_v10 = vadd.f32 %v7424_v43, %v5080_v40  ;;  %v7425_v33 = vld [vmem:[#allocation48_spill] sm:$0xff]  ;;  %v7426_v30 = vld [vmem:[#allocation49_spill] sm:$0xff] }
 0x236   :  { %v1663_v22 = vadd.f32 %v1662_v1, %v7422_v0  ;;  %v1612_v28 = vadd.f32 %v1611_v11, %v7423_v37  ;;  %v7069_v53 = vmax.f32 %v5310_v52, 0.0  ;;  %v7056_v0 = vmax.f32 %v5312_v12, 0.0 }
 0x237   :  { %v1451_v63 = vpop.f32.mrf.mxu1  ;;  %v5334_v37 = vadd.f32 %v1447_v61, %v1107_v17  ;;  %v1113_v55 = vadd.f32 %v7425_v33, %v5114_v20  ;;  %v1117_v40 = vadd.f32 %v7426_v30, %v5146_v34  ;;  %v7427_v17 = vld [vmem:[#allocation51_spill] sm:$0xff]  ;;  %v7428_v20 = vld [vmem:[#allocation52_spill] sm:$0xff]  ;;  %v795_v34 = vpop.f32.mrf.mxu0 }
 0x238   :  { %v1664_v60 = vadd.f32 %v1663_v22, %v7053_v13  ;;  %v1613_v11 = vadd.f32 %v1612_v28, %v7052_v6  ;;  %v5340_v59 = vadd.f32 %v1451_v63, %v1111_v10  ;;  %v7057_v6 = vmax.f32 %v5322_v18, 0.0 }
 0x239   :  { %v1453_v14 = vpop.f32.mrf.mxu1  ;;  %v1119_v13 = vadd.f32 %v7427_v17, %v5186_v46  ;;  %v1123_v33 = vadd.f32 %v7428_v20, %v5215_v3  ;;  %v7059_v46 = vmax.f32 %v5334_v37, 0.0  ;;  %v7430_v17 = vld [vmem:[#allocation55_spill] sm:$0xff] }
 0x23a   :  { %v1665_v22 = vadd.f32 %v1664_v60, %v7054_v39  ;;  %v1614_v28 = vadd.f32 %v1613_v11, %v7055_v21  ;;  %v5352_v63 = vadd.f32 %v1453_v14, %v1113_v55  ;;  %v7429_v60 = vld [vmem:[#allocation54_spill] sm:$0xff]  ;;  %v1129_v61 = vadd.f32 %v7430_v17, %v787_v56 }
 0x23b   :  { %v1457_v57 = vpop.f32.mrf.mxu1  ;;  %v1125_v39 = vadd.f32 %v7429_v60, %v5245_v15  ;;  %v7058_v3 = vmax.f32 %v5340_v59, 0.0 }
 0x23c   :  { %v5354_v10 = vadd.f32 %v1457_v57, %v1117_v40  ;;  %v1666_v11 = vadd.f32 %v1665_v22, %v7069_v53  ;;  %v1615_v21 = vadd.f32 %v1614_v28, %v7056_v0  ;;  %v7431_v40 = vld [vmem:[#allocation57_spill] sm:$0xff]  ;;  %v7432_v22 = vmax.f32 %v5324_v19, 0.0  ;;  %v799_v28 = vpop.f32.mrf.mxu0 }
 0x23d   :  { %v1459_v1 = vpop.f32.mrf.mxu1  ;;  %v1131_v20 = vadd.f32 %v7431_v40, %v789_v31  ;;  %v7061_v0 = vmax.f32 %v5352_v63, 0.0 }
 0x23e   :  { %v5365_v14 = vadd.f32 %v1459_v1, %v1119_v13  ;;  %v1667_v15 = vadd.f32 %v1666_v11, %v7057_v6  ;;  %v1616_v60 = vadd.f32 %v1615_v21, %v7432_v22  ;;  %v7060_v56 = vmax.f32 %v5354_v10, 0.0 }
 0x23f   :  { %v1463_v43 = vpop.f32.mrf.mxu1 }
 0x240   :  { %v5367_v57 = vadd.f32 %v1463_v43, %v1123_v33  ;;  %v7433_v43 = vld [vmem:[#allocation58_spill] sm:$0xff]  ;;  %v1668_v31 = vadd.f32 %v1667_v15, %v7059_v46  ;;  %v1617_v11 = vadd.f32 %v1616_v60, %v7058_v3  ;;  %v7067_v21 = vmax.f32 %v5365_v14, 0.0  ;;  %v7436_v46 = vld [vmem:[#allocation61_spill] sm:$0xff] }
 0x241   :  { %v1465_v30 = vpop.f32.mrf.mxu1  ;;  %v1135_v33 = vadd.f32 %v7433_v43, %v793_v25 }
 0x242   :  { %v5376_v17 = vadd.f32 %v1465_v30, %v1125_v39  ;;  %v7062_v40 = vmax.f32 %v5367_v57, 0.0  ;;  %v7434_v39 = vld [vmem:[#allocation60_spill] sm:$0xff]  ;;  %v1669_v25 = vadd.f32 %v1668_v31, %v7061_v0  ;;  %v1618_v15 = vadd.f32 %v1617_v11, %v7060_v56 }
 0x243   :  { %v1469_v55 = vpop.f32.mrf.mxu1  ;;  %v1137_v30 = vadd.f32 %v7434_v39, %v795_v34  ;;  %v7437_v39 = vld [vmem:[#allocation63_spill] sm:$0xff] }
 0x244   :  { %v5378_v13 = vadd.f32 %v1469_v55, %v1129_v61  ;;  %v801_v55 = vpop.f32.mrf.mxu0  ;;  %v7066_v60 = vmax.f32 %v5376_v17, 0.0  ;;  %v1619_v34 = vadd.f32 %v1618_v15, %v7062_v40 }
 0x245   :  { %v1471_v1 = vpop.f32.mrf.mxu1  ;;  %v1143_v56 = vadd.f32 %v7437_v39, %v801_v55 }
 0x246   :  { %v5387_v22 = vadd.f32 %v1471_v1, %v1131_v20  ;;  %v7064_v43 = vmax.f32 %v5378_v13, 0.0  ;;  %v1141_v20 = vadd.f32 %v7436_v46, %v799_v28 }
 0x247   :  { %v1475_v6 = vpop.f32.mrf.mxu1 }
 0x248   :  { %v5390_v61 = vadd.f32 %v1475_v6, %v1135_v33  ;;  %v1670_v6 = vadd.f32 %v1669_v25, %v7067_v21  ;;  %v7063_v33 = vmax.f32 %v5387_v22, 0.0 }
 0x249   :  { %v1477_v3 = vpop.f32.mrf.mxu1 }
 0x24a   :  { %7435 = vst [vmem:[#allocation9_spill] sm:$0xff] %v5390_v61  ;;  %v5399_v1 = vadd.f32 %v1477_v3, %v1137_v30  ;;  %v7065_v31 = vmax.f32 %v5390_v61, 0.0  ;;  %v1671_v46 = vadd.f32 %v1670_v6, %v7066_v60  ;;  %v1620_v3 = vadd.f32 %v1619_v34, %v7064_v43 }
 0x24b   :  { %v1481_v11 = vpop.f32.mrf.mxu1 }
 0x24c   :  { %v5408_v0 = vadd.f32 %v1481_v11, %v1141_v20  ;;  %v7073_v28 = vmax.f32 %v5399_v1, 0.0  ;;  %v1672_v40 = vadd.f32 %v1671_v46, %v7063_v33  ;;  %v1621_v55 = vadd.f32 %v1620_v3, %v7065_v31 }
 0x24d   :  { %v1483_v30 = vpop.f32.mrf.mxu1 }
 0x24e   :  { %7438 = vst [vmem:[#allocation62_spill] sm:$0xff] %v5408_v0  ;;  %v7068_v25 = vmax.f32 %v5408_v0, 0.0  ;;  %v5416_v15 = vadd.f32 %v1483_v30, %v1143_v56  ;;  %v1673_v34 = vadd.f32 %v1672_v40, %v7073_v28  ;;  %v2725_v40 = vld [vmem:[%s6962_s3 + $0xf0] sm:$0xff] }
 0x250   :  { %v1622_v20 = vsel %vm456_vm0, %v7068_v25, 0.0  ;;  %v7072_v6 = vmax.f32 %v5416_v15, 0.0 }
 0x251   :  { %v1623_v11 = vadd.f32 %v1622_v20, %v1621_v55  ;;  %v2726_v55 = vld [vmem:[%s6962_s3 + $0xe8] sm:$0xff]  ;;  %v2736_v20 = vld [vmem:[%s6962_s3 + $0x98] sm:$0xff] }
 0x252   :  { %v1674_v56 = vsel %vm456_vm0, %v7072_v6, 0.0 }
 0x253   :  { %v1624_v39 = vrot.slane %v1623_v11, 4  ;;  %v1675_v30 = vadd.f32 %v1674_v56, %v1673_v34  ;;  %v2737_v34 = vld [vmem:[%s6962_s3 + $0x90] sm:$0xff]  ;;  %v2739_v56 = vld [vmem:[%s6962_s3 + $0x80] sm:$0xff] }
 0x255   :  { %v1625_v46 = vadd.f32 %v1624_v39, %v1623_v11  ;;  %v1676_v33 = vrot.slane %v1675_v30, 4  ;;  %v2738_v11 = vld [vmem:[%s6962_s3 + $0x88] sm:$0xff]  ;;  %v2740_v39 = vld [vmem:[%s6962_s3 + $0x78] sm:$0xff] }
 0x257   :  { %v1626_v43 = vrot.slane %v1625_v46, 2  ;;  %v1677_v3 = vadd.f32 %v1676_v33, %v1675_v30  ;;  %v2733_v33 = vld [vmem:[%s6962_s3 + $0xb0] sm:$0xff] }
 0x258   :  { %v2741_v30 = vld [vmem:[%s6962_s3 + $0x70] sm:$0xff] }
 0x259   :  { %v1627_v31 = vadd.f32 %v1626_v43, %v1625_v46  ;;  %v1678_v60 = vrot.slane %v1677_v3, 2  ;;  %v2732_v43 = vld [vmem:[%s6962_s3 + $0xb8] sm:$0xff]  ;;  %v2742_v46 = vld [vmem:[%s6962_s3 + $0x68] sm:$0xff] }
 0x25b   :  { %v1679_v21 = vadd.f32 %v1678_v60, %v1677_v3  ;;  %v1628_v25 = vrot.slane %v1627_v31, 1  ;;  %v2727_v60 = vld [vmem:[%s6962_s3 + $0xe0] sm:$0xff] }
 0x25c   :  { %v2743_v3 = vld [vmem:[%s6962_s3 + $0x60] sm:$0xff] }
 0x25d   :  { %v1680_v53 = vrot.slane %v1679_v21, 1  ;;  %v1629_v61 = vadd.f32 %v1628_v25, %v1627_v31  ;;  %v2734_v31 = vld [vmem:[%s6962_s3 + $0xa8] sm:$0xff]  ;;  %v2735_v25 = vld [vmem:[%s6962_s3 + $0xa0] sm:$0xff] }
 0x25f   :  { %v1681_v0 = vadd.f32 %v1680_v53, %v1679_v21  ;;  %v2728_v53 = vld [vmem:[%s6962_s3 + $0xd8] sm:$0xff]  ;;  %v2730_v21 = vld [vmem:[%s6962_s3 + $0xc8] sm:$0xff] }
 0x261   :  { %1810 = vmatprep.mubr.f32.mxu0 %v1681_v0  ;;  %v2729_v0 = vld [vmem:[%s6962_s3 + $0xd0] sm:$0xff] }
 0x262   :  { %1811 = vmatmul.mubr.f32.vlgmr.msra.gmra.mxu0 %v1629_v61  ;;  %v2731_v61 = vld [vmem:[%s6962_s3 + $0xc0] sm:$0xff] }
 0x263   :  { %2114 = vmatpush1.msra.mxu0 %v2725_v40  ;;  %v2744_v40 = vld [vmem:[%s6962_s3 + $0x58] sm:$0xff] }
 0x264   :  { %2115 = vmatprep.subr.mxu0 %v2726_v55  ;;  %v2745_v55 = vld [vmem:[%s6962_s3 + $0x50] sm:$0xff] }
 0x265   :  { %2116 = vmatpush1.msra.mxu0 %v2727_v60  ;;  %v2746_v60 = vld [vmem:[%s6962_s3 + $0x48] sm:$0xff] }
 0x266   :  { %2117 = vmatprep.subr.mxu0 %v2728_v53  ;;  %v2747_v53 = vld [vmem:[%s6962_s3 + $0x40] sm:$0xff] }
 0x267   :  { %2118 = vmatpush1.msra.mxu0 %v2729_v0  ;;  %v2748_v0 = vld [vmem:[%s6962_s3 + $0x38] sm:$0xff] }
 0x268   :  { %2119 = vmatprep.subr.mxu0 %v2730_v21  ;;  %v2749_v21 = vld [vmem:[%s6962_s3 + $0x30] sm:$0xff] }
 0x269   :  { %2120 = vmatpush1.msra.mxu0 %v2731_v61  ;;  %v2750_v61 = vld [vmem:[%s6962_s3 + $0x28] sm:$0xff] }
 0x26a   :  { %2121 = vmatprep.subr.mxu0 %v2732_v43  ;;  %v2751_v43 = vld [vmem:[%s6962_s3 + $0x20] sm:$0xff] }
 0x26b   :  { %2122 = vmatpush1.msra.mxu0 %v2733_v33  ;;  %v2752_v33 = vld [vmem:[%s6962_s3 + $0x18] sm:$0xff] }
 0x26c   :  { %2123 = vmatprep.subr.mxu0 %v2734_v31  ;;  %v2753_v31 = vld [vmem:[%s6962_s3 + $0x10] sm:$0xff] }
 0x26d   :  { %2124 = vmatpush1.msra.mxu0 %v2735_v25  ;;  %v2754_v25 = vld [vmem:[%s6962_s3 + $0x8] sm:$0xff] }
 0x26e   :  { %2125 = vmatprep.subr.mxu0 %v2736_v20  ;;  %v2755_v20 = vld [vmem:[%s6962_s3] sm:$0xff] }
 0x26f   :  { %2126 = vmatpush1.msra.mxu0 %v2737_v34  ;;  %v2756_v34 = vld [vmem:[%s6962_s3 + $0x1f8] sm:$0xff] }
 0x270   :  { %2127 = vmatprep.subr.mxu0 %v2738_v11  ;;  %v2757_v11 = vld [vmem:[%s6962_s3 + $0x1f0] sm:$0xff] }
 0x271   :  { %2128 = vmatpush1.msra.mxu0 %v2739_v56  ;;  %v2758_v56 = vld [vmem:[%s6962_s3 + $0x1e8] sm:$0xff] }
 0x272   :  { %2129 = vmatprep.subr.mxu0 %v2740_v39  ;;  %v2759_v39 = vld [vmem:[%s6962_s3 + $0x1e0] sm:$0xff] }
 0x273   :  { %2130 = vmatpush1.msra.mxu0 %v2741_v30  ;;  %v2760_v30 = vld [vmem:[%s6962_s3 + $0x1d8] sm:$0xff] }
 0x274   :  { %2131 = vmatprep.subr.mxu0 %v2742_v46  ;;  %v2761_v46 = vld [vmem:[%s6962_s3 + $0x1d0] sm:$0xff] }
 0x275   :  { %2132 = vmatpush1.msra.mxu0 %v2743_v3  ;;  %v2762_v3 = vld [vmem:[%s6962_s3 + $0x1c8] sm:$0xff] }
 0x276   :  { %2133 = vmatprep.subr.mxu0 %v2744_v40  ;;  %v2763_v40 = vld [vmem:[%s6962_s3 + $0x1c0] sm:$0xff] }
 0x277   :  { %2134 = vmatpush1.msra.mxu0 %v2745_v55  ;;  %v2764_v55 = vld [vmem:[%s6962_s3 + $0x1b8] sm:$0xff] }
 0x278   :  { %2135 = vmatprep.subr.mxu0 %v2746_v60  ;;  %v2765_v60 = vld [vmem:[%s6962_s3 + $0x1b0] sm:$0xff] }
 0x279   :  { %2136 = vmatpush1.msra.mxu0 %v2747_v53  ;;  %v2766_v53 = vld [vmem:[%s6962_s3 + $0x1a8] sm:$0xff] }
 0x27a   :  { %2137 = vmatprep.subr.mxu0 %v2748_v0  ;;  %v2767_v0 = vld [vmem:[%s6962_s3 + $0x1a0] sm:$0xff] }
 0x27b   :  { %2138 = vmatpush1.msra.mxu0 %v2749_v21  ;;  %v2768_v21 = vld [vmem:[%s6962_s3 + $0x198] sm:$0xff] }
 0x27c   :  { %2139 = vmatprep.subr.mxu0 %v2750_v61  ;;  %v2769_v61 = vld [vmem:[%s6962_s3 + $0x190] sm:$0xff] }
 0x27d   :  { %2140 = vmatpush1.msra.mxu0 %v2751_v43  ;;  %v2770_v43 = vld [vmem:[%s6962_s3 + $0x188] sm:$0xff] }
 0x27e   :  { %2141 = vmatprep.subr.mxu0 %v2752_v33  ;;  %v2771_v33 = vld [vmem:[%s6962_s3 + $0x180] sm:$0xff] }
 0x27f   :  { %2142 = vmatpush1.msra.mxu0 %v2753_v31  ;;  %v2772_v31 = vld [vmem:[%s6962_s3 + $0x178] sm:$0xff] }
 0x280   :  { %2143 = vmatprep.subr.mxu0 %v2754_v25  ;;  %v2773_v25 = vld [vmem:[%s6962_s3 + $0x170] sm:$0xff] }
 0x281   :  { %2144 = vmatpush1.msra.mxu0 %v2755_v20  ;;  %v2774_v20 = vld [vmem:[%s6962_s3 + $0x168] sm:$0xff] }
 0x282   :  { %2145 = vmatprep.subr.mxu0 %v2756_v34  ;;  %v2775_v34 = vld [vmem:[%s6962_s3 + $0x160] sm:$0xff] }
 0x283   :  { %2146 = vmatpush2.msra.mxu0 %v2757_v11  ;;  %v7439_v11 = vld [vmem:[#allocation89_spill] sm:$0xff] }
 0x284   :  { %2147 = vmatprep.subr.mxu0 %v2758_v56  ;;  %v7440_v56 = vld [vmem:[#allocation91_spill] sm:$0xff] }
 0x285   :  { %2148 = vmatpush2.msra.mxu0 %v2759_v39  ;;  %v7441_v39 = vld [vmem:[#allocation95_spill] sm:$0xff] }
 0x286   :  { %2149 = vmatprep.subr.mxu0 %v2760_v30  ;;  %v7442_v30 = vld [vmem:[#allocation97_spill] sm:$0xff] }
 0x287   :  { %2150 = vmatpush2.msra.mxu0 %v2761_v46  ;;  %v7443_v46 = vld [vmem:[#allocation105_spill] sm:$0xff] }
 0x288   :  { %2151 = vmatprep.subr.mxu0 %v2762_v3  ;;  %v7444_v3 = vld [vmem:[#allocation106_spill] sm:$0xff] }
 0x289   :  { %2152 = vmatpush2.msra.mxu0 %v2763_v40  ;;  %v7445_v40 = vld [vmem:[#allocation107_spill] sm:$0xff] }
 0x28a   :  { %2153 = vmatprep.subr.mxu0 %v2764_v55  ;;  %v7446_v55 = vld [vmem:[#allocation108_spill] sm:$0xff] }
 0x28b   :  { %2154 = vmatpush2.msra.mxu0 %v2765_v60  ;;  %v7447_v60 = vld [vmem:[#allocation111_spill] sm:$0xff] }
 0x28c   :  { %2155 = vmatprep.subr.mxu0 %v2766_v53  ;;  %v7448_v53 = vld [vmem:[#allocation112_spill] sm:$0xff] }
 0x28d   :  { %2156 = vmatpush2.msra.mxu0 %v2767_v0  ;;  %v7449_v0 = vld [vmem:[#allocation113_spill] sm:$0xff] }
 0x28e   :  { %2157 = vmatprep.subr.mxu0 %v2768_v21  ;;  %v7450_v21 = vld [vmem:[#allocation114_spill] sm:$0xff] }
 0x28f   :  { %2158 = vmatpush2.msra.mxu0 %v2769_v61  ;;  %v1817_v61 = vlaneseq }
 0x290   :  { %2159 = vmatprep.subr.mxu0 %v2770_v43 }
 0x291   :  { %2160 = vmatpush2.msra.mxu0 %v2771_v33  ;;  %v5596_v43 = vshrl.u32 %v1817_v61, 7 }
 0x292   :  { %2161 = vmatprep.subr.mxu0 %v2772_v31 }
 0x293   :  { %2162 = vmatpush2.msra.mxu0 %v2773_v25  ;;  %7451 = vst [vmem:[#allocation10_spill] sm:$0xff] %v5596_v43  ;;  %v5599_v31 = vsub.s32 0, %v5596_v43 }
 0x294   :  { %2163 = vmatprep.subr.mxu0 %v2774_v20 }
 0x295   :  { %2164 = vmatpush2.msra.mxu0 %v2775_v34  ;;  %7452 = vst [vmem:[#allocation126_spill] sm:$0xff] %v5599_v31 }
 0x296   :  { %2165 = vmatprep.subr.mxu0 %v7439_v11  ;;  %v7453_v11 = vld [vmem:[#allocation64_spill] sm:$0xff] }
 0x297   :  { %2166 = vmatpush2.msra.mxu0 %v7440_v56  ;;  %v7454_v56 = vmax.f32 %v7453_v11, 0.0 }
 0x298   :  { %2167 = vmatprep.subr.mxu0 %v7441_v39 }
 0x299   :  { %2168 = vmatpush2.msra.mxu0 %v7442_v30  ;;  %v7456_v30 = vmax.f32 %v4508_v24, 0.0 }
 0x29a   :  { %2169 = vmatprep.subr.mxu0 %v7443_v46 }
 0x29b   :  { %2170 = vmatpush2.msra.mxu0 %v7444_v3  ;;  %v7458_v3 = vld [vmem:[#allocation66_spill] sm:$0xff] }
 0x29c   :  { %2171 = vmatprep.subr.mxu0 %v7445_v40  ;;  %v7459_v40 = vmax.f32 %v7458_v3, 0.0 }
 0x29d   :  { %2172 = vmatpush2.msra.mxu0 %v7446_v55 }
 0x29e   :  { %2173 = vmatprep.subr.mxu0 %v7447_v60  ;;  %v7461_v60 = vld [vmem:[#allocation68_spill] sm:$0xff] }
 0x29f   :  { %2174 = vmatpush2.msra.mxu0 %v7448_v53  ;;  %v7462_v53 = vmax.f32 %v7461_v60, 0.0  ;;  %v7470_v60 = vld [vmem:[#allocation72_spill] sm:$0xff] }
 0x2a0   :  { %2175 = vmatprep.subr.mxu0 %v7449_v0 }
 0x2a1   :  { %2176 = vmatpush2.msra.mxu0 %v7450_v21  ;;  %v7464_v21 = vld [vmem:[#allocation69_spill] sm:$0xff] }
 0x2a2   :  { %v7465_v61 = vmax.f32 %v7464_v21, 0.0 }
 0x322   :  { %v1812_v33 = vpop.f32.mrf.mxu0 }
 0x323   :  { %v5602_v20 = vrot.slane %v1812_v33, %v5599_v31 }
 0x324   :  { %v1814_v25 = vpop.f32.mrf.mxu0 }
 0x325   :  { %v5605_v34 = vrot.slane %v1814_v25, %v5599_v31  ;;  %v5610_v39 = vsub.f32 %v7454_v56, %v5602_v20  ;;  %v5615_v46 = vsub.f32 %v7456_v30, %v5602_v20  ;;  %v5630_v33 = vsub.f32 %v7465_v61, %v5602_v20  ;;  %v7467_v25 = vld [vmem:[#allocation71_spill] sm:$0xff] }
 0x326   :  { %v7468_v11 = vmax.f32 %v7467_v25, 0.0  ;;  %v7473_v61 = vmax.f32 %v4541_v9, 0.0 }
 0x327   :  { %7455 = vst [vmem:[#allocation127_spill] sm:$0xff] %v5610_v39  ;;  %7457 = vst [vmem:[#allocation65_spill] sm:$0xff] %v5615_v46  ;;  %v5620_v55 = vsub.f32 %v7459_v40, %v5605_v34  ;;  %v5625_v0 = vsub.f32 %v7462_v53, %v5605_v34  ;;  %v1917_v24 = vmul.f32 %v5610_v39, %v5610_v39  ;;  %v7471_v53 = vmax.f32 %v7470_v60, 0.0 }
 0x328   :  { %7466 = vst [vmem:[#allocation67_spill] sm:$0xff] %v5630_v33  ;;  %v5637_v56 = vsub.f32 %v7468_v11, %v5605_v34  ;;  %v1919_v30 = vmul.f32 %v5615_v46, %v5615_v46  ;;  %v5653_v25 = vsub.f32 %v7473_v61, %v5605_v34  ;;  %v7475_v11 = vld [vmem:[#allocation74_spill] sm:$0xff]  ;;  %v7480_v61 = vld [vmem:[#allocation77_spill] sm:$0xff] }
 0x329   :  { %7460 = vst [vmem:[#allocation11_spill] sm:$0xff] %v5620_v55  ;;  %7463 = vst [vmem:[#allocation129_spill] sm:$0xff] %v5625_v0  ;;  %v1918_v3 = vmul.f32 %v5620_v55, %v5620_v55  ;;  %v1920_v40 = vmul.f32 %v5625_v0, %v5625_v0  ;;  %v5648_v21 = vsub.f32 %v7471_v53, %v5602_v20  ;;  %v7476_v6 = vmax.f32 %v7475_v11, 0.0  ;;  %v7477_v0 = vld [vmem:[#allocation76_spill] sm:$0xff] }
 0x32a   :  { %7469 = vst [vmem:[#allocation12_spill] sm:$0xff] %v5637_v56  ;;  %7474 = vst [vmem:[#allocation13_spill] sm:$0xff] %v5653_v25  ;;  %v1921_v55 = vmul.f32 %v5630_v33, %v5630_v33  ;;  %v7478_v46 = vmax.f32 %v7477_v0, 0.0  ;;  %v1922_v60 = vmul.f32 %v5637_v56, %v5637_v56  ;;  %v2009_v53 = vadd.f32 %v1919_v30, %v1917_v24  ;;  %v7484_v24 = vld [vmem:[#allocation79_spill] sm:$0xff] }
 0x32b   :  { %7472 = vst [vmem:[#allocation70_spill] sm:$0xff] %v5648_v21  ;;  %v5658_v28 = vsub.f32 %v7476_v6, %v5602_v20  ;;  %v2061_v9 = vadd.f32 %v1920_v40, %v1918_v3  ;;  %v7481_v43 = vmax.f32 %v7480_v61, 0.0  ;;  %v1923_v6 = vmul.f32 %v5648_v21, %v5648_v21  ;;  %v7486_v40 = vld [vmem:[#allocation81_spill] sm:$0xff] }
 0x32c   :  { %v5665_v39 = vsub.f32 %v7478_v46, %v5605_v34  ;;  %v7482_v11 = vmax.f32 %v4563_v5, 0.0  ;;  %v1924_v46 = vmul.f32 %v5653_v25, %v5653_v25  ;;  %v2010_v0 = vadd.f32 %v2009_v53, %v1921_v55  ;;  %v7489_v55 = vld [vmem:[#allocation82_spill] sm:$0xff] }
 0x32d   :  { %v5672_v31 = vsub.f32 %v7481_v43, %v5602_v20  ;;  %v2062_v56 = vadd.f32 %v2061_v9, %v1922_v60  ;;  %v7485_v30 = vmax.f32 %v7484_v24, 0.0  ;;  %v1925_v43 = vmul.f32 %v5658_v28, %v5658_v28 }
 0x32e   :  { %7479 = vst [vmem:[#allocation73_spill] sm:$0xff] %v5665_v39  ;;  %v5679_v33 = vsub.f32 %v7482_v11, %v5605_v34  ;;  %v7487_v61 = vmax.f32 %v7486_v40, 0.0  ;;  %v1926_v5 = vmul.f32 %v5665_v39, %v5665_v39  ;;  %v2011_v11 = vadd.f32 %v2010_v0, %v1923_v6 }
 0x32f   :  { %v5686_v3 = vsub.f32 %v7485_v30, %v5602_v20  ;;  %v2063_v25 = vadd.f32 %v2062_v56, %v1924_v46  ;;  %v7490_v60 = vmax.f32 %v7489_v55, 0.0  ;;  %v7491_v9 = vmax.f32 %v4591_v16, 0.0  ;;  %v7493_v56 = vld [vmem:[#allocation84_spill] sm:$0xff] }
 0x330   :  { %7483 = vst [vmem:[#allocation14_spill] sm:$0xff] %v5679_v33  ;;  %v5693_v21 = vsub.f32 %v7487_v61, %v5605_v34  ;;  %v1927_v30 = vmul.f32 %v5672_v31, %v5672_v31  ;;  %v1928_v40 = vmul.f32 %v5679_v33, %v5679_v33  ;;  %v2012_v61 = vadd.f32 %v2011_v11, %v1925_v43 }
 0x331   :  { %v5700_v53 = vsub.f32 %v7490_v60, %v5602_v20  ;;  %v5705_v24 = vsub.f32 %v7491_v9, %v5605_v34  ;;  %v2064_v39 = vadd.f32 %v2063_v25, %v1926_v5  ;;  %v7494_v6 = vmax.f32 %v7493_v56, 0.0  ;;  %v7498_v5 = vld [vmem:[#allocation87_spill] sm:$0xff] }
 0x332   :  { %7488 = vst [vmem:[#allocation75_spill] sm:$0xff] %v5693_v21  ;;  %v7495_v0 = vmax.f32 %v4602_v2, 0.0  ;;  %v1929_v16 = vmul.f32 %v5686_v3, %v5686_v3  ;;  %v1930_v60 = vmul.f32 %v5693_v21, %v5693_v21  ;;  %v2013_v9 = vadd.f32 %v2012_v61, %v1927_v30 }
 0x333   :  { %7492 = vst [vmem:[#allocation15_spill] sm:$0xff] %v5705_v24  ;;  %v5714_v46 = vsub.f32 %v7494_v6, %v5602_v20  ;;  %v2065_v33 = vadd.f32 %v2064_v39, %v1928_v40  ;;  %v7497_v25 = vmax.f32 %v4608_v38, 0.0  ;;  %v7499_v11 = vmax.f32 %v7498_v5, 0.0 }
 0x334   :  { %v5719_v55 = vsub.f32 %v7495_v0, %v5605_v34  ;;  %v1931_v2 = vmul.f32 %v5700_v53, %v5700_v53  ;;  %v1932_v6 = vmul.f32 %v5705_v24, %v5705_v24  ;;  %v2014_v0 = vadd.f32 %v2013_v9, %v1929_v16 }
 0x335   :  { %v5728_v43 = vsub.f32 %v7497_v25, %v5602_v20  ;;  %v5733_v56 = vsub.f32 %v7499_v11, %v5605_v34  ;;  %v2066_v21 = vadd.f32 %v2065_v33, %v1930_v60  ;;  %v7501_v39 = vmax.f32 %v4619_v54, 0.0 }
 0x336   :  { %7496 = vst [vmem:[#allocation78_spill] sm:$0xff] %v5719_v55  ;;  %v7502_v38 = vmax.f32 %v4627_v45, 0.0  ;;  %v1933_v61 = vmul.f32 %v5714_v46, %v5714_v46  ;;  %v1934_v25 = vmul.f32 %v5719_v55, %v5719_v55  ;;  %v2015_v5 = vadd.f32 %v2014_v0, %v1931_v2 }
 0x337   :  { %7500 = vst [vmem:[#allocation16_spill] sm:$0xff] %v5733_v56  ;;  %v5742_v30 = vsub.f32 %v7501_v39, %v5602_v20  ;;  %v2067_v11 = vadd.f32 %v2066_v21, %v1932_v6  ;;  %v7504_v33 = vmax.f32 %v4630_v27, 0.0  ;;  %v7506_v54 = vmax.f32 %v4641_v44, 0.0  ;;  %v7508_v21 = vld [vmem:[#allocation92_spill] sm:$0xff]  ;;  %v7511_v27 = vld [vmem:[#allocation94_spill] sm:$0xff] }
 0x338   :  { %v5747_v40 = vsub.f32 %v7502_v38, %v5605_v34  ;;  %v1935_v45 = vmul.f32 %v5728_v43, %v5728_v43  ;;  %v1936_v9 = vmul.f32 %v5733_v56, %v5733_v56  ;;  %v2016_v39 = vadd.f32 %v2015_v5, %v1933_v61  ;;  %v7514_v61 = vld [vmem:[#allocation96_spill] sm:$0xff] }
 0x339   :  { %v5756_v16 = vsub.f32 %v7504_v33, %v5602_v20  ;;  %v5761_v60 = vsub.f32 %v7506_v54, %v5605_v34  ;;  %v2068_v38 = vadd.f32 %v2067_v11, %v1934_v25  ;;  %v7509_v2 = vmax.f32 %v7508_v21, 0.0  ;;  %v7517_v11 = vld [vmem:[#allocation99_spill] sm:$0xff] }
 0x33a   :  { %7503 = vst [vmem:[#allocation80_spill] sm:$0xff] %v5747_v40  ;;  %v7512_v0 = vmax.f32 %v7511_v27, 0.0  ;;  %v1937_v44 = vmul.f32 %v5742_v30, %v5742_v30  ;;  %v1938_v54 = vmul.f32 %v5747_v40, %v5747_v40  ;;  %v2017_v55 = vadd.f32 %v2016_v39, %v1935_v45  ;;  %v7520_v45 = vld [vmem:[#allocation100_spill] sm:$0xff] }
 0x33b   :  { %7505 = vst [vmem:[#allocation17_spill] sm:$0xff] %v5756_v16  ;;  %7507 = vst [vmem:[#allocation83_spill] sm:$0xff] %v5761_v60  ;;  %v5770_v6 = vsub.f32 %v7509_v2, %v5602_v20  ;;  %v2069_v56 = vadd.f32 %v2068_v38, %v1936_v9  ;;  %v7515_v25 = vmax.f32 %v7514_v61, 0.0  ;;  %v7518_v21 = vmax.f32 %v7517_v11, 0.0  ;;  %v7523_v38 = vld [vmem:[#allocation130_spill] sm:$0xff] }
 0x33c   :  { %v5775_v33 = vsub.f32 %v7512_v0, %v5605_v34  ;;  %v1939_v27 = vmul.f32 %v5756_v16, %v5756_v16  ;;  %v1940_v0 = vmul.f32 %v5761_v60, %v5761_v60  ;;  %v2018_v24 = vadd.f32 %v2017_v55, %v1937_v44  ;;  %v7526_v55 = vld [vmem:[#allocation102_spill] sm:$0xff] }
 0x33d   :  { %7510 = vst [vmem:[#allocation18_spill] sm:$0xff] %v5770_v6  ;;  %v5784_v5 = vsub.f32 %v7515_v25, %v5602_v20  ;;  %v5789_v2 = vsub.f32 %v7518_v21, %v5605_v34  ;;  %v2070_v40 = vadd.f32 %v2069_v56, %v1938_v54  ;;  %v7521_v9 = vmax.f32 %v7520_v45, 0.0  ;;  %v7529_v54 = vld [vmem:[#allocation131_spill] sm:$0xff] }
 0x33e   :  { %7513 = vst [vmem:[#allocation85_spill] sm:$0xff] %v5775_v33  ;;  %v7524_v61 = vmax.f32 %v7523_v38, 0.0  ;;  %v1941_v11 = vmul.f32 %v5770_v6, %v5770_v6  ;;  %v1942_v21 = vmul.f32 %v5775_v33, %v5775_v33  ;;  %v2019_v16 = vadd.f32 %v2018_v24, %v1939_v27  ;;  %v7532_v24 = vld [vmem:[#allocation132_spill] sm:$0xff] }
 0x33f   :  { %7516 = vst [vmem:[#allocation19_spill] sm:$0xff] %v5784_v5  ;;  %7519 = vst [vmem:[#allocation86_spill] sm:$0xff] %v5789_v2  ;;  %v5798_v39 = vsub.f32 %v7521_v9, %v5602_v20  ;;  %v2071_v60 = vadd.f32 %v2070_v40, %v1940_v0  ;;  %v7527_v56 = vmax.f32 %v7526_v55, 0.0  ;;  %v7530_v45 = vmax.f32 %v7529_v54, 0.0  ;;  %v7535_v0 = vld [vmem:[#allocation133_spill] sm:$0xff] }
 0x340   :  { %v5803_v25 = vsub.f32 %v7524_v61, %v5605_v34  ;;  %v1943_v38 = vmul.f32 %v5784_v5, %v5784_v5  ;;  %v1944_v61 = vmul.f32 %v5789_v2, %v5789_v2  ;;  %v2020_v6 = vadd.f32 %v2019_v16, %v1941_v11  ;;  %v7538_v16 = vld [vmem:[#allocation134_spill] sm:$0xff] }
 0x341   :  { %7522 = vst [vmem:[#allocation20_spill] sm:$0xff] %v5798_v39  ;;  %v5812_v44 = vsub.f32 %v7527_v56, %v5602_v20  ;;  %v5817_v9 = vsub.f32 %v7530_v45, %v5605_v34  ;;  %v2072_v33 = vadd.f32 %v2071_v60, %v1942_v21  ;;  %v7533_v40 = vmax.f32 %v7532_v24, 0.0  ;;  %v7541_v21 = vld [vmem:[#allocation2_spill] sm:$0xff] }
 0x342   :  { %7525 = vst [vmem:[#allocation88_spill] sm:$0xff] %v5803_v25  ;;  %v7536_v55 = vmax.f32 %v7535_v0, 0.0  ;;  %v1945_v54 = vmul.f32 %v5798_v39, %v5798_v39  ;;  %v1946_v45 = vmul.f32 %v5803_v25, %v5803_v25  ;;  %v2021_v5 = vadd.f32 %v2020_v6, %v1943_v38  ;;  %v7544_v6 = vld [vmem:[#allocation110_spill] sm:$0xff] }
 0x343   :  { %7528 = vst [vmem:[#allocation21_spill] sm:$0xff] %v5812_v44  ;;  %7531 = vst [vmem:[#allocation90_spill] sm:$0xff] %v5817_v9  ;;  %v5826_v27 = vsub.f32 %v7533_v40, %v5602_v20  ;;  %v2073_v2 = vadd.f32 %v2072_v33, %v1944_v61  ;;  %v7539_v60 = vmax.f32 %v7538_v16, 0.0  ;;  %v7542_v24 = vmax.f32 %v7541_v21, 0.0  ;;  %v7546_v61 = vld [vmem:[#allocation115_spill] sm:$0xff] }
 0x344   :  { %v5831_v56 = vsub.f32 %v7536_v55, %v5605_v34  ;;  %v1947_v0 = vmul.f32 %v5812_v44, %v5812_v44  ;;  %v1948_v55 = vmul.f32 %v5817_v9, %v5817_v9  ;;  %v2022_v39 = vadd.f32 %v2021_v5, %v1945_v54  ;;  %v7549_v5 = vld [vmem:[#allocation41_spill] sm:$0xff] }
 0x345   :  { %7534 = vst [vmem:[#allocation22_spill] sm:$0xff] %v5826_v27  ;;  %v5840_v11 = vsub.f32 %v7539_v60, %v5602_v20  ;;  %v5845_v40 = vsub.f32 %v7542_v24, %v5605_v34  ;;  %v2074_v25 = vadd.f32 %v2073_v2, %v1946_v45  ;;  %v7545_v33 = vmax.f32 %v7544_v6, 0.0  ;;  %v7552_v45 = vld [vmem:[#allocation3_spill] sm:$0xff] }
 0x346   :  { %7537 = vst [vmem:[#allocation93_spill] sm:$0xff] %v5831_v56  ;;  %v7547_v16 = vmax.f32 %v7546_v61, 0.0  ;;  %v1949_v21 = vmul.f32 %v5826_v27, %v5826_v27  ;;  %v1950_v24 = vmul.f32 %v5831_v56, %v5831_v56  ;;  %v2023_v44 = vadd.f32 %v2022_v39, %v1947_v0  ;;  %v7555_v39 = vld [vmem:[#allocation117_spill] sm:$0xff] }
 0x347   :  { %7540 = vst [vmem:[#allocation23_spill] sm:$0xff] %v5840_v11  ;;  %7543 = vst [vmem:[#allocation98_spill] sm:$0xff] %v5845_v40  ;;  %v5854_v38 = vsub.f32 %v7545_v33, %v5602_v20  ;;  %v2075_v9 = vadd.f32 %v2074_v25, %v1948_v55  ;;  %v7550_v2 = vmax.f32 %v7549_v5, 0.0  ;;  %v7553_v6 = vmax.f32 %v7552_v45, 0.0  ;;  %v7558_v55 = vld [vmem:[#allocation118_spill] sm:$0xff] }
 0x348   :  { %v5859_v60 = vsub.f32 %v7547_v16, %v5605_v34  ;;  %v1951_v61 = vmul.f32 %v5840_v11, %v5840_v11  ;;  %v1952_v16 = vmul.f32 %v5845_v40, %v5845_v40  ;;  %v2024_v27 = vadd.f32 %v2023_v44, %v1949_v21  ;;  %v7561_v44 = vld [vmem:[#allocation44_spill] sm:$0xff] }
 0x349   :  { %v5868_v54 = vsub.f32 %v7550_v2, %v5602_v20  ;;  %v5873_v33 = vsub.f32 %v7553_v6, %v5605_v34  ;;  %v2076_v56 = vadd.f32 %v2075_v9, %v1950_v24  ;;  %v7556_v25 = vmax.f32 %v7555_v39, 0.0 }
 0x34a   :  { %7548 = vst [vmem:[#allocation24_spill] sm:$0xff] %v5859_v60  ;;  %v7559_v5 = vmax.f32 %v7558_v55, 0.0  ;;  %v1953_v45 = vmul.f32 %v5854_v38, %v5854_v38  ;;  %v1954_v6 = vmul.f32 %v5859_v60, %v5859_v60  ;;  %v2025_v11 = vadd.f32 %v2024_v27, %v1951_v61  ;;  %v7566_v27 = vld [vmem:[#allocation4_spill] sm:$0xff] }
 0x34b   :  { %7551 = vst [vmem:[#allocation101_spill] sm:$0xff] %v5868_v54  ;;  %7554 = vst [vmem:[#allocation25_spill] sm:$0xff] %v5873_v33  ;;  %v5882_v0 = vsub.f32 %v7556_v25, %v5602_v20  ;;  %v2077_v40 = vadd.f32 %v2076_v56, %v1952_v16  ;;  %v7562_v9 = vmax.f32 %v7561_v44, 0.0  ;;  %v7564_v24 = vmax.f32 %v5025_v41, 0.0  ;;  %v7568_v16 = vld [vmem:[#allocation120_spill] sm:$0xff] }
 0x34c   :  { %v5887_v2 = vsub.f32 %v7559_v5, %v5605_v34  ;;  %v1955_v25 = vmul.f32 %v5868_v54, %v5868_v54  ;;  %v1956_v55 = vmul.f32 %v5873_v33, %v5873_v33  ;;  %v2026_v5 = vadd.f32 %v2025_v11, %v1953_v45  ;;  %v7571_v11 = vld [vmem:[#allocation47_spill] sm:$0xff] }
 0x34d   :  { %7557 = vst [vmem:[#allocation103_spill] sm:$0xff] %v5882_v0  ;;  %v5896_v21 = vsub.f32 %v7562_v9, %v5602_v20  ;;  %v5901_v39 = vsub.f32 %v7564_v24, %v5605_v34  ;;  %v2078_v60 = vadd.f32 %v2077_v40, %v1954_v6  ;;  %v7567_v56 = vmax.f32 %v7566_v27, 0.0  ;;  %v7574_v6 = vld [vmem:[#allocation5_spill] sm:$0xff] }
 0x34e   :  { %7560 = vst [vmem:[#allocation26_spill] sm:$0xff] %v5887_v2  ;;  %v7569_v44 = vmax.f32 %v7568_v16, 0.0  ;;  %v1957_v41 = vmul.f32 %v5882_v0, %v5882_v0  ;;  %v1958_v24 = vmul.f32 %v5887_v2, %v5887_v2  ;;  %v2027_v54 = vadd.f32 %v2026_v5, %v1955_v25  ;;  %v7580_v5 = vld [vmem:[#allocation6_spill] sm:$0xff] }
 0x34f   :  { %7563 = vst [vmem:[#allocation104_spill] sm:$0xff] %v5896_v21  ;;  %7565 = vst [vmem:[#allocation27_spill] sm:$0xff] %v5901_v39  ;;  %v5910_v61 = vsub.f32 %v7567_v56, %v5602_v20  ;;  %v2079_v33 = vadd.f32 %v2078_v60, %v1956_v55  ;;  %v7572_v40 = vmax.f32 %v7571_v11, 0.0  ;;  %v7575_v27 = vmax.f32 %v7574_v6, 0.0  ;;  %v7577_v60 = vld [vmem:[#allocation50_spill] sm:$0xff] }
 0x350   :  { %v5915_v9 = vsub.f32 %v7569_v44, %v5605_v34  ;;  %v1959_v16 = vmul.f32 %v5896_v21, %v5896_v21  ;;  %v1960_v44 = vmul.f32 %v5901_v39, %v5901_v39  ;;  %v2028_v0 = vadd.f32 %v2027_v54, %v1957_v41  ;;  %v7583_v54 = vld [vmem:[#allocation121_spill] sm:$0xff] }
 0x351   :  { %v5924_v45 = vsub.f32 %v7572_v40, %v5602_v20  ;;  %v5929_v56 = vsub.f32 %v7575_v27, %v5605_v34  ;;  %v2080_v2 = vadd.f32 %v2079_v33, %v1958_v24  ;;  %v7578_v25 = vmax.f32 %v7577_v60, 0.0 }
 0x352   :  { %7570 = vst [vmem:[#allocation109_spill] sm:$0xff] %v5915_v9  ;;  %v7581_v11 = vmax.f32 %v7580_v5, 0.0  ;;  %v1961_v6 = vmul.f32 %v5910_v61, %v5910_v61  ;;  %v1962_v27 = vmul.f32 %v5915_v9, %v5915_v9  ;;  %v2029_v21 = vadd.f32 %v2028_v0, %v1959_v16  ;;  %v7588_v0 = vld [vmem:[#allocation53_spill] sm:$0xff] }
 0x353   :  { %7573 = vst [vmem:[#allocation28_spill] sm:$0xff] %v5924_v45  ;;  %7576 = vst [vmem:[#allocation116_spill] sm:$0xff] %v5929_v56  ;;  %v5938_v55 = vsub.f32 %v7578_v25, %v5602_v20  ;;  %v2081_v39 = vadd.f32 %v2080_v2, %v1960_v44  ;;  %v7584_v33 = vmax.f32 %v7583_v54, 0.0  ;;  %v7586_v24 = vmax.f32 %v5101_v32, 0.0  ;;  %v7590_v44 = vld [vmem:[#allocation7_spill] sm:$0xff] }
 0x354   :  { %v5943_v40 = vsub.f32 %v7581_v11, %v5605_v34  ;;  %v1963_v25 = vmul.f32 %v5924_v45, %v5924_v45  ;;  %v1964_v5 = vmul.f32 %v5929_v56, %v5929_v56  ;;  %v2030_v11 = vadd.f32 %v2029_v21, %v1961_v6  ;;  %v7593_v21 = vld [vmem:[#allocation56_spill] sm:$0xff] }
 0x355   :  { %7579 = vst [vmem:[#allocation29_spill] sm:$0xff] %v5938_v55  ;;  %v5952_v41 = vsub.f32 %v7584_v33, %v5602_v20  ;;  %v5957_v60 = vsub.f32 %v7586_v24, %v5605_v34  ;;  %v2082_v9 = vadd.f32 %v2081_v39, %v1962_v27  ;;  %v7589_v2 = vmax.f32 %v7588_v0, 0.0  ;;  %v7595_v27 = vld [vmem:[#allocation8_spill] sm:$0xff] }
 0x356   :  { %7582 = vst [vmem:[#allocation119_spill] sm:$0xff] %v5943_v40  ;;  %v7591_v54 = vmax.f32 %v7590_v44, 0.0  ;;  %v1965_v32 = vmul.f32 %v5938_v55, %v5938_v55  ;;  %v1966_v24 = vmul.f32 %v5943_v40, %v5943_v40  ;;  %v2031_v45 = vadd.f32 %v2030_v11, %v1963_v25  ;;  %v7600_v11 = vld [vmem:[#allocation124_spill] sm:$0xff] }
 0x357   :  { %7585 = vst [vmem:[#allocation30_spill] sm:$0xff] %v5952_v41  ;;  %7587 = vst [vmem:[#allocation122_spill] sm:$0xff] %v5957_v60  ;;  %v5966_v16 = vsub.f32 %v7589_v2, %v5602_v20  ;;  %v2083_v56 = vadd.f32 %v2082_v9, %v1964_v5  ;;  %v7594_v39 = vmax.f32 %v7593_v21, 0.0  ;;  %v7596_v0 = vmax.f32 %v7595_v27, 0.0  ;;  %v7598_v9 = vld [vmem:[#allocation123_spill] sm:$0xff] }
 0x358   :  { %v5971_v33 = vsub.f32 %v7591_v54, %v5605_v34  ;;  %v1967_v44 = vmul.f32 %v5952_v41, %v5952_v41  ;;  %v1968_v54 = vmul.f32 %v5957_v60, %v5957_v60  ;;  %v2032_v55 = vadd.f32 %v2031_v45, %v1965_v32  ;;  %v7603_v45 = vld [vmem:[#allocation59_spill] sm:$0xff] }
 0x359   :  { %v5980_v6 = vsub.f32 %v7594_v39, %v5602_v20  ;;  %v5985_v2 = vsub.f32 %v7596_v0, %v5605_v34  ;;  %v2084_v40 = vadd.f32 %v2083_v56, %v1966_v24  ;;  %v7599_v25 = vmax.f32 %v7598_v9, 0.0 }
 0x35a   :  { %7592 = vst [vmem:[#allocation31_spill] sm:$0xff] %v5971_v33  ;;  %v7601_v21 = vmax.f32 %v7600_v11, 0.0  ;;  %v1969_v27 = vmul.f32 %v5966_v16, %v5966_v16  ;;  %v1970_v0 = vmul.f32 %v5971_v33, %v5971_v33  ;;  %v2033_v41 = vadd.f32 %v2032_v55, %v1967_v44 }
 0x35b   :  { %7597 = vst [vmem:[#allocation125_spill] sm:$0xff] %v5985_v2  ;;  %v5994_v5 = vsub.f32 %v7599_v25, %v5602_v20  ;;  %v2085_v60 = vadd.f32 %v2084_v40, %v1968_v54  ;;  %v7604_v56 = vmax.f32 %v7603_v45, 0.0  ;;  %v7605_v24 = vmax.f32 %v5179_v29, 0.0 }
 0x35c   :  { %v5999_v39 = vsub.f32 %v7601_v21, %v5605_v34  ;;  %v1971_v25 = vmul.f32 %v5980_v6, %v5980_v6  ;;  %v1972_v11 = vmul.f32 %v5985_v2, %v5985_v2  ;;  %v2034_v21 = vadd.f32 %v2033_v41, %v1969_v27 }
 0x35d   :  { %v6008_v32 = vsub.f32 %v7604_v56, %v5602_v20  ;;  %v6013_v9 = vsub.f32 %v7605_v24, %v5605_v34  ;;  %v2086_v33 = vadd.f32 %v2085_v60, %v1970_v0  ;;  %v7607_v55 = vmax.f32 %v5182_v49, 0.0 }
 0x35e   :  { %7602 = vst [vmem:[#allocation32_spill] sm:$0xff] %v5999_v39  ;;  %v7608_v44 = vmax.f32 %v5195_v62, 0.0  ;;  %v1973_v29 = vmul.f32 %v5994_v5, %v5994_v5  ;;  %v1974_v45 = vmul.f32 %v5999_v39, %v5999_v39  ;;  %v2035_v56 = vadd.f32 %v2034_v21, %v1971_v25  ;;  %v7675_v39 = vld [vmem:[#allocation30_spill] sm:$0xff] }
 0x35f   :  { %7606 = vst [vmem:[#allocation128_spill] sm:$0xff] %v6013_v9  ;;  %v6022_v40 = vsub.f32 %v7607_v55, %v5602_v20  ;;  %v2087_v24 = vadd.f32 %v2086_v33, %v1972_v11  ;;  %v7610_v41 = vmax.f32 %v5198_v35, 0.0  ;;  %v7611_v49 = vmax.f32 %v5209_v48, 0.0 }
 0x360   :  { %v6027_v54 = vsub.f32 %v7608_v44, %v5605_v34  ;;  %v1975_v62 = vmul.f32 %v6008_v32, %v6008_v32  ;;  %v1976_v0 = vmul.f32 %v6013_v9, %v6013_v9  ;;  %v2036_v55 = vadd.f32 %v2035_v56, %v1973_v29  ;;  %v7674_v9 = vld [vmem:[#allocation29_spill] sm:$0xff] }
 0x361   :  { %v6036_v60 = vsub.f32 %v7610_v41, %v5602_v20  ;;  %v6041_v27 = vsub.f32 %v7611_v49, %v5605_v34  ;;  %v2088_v44 = vadd.f32 %v2087_v24, %v1974_v45  ;;  %v7613_v33 = vmax.f32 %v5218_v50, 0.0 }
 0x362   :  { %7609 = vst [vmem:[#allocation33_spill] sm:$0xff] %v6027_v54  ;;  %v7614_v35 = vmax.f32 %v5231_v42, 0.0  ;;  %v1977_v48 = vmul.f32 %v6022_v40, %v6022_v40  ;;  %v1978_v21 = vmul.f32 %v6027_v54, %v6027_v54  ;;  %v2037_v41 = vadd.f32 %v2036_v55, %v1975_v62  ;;  %v7673_v54 = vld [vmem:[#allocation28_spill] sm:$0xff] }
 0x363   :  { %7612 = vst [vmem:[#allocation34_spill] sm:$0xff] %v6041_v27  ;;  %v6050_v25 = vsub.f32 %v7613_v33, %v5602_v20  ;;  %v2089_v49 = vadd.f32 %v2088_v44, %v1976_v0  ;;  %v7616_v29 = vmax.f32 %v5234_v4, 0.0  ;;  %v7617_v50 = vmax.f32 %v5249_v36, 0.0 }
 0x364   :  { %v6055_v11 = vsub.f32 %v7614_v35, %v5605_v34  ;;  %v1979_v42 = vmul.f32 %v6036_v60, %v6036_v60  ;;  %v1980_v24 = vmul.f32 %v6041_v27, %v6041_v27  ;;  %v2038_v33 = vadd.f32 %v2037_v41, %v1977_v48  ;;  %v7672_v27 = vld [vmem:[#allocation104_spill] sm:$0xff] }
 0x365   :  { %v6064_v45 = vsub.f32 %v7616_v29, %v5602_v20  ;;  %v6069_v56 = vsub.f32 %v7617_v50, %v5605_v34  ;;  %v2090_v35 = vadd.f32 %v2089_v49, %v1978_v21  ;;  %v7619_v62 = vmax.f32 %v5252_v26, 0.0 }
 0x366   :  { %7615 = vst [vmem:[#allocation35_spill] sm:$0xff] %v6055_v11  ;;  %v7620_v4 = vmax.f32 %v5263_v7, 0.0  ;;  %v1981_v36 = vmul.f32 %v6050_v25, %v6050_v25  ;;  %v1982_v44 = vmul.f32 %v6055_v11, %v6055_v11  ;;  %v2039_v29 = vadd.f32 %v2038_v33, %v1979_v42  ;;  %v7671_v11 = vld [vmem:[#allocation103_spill] sm:$0xff] }
 0x367   :  { %7618 = vst [vmem:[#allocation36_spill] sm:$0xff] %v6069_v56  ;;  %v6078_v0 = vsub.f32 %v7619_v62, %v5602_v20  ;;  %v2091_v50 = vadd.f32 %v2090_v35, %v1980_v24  ;;  %v7622_v48 = vmax.f32 %v5266_v58, 0.0  ;;  %v7623_v26 = vmax.f32 %v5277_v8, 0.0 }
 0x368   :  { %v6083_v55 = vsub.f32 %v7620_v4, %v5605_v34  ;;  %v1983_v7 = vmul.f32 %v6064_v45, %v6064_v45  ;;  %v1984_v49 = vmul.f32 %v6069_v56, %v6069_v56  ;;  %v2040_v62 = vadd.f32 %v2039_v29, %v1981_v36  ;;  %v7670_v56 = vld [vmem:[#allocation101_spill] sm:$0xff] }
 0x369   :  { %v6092_v21 = vsub.f32 %v7622_v48, %v5602_v20  ;;  %v6097_v41 = vsub.f32 %v7623_v26, %v5605_v34  ;;  %v2092_v4 = vadd.f32 %v2091_v50, %v1982_v44  ;;  %v7625_v42 = vmax.f32 %v5284_v47, 0.0 }
 0x36a   :  { %7621 = vst [vmem:[#allocation37_spill] sm:$0xff] %v6083_v55  ;;  %v7626_v58 = vmax.f32 %v5296_v23, 0.0  ;;  %v1985_v8 = vmul.f32 %v6078_v0, %v6078_v0  ;;  %v1986_v35 = vmul.f32 %v6083_v55, %v6083_v55  ;;  %v2041_v48 = vadd.f32 %v2040_v62, %v1983_v7  ;;  %v7669_v55 = vld [vmem:[#allocation23_spill] sm:$0xff] }
 0x36b   :  { %7624 = vst [vmem:[#allocation38_spill] sm:$0xff] %v6097_v41  ;;  %v6106_v24 = vsub.f32 %v7625_v42, %v5602_v20  ;;  %v2093_v26 = vadd.f32 %v2092_v4, %v1984_v49  ;;  %v7628_v36 = vmax.f32 %v5298_v51, 0.0  ;;  %v7629_v47 = vmax.f32 %v5310_v52, 0.0 }
 0x36c   :  { %v6111_v33 = vsub.f32 %v7626_v58, %v5605_v34  ;;  %v1987_v23 = vmul.f32 %v6092_v21, %v6092_v21  ;;  %v1988_v50 = vmul.f32 %v6097_v41, %v6097_v41  ;;  %v2042_v42 = vadd.f32 %v2041_v48, %v1985_v8  ;;  %v7668_v41 = vld [vmem:[#allocation22_spill] sm:$0xff] }
 0x36d   :  { %v6120_v44 = vsub.f32 %v7628_v36, %v5602_v20  ;;  %v6125_v29 = vsub.f32 %v7629_v47, %v5605_v34  ;;  %v2094_v58 = vadd.f32 %v2093_v26, %v1986_v35  ;;  %v7631_v7 = vmax.f32 %v5312_v12, 0.0 }
 0x36e   :  { %7627 = vst [vmem:[#allocation39_spill] sm:$0xff] %v6111_v33  ;;  %v7632_v51 = vmax.f32 %v5322_v18, 0.0  ;;  %v1989_v52 = vmul.f32 %v6106_v24, %v6106_v24  ;;  %v1990_v4 = vmul.f32 %v6111_v33, %v6111_v33  ;;  %v2043_v36 = vadd.f32 %v2042_v42, %v1987_v23 }
 0x36f   :  { %7630 = vst [vmem:[#allocation40_spill] sm:$0xff] %v6125_v29  ;;  %v6134_v49 = vsub.f32 %v7631_v7, %v5602_v20  ;;  %v2095_v47 = vadd.f32 %v2094_v58, %v1988_v50  ;;  %v7634_v8 = vmax.f32 %v5324_v19, 0.0  ;;  %v7635_v12 = vmax.f32 %v5334_v37, 0.0 }
 0x370   :  { %v6139_v62 = vsub.f32 %v7632_v51, %v5605_v34  ;;  %v1991_v18 = vmul.f32 %v6120_v44, %v6120_v44  ;;  %v1992_v26 = vmul.f32 %v6125_v29, %v6125_v29  ;;  %v2044_v7 = vadd.f32 %v2043_v36, %v1989_v52 }
 0x371   :  { %v6148_v35 = vsub.f32 %v7634_v8, %v5602_v20  ;;  %v6153_v48 = vsub.f32 %v7635_v12, %v5605_v34  ;;  %v2096_v51 = vadd.f32 %v2095_v47, %v1990_v4  ;;  %v7637_v23 = vmax.f32 %v5340_v59, 0.0 }
 0x372   :  { %7633 = vst [vmem:[#allocation42_spill] sm:$0xff] %v6139_v62  ;;  %v7638_v19 = vmax.f32 %v5352_v63, 0.0  ;;  %v1993_v37 = vmul.f32 %v6134_v49, %v6134_v49  ;;  %v1994_v58 = vmul.f32 %v6139_v62, %v6139_v62  ;;  %v2045_v8 = vadd.f32 %v2044_v7, %v1991_v18 }
 0x373   :  { %7636 = vst [vmem:[#allocation43_spill] sm:$0xff] %v6153_v48  ;;  %v6162_v50 = vsub.f32 %v7637_v23, %v5602_v20  ;;  %v2097_v12 = vadd.f32 %v2096_v51, %v1992_v26  ;;  %v7640_v52 = vmax.f32 %v5354_v10, 0.0  ;;  %v7641_v59 = vmax.f32 %v5365_v14, 0.0 }
 0x374   :  { %v6167_v42 = vsub.f32 %v7638_v19, %v5605_v34  ;;  %v1995_v63 = vmul.f32 %v6148_v35, %v6148_v35  ;;  %v1996_v47 = vmul.f32 %v6153_v48, %v6153_v48  ;;  %v2046_v23 = vadd.f32 %v2045_v8, %v1993_v37 }
 0x375   :  { %v6176_v4 = vsub.f32 %v7640_v52, %v5602_v20  ;;  %v6181_v36 = vsub.f32 %v7641_v59, %v5605_v34  ;;  %v2098_v19 = vadd.f32 %v2097_v12, %v1994_v58  ;;  %v7643_v18 = vmax.f32 %v5367_v57, 0.0 }
 0x376   :  { %7639 = vst [vmem:[#allocation45_spill] sm:$0xff] %v6167_v42  ;;  %v7644_v10 = vmax.f32 %v5376_v17, 0.0  ;;  %v1997_v14 = vmul.f32 %v6162_v50, %v6162_v50  ;;  %v1998_v51 = vmul.f32 %v6167_v42, %v6167_v42  ;;  %v2047_v52 = vadd.f32 %v2046_v23, %v1995_v63  ;;  %v7649_v63 = vld [vmem:[#allocation9_spill] sm:$0xff] }
 0x377   :  { %7642 = vst [vmem:[#allocation46_spill] sm:$0xff] %v6181_v36  ;;  %v6190_v26 = vsub.f32 %v7643_v18, %v5602_v20  ;;  %v2099_v59 = vadd.f32 %v2098_v19, %v1996_v47  ;;  %v7646_v37 = vmax.f32 %v5378_v13, 0.0  ;;  %v7647_v57 = vmax.f32 %v5387_v22, 0.0  ;;  %v7651_v13 = vld [vmem:[#allocation62_spill] sm:$0xff] }
 0x378   :  { %v6195_v7 = vsub.f32 %v7644_v10, %v5605_v34  ;;  %v1999_v17 = vmul.f32 %v6176_v4, %v6176_v4  ;;  %v2000_v12 = vmul.f32 %v6181_v36, %v6181_v36  ;;  %v2048_v18 = vadd.f32 %v2047_v52, %v1997_v14 }
 0x379   :  { %v6204_v58 = vsub.f32 %v7646_v37, %v5602_v20  ;;  %v6209_v8 = vsub.f32 %v7647_v57, %v5605_v34  ;;  %v2100_v10 = vadd.f32 %v2099_v59, %v1998_v51  ;;  %v7650_v47 = vmax.f32 %v7649_v63, 0.0 }
 0x37a   :  { %7645 = vst [vmem:[#allocation48_spill] sm:$0xff] %v6195_v7  ;;  %v7652_v19 = vmax.f32 %v7651_v13, 0.0  ;;  %v7653_v22 = vmax.f32 %v5399_v1, 0.0  ;;  %v7655_v36 = vmax.f32 %v5416_v15, 0.0  ;;  %v2001_v51 = vmul.f32 %v6190_v26, %v6190_v26 }
 0x37b   :  { %7648 = vst [vmem:[#allocation49_spill] sm:$0xff] %v6209_v8  ;;  %v6218_v23 = vsub.f32 %v7650_v47, %v5602_v20  ;;  %v2002_v52 = vmul.f32 %v6195_v7, %v6195_v7  ;;  %v2049_v59 = vadd.f32 %v2048_v18, %v1999_v17  ;;  %v2101_v63 = vadd.f32 %v2100_v10, %v2000_v12 }
 0x37c   :  { %v6223_v37 = vsub.f32 %v7652_v19, %v5602_v20  ;;  %v6228_v57 = vsub.f32 %v7653_v22, %v5605_v34  ;;  %v6233_v14 = vsub.f32 %v7655_v36, %v5605_v34  ;;  %v2003_v20 = vmul.f32 %v6204_v58, %v6204_v58 }
 0x37d   :  { %v2004_v1 = vmul.f32 %v6209_v8, %v6209_v8  ;;  %v2050_v47 = vadd.f32 %v2049_v59, %v2001_v51  ;;  %v2102_v13 = vadd.f32 %v2101_v63, %v2002_v52  ;;  %v2005_v36 = vmul.f32 %v6218_v23, %v6218_v23 }
 0x37e   :  { %7654 = vst [vmem:[#allocation51_spill] sm:$0xff] %v6228_v57  ;;  %7656 = vst [vmem:[#allocation52_spill] sm:$0xff] %v6233_v14  ;;  %v2007_v15 = vmul.f32 %v6223_v37, %v6223_v37  ;;  %v2008_v34 = vmul.f32 %v6233_v14, %v6233_v14  ;;  %v2006_v17 = vmul.f32 %v6228_v57, %v6228_v57 }
 0x37f   :  { %v2051_v12 = vadd.f32 %v2050_v47, %v2003_v20  ;;  %v2103_v18 = vadd.f32 %v2102_v13, %v2004_v1 }
 0x380   :  { %v2053_v22 = vsel %vm456_vm0, %v2007_v15, 0.0  ;;  %v2105_v51 = vsel %vm456_vm0, %v2008_v34, 0.0 }
 0x381   :  { %v2052_v10 = vadd.f32 %v2051_v12, %v2005_v36  ;;  %v2104_v19 = vadd.f32 %v2103_v18, %v2006_v17  ;;  %v6256_v36 = vld [vmem:[%s6963_s4] sm:$0x3]  ;;  %v7660_v12 = vld [vmem:[#allocation65_spill] sm:$0xff] }
 0x383   :  { %v2054_v52 = vadd.f32 %v2053_v22, %v2052_v10  ;;  %v2106_v59 = vadd.f32 %v2105_v51, %v2104_v19  ;;  %v7661_v10 = vld [vmem:[#allocation67_spill] sm:$0xff]  ;;  %v7662_v22 = vld [vmem:[#allocation70_spill] sm:$0xff] }
 0x385   :  { %v2055_v63 = vrot.slane %v2054_v52, 4  ;;  %v2107_v8 = vrot.slane %v2106_v59, 4 }
 0x387   :  { %v2056_v7 = vadd.f32 %v2055_v63, %v2054_v52  ;;  %v2108_v14 = vadd.f32 %v2107_v8, %v2106_v59  ;;  %v7667_v8 = vld [vmem:[#allocation21_spill] sm:$0xff] }
 0x389   :  { %v2109_v42 = vrot.slane %v2108_v14, 2  ;;  %v2057_v48 = vrot.slane %v2056_v7, 2 }
 0x38b   :  { %v2110_v62 = vadd.f32 %v2109_v42, %v2108_v14  ;;  %v2058_v29 = vadd.f32 %v2057_v48, %v2056_v7  ;;  %v6261_v48 = vld [vmem:[%s6964_s5] sm:$0x3]  ;;  %v7659_v14 = vld [vmem:[#allocation127_spill] sm:$0xff] }
 0x38c   :  { %v7658_v7 = vld [vmem:[#allocation10_spill] sm:$0xff] }
 0x38d   :  { %v2111_v33 = vrot.slane %v2110_v62, 1  ;;  %v2059_v57 = vrot.slane %v2058_v29, 1 }
 0x38f   :  { %v2112_v20 = vadd.f32 %v2111_v33, %v2110_v62  ;;  %v2060_v1 = vadd.f32 %v2059_v57, %v2058_v29  ;;  %v7657_v33 = vld [vmem:[#allocation126_spill] sm:$0xff] }
 0x390   :  { %v6266_v62 = vrot.slane %v6256_v36, %v7657_v33  ;;  %v6271_v57 = vrot.slane %v6261_v48, %v7657_v33 }
 0x391   :  { %2177 = vmatprep.mubr.f32.mxu0 %v2112_v20 }
 0x392   :  { %2178 = vmatmul.mubr.f32.vlgmr.msra.gmra.mxu0 %v2060_v1 }
 0x452   :  { %v2179_v47 = vpop.f32.mrf.mxu0 }
 0x453   :  { %v2180_v13 = vadd.f32 1e-05, %v2179_v47 }
 0x454   :  { %v2181_v15 = vpop.f32.mrf.mxu0 }
 0x455   :  { %2639 = vrsqrt.f32 %v2180_v13  ;;  %v2182_v34 = vadd.f32 1e-05, %v2181_v15  ;;  %v7663_v15 = vld [vmem:[#allocation17_spill] sm:$0xff] }
 0x457   :  { %2641 = vrsqrt.f32 %v2182_v34 }
 0x462   :  { %v2640_v42 = vpop.eup %2639 }
 0x463   :  { %v2189_v29 = vrot.slane %v2640_v42, %v7657_v33  ;;  %v7664_v42 = vld [vmem:[#allocation18_spill] sm:$0xff] }
 0x464   :  { %v6321_v2 = vpop.eup %2641 }
 0x465   :  { %v2194_v17 = vmul.f32 %v2189_v29, %v7659_v14  ;;  %v2196_v18 = vmul.f32 %v2189_v29, %v7660_v12  ;;  %v2198_v19 = vmul.f32 %v2189_v29, %v7661_v10  ;;  %v2200_v51 = vmul.f32 %v2189_v29, %v7662_v22  ;;  %v7665_v12 = vld [vmem:[#allocation19_spill] sm:$0xff]  ;;  %v7666_v22 = vld [vmem:[#allocation20_spill] sm:$0xff] }
 0x466   :  { %v2202_v52 = vmul.f32 %v2189_v29, %v5658_v28  ;;  %v2204_v59 = vmul.f32 %v2189_v29, %v5672_v31  ;;  %v2206_v63 = vmul.f32 %v2189_v29, %v5686_v3  ;;  %v2208_v20 = vmul.f32 %v2189_v29, %v5700_v53 }
 0x467   :  { %v2210_v1 = vmul.f32 %v2189_v29, %v5714_v46  ;;  %v2212_v47 = vmul.f32 %v2189_v29, %v5728_v43  ;;  %v2214_v13 = vmul.f32 %v2189_v29, %v5742_v30  ;;  %v2216_v34 = vmul.f32 %v2189_v29, %v7663_v15 }
 0x468   :  { %v2218_v14 = vmul.f32 %v2189_v29, %v7664_v42  ;;  %v2220_v10 = vmul.f32 %v2189_v29, %v7665_v12  ;;  %v2222_v28 = vmul.f32 %v2189_v29, %v7666_v22  ;;  %v2224_v31 = vmul.f32 %v2189_v29, %v7667_v8 }
 0x469   :  { %v2226_v3 = vmul.f32 %v2189_v29, %v7668_v41  ;;  %v2228_v53 = vmul.f32 %v2189_v29, %v7669_v55  ;;  %v2230_v46 = vmul.f32 %v2189_v29, %v5854_v38  ;;  %v2232_v43 = vmul.f32 %v2189_v29, %v7670_v56 }
 0x46a   :  { %v2234_v30 = vmul.f32 %v2189_v29, %v7671_v11  ;;  %v2236_v15 = vmul.f32 %v2189_v29, %v7672_v27  ;;  %v2238_v42 = vmul.f32 %v2189_v29, %v5910_v61  ;;  %v2240_v12 = vmul.f32 %v2189_v29, %v7673_v54 }
 0x46b   :  { %v2242_v22 = vmul.f32 %v2189_v29, %v7674_v9  ;;  %v2244_v8 = vmul.f32 %v2189_v29, %v7675_v39  ;;  %v2246_v41 = vmul.f32 %v2189_v29, %v5966_v16  ;;  %v2248_v55 = vmul.f32 %v2189_v29, %v5980_v6 }
 0x46c   :  { %v2250_v38 = vmul.f32 %v2189_v29, %v5994_v5  ;;  %v2252_v56 = vmul.f32 %v2189_v29, %v6008_v32  ;;  %v2254_v11 = vmul.f32 %v2189_v29, %v6022_v40  ;;  %v2256_v27 = vmul.f32 %v2189_v29, %v6036_v60 }
 0x46d   :  { %v2258_v61 = vmul.f32 %v2189_v29, %v6050_v25  ;;  %v2260_v54 = vmul.f32 %v2189_v29, %v6064_v45  ;;  %v2262_v9 = vmul.f32 %v2189_v29, %v6078_v0  ;;  %v2264_v39 = vmul.f32 %v2189_v29, %v6092_v21 }
 0x46e   :  { %v2266_v16 = vmul.f32 %v2189_v29, %v6106_v24  ;;  %v2268_v6 = vmul.f32 %v2189_v29, %v6120_v44  ;;  %v2270_v5 = vmul.f32 %v2189_v29, %v6134_v49  ;;  %v2272_v32 = vmul.f32 %v2189_v29, %v6148_v35 }
 0x46f   :  { %v2274_v40 = vmul.f32 %v2189_v29, %v6162_v50  ;;  %v2276_v60 = vmul.f32 %v2189_v29, %v6176_v4  ;;  %v2278_v25 = vmul.f32 %v2189_v29, %v6190_v26  ;;  %v2280_v45 = vmul.f32 %v2189_v29, %v6204_v58 }
 0x470   :  { %v2282_v0 = vmul.f32 %v2189_v29, %v6218_v23  ;;  %v2284_v21 = vmul.f32 %v2189_v29, %v6223_v37  ;;  %v2298_v24 = vmul.f32 %v6266_v62, %v2194_v17  ;;  %v2300_v44 = vmul.f32 %v6266_v62, %v2196_v18 }
 0x471   :  { %v2302_v49 = vmul.f32 %v6266_v62, %v2198_v19  ;;  %v2304_v35 = vmul.f32 %v6266_v62, %v2200_v51  ;;  %v2306_v50 = vmul.f32 %v6266_v62, %v2202_v52  ;;  %v2308_v4 = vmul.f32 %v6266_v62, %v2204_v59 }
 0x472   :  { %v2310_v26 = vmul.f32 %v6266_v62, %v2206_v63  ;;  %v2312_v58 = vmul.f32 %v6266_v62, %v2208_v20  ;;  %v2314_v23 = vmul.f32 %v6266_v62, %v2210_v1  ;;  %v2316_v37 = vmul.f32 %v6266_v62, %v2212_v47 }
 0x473   :  { %v2318_v29 = vmul.f32 %v6266_v62, %v2214_v13  ;;  %v2320_v17 = vmul.f32 %v6266_v62, %v2216_v34  ;;  %v2322_v18 = vmul.f32 %v6266_v62, %v2218_v14  ;;  %v2324_v19 = vmul.f32 %v6266_v62, %v2220_v10 }
 0x474   :  { %v2326_v51 = vmul.f32 %v6266_v62, %v2222_v28  ;;  %v2328_v52 = vmul.f32 %v6266_v62, %v2224_v31  ;;  %v2330_v59 = vmul.f32 %v6266_v62, %v2226_v3  ;;  %v2332_v63 = vmul.f32 %v6266_v62, %v2228_v53 }
 0x475   :  { %v2334_v20 = vmul.f32 %v6266_v62, %v2230_v46  ;;  %v2336_v1 = vmul.f32 %v6266_v62, %v2232_v43  ;;  %v2338_v47 = vmul.f32 %v6266_v62, %v2234_v30  ;;  %v2340_v13 = vmul.f32 %v6266_v62, %v2236_v15 }
 0x476   :  { %v2342_v34 = vmul.f32 %v6266_v62, %v2238_v42  ;;  %v2344_v14 = vmul.f32 %v6266_v62, %v2240_v12  ;;  %v6346_v10 = vmul.f32 %v6266_v62, %v2242_v22  ;;  %v6349_v28 = vmul.f32 %v6266_v62, %v2244_v8 }
 0x477   :  { %v6352_v31 = vmul.f32 %v6266_v62, %v2246_v41  ;;  %v6355_v3 = vmul.f32 %v6266_v62, %v2248_v55  ;;  %v6358_v53 = vmul.f32 %v6266_v62, %v2250_v38  ;;  %v6361_v46 = vmul.f32 %v6266_v62, %v2252_v56 }
 0x478   :  { %v6364_v43 = vmul.f32 %v6266_v62, %v2254_v11  ;;  %v6367_v30 = vmul.f32 %v6266_v62, %v2256_v27  ;;  %v6370_v15 = vmul.f32 %v6266_v62, %v2258_v61  ;;  %v6373_v42 = vmul.f32 %v6266_v62, %v2260_v54 }
 0x479   :  { %v6376_v12 = vmul.f32 %v6266_v62, %v2262_v9  ;;  %v6379_v22 = vmul.f32 %v6266_v62, %v2264_v39  ;;  %v6382_v8 = vmul.f32 %v6266_v62, %v2266_v16  ;;  %v6385_v41 = vmul.f32 %v6266_v62, %v2268_v6 }
 0x47a   :  { %v6388_v55 = vmul.f32 %v6266_v62, %v2270_v5  ;;  %v6391_v38 = vmul.f32 %v6266_v62, %v2272_v32  ;;  %v6394_v56 = vmul.f32 %v6266_v62, %v2274_v40  ;;  %v6397_v11 = vmul.f32 %v6266_v62, %v2276_v60 }
 0x47b   :  { %v6400_v27 = vmul.f32 %v6266_v62, %v2278_v25  ;;  %v6403_v61 = vmul.f32 %v6266_v62, %v2280_v45  ;;  %v6406_v54 = vmul.f32 %v6266_v62, %v2282_v0  ;;  %v6409_v9 = vmul.f32 %v6266_v62, %v2284_v21 }
 0x47c   :  { %v2402_v39 = vadd.f32 %v6271_v57, %v2298_v24  ;;  %v2404_v16 = vadd.f32 %v6271_v57, %v2300_v44  ;;  %v2406_v6 = vadd.f32 %v6271_v57, %v2302_v49  ;;  %v2408_v5 = vadd.f32 %v6271_v57, %v2304_v35 }
 0x47d   :  { %v2410_v32 = vadd.f32 %v6271_v57, %v2306_v50  ;;  %v2412_v40 = vadd.f32 %v6271_v57, %v2308_v4  ;;  %v2414_v60 = vadd.f32 %v6271_v57, %v2310_v26  ;;  %v2416_v25 = vadd.f32 %v6271_v57, %v2312_v58 }
 0x47e   :  { %v2418_v45 = vadd.f32 %v6271_v57, %v2314_v23  ;;  %v2420_v62 = vadd.f32 %v6271_v57, %v2316_v37  ;;  %v2422_v0 = vadd.f32 %v6271_v57, %v2318_v29  ;;  %v2424_v21 = vadd.f32 %v6271_v57, %v2320_v17  ;;  %2494 = vst [vmem:[%s6965_s6] sm:$0xff] %v2402_v39 }
 0x47f   :  { %2496 = vst [vmem:[%s6965_s6 + $0x10] sm:$0xff] %v2404_v16  ;;  %2498 = vst [vmem:[%s6965_s6 + $0x20] sm:$0xff] %v2406_v6  ;;  %v2426_v24 = vadd.f32 %v6271_v57, %v2322_v18  ;;  %v2428_v44 = vadd.f32 %v6271_v57, %v2324_v19  ;;  %v2430_v49 = vadd.f32 %v6271_v57, %v2326_v51  ;;  %v7685_v16 = vld [vmem:[#allocation15_spill] sm:$0xff] }
 0x480   :  { %2500 = vst [vmem:[%s6965_s6 + $0x30] sm:$0xff] %v2408_v5  ;;  %v2432_v35 = vadd.f32 %v6271_v57, %v2328_v52  ;;  %2502 = vst [vmem:[%s6965_s6 + $0x40] sm:$0xff] %v2410_v32  ;;  %v2434_v50 = vadd.f32 %v6271_v57, %v2330_v59  ;;  %v2436_v4 = vadd.f32 %v6271_v57, %v2332_v63  ;;  %v7686_v5 = vld [vmem:[#allocation78_spill] sm:$0xff] }
 0x481   :  { %2504 = vst [vmem:[%s6965_s6 + $0x50] sm:$0xff] %v2412_v40  ;;  %2506 = vst [vmem:[%s6965_s6 + $0x60] sm:$0xff] %v2414_v60  ;;  %v2438_v26 = vadd.f32 %v6271_v57, %v2334_v20  ;;  %v2440_v58 = vadd.f32 %v6271_v57, %v2336_v1  ;;  %v2442_v23 = vadd.f32 %v6271_v57, %v2338_v47  ;;  %v7687_v40 = vld [vmem:[#allocation16_spill] sm:$0xff] }
 0x482   :  { %2508 = vst [vmem:[%s6965_s6 + $0x70] sm:$0xff] %v2416_v25  ;;  %2510 = vst [vmem:[%s6965_s6 + $0x80] sm:$0xff] %v2418_v45  ;;  %v2444_v37 = vadd.f32 %v6271_v57, %v2340_v13  ;;  %v2446_v29 = vadd.f32 %v6271_v57, %v2342_v34  ;;  %v2448_v17 = vadd.f32 %v6271_v57, %v2344_v14  ;;  %v7688_v25 = vld [vmem:[#allocation80_spill] sm:$0xff] }
 0x483   :  { %2512 = vst [vmem:[%s6965_s6 + $0x90] sm:$0xff] %v2420_v62  ;;  %2514 = vst [vmem:[%s6965_s6 + $0xa0] sm:$0xff] %v2422_v0  ;;  %v2450_v18 = vadd.f32 %v6271_v57, %v6346_v10  ;;  %v2452_v19 = vadd.f32 %v6271_v57, %v6349_v28  ;;  %v2454_v51 = vadd.f32 %v6271_v57, %v6352_v31  ;;  %v7689_v62 = vld [vmem:[#allocation83_spill] sm:$0xff] }
 0x484   :  { %2516 = vst [vmem:[%s6965_s6 + $0xb0] sm:$0xff] %v2424_v21  ;;  %2518 = vst [vmem:[%s6965_s6 + $0xc0] sm:$0xff] %v2426_v24  ;;  %v2456_v52 = vadd.f32 %v6271_v57, %v6355_v3  ;;  %v2458_v59 = vadd.f32 %v6271_v57, %v6358_v53  ;;  %v2460_v63 = vadd.f32 %v6271_v57, %v6361_v46  ;;  %v7690_v21 = vld [vmem:[#allocation85_spill] sm:$0xff] }
 0x485   :  { %2520 = vst [vmem:[%s6965_s6 + $0xd0] sm:$0xff] %v2428_v44  ;;  %2522 = vst [vmem:[%s6965_s6 + $0xe0] sm:$0xff] %v2430_v49  ;;  %v2462_v20 = vadd.f32 %v6271_v57, %v6364_v43  ;;  %v2464_v1 = vadd.f32 %v6271_v57, %v6367_v30  ;;  %v2466_v47 = vadd.f32 %v6271_v57, %v6370_v15  ;;  %v7691_v44 = vld [vmem:[#allocation86_spill] sm:$0xff] }
 0x486   :  { %2524 = vst [vmem:[%s6965_s6 + $0xf0] sm:$0xff] %v2432_v35  ;;  %2526 = vst [vmem:[%s6965_s6 + $0x100] sm:$0xff] %v2434_v50  ;;  %v2468_v13 = vadd.f32 %v6271_v57, %v6373_v42  ;;  %v2470_v34 = vadd.f32 %v6271_v57, %v6376_v12  ;;  %v2472_v14 = vadd.f32 %v6271_v57, %v6379_v22  ;;  %v7692_v35 = vld [vmem:[#allocation88_spill] sm:$0xff] }
 0x487   :  { %2528 = vst [vmem:[%s6965_s6 + $0x110] sm:$0xff] %v2436_v4  ;;  %2530 = vst [vmem:[%s6965_s6 + $0x120] sm:$0xff] %v2438_v26  ;;  %v2474_v10 = vadd.f32 %v6271_v57, %v6382_v8  ;;  %v2476_v28 = vadd.f32 %v6271_v57, %v6385_v41  ;;  %v2478_v31 = vadd.f32 %v6271_v57, %v6388_v55  ;;  %v7693_v4 = vld [vmem:[#allocation90_spill] sm:$0xff] }
 0x488   :  { %2532 = vst [vmem:[%s6965_s6 + $0x130] sm:$0xff] %v2440_v58  ;;  %2534 = vst [vmem:[%s6965_s6 + $0x140] sm:$0xff] %v2442_v23  ;;  %v2480_v3 = vadd.f32 %v6271_v57, %v6391_v38  ;;  %v2482_v53 = vadd.f32 %v6271_v57, %v6394_v56  ;;  %v2484_v46 = vadd.f32 %v6271_v57, %v6397_v11  ;;  %v7681_v38 = vld [vmem:[#allocation13_spill] sm:$0xff] }
 0x489   :  { %2536 = vst [vmem:[%s6965_s6 + $0x150] sm:$0xff] %v2444_v37  ;;  %2538 = vst [vmem:[%s6965_s6 + $0x160] sm:$0xff] %v2446_v29  ;;  %v2486_v43 = vadd.f32 %v6271_v57, %v6400_v27  ;;  %v2488_v30 = vadd.f32 %v6271_v57, %v6403_v61  ;;  %v2490_v15 = vadd.f32 %v6271_v57, %v6406_v54  ;;  %v7682_v11 = vld [vmem:[#allocation73_spill] sm:$0xff]  ;;  %v7683_v61 = vld [vmem:[#allocation14_spill] sm:$0xff] }
 0x48a   :  { %2540 = vst [vmem:[%s6965_s6 + $0x170] sm:$0xff] %v2448_v17  ;;  %2542 = vst [vmem:[%s6965_s6 + $0x180] sm:$0xff] %v2450_v18  ;;  %v2492_v42 = vadd.f32 %v6271_v57, %v6409_v9  ;;  %v2193_v12 = vrot.slane %v6321_v2, %v7657_v33  ;;  %v7676_v57 = vsub.s32 1, %v7658_v7  ;;  %v7678_v2 = vld [vmem:[#allocation11_spill] sm:$0xff]  ;;  %v7680_v7 = vld [vmem:[#allocation12_spill] sm:$0xff] }
 0x48b   :  { %2544 = vst [vmem:[%s6965_s6 + $0x190] sm:$0xff] %v2452_v19  ;;  %2546 = vst [vmem:[%s6965_s6 + $0x1a0] sm:$0xff] %v2454_v51  ;;  %v7684_v9 = vld [vmem:[#allocation75_spill] sm:$0xff]  ;;  %v7694_v58 = vld [vmem:[#allocation93_spill] sm:$0xff] }
 0x48c   :  { %2548 = vst [vmem:[%s6965_s6 + $0x1b0] sm:$0xff] %v2456_v52  ;;  %2550 = vst [vmem:[%s6965_s6 + $0x1c0] sm:$0xff] %v2458_v59  ;;  %v6604_v22 = vrot.slane %v6256_v36, %v7676_v57  ;;  %v7677_v8 = vmov %v7676_v57  ;;  %v2195_v36 = vmul.f32 %v2193_v12, %v7678_v2  ;;  %v2199_v55 = vmul.f32 %v2193_v12, %v7680_v7  ;;  %v7695_v37 = vld [vmem:[#allocation98_spill] sm:$0xff]  ;;  %v7696_v17 = vld [vmem:[#allocation24_spill] sm:$0xff] }
 0x48d   :  { %2552 = vst [vmem:[%s6965_s6 + $0x1d0] sm:$0xff] %v2460_v63  ;;  %2554 = vst [vmem:[%s6965_s6 + $0x1e0] sm:$0xff] %v2462_v20  ;;  %v6609_v41 = vrot.slane %v6261_v48, %v7677_v8  ;;  %v7679_v48 = vld [vmem:[#allocation129_spill] sm:$0xff]  ;;  %v2201_v56 = vmul.f32 %v2193_v12, %v7681_v38  ;;  %v2203_v27 = vmul.f32 %v2193_v12, %v7682_v11  ;;  %v7698_v52 = vld [vmem:[#allocation26_spill] sm:$0xff] }
 0x48e   :  { %2556 = vst [vmem:[%s6965_s6 + $0x1f0] sm:$0xff] %v2464_v1  ;;  %2558 = vst [vmem:[%s6965_s6 + $0x200] sm:$0xff] %v2466_v47  ;;  %v2197_v33 = vmul.f32 %v2193_v12, %v7679_v48  ;;  %v2205_v54 = vmul.f32 %v2193_v12, %v7683_v61  ;;  %v2207_v39 = vmul.f32 %v2193_v12, %v7684_v9  ;;  %v7697_v19 = vld [vmem:[#allocation25_spill] sm:$0xff]  ;;  %v7699_v63 = vld [vmem:[#allocation27_spill] sm:$0xff] }
 0x48f   :  { %2560 = vst [vmem:[%s6965_s6 + $0x210] sm:$0xff] %v2468_v13  ;;  %2562 = vst [vmem:[%s6965_s6 + $0x220] sm:$0xff] %v2470_v34  ;;  %v2209_v6 = vmul.f32 %v2193_v12, %v7685_v16  ;;  %v2211_v32 = vmul.f32 %v2193_v12, %v7686_v5  ;;  %v2213_v60 = vmul.f32 %v2193_v12, %v7687_v40  ;;  %v7700_v1 = vld [vmem:[#allocation109_spill] sm:$0xff]  ;;  %v7701_v13 = vld [vmem:[#allocation116_spill] sm:$0xff] }
 0x490   :  { %2564 = vst [vmem:[%s6965_s6 + $0x230] sm:$0xff] %v2472_v14  ;;  %2566 = vst [vmem:[%s6965_s6 + $0x240] sm:$0xff] %v2474_v10  ;;  %v2215_v45 = vmul.f32 %v2193_v12, %v7688_v25  ;;  %v2217_v0 = vmul.f32 %v2193_v12, %v7689_v62  ;;  %v2219_v24 = vmul.f32 %v2193_v12, %v7690_v21  ;;  %v7702_v14 = vld [vmem:[#allocation119_spill] sm:$0xff]  ;;  %v7708_v8 = vld [vmem:[#allocation33_spill] sm:$0xff] }
 0x491   :  { %2568 = vst [vmem:[%s6965_s6 + $0x250] sm:$0xff] %v2476_v28  ;;  %2570 = vst [vmem:[%s6965_s6 + $0x260] sm:$0xff] %v2478_v31  ;;  %v2221_v49 = vmul.f32 %v2193_v12, %v7691_v44  ;;  %v2223_v50 = vmul.f32 %v2193_v12, %v7692_v35  ;;  %v2225_v26 = vmul.f32 %v2193_v12, %v7693_v4  ;;  %v7703_v28 = vld [vmem:[#allocation122_spill] sm:$0xff]  ;;  %v7710_v38 = vld [vmem:[#allocation35_spill] sm:$0xff] }
 0x492   :  { %2572 = vst [vmem:[%s6965_s6 + $0x270] sm:$0xff] %v2480_v3  ;;  %2574 = vst [vmem:[%s6965_s6 + $0x280] sm:$0xff] %v2482_v53  ;;  %v2227_v23 = vmul.f32 %v2193_v12, %v7694_v58  ;;  %v2229_v29 = vmul.f32 %v2193_v12, %v7695_v37  ;;  %v2231_v18 = vmul.f32 %v2193_v12, %v7696_v17  ;;  %v7704_v3 = vld [vmem:[#allocation31_spill] sm:$0xff]  ;;  %v7709_v48 = vld [vmem:[#allocation34_spill] sm:$0xff] }
 0x493   :  { %2576 = vst [vmem:[%s6965_s6 + $0x290] sm:$0xff] %v2484_v46  ;;  %2578 = vst [vmem:[%s6965_s6 + $0x2a0] sm:$0xff] %v2486_v43  ;;  %v2233_v51 = vmul.f32 %v2193_v12, %v7697_v19  ;;  %v2235_v59 = vmul.f32 %v2193_v12, %v7698_v52  ;;  %v2237_v20 = vmul.f32 %v2193_v12, %v7699_v63  ;;  %v7705_v46 = vld [vmem:[#allocation125_spill] sm:$0xff]  ;;  %v7711_v61 = vld [vmem:[#allocation36_spill] sm:$0xff] }
 0x494   :  { %2580 = vst [vmem:[%s6965_s6 + $0x2b0] sm:$0xff] %v2488_v30  ;;  %2582 = vst [vmem:[%s6965_s6 + $0x2c0] sm:$0xff] %v2490_v15  ;;  %v2239_v47 = vmul.f32 %v2193_v12, %v7700_v1  ;;  %v2241_v34 = vmul.f32 %v2193_v12, %v7701_v13  ;;  %v2243_v10 = vmul.f32 %v2193_v12, %v7702_v14  ;;  %v7706_v30 = vld [vmem:[#allocation32_spill] sm:$0xff]  ;;  %v7712_v16 = vld [vmem:[#allocation37_spill] sm:$0xff] }
 0x495   :  { %2584 = vst [vmem:[%s6965_s6 + $0x2d0] sm:$0x1f] %v2492_v42  ;;  %v2245_v31 = vmul.f32 %v2193_v12, %v7703_v28  ;;  %v2247_v53 = vmul.f32 %v2193_v12, %v7704_v3  ;;  %v2249_v43 = vmul.f32 %v2193_v12, %v7705_v46  ;;  %v2251_v15 = vmul.f32 %v2193_v12, %v7706_v30  ;;  %v7707_v42 = vld [vmem:[#allocation128_spill] sm:$0xff]  ;;  %v7713_v40 = vld [vmem:[#allocation38_spill] sm:$0xff]  ;;  %v7714_v62 = vld [vmem:[#allocation39_spill] sm:$0xff] }
 0x496   :  { %v2253_v57 = vmul.f32 %v2193_v12, %v7707_v42  ;;  %v2255_v2 = vmul.f32 %v2193_v12, %v7708_v8  ;;  %v2257_v7 = vmul.f32 %v2193_v12, %v7709_v48  ;;  %v2259_v11 = vmul.f32 %v2193_v12, %v7710_v38  ;;  %v7715_v44 = vld [vmem:[#allocation40_spill] sm:$0xff]  ;;  %v7716_v4 = vld [vmem:[#allocation42_spill] sm:$0xff]  ;;  %v7717_v37 = vld [vmem:[#allocation43_spill] sm:$0xff] }
 0x497   :  { %v2261_v9 = vmul.f32 %v2193_v12, %v7711_v61  ;;  %v2263_v5 = vmul.f32 %v2193_v12, %v7712_v16  ;;  %v2265_v25 = vmul.f32 %v2193_v12, %v7713_v40  ;;  %v2267_v21 = vmul.f32 %v2193_v12, %v7714_v62  ;;  %v7718_v19 = vld [vmem:[#allocation45_spill] sm:$0xff]  ;;  %v7719_v63 = vld [vmem:[#allocation46_spill] sm:$0xff]  ;;  %v7720_v13 = vld [vmem:[#allocation48_spill] sm:$0xff] }
 0x498   :  { %v2269_v35 = vmul.f32 %v2193_v12, %v7715_v44  ;;  %v2271_v58 = vmul.f32 %v2193_v12, %v7716_v4  ;;  %v2273_v17 = vmul.f32 %v2193_v12, %v7717_v37  ;;  %v2275_v52 = vmul.f32 %v2193_v12, %v7718_v19  ;;  %v7721_v28 = vld [vmem:[#allocation49_spill] sm:$0xff]  ;;  %v7722_v46 = vld [vmem:[#allocation51_spill] sm:$0xff]  ;;  %v7723_v42 = vld [vmem:[#allocation52_spill] sm:$0xff] }
 0x499   :  { %v2277_v1 = vmul.f32 %v2193_v12, %v7719_v63  ;;  %v2279_v14 = vmul.f32 %v2193_v12, %v7720_v13  ;;  %v2281_v3 = vmul.f32 %v2193_v12, %v7721_v28  ;;  %v2283_v30 = vmul.f32 %v2193_v12, %v7722_v46 }
 0x49a   :  { %v2285_v8 = vmul.f32 %v2193_v12, %v7723_v42  ;;  %v2299_v48 = vmul.f32 %v6604_v22, %v2195_v36  ;;  %v2301_v38 = vmul.f32 %v6604_v22, %v2197_v33  ;;  %v2303_v61 = vmul.f32 %v6604_v22, %v2199_v55 }
 0x49b   :  { %v2305_v16 = vmul.f32 %v6604_v22, %v2201_v56  ;;  %v2307_v40 = vmul.f32 %v6604_v22, %v2203_v27  ;;  %v2309_v62 = vmul.f32 %v6604_v22, %v2205_v54  ;;  %v2311_v44 = vmul.f32 %v6604_v22, %v2207_v39 }
 0x49c   :  { %v2313_v4 = vmul.f32 %v6604_v22, %v2209_v6  ;;  %v2315_v37 = vmul.f32 %v6604_v22, %v2211_v32  ;;  %v2317_v12 = vmul.f32 %v6604_v22, %v2213_v60  ;;  %v2319_v36 = vmul.f32 %v6604_v22, %v2215_v45 }
 0x49d   :  { %v2321_v33 = vmul.f32 %v6604_v22, %v2217_v0  ;;  %v2323_v55 = vmul.f32 %v6604_v22, %v2219_v24  ;;  %v2325_v56 = vmul.f32 %v6604_v22, %v2221_v49  ;;  %v2327_v27 = vmul.f32 %v6604_v22, %v2223_v50 }
 0x49e   :  { %v2329_v54 = vmul.f32 %v6604_v22, %v2225_v26  ;;  %v2331_v39 = vmul.f32 %v6604_v22, %v2227_v23  ;;  %v2333_v6 = vmul.f32 %v6604_v22, %v2229_v29  ;;  %v2335_v32 = vmul.f32 %v6604_v22, %v2231_v18 }
 0x49f   :  { %v2337_v60 = vmul.f32 %v6604_v22, %v2233_v51  ;;  %v2339_v45 = vmul.f32 %v6604_v22, %v2235_v59  ;;  %v2341_v0 = vmul.f32 %v6604_v22, %v2237_v20  ;;  %v2343_v24 = vmul.f32 %v6604_v22, %v2239_v47 }
 0x4a0   :  { %v2345_v49 = vmul.f32 %v6604_v22, %v2241_v34  ;;  %v2347_v50 = vmul.f32 %v6604_v22, %v2243_v10  ;;  %v2349_v26 = vmul.f32 %v6604_v22, %v2245_v31  ;;  %v2351_v23 = vmul.f32 %v6604_v22, %v2247_v53 }
 0x4a1   :  { %v2353_v29 = vmul.f32 %v6604_v22, %v2249_v43  ;;  %v6704_v18 = vmul.f32 %v6604_v22, %v2251_v15  ;;  %v6707_v51 = vmul.f32 %v6604_v22, %v2253_v57  ;;  %v6710_v59 = vmul.f32 %v6604_v22, %v2255_v2 }
 0x4a2   :  { %v6713_v20 = vmul.f32 %v6604_v22, %v2257_v7  ;;  %v6716_v47 = vmul.f32 %v6604_v22, %v2259_v11  ;;  %v6719_v34 = vmul.f32 %v6604_v22, %v2261_v9  ;;  %v6722_v10 = vmul.f32 %v6604_v22, %v2263_v5 }
 0x4a3   :  { %v6725_v31 = vmul.f32 %v6604_v22, %v2265_v25  ;;  %v6728_v53 = vmul.f32 %v6604_v22, %v2267_v21  ;;  %v6731_v43 = vmul.f32 %v6604_v22, %v2269_v35  ;;  %v6734_v15 = vmul.f32 %v6604_v22, %v2271_v58 }
 0x4a4   :  { %v6737_v57 = vmul.f32 %v6604_v22, %v2273_v17  ;;  %v6740_v2 = vmul.f32 %v6604_v22, %v2275_v52  ;;  %v6743_v7 = vmul.f32 %v6604_v22, %v2277_v1  ;;  %v6746_v11 = vmul.f32 %v6604_v22, %v2279_v14 }
 0x4a5   :  { %v6749_v9 = vmul.f32 %v6604_v22, %v2281_v3  ;;  %v6752_v5 = vmul.f32 %v6604_v22, %v2283_v30  ;;  %v6755_v25 = vmul.f32 %v6604_v22, %v2285_v8  ;;  %v2403_v21 = vadd.f32 %v6609_v41, %v2299_v48 }
 0x4a6   :  { %v2405_v35 = vadd.f32 %v6609_v41, %v2301_v38  ;;  %v2407_v58 = vadd.f32 %v6609_v41, %v2303_v61  ;;  %v2409_v17 = vadd.f32 %v6609_v41, %v2305_v16  ;;  %v2411_v19 = vadd.f32 %v6609_v41, %v2307_v40 }
 0x4a7   :  { %v2413_v52 = vadd.f32 %v6609_v41, %v2309_v62  ;;  %v2415_v63 = vadd.f32 %v6609_v41, %v2311_v44  ;;  %v2417_v1 = vadd.f32 %v6609_v41, %v2313_v4  ;;  %v2419_v13 = vadd.f32 %v6609_v41, %v2315_v37  ;;  %2495 = vst [vmem:[%s6965_s6 + $0x8] sm:$0xff] %v2403_v21 }
 0x4a8   :  { %v2421_v22 = vadd.f32 %v6609_v41, %v2317_v12  ;;  %v2423_v14 = vadd.f32 %v6609_v41, %v2319_v36  ;;  %v2425_v28 = vadd.f32 %v6609_v41, %v2321_v33  ;;  %2497 = vst [vmem:[%s6965_s6 + $0x18] sm:$0xff] %v2405_v35  ;;  %2499 = vst [vmem:[%s6965_s6 + $0x28] sm:$0xff] %v2407_v58 }
 0x4a9   :  { %2501 = vst [vmem:[%s6965_s6 + $0x38] sm:$0xff] %v2409_v17  ;;  %v2427_v3 = vadd.f32 %v6609_v41, %v2323_v55  ;;  %v2429_v46 = vadd.f32 %v6609_v41, %v2325_v56  ;;  %v2431_v30 = vadd.f32 %v6609_v41, %v2327_v27  ;;  %v2433_v42 = vadd.f32 %v6609_v41, %v2329_v54 }
 0x4aa   :  { %2503 = vst [vmem:[%s6965_s6 + $0x48] sm:$0xff] %v2411_v19  ;;  %2505 = vst [vmem:[%s6965_s6 + $0x58] sm:$0xff] %v2413_v52  ;;  %v2435_v8 = vadd.f32 %v6609_v41, %v2331_v39  ;;  %v2437_v48 = vadd.f32 %v6609_v41, %v2333_v6  ;;  %v2439_v38 = vadd.f32 %v6609_v41, %v2335_v32 }
 0x4ab   :  { %2507 = vst [vmem:[%s6965_s6 + $0x68] sm:$0xff] %v2415_v63  ;;  %2509 = vst [vmem:[%s6965_s6 + $0x78] sm:$0xff] %v2417_v1  ;;  %v2441_v61 = vadd.f32 %v6609_v41, %v2337_v60  ;;  %v2443_v16 = vadd.f32 %v6609_v41, %v2339_v45  ;;  %v2445_v40 = vadd.f32 %v6609_v41, %v2341_v0 }
 0x4ac   :  { %2511 = vst [vmem:[%s6965_s6 + $0x88] sm:$0xff] %v2419_v13  ;;  %2513 = vst [vmem:[%s6965_s6 + $0x98] sm:$0xff] %v2421_v22  ;;  %v2447_v62 = vadd.f32 %v6609_v41, %v2343_v24  ;;  %v2449_v44 = vadd.f32 %v6609_v41, %v2345_v49  ;;  %v2451_v4 = vadd.f32 %v6609_v41, %v2347_v50 }
 0x4ad   :  { %2515 = vst [vmem:[%s6965_s6 + $0xa8] sm:$0xff] %v2423_v14  ;;  %2517 = vst [vmem:[%s6965_s6 + $0xb8] sm:$0xff] %v2425_v28  ;;  %v2453_v37 = vadd.f32 %v6609_v41, %v2349_v26  ;;  %v2455_v12 = vadd.f32 %v6609_v41, %v2351_v23  ;;  %v2457_v36 = vadd.f32 %v6609_v41, %v2353_v29 }
 0x4ae   :  { %2519 = vst [vmem:[%s6965_s6 + $0xc8] sm:$0xff] %v2427_v3  ;;  %2521 = vst [vmem:[%s6965_s6 + $0xd8] sm:$0xff] %v2429_v46  ;;  %v2459_v33 = vadd.f32 %v6609_v41, %v6704_v18  ;;  %v2461_v55 = vadd.f32 %v6609_v41, %v6707_v51  ;;  %v2463_v56 = vadd.f32 %v6609_v41, %v6710_v59 }
 0x4af   :  { %2523 = vst [vmem:[%s6965_s6 + $0xe8] sm:$0xff] %v2431_v30  ;;  %2525 = vst [vmem:[%s6965_s6 + $0xf8] sm:$0xff] %v2433_v42  ;;  %v2465_v27 = vadd.f32 %v6609_v41, %v6713_v20  ;;  %v2467_v54 = vadd.f32 %v6609_v41, %v6716_v47  ;;  %v2469_v39 = vadd.f32 %v6609_v41, %v6719_v34 }
 0x4b0   :  { %2527 = vst [vmem:[%s6965_s6 + $0x108] sm:$0xff] %v2435_v8  ;;  %2529 = vst [vmem:[%s6965_s6 + $0x118] sm:$0xff] %v2437_v48  ;;  %v2471_v6 = vadd.f32 %v6609_v41, %v6722_v10  ;;  %v2473_v32 = vadd.f32 %v6609_v41, %v6725_v31  ;;  %v2475_v60 = vadd.f32 %v6609_v41, %v6728_v53 }
 0x4b1   :  { %2531 = vst [vmem:[%s6965_s6 + $0x128] sm:$0xff] %v2439_v38  ;;  %2533 = vst [vmem:[%s6965_s6 + $0x138] sm:$0xff] %v2441_v61  ;;  %v2477_v45 = vadd.f32 %v6609_v41, %v6731_v43  ;;  %v2479_v0 = vadd.f32 %v6609_v41, %v6734_v15  ;;  %v2481_v24 = vadd.f32 %v6609_v41, %v6737_v57 }
 0x4b2   :  { %2535 = vst [vmem:[%s6965_s6 + $0x148] sm:$0xff] %v2443_v16  ;;  %2537 = vst [vmem:[%s6965_s6 + $0x158] sm:$0xff] %v2445_v40  ;;  %v2483_v49 = vadd.f32 %v6609_v41, %v6740_v2  ;;  %v2485_v50 = vadd.f32 %v6609_v41, %v6743_v7  ;;  %v2487_v26 = vadd.f32 %v6609_v41, %v6746_v11 }
 0x4b3   :  { %2539 = vst [vmem:[%s6965_s6 + $0x168] sm:$0xff] %v2447_v62  ;;  %2541 = vst [vmem:[%s6965_s6 + $0x178] sm:$0xff] %v2449_v44  ;;  %v2489_v23 = vadd.f32 %v6609_v41, %v6749_v9  ;;  %v2491_v29 = vadd.f32 %v6609_v41, %v6752_v5  ;;  %v2493_v18 = vadd.f32 %v6609_v41, %v6755_v25 }
 0x4b4   :  { %2543 = vst [vmem:[%s6965_s6 + $0x188] sm:$0xff] %v2451_v4  ;;  %2545 = vst [vmem:[%s6965_s6 + $0x198] sm:$0xff] %v2453_v37 }
 0x4b5   :  { %2547 = vst [vmem:[%s6965_s6 + $0x1a8] sm:$0xff] %v2455_v12  ;;  %2549 = vst [vmem:[%s6965_s6 + $0x1b8] sm:$0xff] %v2457_v36 }
 0x4b6   :  { %2551 = vst [vmem:[%s6965_s6 + $0x1c8] sm:$0xff] %v2459_v33  ;;  %2553 = vst [vmem:[%s6965_s6 + $0x1d8] sm:$0xff] %v2461_v55 }
 0x4b7   :  { %2555 = vst [vmem:[%s6965_s6 + $0x1e8] sm:$0xff] %v2463_v56  ;;  %2557 = vst [vmem:[%s6965_s6 + $0x1f8] sm:$0xff] %v2465_v27 }
 0x4b8   :  { %2559 = vst [vmem:[%s6965_s6 + $0x208] sm:$0xff] %v2467_v54  ;;  %2561 = vst [vmem:[%s6965_s6 + $0x218] sm:$0xff] %v2469_v39 }
 0x4b9   :  { %2563 = vst [vmem:[%s6965_s6 + $0x228] sm:$0xff] %v2471_v6  ;;  %2565 = vst [vmem:[%s6965_s6 + $0x238] sm:$0xff] %v2473_v32 }
 0x4ba   :  { %2567 = vst [vmem:[%s6965_s6 + $0x248] sm:$0xff] %v2475_v60  ;;  %2569 = vst [vmem:[%s6965_s6 + $0x258] sm:$0xff] %v2477_v45 }
 0x4bb   :  { %2571 = vst [vmem:[%s6965_s6 + $0x268] sm:$0xff] %v2479_v0  ;;  %2573 = vst [vmem:[%s6965_s6 + $0x278] sm:$0xff] %v2481_v24 }
 0x4bc   :  { %2575 = vst [vmem:[%s6965_s6 + $0x288] sm:$0xff] %v2483_v49  ;;  %2577 = vst [vmem:[%s6965_s6 + $0x298] sm:$0xff] %v2485_v50 }
 0x4bd   :  { %2579 = vst [vmem:[%s6965_s6 + $0x2a8] sm:$0xff] %v2487_v26  ;;  %2581 = vst [vmem:[%s6965_s6 + $0x2b8] sm:$0xff] %v2489_v23 }
 0x4be   :  { %2583 = vst [vmem:[%s6965_s6 + $0x2c8] sm:$0xff] %v2491_v29  ;;  %2585 = vst [vmem:[%s6965_s6 + $0x2d8] sm:$0x1f] %v2493_v18 }

</bundles_post_ra>
